<compile_context>
chip_gen: v7x
topology: tpu7x:2x2x1
jax: 0.10.0
libtpu: 0.0.40
codegen_flags: <defaults>
</compile_context>

<pallas_src>
import jax
import jax.numpy as jnp
import numpy as np
from jax.experimental import pallas as pl
from jax.experimental.pallas import tpu as pltpu


# ----------------------------- fused projection + attention kernel ------------------

def _make_fused_stem_kernel(TH, W, Cout, ks, pad, THp, Wp, Cin):
    ks2 = ks * ks
    n_proj = (2 + ks2) * Cout

    def kernel(x_ref, w_ref, o_ref):
        # x_ref: (1, 1, THp, Wp, Cin)  haloed padded-input row tile (NHWC)
        # w_ref: (Cin, (2 + ks*ks) * Cout)  concatenated [Wq | Wk | emb-folded Wv]
        # o_ref: (1, TH, W, Cout)
        xt = x_ref[0, 0]                                           # (THp, Wp, Cin)

        # One MXU call for every projection (q, k, and the emb-mixed value for each of the
        # ks*ks window offsets).  Wp % 8 == 0 makes these reshapes layout-trivial.
        proj = jnp.dot(
            xt.reshape(THp * Wp, Cin),
            w_ref[...],
            preferred_element_type=jnp.float32,
            precision=jax.lax.Precision.HIGHEST,
        ).reshape(THp, Wp, n_proj)

        q = proj[pad:pad + TH, pad:pad + W, 0:Cout]                # (TH, W, Cout)
        k = proj[:, :, Cout:2 * Cout]                              # (THp, Wp, Cout)
        v = proj[:, :, 2 * Cout:]                                  # (THp, Wp, ks2*Cout)

        # ---- pass 1: running max of q*k over the ks*ks window offsets -------------
        m_run = jnp.full((TH, W, Cout), -jnp.inf, dtype=jnp.float32)
        for a in range(ks):
            for b in range(ks):
                m_run = jnp.maximum(m_run, q * k[a:a + TH, b:b + W, :])

        # ---- pass 2: accumulate softmax numerator / denominator -------------------
        # only (TH, W, Cout)-sized running buffers; no (ks*ks, ...) temporaries.
        l_run = jnp.zeros((TH, W, Cout), dtype=jnp.float32)
        acc = jnp.zeros((TH, W, Cout), dtype=jnp.float32)
        for a in range(ks):
            for b in range(ks):
                idx = a * ks + b
                p = jnp.exp(q * k[a:a + TH, b:b + W, :] - m_run)
                l_run = l_run + p
                # value already emb-mixed per offset by the folded weights
                acc = acc + p * v[a:a + TH, b:b + W, idx * Cout:(idx + 1) * Cout]

        # softmax denominator on the EUP (approx reciprocal) + one Newton step for f32 acc.
        inv = pl.reciprocal(l_run, approx=True)
        inv = inv * (2.0 - l_run * inv)
        o_ref[0, :, :, :] = acc * inv

    return kernel


# ----------------------------- parameter glue ---------------------------------------

def _emb_softmax(params, ks, m):
    hi = jax.lax.Precision.HIGHEST
    emb_logit_a = jnp.einsum("mc,ca->ma", params["emb_mix"], params["emb_a"], precision=hi)
    emb_logit_b = jnp.einsum("mc,cb->mb", params["emb_mix"], params["emb_b"], precision=hi)
    emb = emb_logit_a[:, :, None] + emb_logit_b[:, None, :]          # (m, ks, ks)
    return jax.nn.softmax(emb.reshape(m, ks * ks), axis=0)           # (m, ks*ks)


def _pick_row_tile(H, max_rows=32):
    cands = [t for t in range(1, min(H, max_rows) + 1) if H % t == 0]
    multi = [t for t in cands if H // t >= 2]  # >=2 row tiles keeps both v7x cores busy at B=1
    return max(multi) if multi else max(cands)


def init_params(key, in_channels, out_channels, kernel_size, groups, m):
    k0, k1, k2, k3, k4, k5 = jax.random.split(key, 6)
    fan_out = out_channels  # kaiming_normal_ fan_out for a 1x1 conv
    std = (2.0 / fan_out) ** 0.5
    wq = jax.random.normal(k0, (out_channels, in_channels, 1, 1), jnp.float32) * std
    wk = jax.random.normal(k1, (out_channels, in_channels, 1, 1), jnp.float32) * std
    wv = jax.random.normal(k2, (m, out_channels, in_channels, 1, 1), jnp.float32) * std
    emb_a = jax.random.normal(k3, (out_channels // groups, kernel_size), jnp.float32)
    emb_b = jax.random.normal(k4, (out_channels // groups, kernel_size), jnp.float32)
    emb_mix = jax.random.normal(k5, (m, out_channels // groups), jnp.float32)
    return dict(wq=wq, wk=wk, wv=wv, emb_a=emb_a, emb_b=emb_b, emb_mix=emb_mix)


# ----------------------------- forward (wrapper around the fused kernel) ------------

def attention_stem_forward(x_nchw, params, *, kernel_size, stride=1, padding=0,
                           groups=1, m=4, row_tile=None):
    # TODO(synk): stride > 1 (strided unfold) not implemented in the fused kernel.
    assert stride == 1
    B, Cin, H, W = x_nchw.shape
    Cout = params["wq"].shape[0]
    ks = kernel_size
    ks2 = ks * ks
    assert 2 * padding >= ks - 1, "every k x k window must live inside the padded map"
    assert padding <= ks - 1, "the ks-1 row halo must also cover the query row"

    TH = _pick_row_tile(H) if row_tile is None else row_tile
    assert H % TH == 0
    nH = H // TH
    THp = TH + ks - 1                                                 # haloed rows per tile
    hi = jax.lax.Precision.HIGHEST

    # ---- NHWC, width padded up to a sublane multiple (free in-kernel reshapes) ----
    x = jnp.transpose(x_nchw, (0, 2, 3, 1)).astype(jnp.float32)       # (B, H, W, Cin)
    Wp = ((W + 2 * padding + 7) // 8) * 8
    xp = jnp.pad(x, ((0, 0), (padding, padding), (padding, Wp - W - padding), (0, 0)))
    # haloed row tiles: tile i holds padded rows [i*TH, i*TH + THp); only (ks-1)*nH rows of
    # the small Cin-channel input are duplicated -> keeps BlockSpec auto-pipelining.
    xp_tiles = jnp.stack([xp[:, i * TH:i * TH + THp] for i in range(nH)], axis=1)
    # (B, nH, THp, Wp, Cin)

    # ---- weights: q | k | emb-folded v concatenated into one (Cin, N) matrix ----
    wq = params["wq"].reshape(Cout, Cin).T                            # (Cin, Cout)
    wk = params["wk"].reshape(Cout, Cin).T                            # (Cin, Cout)
    wv = params["wv"].reshape(m, Cout, Cin)                           # (m, Cout, Cin)
    emb = _emb_softmax(params, ks, m)                                 # (m, ks*ks)
    # W_fold[c, idx*Cout + o] = sum_m emb[m, idx] * Wv_m[o, c]  -> m-sum leaves the kernel
    wv_fold = jnp.einsum("mk,moc->cko", emb, wv, precision=hi).reshape(Cin, ks2 * Cout)
    w_cat = jnp.concatenate([wq, wk, wv_fold], axis=1)                # (Cin, (2+ks2)*Cout)
    n_proj = (2 + ks2) * Cout

    kern = _make_fused_stem_kernel(TH, W, Cout, ks, padding, THp, Wp, Cin)
    out_nhwc = pl.pallas_call(
        kern,
        out_shape=jax.ShapeDtypeStruct((B, H, W, Cout), jnp.float32),
        grid=(B, nH),
        in_specs=[
            pl.BlockSpec((1, 1, THp, Wp, Cin), lambda b, i: (b, i, 0, 0, 0)),
            pl.BlockSpec((Cin, n_proj), lambda b, i: (0, 0)),
        ],
        out_specs=pl.BlockSpec((1, TH, W, Cout), lambda b, i: (b, i, 0, 0)),
        compiler_params=pltpu.CompilerParams(
            dimension_semantics=("parallel", "parallel"),
            vmem_limit_bytes=32 * 1024 * 1024,
        ),
    )(xp_tiles, w_cat)

    return jnp.transpose(out_nhwc, (0, 3, 1, 2))                      # (B, Cout, H, W)


# ----------------------------- pure-JAX reference (mirrors the torch code) ----------

def reference_forward(x_nchw, params, *, kernel_size, stride=1, padding=0,
                      groups=1, m=4):
    hi = jax.lax.Precision.HIGHEST
    B, Cin, H, W = x_nchw.shape
    Cout = params["wq"].shape[0]
    ks = kernel_size
    xp = jnp.pad(x_nchw, ((0, 0), (0, 0), (padding, padding), (padding, padding)))

    def conv1x1(inp, w):
        return jnp.einsum("bchw,oc->bohw", inp, w.reshape(Cout, Cin), precision=hi)

    q_out = conv1x1(x_nchw, params["wq"])                                   # (B,Cout,H,W)
    k_out = conv1x1(xp, params["wk"])                                       # (B,Cout,Hp,Wp)
    v_out = jnp.stack([conv1x1(xp, params["wv"][i]) for i in range(m)], 0)  # (m,B,Cout,Hp,Wp)

    k_unf = jnp.stack(
        [jnp.stack([k_out[:, :, a:a + H, b:b + W] for b in range(ks)], axis=-1)
         for a in range(ks)], axis=-2)                                       # (B,Cout,H,W,ks,ks)
    v_unf = jnp.stack(
        [jnp.stack([v_out[:, :, :, a:a + H, b:b + W] for b in range(ks)], axis=-1)
         for a in range(ks)], axis=-2)                                       # (m,B,Cout,H,W,ks,ks)

    emb = _emb_softmax(params, ks, m).reshape(m, 1, 1, 1, 1, ks, ks)

    v_mix = jnp.sum(emb * v_unf, axis=0).reshape(B, Cout, H, W, ks * ks)
    k_flat = k_unf.reshape(B, Cout, H, W, ks * ks)
    scores = q_out[..., None] * k_flat
    attn = jax.nn.softmax(scores, axis=-1)
    return jnp.sum(attn * v_mix, axis=-1)                                    # (B,Cout,H,W)


# ----------------------------- main --------------------------------------------------

if __name__ == "__main__":
    B, Cin, H, W = 2, 4, 16, 16
    Cout, ks, stride, padding, groups, m = 8, 3, 1, 1, 2, 4

    key = jax.random.PRNGKey(0)
    kx, kp = jax.random.split(key)
    x = jax.random.normal(kx, (B, Cin, H, W), jnp.float32)
    params = init_params(kp, Cin, Cout, ks, groups, m)

    out = attention_stem_forward(x, params, kernel_size=ks, stride=stride,
                                 padding=padding, groups=groups, m=m)
    out = jax.block_until_ready(out)

    ref = reference_forward(x, params, kernel_size=ks, stride=stride,
                            padding=padding, groups=groups, m=m)
    ref = jax.block_until_ready(ref)

    assert out.shape == (B, Cout, H, W), out.shape
    np.testing.assert_allclose(np.asarray(out), np.asarray(ref), rtol=1e-4, atol=1e-4)
    print("KERNEL_OK")
</pallas_src>

<mosaic_0001>
module attributes {stable_mosaic.version = 11 : i64} {
  func.func @kernel(%arg0: i32, %arg1: i32, %arg2: memref<1x1x10x24x4xf32, #tpu.memory_space<vmem>>, %arg3: memref<4x88xf32, #tpu.memory_space<vmem>>, %arg4: memref<1x8x16x8xf32, #tpu.memory_space<vmem>>) attributes {dimension_semantics = [#tpu.dimension_semantics<parallel>, #tpu.dimension_semantics<parallel>], iteration_bounds = array<i64: 2, 2>, scalar_prefetch = 0 : i64, scratch_operands = 0 : i64, tpu.core_type = #tpu.core_type<tc>, window_params = [{transform_indices = @transform_0, window_bounds = array<i64: 1, 1, 10, 24, 4>}, {pipeline_mode = #tpu.pipeline_mode<synchronous>, transform_indices = @transform_1, window_bounds = array<i64: 4, 88>}, {transform_indices = @transform_2, window_bounds = array<i64: 1, 8, 16, 8>}]} {
    %c0 = arith.constant 0 : index
    %c0_0 = arith.constant 0 : index
    %c0_1 = arith.constant 0 : index
    %c0_2 = arith.constant 0 : index
    %c0_3 = arith.constant 0 : index
    %0 = vector.load %arg2[%c0, %c0_0, %c0_1, %c0_2, %c0_3] : memref<1x1x10x24x4xf32, #tpu.memory_space<vmem>>, vector<1x1x10x24x4xf32>
    %1 = vector.shape_cast %0 : vector<1x1x10x24x4xf32> to vector<10x24x4xf32>
    %2 = vector.shape_cast %1 : vector<10x24x4xf32> to vector<240x4xf32>
    %c0_4 = arith.constant 0 : index
    %c0_5 = arith.constant 0 : index
    %3 = vector.load %arg3[%c0_4, %c0_5] : memref<4x88xf32, #tpu.memory_space<vmem>>, vector<4x88xf32>
    %cst = arith.constant dense<0.000000e+00> : vector<240x88xf32>
    %4 = tpu.matmul %2, %3, %cst {dimension_numbers = #tpu.dot_dimension_numbers<[1], [0], [0], [1], [0, 0, 1, 1], [], []>, precision = #tpu.contract_precision<fp32>} : vector<240x4xf32>, vector<4x88xf32>, vector<240x88xf32> -> vector<240x88xf32>
    %5 = vector.shape_cast %4 : vector<240x88xf32> to vector<10x24x88xf32>
    %6 = vector.extract_strided_slice %5 {offsets = [1, 1, 0], sizes = [8, 16, 8], strides = [1, 1, 1]} : vector<10x24x88xf32> to vector<8x16x8xf32>
    %7 = vector.extract_strided_slice %5 {offsets = [0, 0, 8], sizes = [10, 24, 8], strides = [1, 1, 1]} : vector<10x24x88xf32> to vector<10x24x8xf32>
    %8 = vector.extract_strided_slice %5 {offsets = [0, 0, 16], sizes = [10, 24, 72], strides = [1, 1, 1]} : vector<10x24x88xf32> to vector<10x24x72xf32>
    %cst_6 = arith.constant 0xFF800000 : f32
    %9 = vector.broadcast %cst_6 : f32 to vector<8x16x8xf32>
    %10 = vector.extract_strided_slice %7 {offsets = [0, 0, 0], sizes = [8, 16, 8], strides = [1, 1, 1]} : vector<10x24x8xf32> to vector<8x16x8xf32>
    %11 = arith.mulf %6, %10 : vector<8x16x8xf32>
    %12 = arith.maximumf %9, %11 : vector<8x16x8xf32>
    %13 = vector.extract_strided_slice %7 {offsets = [0, 1, 0], sizes = [8, 16, 8], strides = [1, 1, 1]} : vector<10x24x8xf32> to vector<8x16x8xf32>
    %14 = arith.mulf %6, %13 : vector<8x16x8xf32>
    %15 = arith.maximumf %12, %14 : vector<8x16x8xf32>
    %16 = vector.extract_strided_slice %7 {offsets = [0, 2, 0], sizes = [8, 16, 8], strides = [1, 1, 1]} : vector<10x24x8xf32> to vector<8x16x8xf32>
    %17 = arith.mulf %6, %16 : vector<8x16x8xf32>
    %18 = arith.maximumf %15, %17 : vector<8x16x8xf32>
    %19 = vector.extract_strided_slice %7 {offsets = [1, 0, 0], sizes = [8, 16, 8], strides = [1, 1, 1]} : vector<10x24x8xf32> to vector<8x16x8xf32>
    %20 = arith.mulf %6, %19 : vector<8x16x8xf32>
    %21 = arith.maximumf %18, %20 : vector<8x16x8xf32>
    %22 = vector.extract_strided_slice %7 {offsets = [1, 1, 0], sizes = [8, 16, 8], strides = [1, 1, 1]} : vector<10x24x8xf32> to vector<8x16x8xf32>
    %23 = arith.mulf %6, %22 : vector<8x16x8xf32>
    %24 = arith.maximumf %21, %23 : vector<8x16x8xf32>
    %25 = vector.extract_strided_slice %7 {offsets = [1, 2, 0], sizes = [8, 16, 8], strides = [1, 1, 1]} : vector<10x24x8xf32> to vector<8x16x8xf32>
    %26 = arith.mulf %6, %25 : vector<8x16x8xf32>
    %27 = arith.maximumf %24, %26 : vector<8x16x8xf32>
    %28 = vector.extract_strided_slice %7 {offsets = [2, 0, 0], sizes = [8, 16, 8], strides = [1, 1, 1]} : vector<10x24x8xf32> to vector<8x16x8xf32>
    %29 = arith.mulf %6, %28 : vector<8x16x8xf32>
    %30 = arith.maximumf %27, %29 : vector<8x16x8xf32>
    %31 = vector.extract_strided_slice %7 {offsets = [2, 1, 0], sizes = [8, 16, 8], strides = [1, 1, 1]} : vector<10x24x8xf32> to vector<8x16x8xf32>
    %32 = arith.mulf %6, %31 : vector<8x16x8xf32>
    %33 = arith.maximumf %30, %32 : vector<8x16x8xf32>
    %34 = vector.extract_strided_slice %7 {offsets = [2, 2, 0], sizes = [8, 16, 8], strides = [1, 1, 1]} : vector<10x24x8xf32> to vector<8x16x8xf32>
    %35 = arith.mulf %6, %34 : vector<8x16x8xf32>
    %36 = arith.maximumf %33, %35 : vector<8x16x8xf32>
    %cst_7 = arith.constant 0.000000e+00 : f32
    %37 = vector.broadcast %cst_7 : f32 to vector<8x16x8xf32>
    %cst_8 = arith.constant 0.000000e+00 : f32
    %38 = vector.broadcast %cst_8 : f32 to vector<8x16x8xf32>
    %39 = vector.extract_strided_slice %7 {offsets = [0, 0, 0], sizes = [8, 16, 8], strides = [1, 1, 1]} : vector<10x24x8xf32> to vector<8x16x8xf32>
    %40 = arith.mulf %6, %39 : vector<8x16x8xf32>
    %41 = arith.subf %40, %36 : vector<8x16x8xf32>
    %42 = math.exp %41 : vector<8x16x8xf32>
    %43 = arith.addf %37, %42 : vector<8x16x8xf32>
    %44 = vector.extract_strided_slice %8 {offsets = [0, 0, 0], sizes = [8, 16, 8], strides = [1, 1, 1]} : vector<10x24x72xf32> to vector<8x16x8xf32>
    %45 = arith.mulf %42, %44 : vector<8x16x8xf32>
    %46 = arith.addf %38, %45 : vector<8x16x8xf32>
    %47 = vector.extract_strided_slice %7 {offsets = [0, 1, 0], sizes = [8, 16, 8], strides = [1, 1, 1]} : vector<10x24x8xf32> to vector<8x16x8xf32>
    %48 = arith.mulf %6, %47 : vector<8x16x8xf32>
    %49 = arith.subf %48, %36 : vector<8x16x8xf32>
    %50 = math.exp %49 : vector<8x16x8xf32>
    %51 = arith.addf %43, %50 : vector<8x16x8xf32>
    %52 = vector.extract_strided_slice %8 {offsets = [0, 1, 8], sizes = [8, 16, 8], strides = [1, 1, 1]} : vector<10x24x72xf32> to vector<8x16x8xf32>
    %53 = arith.mulf %50, %52 : vector<8x16x8xf32>
    %54 = arith.addf %46, %53 : vector<8x16x8xf32>
    %55 = vector.extract_strided_slice %7 {offsets = [0, 2, 0], sizes = [8, 16, 8], strides = [1, 1, 1]} : vector<10x24x8xf32> to vector<8x16x8xf32>
    %56 = arith.mulf %6, %55 : vector<8x16x8xf32>
    %57 = arith.subf %56, %36 : vector<8x16x8xf32>
    %58 = math.exp %57 : vector<8x16x8xf32>
    %59 = arith.addf %51, %58 : vector<8x16x8xf32>
    %60 = vector.extract_strided_slice %8 {offsets = [0, 2, 16], sizes = [8, 16, 8], strides = [1, 1, 1]} : vector<10x24x72xf32> to vector<8x16x8xf32>
    %61 = arith.mulf %58, %60 : vector<8x16x8xf32>
    %62 = arith.addf %54, %61 : vector<8x16x8xf32>
    %63 = vector.extract_strided_slice %7 {offsets = [1, 0, 0], sizes = [8, 16, 8], strides = [1, 1, 1]} : vector<10x24x8xf32> to vector<8x16x8xf32>
    %64 = arith.mulf %6, %63 : vector<8x16x8xf32>
    %65 = arith.subf %64, %36 : vector<8x16x8xf32>
    %66 = math.exp %65 : vector<8x16x8xf32>
    %67 = arith.addf %59, %66 : vector<8x16x8xf32>
    %68 = vector.extract_strided_slice %8 {offsets = [1, 0, 24], sizes = [8, 16, 8], strides = [1, 1, 1]} : vector<10x24x72xf32> to vector<8x16x8xf32>
    %69 = arith.mulf %66, %68 : vector<8x16x8xf32>
    %70 = arith.addf %62, %69 : vector<8x16x8xf32>
    %71 = vector.extract_strided_slice %7 {offsets = [1, 1, 0], sizes = [8, 16, 8], strides = [1, 1, 1]} : vector<10x24x8xf32> to vector<8x16x8xf32>
    %72 = arith.mulf %6, %71 : vector<8x16x8xf32>
    %73 = arith.subf %72, %36 : vector<8x16x8xf32>
    %74 = math.exp %73 : vector<8x16x8xf32>
    %75 = arith.addf %67, %74 : vector<8x16x8xf32>
    %76 = vector.extract_strided_slice %8 {offsets = [1, 1, 32], sizes = [8, 16, 8], strides = [1, 1, 1]} : vector<10x24x72xf32> to vector<8x16x8xf32>
    %77 = arith.mulf %74, %76 : vector<8x16x8xf32>
    %78 = arith.addf %70, %77 : vector<8x16x8xf32>
    %79 = vector.extract_strided_slice %7 {offsets = [1, 2, 0], sizes = [8, 16, 8], strides = [1, 1, 1]} : vector<10x24x8xf32> to vector<8x16x8xf32>
    %80 = arith.mulf %6, %79 : vector<8x16x8xf32>
    %81 = arith.subf %80, %36 : vector<8x16x8xf32>
    %82 = math.exp %81 : vector<8x16x8xf32>
    %83 = arith.addf %75, %82 : vector<8x16x8xf32>
    %84 = vector.extract_strided_slice %8 {offsets = [1, 2, 40], sizes = [8, 16, 8], strides = [1, 1, 1]} : vector<10x24x72xf32> to vector<8x16x8xf32>
    %85 = arith.mulf %82, %84 : vector<8x16x8xf32>
    %86 = arith.addf %78, %85 : vector<8x16x8xf32>
    %87 = vector.extract_strided_slice %7 {offsets = [2, 0, 0], sizes = [8, 16, 8], strides = [1, 1, 1]} : vector<10x24x8xf32> to vector<8x16x8xf32>
    %88 = arith.mulf %6, %87 : vector<8x16x8xf32>
    %89 = arith.subf %88, %36 : vector<8x16x8xf32>
    %90 = math.exp %89 : vector<8x16x8xf32>
    %91 = arith.addf %83, %90 : vector<8x16x8xf32>
    %92 = vector.extract_strided_slice %8 {offsets = [2, 0, 48], sizes = [8, 16, 8], strides = [1, 1, 1]} : vector<10x24x72xf32> to vector<8x16x8xf32>
    %93 = arith.mulf %90, %92 : vector<8x16x8xf32>
    %94 = arith.addf %86, %93 : vector<8x16x8xf32>
    %95 = vector.extract_strided_slice %7 {offsets = [2, 1, 0], sizes = [8, 16, 8], strides = [1, 1, 1]} : vector<10x24x8xf32> to vector<8x16x8xf32>
    %96 = arith.mulf %6, %95 : vector<8x16x8xf32>
    %97 = arith.subf %96, %36 : vector<8x16x8xf32>
    %98 = math.exp %97 : vector<8x16x8xf32>
    %99 = arith.addf %91, %98 : vector<8x16x8xf32>
    %100 = vector.extract_strided_slice %8 {offsets = [2, 1, 56], sizes = [8, 16, 8], strides = [1, 1, 1]} : vector<10x24x72xf32> to vector<8x16x8xf32>
    %101 = arith.mulf %98, %100 : vector<8x16x8xf32>
    %102 = arith.addf %94, %101 : vector<8x16x8xf32>
    %103 = vector.extract_strided_slice %7 {offsets = [2, 2, 0], sizes = [8, 16, 8], strides = [1, 1, 1]} : vector<10x24x8xf32> to vector<8x16x8xf32>
    %104 = arith.mulf %6, %103 : vector<8x16x8xf32>
    %105 = arith.subf %104, %36 : vector<8x16x8xf32>
    %106 = math.exp %105 : vector<8x16x8xf32>
    %107 = arith.addf %99, %106 : vector<8x16x8xf32>
    %108 = vector.extract_strided_slice %8 {offsets = [2, 2, 64], sizes = [8, 16, 8], strides = [1, 1, 1]} : vector<10x24x72xf32> to vector<8x16x8xf32>
    %109 = arith.mulf %106, %108 : vector<8x16x8xf32>
    %110 = arith.addf %102, %109 : vector<8x16x8xf32>
    %111 = tpu.reciprocal %107 {approx = true} : vector<8x16x8xf32> -> vector<8x16x8xf32>
    %112 = arith.mulf %107, %111 : vector<8x16x8xf32>
    %cst_9 = arith.constant 2.000000e+00 : f32
    %113 = vector.broadcast %cst_9 : f32 to vector<8x16x8xf32>
    %114 = arith.subf %113, %112 : vector<8x16x8xf32>
    %115 = arith.mulf %111, %114 : vector<8x16x8xf32>
    %116 = arith.mulf %110, %115 : vector<8x16x8xf32>
    %c0_10 = arith.constant 0 : index
    %c0_11 = arith.constant 0 : index
    %c0_12 = arith.constant 0 : index
    %c0_13 = arith.constant 0 : index
    %117 = vector.load %arg4[%c0_10, %c0_11, %c0_12, %c0_13] : memref<1x8x16x8xf32, #tpu.memory_space<vmem>>, vector<1x8x16x8xf32>
    %118 = vector.shape_cast %117 : vector<1x8x16x8xf32> to vector<8x16x8xf32>
    %119 = vector.shape_cast %116 : vector<8x16x8xf32> to vector<1x8x16x8xf32>
    tpu.vector_store %arg4[%c0_10, %c0_11, %c0_12, %c0_13], %119 {strides = array<i32>} : memref<1x8x16x8xf32, #tpu.memory_space<vmem>>, vector<1x8x16x8xf32>,
    return
  }
  func.func @transform_0(%arg0: i32, %arg1: i32) -> (i32, i32, i32, i32, i32) {
    %c0_i32 = arith.constant 0 : i32
    %c0_i32_0 = arith.constant 0 : i32
    %c0_i32_1 = arith.constant 0 : i32
    %c0_i32_2 = arith.constant 0 : i32
    return %arg0, %arg1, %c0_i32, %c0_i32_0, %c0_i32_1 : i32, i32, i32, i32, i32
  }
  func.func @transform_1(%arg0: i32, %arg1: i32) -> (i32, i32) {
    %c0_i32 = arith.constant 0 : i32
    %c0_i32_0 = arith.constant 0 : i32
    %c0_i32_1 = arith.constant 0 : i32
    return %c0_i32, %c0_i32_0 : i32, i32
  }
  func.func @transform_2(%arg0: i32, %arg1: i32) -> (i32, i32, i32, i32) {
    %c0_i32 = arith.constant 0 : i32
    %c0_i32_0 = arith.constant 0 : i32
    %c0_i32_1 = arith.constant 0 : i32
    return %arg0, %arg1, %c0_i32, %c0_i32_0 : i32, i32, i32, i32
  }
}

</mosaic_0001>

<bundles_post_ra>
// kernel: tpu_custom_call.1
= control target key start
LH: loop header
LB: loop body
LE: loop exit
PB: predicated region body
PF: predicated region fallthrough
CT: control target
= control target key end

     0   :  { %s6209_s9 = smov 0   ;;  %s6211_s10 = smov 0   ;;  %s11354_s0 = inlined_call_operand.vmem [shape: f32[2,2,10,24,4], index: 0, kind: input, shape index: {}]   ;;  %s11355_s1 = inlined_call_operand.vmem [shape: f32[4,88], index: 1, kind: input, shape index: {}]   ;;  %s11356_s2 = inlined_call_operand.vmem [shape: f32[2,16,16,8], index: 2, kind: output, shape index: {}]  }
   0x1   :  { %s6213_s11 = smov 0   ;;  %s6215_s12 = smov 0  }
   0x2   :  { %s6217_s13 = smov 0  }
   0x3 LB: > { %s21_s14 = sadd.s32 1, %s6174_s11  ;;  %s24_s15 = sadd.s32 1, %s6178_s12  ;;  %s6182_s13 = sphi %s6217_s13, %s12_s13   ;;  %s6178_s12 = sphi %s6215_s12, %s13232_s12   ;;  %s6174_s11 = sphi %s6213_s11, %s13231_s11   ;;  %s6170_s10 = sphi %s6211_s10, %s13230_s10   ;;  %s6166_s9 = sphi %s6209_s9, %s13229_s9  }
   0x4   : > { %p22_p0 = scmp.ge.s32.totalorder %s21_s14, 2  ;;  %p4986_p1 = scmp.ge.s32.totalorder %s6182_s13, 1 }
   0x5   : > { %p132_p2 = scmp.lt.s32.totalorder %s6182_s13, 5 }
   0x6   : > { %s13234_s14 = smov (%p22_p0, %s21_s14), 0  ;;  %s13236_s15 = smov (!%p22_p0, %s24_s15), %s6178_s12 }
   0x7   : > { %p133_p3 = pnand %p4986_p1, %p132_p2  ;;  %p26_p4 = scmp.ge.s32.totalorder %s13236_s15, 2 }
   0x9   : > { %s13238_s15 = smov (%p26_p4, %s13236_s15), 0  ;;  %136 = sbr.rel (%p133_p3) target bundleno = 1115 (0x45b), region = 28 }
  0x10   : > { %v213_v0 = vld [vmem:[%s11355_s1] sm:$0xf]  ;;  %vm305_vm0 = vcmask 1043456   ;;  %p163_p5 = scmp.lt.s32.totalorder %s6170_s10, 1  ;;  %p165_p6 = scmp.lt.s32.totalorder %s6166_s9, 1  ;;  %vm214_vm1 = vcmask 31744  }
  0x11   : > { %v307_v1 = vsel %vm305_vm0, %v213_v0, 0  ;;  %s6184_s26 = smov 120   ;;  %vm2018_vm2 = vcmask 1040384   ;;  %vm2267_vm3 = vcmask 1046528   ;;  %s6185_s27 = smov 104   ;;  %vm4858_vm4 = vcmask 64512  }
  0x12   : > { %v6245_v2 = vand.u32 4294901760, %v307_v1  ;;  %s13240_s10 = smov (!%p163_p5, %s6170_s10), 1  ;;  %s6186_s28 = smov 112   ;;  %vm4856_vm5 = vcmask 64513   ;;  %vm4860_vm6 = vcmask 57344  }
  0x13   : > { %s166_s18 = scalar_select %p165_p6, %s6166_s9, 1 }
  0x14   : > { %5321 = vmatprep.subr.mxu0 %v6245_v2  ;;  %s5613_s19 = smul.u32 60, %s13240_s10  ;;  %5180 = vmatprep.subr.mxu1 %v6245_v2  ;;  %v6254_v3 = vsub.f32 %v307_v1, %v6245_v2  ;;  %s6187_s29 = smov 96  }
  0x15   : > { %5322 = vmatpush3.msra.mxu0 %v6245_v2  ;;  %s5612_s20 = smul.u32 30, %s166_s18  ;;  %5181 = vmatpush3.msra.mxu1 %v6245_v2  ;;  %s6188_s30 = smov 80  }
  0x16   : > { %v678_v4 = vand.u32 4294901760, %v6254_v3  ;;  %s6189_s3 = smov 88   ;;  %s6190_s4 = smov 72  }
  0x17   : > { %s169_s21 = sadd.s32 %s5613_s19, %s5612_s20  ;;  %s6191_s5 = smov 64  }
  0x18   : > { %s4987_s22 = sshll.u32 %s169_s21, 3  ;;  %v679_v5 = vsub.f32 %v6254_v3, %v678_v4  ;;  %5368 = vmatprep.subr.mxu0 %v678_v4  ;;  %s6192_s6 = smov 56  }
  0x19   : > { %s6263_s25 = scalar_lea.vmem %s11354_s0, %s4987_s22  ;;  %s6193_s7 = smov 48  }
  0x1a   : > { %v183_v6 = vld [vmem:[%s6263_s25] sm:$0xff]  ;;  %v184_v7 = vld [vmem:[%s6263_s25 + $0x8] sm:$0xff]  ;;  %v6267_v8 = vand.u32 4294901760, %v679_v5  ;;  %v185_v9 = vld [vmem:[%s6263_s25 + $0x10] sm:$0xff]  ;;  %s4988_s8 = sshll.u32 %s6166_s9, 3  ;;  %s4990_s17 = sshll.u32 %s13240_s10, 5 }
  0x1b   : > { %v216_v10 = vsel %vm214_vm1, %v183_v6, 0  ;;  %v219_v11 = vsel %vm214_vm1, %v184_v7, 0  ;;  %v222_v12 = vsel %vm214_vm1, %v185_v9, 0  ;;  %v186_v13 = vld [vmem:[%s6263_s25 + $0x18] sm:$0xff]  ;;  %v187_v14 = vld [vmem:[%s6263_s25 + $0x20] sm:$0xff]  ;;  %v188_v15 = vld [vmem:[%s6263_s25 + $0x28] sm:$0xff] }
  0x1c   : > { %v6276_v16 = vand.u32 4294901760, %v216_v10  ;;  %v6278_v17 = vand.u32 4294901760, %v219_v11  ;;  %5227 = vmatprep.subr.mxu1 %v6267_v8  ;;  %v6281_v18 = vand.u32 4294901760, %v222_v12  ;;  %v225_v19 = vsel %vm214_vm1, %v186_v13, 0  ;;  %v189_v20 = vld [vmem:[%s6263_s25 + $0x30] sm:$0xff]  ;;  %v190_v21 = vld [vmem:[%s6263_s25 + $0x38] sm:$0xff] }
  0x1d   : > { %v6286_v22 = vand.u32 4294901760, %v225_v19  ;;  %v228_v23 = vsel %vm214_vm1, %v187_v14, 0  ;;  %v231_v24 = vsel %vm214_vm1, %v188_v15, 0  ;;  %v234_v25 = vsel %vm214_vm1, %v189_v20, 0  ;;  %v191_v50 = vld [vmem:[%s6263_s25 + $0x40] sm:$0xff]  ;;  %v192_v51 = vld [vmem:[%s6263_s25 + $0x48] sm:$0xff] }
  0x1e   : > { %v6292_v26 = vsub.f32 %v216_v10, %v6276_v16  ;;  %v6295_v27 = vsub.f32 %v219_v11, %v6278_v17  ;;  %v6298_v28 = vsub.f32 %v222_v12, %v6281_v18  ;;  %v6300_v29 = vand.u32 4294901760, %v228_v23  ;;  %v193_v52 = vld [vmem:[%s6263_s25 + $0x50] sm:$0xff]  ;;  %v194_v60 = vld [vmem:[%s6263_s25 + $0x58] sm:$0xff]  ;;  %v195_v61 = vld [vmem:[%s6263_s25 + $0x60] sm:$0xff]  ;;  %p10966_p7 = scmp.lt.s32.totalorder %s4988_s8, 15 }
  0x1f   : > { %v6303_v30 = vsub.f32 %v225_v19, %v6286_v22  ;;  %v6305_v31 = vand.u32 4294901760, %v231_v24  ;;  %v6307_v32 = vand.u32 4294901760, %v234_v25  ;;  %v237_v33 = vsel %vm214_vm1, %v190_v21, 0  ;;  %v196_v9 = vld [vmem:[%s6263_s25 + $0x68] sm:$0xff]  ;;  %v197_v10 = vld [vmem:[%s6263_s25 + $0x70] sm:$0xff] }
  0x20   : > { %v377_v34 = vand.u32 4294901760, %v6292_v26  ;;  %v387_v35 = vand.u32 4294901760, %v6295_v27  ;;  %v397_v36 = vand.u32 4294901760, %v6298_v28  ;;  %v6314_v37 = vsub.f32 %v228_v23, %v6300_v29  ;;  %s13242_s8 = smov (!%p10966_p7, %s4988_s8), 15 }
  0x21   : > { %v407_v38 = vand.u32 4294901760, %v6303_v30  ;;  %v6318_v39 = vsub.f32 %v231_v24, %v6305_v31  ;;  %v6321_v40 = vsub.f32 %v234_v25, %v6307_v32  ;;  %v6323_v41 = vand.u32 4294901760, %v237_v33  ;;  %s4989_s9 = sshll.u32 %s13242_s8, 1 }
  0x22   : > { %5323 = vmatprep.mubr.f32.mxu0 %v377_v34  ;;  %v378_v42 = vsub.f32 %v6292_v26, %v377_v34  ;;  %v388_v43 = vsub.f32 %v6295_v27, %v387_v35  ;;  %v398_v44 = vsub.f32 %v6298_v28, %v397_v36  ;;  %v417_v45 = vand.u32 4294901760, %v6314_v37  ;;  %s11074_s10 = sadd.s32 %s4990_s17, %s4989_s9 }
  0x23   : > { %5324 = vmatmul.mubr.f32.vlgmr.msra.gmra.mrb[0].mxu0 %v387_v35  ;;  %v408_v46 = vsub.f32 %v6303_v30, %v407_v38  ;;  %v427_v47 = vand.u32 4294901760, %v6318_v39  ;;  %v437_v48 = vand.u32 4294901760, %v6321_v40  ;;  %v6333_v49 = vsub.f32 %v237_v33, %v6323_v41  ;;  %s4991_s18 = sshll.u32 %s11074_s10, 3 }
  0x24   : > { %v379_v53 = vand.u32 4294901760, %v378_v42  ;;  %5326 = vmatprep.mubr.f32.mxu0 %v397_v36  ;;  %v389_v54 = vand.u32 4294901760, %v388_v43  ;;  %5369 = vmatpush3.msra.mxu0 %v678_v4  ;;  %v399_v55 = vand.u32 4294901760, %v398_v44  ;;  %v418_v56 = vsub.f32 %v6314_v37, %v417_v45  ;;  %s11121_s21 = scalar_lea.vmem %s11356_s2, %s4991_s18 }
  0x25   : > { %v428_v57 = vsub.f32 %v6318_v39, %v427_v47  ;;  %v447_v58 = vand.u32 4294901760, %v6333_v49  ;;  %v438_v59 = vsub.f32 %v6321_v40, %v437_v48  ;;  %5415 = vmatprep.subr.mxu0 %v6245_v2  ;;  %v409_v62 = vand.u32 4294901760, %v408_v46 }
  0x26   : > { %5182 = vmatprep.mubr.f32.mxu1 %v379_v53  ;;  %v240_v63 = vsel %vm214_vm1, %v191_v50, 0  ;;  %v243_v0 = vsel %vm214_vm1, %v192_v51, 0  ;;  %v246_v1 = vsel %vm214_vm1, %v193_v52, 0  ;;  %v419_v4 = vand.u32 4294901760, %v418_v56  ;;  %v199_v52 = vld [vmem:[%s6263_s25 + $0x80] sm:$0xff] }
  0x27   : > { %5183 = vmatmul.mubr.f32.vlgmr.msra.gmra.mrb[0].mxu1 %v389_v54  ;;  %5327 = vmatmul.mubr.f32.gmra.mrb[2].mxu0 %v407_v38  ;;  %v429_v5 = vand.u32 4294901760, %v428_v57  ;;  %v439_v6 = vand.u32 4294901760, %v438_v59  ;;  %v6348_v7 = vand.u32 4294901760, %v240_v63  ;;  %v6353_v11 = vand.u32 4294901760, %v243_v0 }
  0x28   : > { %5228 = vmatpush3.msra.mxu1 %v6267_v8  ;;  %5185 = vmatprep.mubr.f32.mxu1 %v399_v55  ;;  %v6355_v12 = vand.u32 4294901760, %v246_v1  ;;  %v249_v13 = vsel %vm214_vm1, %v194_v60, 0  ;;  %v252_v14 = vsel %vm214_vm1, %v195_v61, 0  ;;  %v448_v19 = vsub.f32 %v6333_v49, %v447_v58  ;;  %v198_v8 = vld [vmem:[%s6263_s25 + $0x78] sm:$0xff]  ;;  %v200_v55 = vld [vmem:[%s6263_s25 + $0x88] sm:$0xff]  ;;  %v201_v60 = vld [vmem:[%s6263_s25 + $0x90] sm:$0xff] }
  0x29   : > { %5329 = vmatprep.mubr.f32.mxu0 %v417_v45  ;;  %v6360_v15 = vsub.f32 %v240_v63, %v6348_v7  ;;  %v6363_v20 = vand.u32 4294901760, %v249_v13  ;;  %v6365_v21 = vand.u32 4294901760, %v252_v14  ;;  %5274 = vmatprep.subr.mxu1 %v6254_v3  ;;  %v6370_v23 = vsub.f32 %v243_v0, %v6353_v11  ;;  %v202_v61 = vld [vmem:[%s6263_s25 + $0x98] sm:$0xff] }
  0x2a   : > { %v6373_v24 = vsub.f32 %v246_v1, %v6355_v12  ;;  %v255_v25 = vsel %vm214_vm1, %v196_v9, 0  ;;  %v258_v33 = vsel %vm214_vm1, %v197_v10, 0  ;;  %v261_v45 = vsel %vm214_vm1, %v198_v8, 0 }
  0x2b   : > { %11867 = vst [vmem:[#allocation2_spill] sm:$0xff] %v6370_v23  ;;  %5186 = vmatmul.mubr.f32.gmra.mrb[2].mxu1 %v409_v62  ;;  %5330 = vmatmul.mubr.f32.gmra.mrb[4].mxu0 %v427_v47  ;;  %v457_v34 = vand.u32 4294901760, %v6360_v15  ;;  %v6379_v35 = vsub.f32 %v249_v13, %v6363_v20  ;;  %v6382_v36 = vsub.f32 %v252_v14, %v6365_v21  ;;  %v6384_v38 = vand.u32 4294901760, %v255_v25 }
  0x2c   : > { %11868 = vst [vmem:[#allocation3_spill] sm:$0xff] %v6373_v24  ;;  %5188 = vmatprep.mubr.f32.mxu1 %v419_v4  ;;  %5332 = vmatprep.mubr.f32.mxu0 %v437_v48  ;;  %v467_v42 = vand.u32 4294901760, %v6370_v23  ;;  %v477_v43 = vand.u32 4294901760, %v6373_v24  ;;  %v6388_v44 = vand.u32 4294901760, %v258_v33  ;;  %v449_v53 = vand.u32 4294901760, %v448_v19 }
  0x2d   : > { %11869 = vst [vmem:[#allocation4_spill] sm:$0xff] %v6379_v35  ;;  %11870 = vst [vmem:[#allocation5_spill] sm:$0xff] %v6382_v36  ;;  %v458_v46 = vsub.f32 %v6360_v15, %v457_v34  ;;  %v487_v47 = vand.u32 4294901760, %v6379_v35  ;;  %v6394_v50 = vsub.f32 %v255_v25, %v6384_v38  ;;  %v497_v48 = vand.u32 4294901760, %v6382_v36 }
  0x2e   : > { %v468_v51 = vsub.f32 %v6370_v23, %v467_v42  ;;  %v6399_v54 = vand.u32 4294901760, %v261_v45  ;;  %v478_v57 = vsub.f32 %v6373_v24, %v477_v43  ;;  %v6404_v59 = vsub.f32 %v258_v33, %v6388_v44  ;;  %v211_v24 = vld [vmem:[%s6263_s25 + $0xe0] sm:$0xff] }
  0x2f   : > { %11871 = vst [vmem:[#allocation6_spill] sm:$0xff] %v6394_v50  ;;  %5189 = vmatmul.mubr.f32.gmra.mrb[4].mxu1 %v429_v5  ;;  %5333 = vmatmul.mubr.f32.gmra.mrb[6].mxu0 %v447_v58  ;;  %v459_v56 = vand.u32 4294901760, %v458_v46  ;;  %v488_v62 = vsub.f32 %v6379_v35, %v487_v47  ;;  %v507_v63 = vand.u32 4294901760, %v6394_v50  ;;  %v264_v58 = vsel %vm214_vm1, %v199_v52, 0 }
  0x30   : > { %5191 = vmatprep.mubr.f32.mxu1 %v439_v6  ;;  %5335 = vmatprep.mubr.f32.mxu0 %v457_v34  ;;  %11872 = vst [vmem:[#allocation7_spill] sm:$0xff] %v6404_v59  ;;  %v469_v0 = vand.u32 4294901760, %v468_v51  ;;  %v498_v1 = vsub.f32 %v6382_v36, %v497_v48  ;;  %v6412_v4 = vand.u32 4294901760, %v264_v58  ;;  %v267_v5 = vsel %vm214_vm1, %v200_v55, 0  ;;  %v203_v6 = vld [vmem:[%s6263_s25 + $0xa0] sm:$0xff]  ;;  %v204_v34 = vld [vmem:[%s6263_s25 + $0xa8] sm:$0xff] }
  0x31   : > { %v6417_v9 = vsub.f32 %v261_v45, %v6399_v54  ;;  %v6419_v10 = vand.u32 4294901760, %v267_v5  ;;  %v270_v13 = vsel %vm214_vm1, %v201_v60, 0  ;;  %v273_v14 = vsel %vm214_vm1, %v202_v61, 0  ;;  %v205_v45 = vld [vmem:[%s6263_s25 + $0xb0] sm:$0xff] }
  0x32   : > { %v479_v19 = vand.u32 4294901760, %v478_v57  ;;  %v517_v8 = vand.u32 4294901760, %v6404_v59  ;;  %v6425_v25 = vsub.f32 %v264_v58, %v6412_v4  ;;  %v6427_v33 = vand.u32 4294901760, %v270_v13  ;;  %v206_v58 = vld [vmem:[%s6263_s25 + $0xb8] sm:$0xff] }
  0x33   : > { %5192 = vmatmul.mubr.f32.gmra.mrb[6].mxu1 %v449_v53  ;;  %5336 = vmatmul.mubr.f32.gmra.mrb[8].mxu0 %v467_v42  ;;  %11873 = vst [vmem:[#allocation8_spill] sm:$0xff] %v6417_v9  ;;  %v276_v42 = vsel %vm214_vm1, %v203_v6, 0  ;;  %v489_v46 = vand.u32 4294901760, %v488_v62  ;;  %v499_v51 = vand.u32 4294901760, %v498_v1  ;;  %v6432_v52 = vand.u32 4294901760, %v273_v14 }
  0x34   : > { %5194 = vmatprep.mubr.f32.mxu1 %v459_v56  ;;  %5338 = vmatprep.mubr.f32.mxu0 %v477_v43  ;;  %11874 = vst [vmem:[#allocation9_spill] sm:$0xff] %v6425_v25  ;;  %v6434_v53 = vand.u32 4294901760, %v276_v42  ;;  %v508_v43 = vsub.f32 %v6394_v50, %v507_v63  ;;  %v527_v55 = vand.u32 4294901760, %v6417_v9  ;;  %v6439_v56 = vsub.f32 %v267_v5, %v6419_v10 }
  0x35   : > { %v279_v57 = vsel %vm214_vm1, %v204_v34, 0  ;;  %v518_v60 = vsub.f32 %v6404_v59, %v517_v8  ;;  %v537_v61 = vand.u32 4294901760, %v6425_v25  ;;  %v6445_v62 = vsub.f32 %v270_v13, %v6427_v33 }
  0x36   : > { %11875 = vst [vmem:[#allocation10_spill] sm:$0xff] %v6439_v56  ;;  %v6453_v1 = vsub.f32 %v276_v42, %v6434_v53  ;;  %v6455_v5 = vand.u32 4294901760, %v279_v57  ;;  %v509_v6 = vand.u32 4294901760, %v508_v43  ;;  %v528_v13 = vsub.f32 %v6417_v9, %v527_v55 }
  0x37   : > { %5195 = vmatmul.mubr.f32.gmra.mrb[8].mxu1 %v469_v0  ;;  %5339 = vmatmul.mubr.f32.gmra.mrb[10].mxu0 %v487_v47  ;;  %11876 = vst [vmem:[#allocation11_spill] sm:$0xff] %v6445_v62  ;;  %v282_v47 = vsel %vm214_vm1, %v205_v45, 0  ;;  %v6450_v0 = vsub.f32 %v273_v14, %v6432_v52  ;;  %v519_v14 = vand.u32 4294901760, %v518_v60  ;;  %v538_v42 = vsub.f32 %v6425_v25, %v537_v61 }
  0x38   : > { %5197 = vmatprep.mubr.f32.mxu1 %v479_v19  ;;  %5341 = vmatprep.mubr.f32.mxu0 %v497_v48  ;;  %11878 = vst [vmem:[#allocation13_spill] sm:$0xff] %v6453_v1  ;;  %v207_v48 = vld [vmem:[%s6263_s25 + $0xc0] sm:$0xff]  ;;  %v547_v19 = vand.u32 4294901760, %v6439_v56  ;;  %v6460_v34 = vand.u32 4294901760, %v282_v47  ;;  %v557_v45 = vand.u32 4294901760, %v6445_v62  ;;  %v285_v59 = vsel %vm214_vm1, %v206_v58, 0 }
  0x39   : > { %11877 = vst [vmem:[#allocation12_spill] sm:$0xff] %v6450_v0  ;;  %v567_v43 = vand.u32 4294901760, %v6450_v0  ;;  %v577_v9 = vand.u32 4294901760, %v6453_v1  ;;  %v6470_v50 = vsub.f32 %v279_v57, %v6455_v5  ;;  %v539_v25 = vand.u32 4294901760, %v538_v42 }
  0x3a   : > { %v548_v60 = vsub.f32 %v6439_v56, %v547_v19  ;;  %v6475_v58 = vsub.f32 %v282_v47, %v6460_v34  ;;  %v558_v36 = vsub.f32 %v6445_v62, %v557_v45 }
  0x3b   : > { %5198 = vmatmul.mubr.f32.gmra.mrb[10].mxu1 %v489_v46  ;;  %5342 = vmatmul.mubr.f32.gmra.mrb[12].mxu0 %v507_v63  ;;  %v288_v46 = vsel %vm214_vm1, %v207_v48, 0  ;;  %v208_v63 = vld [vmem:[%s6263_s25 + $0xc8] sm:$0xff]  ;;  %11879 = vst [vmem:[#allocation14_spill] sm:$0xff] %v6470_v50  ;;  %v6477_v48 = vand.u32 4294901760, %v285_v59  ;;  %v587_v56 = vand.u32 4294901760, %v6470_v50  ;;  %v578_v47 = vsub.f32 %v6453_v1, %v577_v9 }
  0x3c   : > { %5200 = vmatprep.mubr.f32.mxu1 %v499_v51  ;;  %5344 = vmatprep.mubr.f32.mxu0 %v517_v8  ;;  %v209_v51 = vld [vmem:[%s6263_s25 + $0xd0] sm:$0xff]  ;;  %v529_v8 = vand.u32 4294901760, %v528_v13  ;;  %11880 = vst [vmem:[#allocation15_spill] sm:$0xff] %v6475_v58  ;;  %v6480_v35 = vand.u32 4294901760, %v288_v46  ;;  %v291_v57 = vsel %vm214_vm1, %v208_v63, 0  ;;  %v568_v13 = vsub.f32 %v6450_v0, %v567_v43 }
  0x3d   : > { %v6491_v42 = vsub.f32 %v285_v59, %v6477_v48  ;;  %v6493_v63 = vand.u32 4294901760, %v291_v57  ;;  %v579_v23 = vand.u32 4294901760, %v578_v47  ;;  %v588_v59 = vsub.f32 %v6470_v50, %v587_v56 }
  0x3e   : > { %v6496_v0 = vsub.f32 %v288_v46, %v6480_v35 }
  0x3f   : > { %5201 = vmatmul.mubr.f32.gmra.mrb[12].mxu1 %v509_v6  ;;  %5345 = vmatmul.mubr.f32.gmra.mrb[14].mxu0 %v527_v55  ;;  %v294_v55 = vsel %vm214_vm1, %v209_v51, 0  ;;  %v210_v6 = vld [vmem:[%s6263_s25 + $0xd8] sm:$0xff]  ;;  %v559_v51 = vand.u32 4294901760, %v558_v36  ;;  %v589_v47 = vand.u32 4294901760, %v588_v59 }
  0x40   : > { %5203 = vmatprep.mubr.f32.mxu1 %v519_v14  ;;  %5347 = vmatprep.mubr.f32.mxu0 %v537_v61  ;;  %v549_v61 = vand.u32 4294901760, %v548_v60  ;;  %v597_v14 = vand.u32 4294901760, %v6475_v58  ;;  %v6498_v62 = vand.u32 4294901760, %v294_v55  ;;  %v297_v1 = vsel %vm214_vm1, %v210_v6, 0 }
  0x41   : > { %v569_v60 = vand.u32 4294901760, %v568_v13  ;;  %v6509_v46 = vand.u32 4294901760, %v297_v1 }
  0x42   : > { %v598_v36 = vsub.f32 %v6475_v58, %v597_v14  ;;  %v6513_v6 = vsub.f32 %v294_v55, %v6498_v62 }
  0x43   : > { %5204 = vmatmul.mubr.f32.gmra.mrb[14].mxu1 %v529_v8  ;;  %5348 = vmatmul.mubr.f32.gmra.mrb[16].mxu0 %v547_v19  ;;  %v300_v19 = vsel %vm214_vm1, %v211_v24, 0  ;;  %v212_v8 = vld [vmem:[%s6263_s25 + $0xe8] sm:$0xff]  ;;  %v617_v24 = vand.u32 4294901760, %v6496_v0  ;;  %v6521_v58 = vsub.f32 %v297_v1, %v6509_v46 }
  0x44   : > { %5206 = vmatprep.mubr.f32.mxu1 %v539_v25  ;;  %5350 = vmatprep.mubr.f32.mxu0 %v557_v45  ;;  %v607_v25 = vand.u32 4294901760, %v6491_v42  ;;  %v6507_v45 = vsub.f32 %v291_v57, %v6493_v63  ;;  %v6515_v13 = vand.u32 4294901760, %v300_v19  ;;  %v599_v55 = vand.u32 4294901760, %v598_v36 }
  0x45   : > { %v637_v50 = vand.u32 4294901760, %v6513_v6  ;;  %v647_v1 = vand.u32 4294901760, %v6521_v58 }
  0x46   : > { %v627_v57 = vand.u32 4294901760, %v6507_v45 }
  0x47   : > { %5207 = vmatmul.mubr.f32.gmra.mrb[16].mxu1 %v549_v61  ;;  %5351 = vmatmul.mubr.f32.gmra.mrb[18].mxu0 %v567_v43  ;;  %v303_v43 = vsel %vm214_vm1, %v212_v8, 0  ;;  %v608_v61 = vsub.f32 %v6491_v42, %v607_v25  ;;  %v6528_v8 = vsub.f32 %v300_v19, %v6515_v13 }
  0x48   : > { %5209 = vmatprep.mubr.f32.mxu1 %v559_v51  ;;  %5353 = vmatprep.mubr.f32.mxu0 %v577_v9  ;;  %v6523_v9 = vand.u32 4294901760, %v303_v43  ;;  %v618_v51 = vsub.f32 %v6496_v0, %v617_v24 }
  0x49   : > { %v657_v36 = vand.u32 4294901760, %v6528_v8 }
  0x4a   : > { %v6533_v59 = vsub.f32 %v303_v43, %v6523_v9 }
  0x4b   : > { %5210 = vmatmul.mubr.f32.gmra.mrb[18].mxu1 %v569_v60  ;;  %5354 = vmatmul.mubr.f32.gmra.mrb[20].mxu0 %v587_v56  ;;  %v609_v56 = vand.u32 4294901760, %v608_v61  ;;  %v628_v60 = vsub.f32 %v6507_v45, %v627_v57  ;;  %v658_v43 = vsub.f32 %v6528_v8, %v657_v36 }
  0x4c   : > { %5212 = vmatprep.mubr.f32.mxu1 %v579_v23  ;;  %5356 = vmatprep.mubr.f32.mxu0 %v597_v14  ;;  %v619_v23 = vand.u32 4294901760, %v618_v51  ;;  %v638_v14 = vsub.f32 %v6513_v6, %v637_v50 }
  0x4d   : > { %v629_v19 = vand.u32 4294901760, %v628_v60  ;;  %v659_v51 = vand.u32 4294901760, %v658_v43 }
  0x4e   : > { %v639_v61 = vand.u32 4294901760, %v638_v14 }
  0x4f   : > { %5213 = vmatmul.mubr.f32.gmra.mrb[20].mxu1 %v589_v47  ;;  %5357 = vmatmul.mubr.f32.gmra.mrb[22].mxu0 %v607_v25  ;;  %v648_v25 = vsub.f32 %v6521_v58, %v647_v1  ;;  %v667_v47 = vand.u32 4294901760, %v6533_v59 }
  0x50   : > { %5215 = vmatprep.mubr.f32.mxu1 %v599_v55  ;;  %5359 = vmatprep.mubr.f32.mxu0 %v617_v24 }
  0x51   : > { %v649_v24 = vand.u32 4294901760, %v648_v25  ;;  %v668_v55 = vsub.f32 %v6533_v59, %v667_v47 }
  0x53   : > { %5216 = vmatmul.mubr.f32.gmra.mrb[22].mxu1 %v609_v56  ;;  %5360 = vmatmul.mubr.f32.gmra.mrb[24].mxu0 %v627_v57  ;;  %v669_v57 = vand.u32 4294901760, %v668_v55 }
  0x54   : > { %5218 = vmatprep.mubr.f32.mxu1 %v619_v23  ;;  %5362 = vmatprep.mubr.f32.mxu0 %v637_v50 }
  0x57   : > { %5219 = vmatmul.mubr.f32.gmra.mrb[24].mxu1 %v629_v19  ;;  %5363 = vmatmul.mubr.f32.gmra.mrb[26].mxu0 %v647_v1 }
  0x58   : > { %5221 = vmatprep.mubr.f32.mxu1 %v639_v61  ;;  %5365 = vmatprep.mubr.f32.mxu0 %v657_v36 }
  0x5b   : > { %5222 = vmatmul.mubr.f32.gmra.mrb[26].mxu1 %v649_v24  ;;  %5366 = vmatmul.mubr.f32.gmra.mrb[28].mxu0 %v667_v47 }
  0x5c   : > { %5224 = vmatprep.mubr.f32.mxu1 %v659_v51  ;;  %5370 = vmatprep.mubr.f32.mxu0 %v6276_v16 }
  0x5f   : > { %5225 = vmatmul.mubr.f32.gmra.mrb[28].mxu1 %v669_v57  ;;  %5371 = vmatmul.mubr.f32.vlgmr.msra.gmra.mrb[0].mxu0 %v6278_v17 }
  0x60   : > { %5229 = vmatprep.mubr.f32.mxu1 %v6276_v16  ;;  %5373 = vmatprep.mubr.f32.mxu0 %v6281_v18 }
  0x61   : > { %5416 = vmatpush3.msra.mxu0 %v6245_v2  ;;  %v11881_v2 = vld [vmem:[#allocation2_spill] sm:$0xff] }
  0x63   : > { %5230 = vmatmul.mubr.f32.vlgmr.msra.gmra.mrb[0].mxu1 %v6278_v17  ;;  %5374 = vmatmul.mubr.f32.gmra.mrb[2].mxu0 %v6286_v22 }
  0x64   : > { %5275 = vmatpush3.msra.mxu1 %v6254_v3  ;;  %5232 = vmatprep.mubr.f32.mxu1 %v6281_v18  ;;  %v11882_v3 = vld [vmem:[#allocation3_spill] sm:$0xff] }
  0x65   : > { %5376 = vmatprep.mubr.f32.mxu0 %v6300_v29 }
  0x67   : > { %5233 = vmatmul.mubr.f32.gmra.mrb[2].mxu1 %v6286_v22  ;;  %5377 = vmatmul.mubr.f32.gmra.mrb[4].mxu0 %v6305_v31 }
  0x68   : > { %5235 = vmatprep.mubr.f32.mxu1 %v6300_v29  ;;  %5379 = vmatprep.mubr.f32.mxu0 %v6307_v32 }
  0x6b   : > { %5236 = vmatmul.mubr.f32.gmra.mrb[4].mxu1 %v6305_v31  ;;  %5380 = vmatmul.mubr.f32.gmra.mrb[6].mxu0 %v6323_v41 }
  0x6c   : > { %5238 = vmatprep.mubr.f32.mxu1 %v6307_v32  ;;  %5382 = vmatprep.mubr.f32.mxu0 %v6348_v7 }
  0x6f   : > { %5239 = vmatmul.mubr.f32.gmra.mrb[6].mxu1 %v6323_v41  ;;  %5383 = vmatmul.mubr.f32.gmra.mrb[8].mxu0 %v6353_v11 }
  0x70   : > { %5241 = vmatprep.mubr.f32.mxu1 %v6348_v7  ;;  %5385 = vmatprep.mubr.f32.mxu0 %v6355_v12 }
  0x73   : > { %5242 = vmatmul.mubr.f32.gmra.mrb[8].mxu1 %v6353_v11  ;;  %5386 = vmatmul.mubr.f32.gmra.mrb[10].mxu0 %v6363_v20 }
  0x74   : > { %5244 = vmatprep.mubr.f32.mxu1 %v6355_v12  ;;  %5388 = vmatprep.mubr.f32.mxu0 %v6365_v21 }
  0x77   : > { %5245 = vmatmul.mubr.f32.gmra.mrb[10].mxu1 %v6363_v20  ;;  %5389 = vmatmul.mubr.f32.gmra.mrb[12].mxu0 %v6384_v38 }
  0x78   : > { %5247 = vmatprep.mubr.f32.mxu1 %v6365_v21  ;;  %5391 = vmatprep.mubr.f32.mxu0 %v6388_v44 }
  0x7b   : > { %5248 = vmatmul.mubr.f32.gmra.mrb[12].mxu1 %v6384_v38  ;;  %5392 = vmatmul.mubr.f32.gmra.mrb[14].mxu0 %v6399_v54 }
  0x7c   : > { %5250 = vmatprep.mubr.f32.mxu1 %v6388_v44  ;;  %5394 = vmatprep.mubr.f32.mxu0 %v6412_v4 }
  0x7f   : > { %5251 = vmatmul.mubr.f32.gmra.mrb[14].mxu1 %v6399_v54  ;;  %5395 = vmatmul.mubr.f32.gmra.mrb[16].mxu0 %v6419_v10 }
  0x80   : > { %5253 = vmatprep.mubr.f32.mxu1 %v6412_v4  ;;  %5397 = vmatprep.mubr.f32.mxu0 %v6427_v33 }
  0x83   : > { %5254 = vmatmul.mubr.f32.gmra.mrb[16].mxu1 %v6419_v10  ;;  %5398 = vmatmul.mubr.f32.gmra.mrb[18].mxu0 %v6432_v52 }
  0x84   : > { %5256 = vmatprep.mubr.f32.mxu1 %v6427_v33  ;;  %5400 = vmatprep.mubr.f32.mxu0 %v6434_v53 }
  0x87   : > { %5257 = vmatmul.mubr.f32.gmra.mrb[18].mxu1 %v6432_v52  ;;  %5401 = vmatmul.mubr.f32.gmra.mrb[20].mxu0 %v6455_v5 }
  0x88   : > { %5259 = vmatprep.mubr.f32.mxu1 %v6434_v53  ;;  %5403 = vmatprep.mubr.f32.mxu0 %v6460_v34 }
  0x8b   : > { %5260 = vmatmul.mubr.f32.gmra.mrb[20].mxu1 %v6455_v5  ;;  %5404 = vmatmul.mubr.f32.gmra.mrb[22].mxu0 %v6477_v48 }
  0x8c   : > { %5262 = vmatprep.mubr.f32.mxu1 %v6460_v34  ;;  %5406 = vmatprep.mubr.f32.mxu0 %v6480_v35 }
  0x8f   : > { %5263 = vmatmul.mubr.f32.gmra.mrb[22].mxu1 %v6477_v48  ;;  %5407 = vmatmul.mubr.f32.gmra.mrb[24].mxu0 %v6493_v63 }
  0x90   : > { %5265 = vmatprep.mubr.f32.mxu1 %v6480_v35  ;;  %5409 = vmatprep.mubr.f32.mxu0 %v6498_v62 }
  0x93   : > { %5266 = vmatmul.mubr.f32.gmra.mrb[24].mxu1 %v6493_v63  ;;  %5410 = vmatmul.mubr.f32.gmra.mrb[26].mxu0 %v6509_v46 }
  0x94   : > { %5268 = vmatprep.mubr.f32.mxu1 %v6498_v62  ;;  %5412 = vmatprep.mubr.f32.mxu0 %v6515_v13 }
  0x97   : > { %5269 = vmatmul.mubr.f32.gmra.mrb[26].mxu1 %v6509_v46  ;;  %5413 = vmatmul.mubr.f32.gmra.mrb[28].mxu0 %v6523_v9 }
  0x98   : > { %5271 = vmatprep.mubr.f32.mxu1 %v6515_v13  ;;  %5417 = vmatprep.mubr.f32.mxu0 %v6276_v16  ;;  %v11883_v16 = vld [vmem:[#allocation4_spill] sm:$0xff] }
  0x9b   : > { %5272 = vmatmul.mubr.f32.gmra.mrb[28].mxu1 %v6523_v9  ;;  %5418 = vmatmul.mubr.f32.vlgmr.msra.gmra.mrb[0].mxu0 %v6278_v17  ;;  %v11884_v17 = vld [vmem:[#allocation5_spill] sm:$0xff] }
  0x9c   : > { %5276 = vmatprep.mubr.f32.mxu1 %v6292_v26  ;;  %5420 = vmatprep.mubr.f32.mxu0 %v6281_v18  ;;  %v11885_v18 = vld [vmem:[#allocation6_spill] sm:$0xff]  ;;  %v11887_v26 = vld [vmem:[#allocation8_spill] sm:$0xff] }
  0x9f   : > { %5277 = vmatmul.mubr.f32.vlgmr.msra.gmra.mrb[0].mxu1 %v6295_v27  ;;  %5421 = vmatmul.mubr.f32.gmra.mrb[2].mxu0 %v6286_v22  ;;  %v11886_v22 = vld [vmem:[#allocation7_spill] sm:$0xff]  ;;  %v11888_v27 = vld [vmem:[#allocation9_spill] sm:$0xff] }
  0xa0   : > { %5279 = vmatprep.mubr.f32.mxu1 %v6298_v28  ;;  %5423 = vmatprep.mubr.f32.mxu0 %v6300_v29  ;;  %v11889_v28 = vld [vmem:[#allocation10_spill] sm:$0xff]  ;;  %v11890_v29 = vld [vmem:[#allocation11_spill] sm:$0xff] }
  0xa3   : > { %5280 = vmatmul.mubr.f32.gmra.mrb[2].mxu1 %v6303_v30  ;;  %5424 = vmatmul.mubr.f32.gmra.mrb[4].mxu0 %v6305_v31  ;;  %v11891_v30 = vld [vmem:[#allocation12_spill] sm:$0xff]  ;;  %v11892_v31 = vld [vmem:[#allocation13_spill] sm:$0xff] }
  0xa4   : > { %5282 = vmatprep.mubr.f32.mxu1 %v6314_v37  ;;  %5426 = vmatprep.mubr.f32.mxu0 %v6307_v32  ;;  %v11893_v32 = vld [vmem:[#allocation14_spill] sm:$0xff]  ;;  %v11894_v37 = vld [vmem:[#allocation15_spill] sm:$0xff] }
  0xa7   : > { %5283 = vmatmul.mubr.f32.gmra.mrb[4].mxu1 %v6318_v39  ;;  %5427 = vmatmul.mubr.f32.gmra.mrb[6].mxu0 %v6323_v41 }
  0xa8   : > { %5285 = vmatprep.mubr.f32.mxu1 %v6321_v40  ;;  %5429 = vmatprep.mubr.f32.mxu0 %v6348_v7 }
  0xab   : > { %5286 = vmatmul.mubr.f32.gmra.mrb[6].mxu1 %v6333_v49  ;;  %5430 = vmatmul.mubr.f32.gmra.mrb[8].mxu0 %v6353_v11 }
  0xac   : > { %5288 = vmatprep.mubr.f32.mxu1 %v6360_v15  ;;  %5432 = vmatprep.mubr.f32.mxu0 %v6355_v12 }
  0xaf   : > { %5289 = vmatmul.mubr.f32.gmra.mrb[8].mxu1 %v11881_v2  ;;  %5433 = vmatmul.mubr.f32.gmra.mrb[10].mxu0 %v6363_v20 }
  0xb0   : > { %5291 = vmatprep.mubr.f32.mxu1 %v11882_v3  ;;  %5435 = vmatprep.mubr.f32.mxu0 %v6365_v21 }
  0xb3   : > { %5292 = vmatmul.mubr.f32.gmra.mrb[10].mxu1 %v11883_v16  ;;  %5436 = vmatmul.mubr.f32.gmra.mrb[12].mxu0 %v6384_v38 }
  0xb4   : > { %5294 = vmatprep.mubr.f32.mxu1 %v11884_v17  ;;  %5438 = vmatprep.mubr.f32.mxu0 %v6388_v44 }
  0xb7   : > { %5295 = vmatmul.mubr.f32.gmra.mrb[12].mxu1 %v11885_v18  ;;  %5439 = vmatmul.mubr.f32.gmra.mrb[14].mxu0 %v6399_v54 }
  0xb8   : > { %5297 = vmatprep.mubr.f32.mxu1 %v11886_v22  ;;  %5441 = vmatprep.mubr.f32.mxu0 %v6412_v4 }
  0xbb   : > { %5298 = vmatmul.mubr.f32.gmra.mrb[14].mxu1 %v11887_v26  ;;  %5442 = vmatmul.mubr.f32.gmra.mrb[16].mxu0 %v6419_v10 }
  0xbc   : > { %5300 = vmatprep.mubr.f32.mxu1 %v11888_v27  ;;  %5444 = vmatprep.mubr.f32.mxu0 %v6427_v33 }
  0xbf   : > { %5301 = vmatmul.mubr.f32.gmra.mrb[16].mxu1 %v11889_v28  ;;  %5445 = vmatmul.mubr.f32.gmra.mrb[18].mxu0 %v6432_v52 }
  0xc0   : > { %5303 = vmatprep.mubr.f32.mxu1 %v11890_v29  ;;  %5447 = vmatprep.mubr.f32.mxu0 %v6434_v53 }
  0xc3   : > { %5304 = vmatmul.mubr.f32.gmra.mrb[18].mxu1 %v11891_v30  ;;  %5448 = vmatmul.mubr.f32.gmra.mrb[20].mxu0 %v6455_v5 }
  0xc4   : > { %5306 = vmatprep.mubr.f32.mxu1 %v11892_v31  ;;  %5450 = vmatprep.mubr.f32.mxu0 %v6460_v34 }
  0xc7   : > { %5307 = vmatmul.mubr.f32.gmra.mrb[20].mxu1 %v11893_v32  ;;  %5451 = vmatmul.mubr.f32.gmra.mrb[22].mxu0 %v6477_v48 }
  0xc8   : > { %5309 = vmatprep.mubr.f32.mxu1 %v11894_v37  ;;  %5453 = vmatprep.mubr.f32.mxu0 %v6480_v35 }
  0xcb   : > { %5310 = vmatmul.mubr.f32.gmra.mrb[22].mxu1 %v6491_v42  ;;  %5454 = vmatmul.mubr.f32.gmra.mrb[24].mxu0 %v6493_v63 }
  0xcc   : > { %5312 = vmatprep.mubr.f32.mxu1 %v6496_v0  ;;  %5456 = vmatprep.mubr.f32.mxu0 %v6498_v62 }
  0xcf   : > { %5313 = vmatmul.mubr.f32.gmra.mrb[24].mxu1 %v6507_v45  ;;  %5457 = vmatmul.mubr.f32.gmra.mrb[26].mxu0 %v6509_v46 }
  0xd0   : > { %5315 = vmatprep.mubr.f32.mxu1 %v6513_v6  ;;  %5459 = vmatprep.mubr.f32.mxu0 %v6515_v13 }
  0xd3   : > { %5316 = vmatmul.mubr.f32.gmra.mrb[26].mxu1 %v6521_v58  ;;  %5460 = vmatmul.mubr.f32.gmra.mrb[28].mxu0 %v6523_v9 }
  0xd4   : > { %5318 = vmatprep.mubr.f32.mxu1 %v6528_v8 }
  0xd7   : > { %5319 = vmatmul.mubr.f32.gmra.mrb[28].mxu1 %v6533_v59 }
 0x16e   : > { %v5419_v39 = vpop.f32.mrb[0].mxu0 }
 0x16f   : > { %v1824_v40 = vpop.f32.mrb[1].mxu0 }
 0x172   : > { %v5278_v41 = vpop.f32.mrb[0].mxu1  ;;  %v5422_v49 = vpop.f32.mrb[2].mxu0 }
 0x173   : > { %v5462_v7 = vadd.f32 %v5419_v39, %v5278_v41  ;;  %v995_v11 = vpop.f32.mrb[1].mxu1  ;;  %v1836_v12 = vpop.f32.mrb[3].mxu0 }
 0x174   : > { %v5463_v15 = vadd.f32 %v1824_v40, %v995_v11 }
 0x175   : > { %2149 = vrot.lane.b32.xlu1 %v5462_v7, %s6184_s26  ;;  %v2020_v20 = vrot.slane %v5462_v7, 7  ;;  %v2269_v21 = vrot.slane %v5462_v7, 1 }
 0x176   : > { %v5425_v35 = vpop.f32.mrb[4].mxu0  ;;  %2147 = vrot.lane.b32.xlu0 %v5463_v15, %s6184_s26  ;;  %v5281_v38 = vpop.f32.mrb[2].mxu1  ;;  %v2019_v44 = vrot.slane %v5463_v15, 7  ;;  %v2268_v50 = vrot.slane %v5463_v15, 1 }
 0x177   : > { %v6665_v54 = vadd.f32 %v5422_v49, %v5281_v38  ;;  %v1009_v4 = vpop.f32.mrb[3].mxu1  ;;  %v1848_v10 = vpop.f32.mrb[5].mxu0 }
 0x178   : > { %v6667_v33 = vadd.f32 %v1836_v12, %v1009_v4  ;;  %v2021_v52 = vsel %vm2018_vm2, %v2019_v44, %v2020_v20  ;;  %v2270_v53 = vsel %vm2267_vm3, %v2268_v50, %v2269_v21 }
 0x179   : > { %3106 = vrot.lane.b32.xlu1 %v5462_v7, %s6185_s27  ;;  %v6709_v3 = vrot.slane %v6665_v54, 7 }
 0x17a   : > { %v6673_v62 = vrot.slane %v6667_v33, 1  ;;  %v5428_v0 = vpop.f32.mrb[6].mxu0  ;;  %3104 = vrot.lane.b32.xlu0 %v5463_v15, %s6185_s27  ;;  %v5284_v5 = vpop.f32.mrb[4].mxu1 }
 0x17b   : > { %v6676_v34 = vadd.f32 %v5425_v35, %v5284_v5  ;;  %v1023_v58 = vpop.f32.mrb[5].mxu1  ;;  %v1860_v48 = vpop.f32.mrb[7].mxu0 }
 0x17c   : > { %v6678_v42 = vadd.f32 %v1848_v10, %v1023_v58  ;;  %v6682_v63 = vsel %vm2267_vm3, %v2269_v21, %v6673_v62 }
 0x17d   : > { %2047 = vrot.lane.b32.xlu1 %v2020_v20, %s6184_s26 }
 0x17e   : > { %v5431_v45 = vpop.f32.mrb[8].mxu0  ;;  %2892 = vrot.lane.b32.xlu0 %v2020_v20, %s6186_s28  ;;  %v5287_v46 = vpop.f32.mrb[6].mxu1 }
 0x17f   : > { %v6686_v6 = vadd.f32 %v5428_v0, %v5287_v46  ;;  %v1037_v13 = vpop.f32.mrb[7].mxu1  ;;  %v1872_v9 = vpop.f32.mrb[9].mxu0 }
 0x180   : > { %v6688_v8 = vadd.f32 %v1860_v48, %v1037_v13 }
 0x181   : > { %11895 = vst [vmem:[#allocation2_spill] sm:$0xff] %v6686_v6  ;;  %2153 = vrot.lane.b32.xlu1 %v6665_v54, %s6184_s26 }
 0x182   : > { %11896 = vst [vmem:[#allocation3_spill] sm:$0xff] %v6688_v8  ;;  %v5434_v56 = vpop.f32.mrb[10].mxu0  ;;  %2043 = vrot.lane.b32.xlu0 %v2019_v44, %s6184_s26  ;;  %v5290_v60 = vpop.f32.mrb[8].mxu1 }
 0x183   : > { %v6693_v1 = vadd.f32 %v5431_v45, %v5290_v60  ;;  %v1051_v59 = vpop.f32.mrb[9].mxu1  ;;  %v1884_v23 = vpop.f32.mrb[11].mxu0 }
 0x184   : > { %v6695_v14 = vadd.f32 %v1872_v9, %v1051_v59  ;;  %v6766_v59 = vrot.slane %v6676_v34, 1 }
 0x185   : > { %11897 = vst [vmem:[#allocation4_spill] sm:$0xff] %v6693_v1  ;;  %2890 = vrot.lane.b32.xlu1 %v2021_v52, %s6186_s28 }
 0x186   : > { %11898 = vst [vmem:[#allocation5_spill] sm:$0xff] %v6695_v14  ;;  %v5437_v36 = vpop.f32.mrb[12].mxu0  ;;  %2888 = vrot.lane.b32.xlu0 %v2019_v44, %s6186_s28  ;;  %v5293_v19 = vpop.f32.mrb[10].mxu1  ;;  %11916 = vst [vmem:[#allocation23_spill] sm:$0xff] %v6766_v59 }
 0x187   : > { %v6699_v25 = vadd.f32 %v5434_v56, %v5293_v19  ;;  %v1065_v47 = vpop.f32.mrb[11].mxu1  ;;  %v1896_v61 = vpop.f32.mrb[13].mxu0 }
 0x188   : > { %v6701_v43 = vadd.f32 %v1884_v23, %v1065_v47 }
 0x189   : > { %11899 = vst [vmem:[#allocation6_spill] sm:$0xff] %v6699_v25  ;;  %3110 = vrot.lane.b32.xlu1 %v6665_v54, %s6185_s27 }
 0x18a   : > { %11900 = vst [vmem:[#allocation7_spill] sm:$0xff] %v6701_v43  ;;  %v5440_v24 = vpop.f32.mrb[14].mxu0  ;;  %2045 = vrot.lane.b32.xlu0 %v2021_v52, %s6184_s26  ;;  %v5296_v55 = vpop.f32.mrb[12].mxu1 }
 0x18b   : > { %v6706_v51 = vadd.f32 %v5437_v36, %v5296_v55  ;;  %v1079_v57 = vpop.f32.mrb[13].mxu1  ;;  %v1908_v2 = vpop.f32.mrb[15].mxu0  ;;  %v2273_v55 = vrot.slane %v6665_v54, 1 }
 0x18c   : > { %v6711_v16 = vadd.f32 %v1896_v61, %v1079_v57 }
 0x18d   : > { %11901 = vst [vmem:[#allocation8_spill] sm:$0xff] %v6706_v51  ;;  %2049 = vrot.lane.b32.xlu1 %v6709_v3, %s6184_s26 }
 0x18e   : > { %11902 = vst [vmem:[#allocation9_spill] sm:$0xff] %v6711_v16  ;;  %v5443_v17 = vpop.f32.mrb[16].mxu0  ;;  %2308 = vrot.lane.b32.xlu0 %v2270_v53, %s6184_s26  ;;  %v5299_v18 = vpop.f32.mrb[14].mxu1 }
 0x18f   : > { %v6716_v22 = vadd.f32 %v5440_v24, %v5299_v18  ;;  %v1093_v26 = vpop.f32.mrb[15].mxu1  ;;  %v1920_v27 = vpop.f32.mrb[17].mxu0  ;;  %v2023_v24 = vrot.slane %v6678_v42, 7  ;;  %v6828_v18 = vrot.slane %v6688_v8, 7 }
 0x190   : > { %v6718_v28 = vadd.f32 %v1908_v2, %v1093_v26 }
 0x191   : > { %11903 = vst [vmem:[#allocation10_spill] sm:$0xff] %v6716_v22  ;;  %2894 = vrot.lane.b32.xlu1 %v6709_v3, %s6186_s28  ;;  %v2024_v2 = vsel %vm2018_vm2, %v6709_v3, %v2023_v24  ;;  %11923 = vst [vmem:[#allocation30_spill] sm:$0xff] %v6828_v18 }
 0x192   : > { %11904 = vst [vmem:[#allocation11_spill] sm:$0xff] %v6718_v28  ;;  %v5446_v29 = vpop.f32.mrb[18].mxu0  ;;  %3320 = vrot.lane.b32.xlu0 %v2270_v53, %s6187_s29  ;;  %v5302_v30 = vpop.f32.mrb[16].mxu1 }
 0x193   : > { %v6723_v31 = vadd.f32 %v5443_v17, %v5302_v30  ;;  %v1107_v32 = vpop.f32.mrb[17].mxu1  ;;  %v1932_v37 = vpop.f32.mrb[19].mxu0 }
 0x194   : > { %v6725_v39 = vadd.f32 %v1920_v27, %v1107_v32  ;;  %v2278_v27 = vrot.slane %v6688_v8, 1 }
 0x195   : > { %11905 = vst [vmem:[#allocation12_spill] sm:$0xff] %v6723_v31  ;;  %2157 = vrot.lane.b32.xlu1 %v6676_v34, %s6184_s26 }
 0x196   : > { %11906 = vst [vmem:[#allocation13_spill] sm:$0xff] %v6725_v39  ;;  %v5449_v40 = vpop.f32.mrb[20].mxu0  ;;  %3752 = vrot.lane.b32.xlu0 %v6665_v54, %s6188_s30  ;;  %v5305_v41 = vpop.f32.mrb[18].mxu1 }
 0x197   : > { %v6731_v49 = vadd.f32 %v5446_v29, %v5305_v41  ;;  %v1121_v7 = vpop.f32.mrb[19].mxu1  ;;  %v1944_v11 = vpop.f32.mrb[21].mxu0  ;;  %v2279_v29 = vrot.slane %v6686_v6, 1  ;;  %v6871_v41 = vrot.slane %v6693_v1, 7 }
 0x198   : > { %v6733_v12 = vadd.f32 %v1932_v37, %v1121_v7 }
 0x199   : > { %11907 = vst [vmem:[#allocation14_spill] sm:$0xff] %v6731_v49  ;;  %2310 = vrot.lane.b32.xlu1 %v6682_v63, %s6184_s26  ;;  %v6864_v37 = vsel %vm2267_vm3, %v2278_v27, %v2279_v29  ;;  %11927 = vst [vmem:[#allocation34_spill] sm:$0xff] %v6871_v41 }
 0x19a   : > { %11908 = vst [vmem:[#allocation15_spill] sm:$0xff] %v6733_v12  ;;  %v5452_v15 = vpop.f32.mrb[22].mxu0  ;;  %2151 = vrot.lane.b32.xlu0 %v6667_v33, %s6184_s26  ;;  %v5308_v20 = vpop.f32.mrb[20].mxu1  ;;  %11925 = vst [vmem:[#allocation32_spill] sm:$0xff] %v6864_v37 }
 0x19b   : > { %v6739_v21 = vadd.f32 %v5449_v40, %v5308_v20  ;;  %v1135_v35 = vpop.f32.mrb[21].mxu1  ;;  %v1956_v38 = vpop.f32.mrb[23].mxu0 }
 0x19c   : > { %v6741_v44 = vadd.f32 %v1944_v11, %v1135_v35 }
 0x19d   : > { %11909 = vst [vmem:[#allocation16_spill] sm:$0xff] %v6739_v21  ;;  %3114 = vrot.lane.b32.xlu1 %v6676_v34, %s6185_s27 }
 0x19e   : > { %11910 = vst [vmem:[#allocation17_spill] sm:$0xff] %v6741_v44  ;;  %v5455_v50 = vpop.f32.mrb[24].mxu0  ;;  %3108 = vrot.lane.b32.xlu0 %v6667_v33, %s6185_s27  ;;  %v5311_v4 = vpop.f32.mrb[22].mxu1 }
 0x19f   : > { %v6747_v10 = vadd.f32 %v5452_v15, %v5311_v4  ;;  %v1149_v52 = vpop.f32.mrb[23].mxu1  ;;  %v1968_v53 = vpop.f32.mrb[25].mxu0 }
 0x1a0   : > { %v6749_v0 = vadd.f32 %v1956_v38, %v1149_v52  ;;  %v6892_v38 = vrot.slane %v6695_v14, 1 }
 0x1a1   : > { %11911 = vst [vmem:[#allocation18_spill] sm:$0xff] %v6747_v10  ;;  %3322 = vrot.lane.b32.xlu1 %v6682_v63, %s6187_s29 }
 0x1a2   : > { %11912 = vst [vmem:[#allocation19_spill] sm:$0xff] %v6749_v0  ;;  %v5458_v5 = vpop.f32.mrb[26].mxu0  ;;  %3536 = vrot.lane.b32.xlu0 %v6709_v3, %s6189_s3  ;;  %v5314_v58 = vpop.f32.mrb[24].mxu1  ;;  %v6821_v3 = vrot.slane %v6686_v6, 7  ;;  %11930 = vst [vmem:[#allocation37_spill] sm:$0xff] %v6892_v38  ;;  %v6904_v52 = vsel %vm2267_vm3, %v2279_v29, %v6892_v38 }
 0x1a3   : > { %v6755_v48 = vadd.f32 %v5455_v50, %v5314_v58  ;;  %v1163_v45 = vpop.f32.mrb[25].mxu1  ;;  %v1980_v33 = vpop.f32.mrb[27].mxu0  ;;  %11933 = vst [vmem:[#allocation40_spill] sm:$0xff] %v6904_v52 }
 0x1a4   : > { %v6757_v46 = vadd.f32 %v1968_v53, %v1163_v45  ;;  %11922 = vst [vmem:[#allocation29_spill] sm:$0xff] %v6821_v3  ;;  %v6837_v26 = vsel %vm2018_vm2, %v6828_v18, %v6821_v3 }
 0x1a5   : > { %11913 = vst [vmem:[#allocation20_spill] sm:$0xff] %v6755_v48  ;;  %3754 = vrot.lane.b32.xlu1 %v6678_v42, %s6188_s30  ;;  %11924 = vst [vmem:[#allocation31_spill] sm:$0xff] %v6837_v26 }
 0x1a6   : > { %11914 = vst [vmem:[#allocation21_spill] sm:$0xff] %v6757_v46  ;;  %v5461_v13 = vpop.f32.mrb[28].mxu0  ;;  %2312 = vrot.lane.b32.xlu0 %v6673_v62, %s6184_s26  ;;  %v5317_v63 = vpop.f32.mrb[26].mxu1 }
 0x1a7   : > { %v6763_v9 = vadd.f32 %v5458_v5, %v5317_v63  ;;  %v1177_v56 = vpop.f32.mrb[27].mxu1  ;;  %v1992_v60 = vpop.f32.mrb[29].mxu0 }
 0x1a8   : > { %v6768_v23 = vadd.f32 %v1980_v33, %v1177_v56  ;;  %v6937_v56 = vrot.slane %v6699_v25, 1 }
 0x1a9   : > { %11915 = vst [vmem:[#allocation22_spill] sm:$0xff] %v6763_v9  ;;  %2318 = vrot.lane.b32.xlu1 %v6766_v59, %s6184_s26 }
 0x1aa   : > { %11917 = vst [vmem:[#allocation24_spill] sm:$0xff] %v6768_v23  ;;  %3324 = vrot.lane.b32.xlu0 %v6673_v62, %s6187_s29  ;;  %v5320_v36 = vpop.f32.mrb[28].mxu1  ;;  %v2274_v62 = vrot.slane %v6678_v42, 1  ;;  %11937 = vst [vmem:[#allocation44_spill] sm:$0xff] %v6937_v56 }
 0x1ab   : > { %v6774_v19 = vadd.f32 %v5461_v13, %v5320_v36  ;;  %v1191_v47 = vpop.f32.mrb[29].mxu1 }
 0x1ac   : > { %v6776_v61 = vadd.f32 %v1992_v60, %v1191_v47  ;;  %v6795_v57 = vsel %vm2267_vm3, %v2273_v55, %v2274_v62  ;;  %v6806_v17 = vsel %vm2267_vm3, %v2274_v62, %v6766_v59  ;;  %v6956_v62 = vrot.slane %v6701_v43, 7 }
 0x1ad   : > { %11918 = vst [vmem:[#allocation25_spill] sm:$0xff] %v6774_v19  ;;  %3330 = vrot.lane.b32.xlu1 %v6766_v59, %s6187_s29  ;;  %11920 = vst [vmem:[#allocation27_spill] sm:$0xff] %v6795_v57 }
 0x1ae   : > { %11919 = vst [vmem:[#allocation26_spill] sm:$0xff] %v6776_v61  ;;  %3756 = vrot.lane.b32.xlu0 %v6676_v34, %s6188_s30  ;;  %11921 = vst [vmem:[#allocation28_spill] sm:$0xff] %v6806_v17 }
 0x1af   : > { %11940 = vst [vmem:[#allocation47_spill] sm:$0xff] %v6956_v62 }
 0x1b1   : > { %2053 = vrot.lane.b32.xlu1 %v2023_v24, %s6184_s26 }
 0x1b2   : > { %2155 = vrot.lane.b32.xlu0 %v6678_v42, %s6184_s26 }
 0x1b5   : > { %2898 = vrot.lane.b32.xlu1 %v2023_v24, %s6186_s28 }
 0x1b6   : > { %3112 = vrot.lane.b32.xlu0 %v6678_v42, %s6185_s27 }
 0x1b9   : > { %2161 = vrot.lane.b32.xlu1 %v6686_v6, %s6184_s26 }
 0x1ba   : > { %3540 = vrot.lane.b32.xlu0 %v2023_v24, %s6189_s3 }
 0x1bd   : > { %2314 = vrot.lane.b32.xlu1 %v6795_v57, %s6184_s26 }
 0x1be   : > { %2051 = vrot.lane.b32.xlu0 %v2024_v2, %s6184_s26 }
 0x1c1   : > { %3118 = vrot.lane.b32.xlu1 %v6686_v6, %s6185_s27 }
 0x1c2   : > { %2316 = vrot.lane.b32.xlu0 %v6806_v17, %s6184_s26 }
 0x1c5   : > { %3326 = vrot.lane.b32.xlu1 %v6795_v57, %s6187_s29 }
 0x1c6   : > { %2896 = vrot.lane.b32.xlu0 %v2024_v2, %s6186_s28 }
 0x1c9   : > { %3538 = vrot.lane.b32.xlu1 %v2024_v2, %s6189_s3 }
 0x1ca   : > { %3328 = vrot.lane.b32.xlu0 %v6806_v17, %s6187_s29 }
 0x1cd   : > { %3758 = vrot.lane.b32.xlu1 %v6688_v8, %s6188_s30 }
 0x1ce   : > { %3760 = vrot.lane.b32.xlu0 %v6686_v6, %s6188_s30 }
 0x1d1   : > { %3546 = vrot.lane.b32.xlu1 %v6821_v3, %s6189_s3 }
 0x1d2   : > { %2159 = vrot.lane.b32.xlu0 %v6688_v8, %s6184_s26 }
 0x1d5   : > { %3542 = vrot.lane.b32.xlu1 %v6828_v18, %s6189_s3 }
 0x1d6   : > { %3116 = vrot.lane.b32.xlu0 %v6688_v8, %s6185_s27 }
 0x1d9   : > { %2057 = vrot.lane.b32.xlu1 %v6837_v26, %s6184_s26 }
 0x1da   : > { %2059 = vrot.lane.b32.xlu0 %v6821_v3, %s6184_s26 }
 0x1dd   : > { %2165 = vrot.lane.b32.xlu1 %v6693_v1, %s6184_s26 }
 0x1de   : > { %2904 = vrot.lane.b32.xlu0 %v6821_v3, %s6186_s28 }
 0x1e1   : > { %2902 = vrot.lane.b32.xlu1 %v6837_v26, %s6186_s28 }
 0x1e2   : > { %2055 = vrot.lane.b32.xlu0 %v6828_v18, %s6184_s26 }
 0x1e5   : > { %3122 = vrot.lane.b32.xlu1 %v6693_v1, %s6185_s27 }
 0x1e6   : > { %2900 = vrot.lane.b32.xlu0 %v6828_v18, %s6186_s28  ;;  %v2284_v18 = vrot.slane %v6701_v43, 1 }
 0x1e7   : > { %v6857_v30 = vpop.permute.xlu1 %2149 }
 0x1e8   : > { %v6859_v32 = vpop.permute.xlu0 %2147 }
 0x1e9   : > { %3762 = vrot.lane.b32.xlu1 %v6695_v14, %s6188_s30 }
 0x1ea   : > { %2320 = vrot.lane.b32.xlu0 %v6864_v37, %s6184_s26 }
 0x1eb   : > { %v6868_v40 = vpop.permute.xlu1 %3106 }
 0x1ec   : > { %11926 = vst [vmem:[#allocation33_spill] sm:$0xff] %v6868_v40  ;;  %v6873_v7 = vpop.permute.xlu0 %3104 }
 0x1ed   : > { %11928 = vst [vmem:[#allocation35_spill] sm:$0xff] %v6873_v7  ;;  %2061 = vrot.lane.b32.xlu1 %v6871_v41, %s6184_s26 }
 0x1ee   : > { %3332 = vrot.lane.b32.xlu0 %v6864_v37, %s6187_s29  ;;  %v6994_v37 = vsel %vm2018_vm2, %v6871_v41, %v6956_v62 }
 0x1ef   : > { %v6879_v11 = vpop.permute.xlu1 %2047  ;;  %11947 = vst [vmem:[#allocation54_spill] sm:$0xff] %v6994_v37 }
 0x1f0   : > { %v6881_v15 = vpop.permute.xlu0 %2892 }
 0x1f1   : > { %11929 = vst [vmem:[#allocation36_spill] sm:$0xff] %v6881_v15  ;;  %2906 = vrot.lane.b32.xlu1 %v6871_v41, %s6186_s28 }
 0x1f2   : > { %3544 = vrot.lane.b32.xlu0 %v6837_v26, %s6189_s3  ;;  %v2283_v26 = vrot.slane %v6693_v1, 1 }
 0x1f3   : > { %v6887_v20 = vpop.permute.xlu1 %2153 }
 0x1f4   : > { %v6889_v35 = vpop.permute.xlu0 %2043  ;;  %v6987_v59 = vsel %vm2267_vm3, %v2283_v26, %v2284_v18  ;;  %v7006_v26 = vsel %vm2267_vm3, %v2284_v18, %v6937_v56 }
 0x1f5   : > { %2169 = vrot.lane.b32.xlu1 %v6699_v25, %s6184_s26  ;;  %11946 = vst [vmem:[#allocation53_spill] sm:$0xff] %v6987_v59  ;;  %11950 = vst [vmem:[#allocation57_spill] sm:$0xff] %v7006_v26 }
 0x1f6   : > { %3764 = vrot.lane.b32.xlu0 %v6693_v1, %s6188_s30 }
 0x1f7   : > { %v6898_v50 = vpop.permute.xlu1 %2890 }
 0x1f8   : > { %11931 = vst [vmem:[#allocation38_spill] sm:$0xff] %v6898_v50  ;;  %v6900_v4 = vpop.permute.xlu0 %2888 }
 0x1f9   : > { %11932 = vst [vmem:[#allocation39_spill] sm:$0xff] %v6900_v4  ;;  %2322 = vrot.lane.b32.xlu1 %v6904_v52, %s6184_s26 }
 0x1fa   : > { %2163 = vrot.lane.b32.xlu0 %v6695_v14, %s6184_s26 }
 0x1fb   : > { %v6910_v53 = vpop.permute.xlu1 %3110 }
 0x1fc   : > { %11934 = vst [vmem:[#allocation41_spill] sm:$0xff] %v6910_v53  ;;  %v6912_v5 = vpop.permute.xlu0 %2045 }
 0x1fd   : > { %3126 = vrot.lane.b32.xlu1 %v6699_v25, %s6185_s27 }
 0x1fe   : > { %3120 = vrot.lane.b32.xlu0 %v6695_v14, %s6185_s27 }
 0x1ff   : > { %v6918_v58 = vpop.permute.xlu1 %2049 }
 0x200   : > { %v6920_v45 = vpop.permute.xlu0 %2308 }
 0x201   : > { %3334 = vrot.lane.b32.xlu1 %v6904_v52, %s6187_s29 }
 0x202   : > { %3548 = vrot.lane.b32.xlu0 %v6871_v41, %s6189_s3 }
 0x203   : > { %v6926_v33 = vpop.permute.xlu1 %2894 }
 0x204   : > { %11935 = vst [vmem:[#allocation42_spill] sm:$0xff] %v6926_v33  ;;  %v6928_v13 = vpop.permute.xlu0 %3320 }
 0x205   : > { %11936 = vst [vmem:[#allocation43_spill] sm:$0xff] %v6928_v13  ;;  %3766 = vrot.lane.b32.xlu1 %v6701_v43, %s6188_s30 }
 0x206   : > { %2324 = vrot.lane.b32.xlu0 %v6892_v38, %s6184_s26 }
 0x207   : > { %v6934_v63 = vpop.permute.xlu1 %2157 }
 0x208   : > { %v6939_v60 = vpop.permute.xlu0 %3752 }
 0x209   : > { %11938 = vst [vmem:[#allocation45_spill] sm:$0xff] %v6939_v60  ;;  %2330 = vrot.lane.b32.xlu1 %v6937_v56, %s6184_s26 }
 0x20a   : > { %3336 = vrot.lane.b32.xlu0 %v6892_v38, %s6187_s29 }
 0x20b   : > { %v6945_v36 = vpop.permute.xlu1 %2310 }
 0x20c   : > { %v6947_v47 = vpop.permute.xlu0 %2151 }
 0x20d   : > { %3342 = vrot.lane.b32.xlu1 %v6937_v56, %s6187_s29 }
 0x20e   : > { %3768 = vrot.lane.b32.xlu0 %v6699_v25, %s6188_s30 }
 0x20f   : > { %v6953_v24 = vpop.permute.xlu1 %3114 }
 0x210   : > { %11939 = vst [vmem:[#allocation46_spill] sm:$0xff] %v6953_v24  ;;  %v6958_v55 = vpop.permute.xlu0 %3108 }
 0x211   : > { %11941 = vst [vmem:[#allocation48_spill] sm:$0xff] %v6958_v55  ;;  %2065 = vrot.lane.b32.xlu1 %v6956_v62, %s6184_s26 }
 0x212   : > { %2167 = vrot.lane.b32.xlu0 %v6701_v43, %s6184_s26 }
 0x213   : > { %v6964_v2 = vpop.permute.xlu1 %3322 }
 0x214   : > { %11942 = vst [vmem:[#allocation49_spill] sm:$0xff] %v6964_v2  ;;  %v6966_v27 = vpop.permute.xlu0 %3536  ;;  %v7130_v2 = vrot.slane %v6718_v28, 1 }
 0x215   : > { %11943 = vst [vmem:[#allocation50_spill] sm:$0xff] %v6966_v27  ;;  %2910 = vrot.lane.b32.xlu1 %v6956_v62, %s6186_s28 }
 0x216   : > { %3124 = vrot.lane.b32.xlu0 %v6701_v43, %s6185_s27  ;;  %11972 = vst [vmem:[#allocation79_spill] sm:$0xff] %v7130_v2 }
 0x217   : > { %v6972_v29 = vpop.permute.xlu1 %3754 }
 0x218   : > { %11944 = vst [vmem:[#allocation51_spill] sm:$0xff] %v6972_v29  ;;  %v6974_v3 = vpop.permute.xlu0 %2312 }
 0x219   : > { %2173 = vrot.lane.b32.xlu1 %v6706_v51, %s6184_s26 }
 0x21a   : > { %3552 = vrot.lane.b32.xlu0 %v6956_v62, %s6189_s3 }
 0x21b   : > { %v6982_v52 = vpop.permute.xlu1 %2318 }
 0x21c   : > { %v6984_v38 = vpop.permute.xlu0 %3324 }
 0x21d   : > { %11945 = vst [vmem:[#allocation52_spill] sm:$0xff] %v6984_v38  ;;  %2326 = vrot.lane.b32.xlu1 %v6987_v59, %s6184_s26 }
 0x21e   : > { %2063 = vrot.lane.b32.xlu0 %v6994_v37, %s6184_s26 }
 0x21f   : > { %v6998_v57 = vpop.permute.xlu1 %3330 }
 0x220   : > { %11948 = vst [vmem:[#allocation55_spill] sm:$0xff] %v6998_v57  ;;  %v7000_v17 = vpop.permute.xlu0 %3756 }
 0x221   : > { %11949 = vst [vmem:[#allocation56_spill] sm:$0xff] %v7000_v17  ;;  %3130 = vrot.lane.b32.xlu1 %v6706_v51, %s6185_s27 }
 0x222   : > { %2328 = vrot.lane.b32.xlu0 %v7006_v26, %s6184_s26 }
 0x223   : > { %v7010_v24 = vpop.permute.xlu1 %2053 }
 0x224   : > { %v7012_v62 = vpop.permute.xlu0 %2155 }
 0x225   : > { %3338 = vrot.lane.b32.xlu1 %v6987_v59, %s6187_s29 }
 0x226   : > { %2908 = vrot.lane.b32.xlu0 %v6994_v37, %s6186_s28 }
 0x227   : > { %v7018_v41 = vpop.permute.xlu1 %2898 }
 0x228   : > { %11951 = vst [vmem:[#allocation58_spill] sm:$0xff] %v7018_v41  ;;  %v7020_v57 = vpop.permute.xlu0 %3112 }
 0x229   : > { %11952 = vst [vmem:[#allocation59_spill] sm:$0xff] %v7020_v57  ;;  %3550 = vrot.lane.b32.xlu1 %v6994_v37, %s6189_s3  ;;  %v7037_v57 = vrot.slane %v6706_v51, 7 }
 0x22a   : > { %3340 = vrot.lane.b32.xlu0 %v7006_v26, %s6187_s29  ;;  %v7048_v26 = vrot.slane %v6711_v16, 7 }
 0x22b   : > { %v7026_v18 = vpop.permute.xlu1 %2161  ;;  %11954 = vst [vmem:[#allocation61_spill] sm:$0xff] %v7037_v57 }
 0x22c   : > { %v7028_v56 = vpop.permute.xlu0 %3540  ;;  %11956 = vst [vmem:[#allocation63_spill] sm:$0xff] %v7048_v26 }
 0x22d   : > { %11953 = vst [vmem:[#allocation60_spill] sm:$0xff] %v7028_v56  ;;  %3770 = vrot.lane.b32.xlu1 %v6711_v16, %s6188_s30  ;;  %v7063_v56 = vsel %vm2018_vm2, %v7048_v26, %v7037_v57 }
 0x22e   : > { %3772 = vrot.lane.b32.xlu0 %v6706_v51, %s6188_s30  ;;  %11959 = vst [vmem:[#allocation66_spill] sm:$0xff] %v7063_v56 }
 0x22f   : > { %v7034_v59 = vpop.permute.xlu1 %2314 }
 0x230   : > { %v7039_v41 = vpop.permute.xlu0 %2051 }
 0x231   : > { %3558 = vrot.lane.b32.xlu1 %v7037_v57, %s6189_s3 }
 0x232   : > { %2171 = vrot.lane.b32.xlu0 %v6711_v16, %s6184_s26 }
 0x233   : > { %v7045_v37 = vpop.permute.xlu1 %3118 }
 0x234   : > { %11955 = vst [vmem:[#allocation62_spill] sm:$0xff] %v7045_v37  ;;  %v7050_v53 = vpop.permute.xlu0 %2316 }
 0x235   : > { %3554 = vrot.lane.b32.xlu1 %v7048_v26, %s6189_s3 }
 0x236   : > { %3128 = vrot.lane.b32.xlu0 %v6711_v16, %s6185_s27 }
 0x237   : > { %v7056_v33 = vpop.permute.xlu1 %3326 }
 0x238   : > { %11957 = vst [vmem:[#allocation64_spill] sm:$0xff] %v7056_v33  ;;  %v7058_v17 = vpop.permute.xlu0 %2896 }
 0x239   : > { %11958 = vst [vmem:[#allocation65_spill] sm:$0xff] %v7058_v17  ;;  %2069 = vrot.lane.b32.xlu1 %v7063_v56, %s6184_s26 }
 0x23a   : > { %2071 = vrot.lane.b32.xlu0 %v7037_v57, %s6184_s26 }
 0x23b   : > { %v7069_v37 = vpop.permute.xlu1 %3538 }
 0x23c   : > { %11960 = vst [vmem:[#allocation67_spill] sm:$0xff] %v7069_v37  ;;  %v7071_v38 = vpop.permute.xlu0 %3328 }
 0x23d   : > { %11961 = vst [vmem:[#allocation68_spill] sm:$0xff] %v7071_v38  ;;  %2177 = vrot.lane.b32.xlu1 %v6716_v22, %s6184_s26  ;;  %v2288_v38 = vrot.slane %v6711_v16, 1  ;;  %v7308_v16 = vmul.f32 %v6678_v42, %v6857_v30  ;;  %v7325_v30 = vrot.slane %v6741_v44, 1 }
 0x23e   : > { %2916 = vrot.lane.b32.xlu0 %v7037_v57, %s6186_s28  ;;  %v2289_v57 = vrot.slane %v6706_v51, 1  ;;  %v7109_v51 = vrot.slane %v6716_v22, 7 }
 0x23f   : > { %v7077_v17 = vpop.permute.xlu1 %3758  ;;  %12008 = vst [vmem:[#allocation115_spill] sm:$0xff] %v7325_v30 }
 0x240   : > { %11962 = vst [vmem:[#allocation69_spill] sm:$0xff] %v7077_v17  ;;  %v7079_v33 = vpop.permute.xlu0 %3760  ;;  %11968 = vst [vmem:[#allocation75_spill] sm:$0xff] %v7109_v51 }
 0x241   : > { %11963 = vst [vmem:[#allocation70_spill] sm:$0xff] %v7079_v33  ;;  %2914 = vrot.lane.b32.xlu1 %v7063_v56, %s6186_s28 }
 0x242   : > { %2067 = vrot.lane.b32.xlu0 %v7048_v26, %s6184_s26 }
 0x243   : > { %v7085_v55 = vpop.permute.xlu1 %3546 }
 0x244   : > { %11964 = vst [vmem:[#allocation71_spill] sm:$0xff] %v7085_v55  ;;  %v7087_v15 = vpop.permute.xlu0 %2159  ;;  %v7102_v55 = vsel %vm2267_vm3, %v2288_v38, %v2289_v57 }
 0x245   : > { %3134 = vrot.lane.b32.xlu1 %v6716_v22, %s6185_s27  ;;  %11967 = vst [vmem:[#allocation74_spill] sm:$0xff] %v7102_v55 }
 0x246   : > { %2912 = vrot.lane.b32.xlu0 %v7048_v26, %s6186_s28 }
 0x247   : > { %v7095_v33 = vpop.permute.xlu1 %3542 }
 0x248   : > { %11965 = vst [vmem:[#allocation72_spill] sm:$0xff] %v7095_v33  ;;  %v7097_v17 = vpop.permute.xlu0 %3116 }
 0x249   : > { %11966 = vst [vmem:[#allocation73_spill] sm:$0xff] %v7097_v17  ;;  %3774 = vrot.lane.b32.xlu1 %v6718_v28, %s6188_s30 }
 0x24a   : > { %2332 = vrot.lane.b32.xlu0 %v7102_v55, %s6184_s26 }
 0x24b   : > { %v7106_v29 = vpop.permute.xlu1 %2057 }
 0x24c   : > { %v7111_v37 = vpop.permute.xlu0 %2059 }
 0x24d   : > { %2073 = vrot.lane.b32.xlu1 %v7109_v51, %s6184_s26 }
 0x24e   : > { %3344 = vrot.lane.b32.xlu0 %v7102_v55, %s6187_s29 }
 0x24f   : > { %v7117_v26 = vpop.permute.xlu1 %2165 }
 0x250   : > { %11969 = vst [vmem:[#allocation76_spill] sm:$0xff] %v7117_v26  ;;  %v7119_v38 = vpop.permute.xlu0 %2904  ;;  %v7312_v26 = vmul.f32 %v6678_v42, %v6945_v36 }
 0x251   : > { %11970 = vst [vmem:[#allocation77_spill] sm:$0xff] %v7119_v38  ;;  %2918 = vrot.lane.b32.xlu1 %v7109_v51, %s6186_s28 }
 0x252   : > { %3556 = vrot.lane.b32.xlu0 %v7063_v56, %s6189_s3  ;;  %v7142_v56 = vsel %vm2267_vm3, %v2289_v57, %v7130_v2  ;;  %12006 = vst [vmem:[#allocation113_spill] sm:$0xff] %v7312_v26 }
 0x253   : > { %v7125_v17 = vpop.permute.xlu1 %2902  ;;  %11975 = vst [vmem:[#allocation82_spill] sm:$0xff] %v7142_v56 }
 0x254   : > { %11971 = vst [vmem:[#allocation78_spill] sm:$0xff] %v7125_v17  ;;  %v7127_v33 = vpop.permute.xlu0 %2055 }
 0x255   : > { %2181 = vrot.lane.b32.xlu1 %v6723_v31, %s6184_s26 }
 0x256   : > { %3776 = vrot.lane.b32.xlu0 %v6716_v22, %s6188_s30 }
 0x257   : > { %v7136_v55 = vpop.permute.xlu1 %3122 }
 0x258   : > { %11973 = vst [vmem:[#allocation80_spill] sm:$0xff] %v7136_v55  ;;  %v7138_v38 = vpop.permute.xlu0 %2900 }
 0x259   : > { %11974 = vst [vmem:[#allocation81_spill] sm:$0xff] %v7138_v38  ;;  %2334 = vrot.lane.b32.xlu1 %v7142_v56, %s6184_s26 }
 0x25a   : > { %2175 = vrot.lane.b32.xlu0 %v6718_v28, %s6184_s26 }
 0x25b   : > { %v7148_v17 = vpop.permute.xlu1 %3762 }
 0x25c   : > { %11976 = vst [vmem:[#allocation83_spill] sm:$0xff] %v7148_v17  ;;  %v7150_v40 = vpop.permute.xlu0 %2320 }
 0x25d   : > { %3138 = vrot.lane.b32.xlu1 %v6723_v31, %s6185_s27 }
 0x25e   : > { %3132 = vrot.lane.b32.xlu0 %v6718_v28, %s6185_s27  ;;  %v2294_v28 = vrot.slane %v6725_v39, 1 }
 0x25f   : > { %v7156_v55 = vpop.permute.xlu1 %2061 }
 0x260   : > { %v7158_v57 = vpop.permute.xlu0 %3332 }
 0x261   : > { %11977 = vst [vmem:[#allocation84_spill] sm:$0xff] %v7158_v57  ;;  %3346 = vrot.lane.b32.xlu1 %v7142_v56, %s6187_s29  ;;  %v7175_v57 = vrot.slane %v6723_v31, 1 }
 0x262   : > { %3560 = vrot.lane.b32.xlu0 %v7109_v51, %s6189_s3 }
 0x263   : > { %v7164_v38 = vpop.permute.xlu1 %2906  ;;  %11981 = vst [vmem:[#allocation88_spill] sm:$0xff] %v7175_v57 }
 0x264   : > { %11978 = vst [vmem:[#allocation85_spill] sm:$0xff] %v7164_v38  ;;  %v7166_v17 = vpop.permute.xlu0 %3544 }
 0x265   : > { %11979 = vst [vmem:[#allocation86_spill] sm:$0xff] %v7166_v17  ;;  %3778 = vrot.lane.b32.xlu1 %v6725_v39, %s6188_s30 }
 0x266   : > { %2336 = vrot.lane.b32.xlu0 %v7130_v2, %s6184_s26 }
 0x267   : > { %v7172_v50 = vpop.permute.xlu1 %2169 }
 0x268   : > { %11980 = vst [vmem:[#allocation87_spill] sm:$0xff] %v7172_v50  ;;  %v7177_v60 = vpop.permute.xlu0 %3764 }
 0x269   : > { %11982 = vst [vmem:[#allocation89_spill] sm:$0xff] %v7177_v60  ;;  %2342 = vrot.lane.b32.xlu1 %v7175_v57, %s6184_s26  ;;  %v7194_v60 = vrot.slane %v6725_v39, 7 }
 0x26a   : > { %3348 = vrot.lane.b32.xlu0 %v7130_v2, %s6187_s29 }
 0x26b   : > { %v7183_v38 = vpop.permute.xlu1 %2322  ;;  %11985 = vst [vmem:[#allocation92_spill] sm:$0xff] %v7194_v60 }
 0x26c   : > { %v7185_v56 = vpop.permute.xlu0 %2163 }
 0x26d   : > { %11983 = vst [vmem:[#allocation90_spill] sm:$0xff] %v7185_v56  ;;  %3354 = vrot.lane.b32.xlu1 %v7175_v57, %s6187_s29  ;;  %v2299_v56 = vrot.slane %v6731_v49, 1 }
 0x26e   : > { %3780 = vrot.lane.b32.xlu0 %v6723_v31, %s6188_s30 }
 0x26f   : > { %v7191_v17 = vpop.permute.xlu1 %3126 }
 0x270   : > { %11984 = vst [vmem:[#allocation91_spill] sm:$0xff] %v7191_v17  ;;  %v7196_v27 = vpop.permute.xlu0 %3120 }
 0x271   : > { %11986 = vst [vmem:[#allocation93_spill] sm:$0xff] %v7196_v27  ;;  %2077 = vrot.lane.b32.xlu1 %v7194_v60, %s6184_s26  ;;  %v7214_v27 = vmul.f32 %v6665_v54, %v6889_v35  ;;  %v2293_v35 = vrot.slane %v6716_v22, 1 }
 0x272   : > { %2179 = vrot.lane.b32.xlu0 %v6725_v39, %s6184_s26 }
 0x273   : > { %v7202_v2 = vpop.permute.xlu1 %3334  ;;  %v7239_v50 = vsel %vm2267_vm3, %v2293_v35, %v2294_v28 }
 0x274   : > { %11987 = vst [vmem:[#allocation94_spill] sm:$0xff] %v7202_v2  ;;  %v7204_v13 = vpop.permute.xlu0 %3548  ;;  %v7223_v2 = vmul.f32 %v6665_v54, %v6859_v32  ;;  %11993 = vst [vmem:[#allocation100_spill] sm:$0xff] %v7239_v50  ;;  %v7246_v32 = vsel %vm2018_vm2, %v7109_v51, %v7194_v60 }
 0x275   : > { %11988 = vst [vmem:[#allocation95_spill] sm:$0xff] %v7204_v13  ;;  %2922 = vrot.lane.b32.xlu1 %v7194_v60, %s6186_s28  ;;  %v7227_v13 = vmul.f32 %v6665_v54, %v6920_v45  ;;  %11994 = vst [vmem:[#allocation101_spill] sm:$0xff] %v7246_v32 }
 0x276   : > { %3136 = vrot.lane.b32.xlu0 %v6725_v39, %s6185_s27  ;;  %v2243_v39 = vmax.f32 %v7214_v27, %v7223_v2 }
 0x277   : > { %v7210_v17 = vpop.permute.xlu1 %3766 }
 0x278   : > { %11989 = vst [vmem:[#allocation96_spill] sm:$0xff] %v7210_v17  ;;  %v7216_v31 = vpop.permute.xlu0 %2324  ;;  %v2404_v45 = vmax.f32 %v2243_v39, %v7227_v13 }
 0x279   : > { %11990 = vst [vmem:[#allocation97_spill] sm:$0xff] %v7216_v31  ;;  %2185 = vrot.lane.b32.xlu1 %v6731_v49, %s6184_s26 }
 0x27a   : > { %3564 = vrot.lane.b32.xlu0 %v7194_v60, %s6189_s3  ;;  %v7263_v60 = vsel %vm2267_vm3, %v2294_v28, %v7175_v57  ;;  %v7290_v57 = vrot.slane %v6731_v49, 7 }
 0x27b   : > { %v7232_v17 = vpop.permute.xlu1 %2330  ;;  %11997 = vst [vmem:[#allocation104_spill] sm:$0xff] %v7263_v60 }
 0x27c   : > { %11991 = vst [vmem:[#allocation98_spill] sm:$0xff] %v7232_v17  ;;  %v7236_v31 = vpop.permute.xlu0 %3336  ;;  %12002 = vst [vmem:[#allocation109_spill] sm:$0xff] %v7290_v57 }
 0x27d   : > { %11992 = vst [vmem:[#allocation99_spill] sm:$0xff] %v7236_v31  ;;  %2338 = vrot.lane.b32.xlu1 %v7239_v50, %s6184_s26  ;;  %v7255_v31 = vmul.f32 %v6665_v54, %v6918_v58 }
 0x27e   : > { %2075 = vrot.lane.b32.xlu0 %v7246_v32, %s6184_s26 }
 0x27f   : > { %v7251_v22 = vpop.permute.xlu1 %3342  ;;  %v2466_v39 = vmax.f32 %v2404_v45, %v7255_v31  ;;  %v7285_v45 = vmul.f32 %v6665_v54, %v7127_v33 }
 0x280   : > { %11995 = vst [vmem:[#allocation102_spill] sm:$0xff] %v7251_v22  ;;  %v7257_v35 = vpop.permute.xlu0 %3768  ;;  %v7272_v22 = vmul.f32 %v6665_v54, %v6887_v20 }
 0x281   : > { %11996 = vst [vmem:[#allocation103_spill] sm:$0xff] %v7257_v35  ;;  %3142 = vrot.lane.b32.xlu1 %v6731_v49, %s6185_s27  ;;  %v7276_v35 = vmul.f32 %v6665_v54, %v7034_v59  ;;  %12001 = vst [vmem:[#allocation108_spill] sm:$0xff] %v7285_v45 }
 0x282   : > { %2340 = vrot.lane.b32.xlu0 %v7263_v60, %s6184_s26  ;;  %v2524_v28 = vmax.f32 %v2466_v39, %v7272_v22  ;;  %v2298_v39 = vrot.slane %v6733_v12, 1 }
 0x283   : > { %v7268_v51 = vpop.permute.xlu1 %2065  ;;  %11999 = vst [vmem:[#allocation106_spill] sm:$0xff] %v7276_v35 }
 0x284   : > { %11998 = vst [vmem:[#allocation105_spill] sm:$0xff] %v7268_v51  ;;  %v7278_v17 = vpop.permute.xlu0 %2167  ;;  %v7293_v51 = vrot.slane %v6733_v12, 7  ;;  %v2586_v7 = vmax.f32 %v2524_v28, %v7276_v35  ;;  %v7350_v35 = vrot.slane %v6747_v10, 1 }
 0x285   : > { %12000 = vst [vmem:[#allocation107_spill] sm:$0xff] %v7278_v17  ;;  %3350 = vrot.lane.b32.xlu1 %v7239_v50, %s6187_s29  ;;  %v7297_v17 = vmul.f32 %v6678_v42, %v6912_v5 }
 0x286   : > { %2920 = vrot.lane.b32.xlu0 %v7246_v32, %s6186_s28  ;;  %12003 = vst [vmem:[#allocation110_spill] sm:$0xff] %v7293_v51  ;;  %v2648_v5 = vmax.f32 %v2586_v7, %v7285_v45  ;;  %v7322_v28 = vsel %vm2018_vm2, %v7293_v51, %v7290_v57  ;;  %v7336_v7 = vsel %vm2267_vm3, %v2298_v39, %v2299_v56  ;;  %12013 = vst [vmem:[#allocation120_spill] sm:$0xff] %v7350_v35 }
 0x287   : > { %v7299_v50 = vpop.permute.xlu1 %2910  ;;  %12007 = vst [vmem:[#allocation114_spill] sm:$0xff] %v7322_v28  ;;  %v2244_v36 = vmax.f32 %v7297_v17, %v7308_v16  ;;  %12010 = vst [vmem:[#allocation117_spill] sm:$0xff] %v7336_v7  ;;  %v7345_v45 = vmul.f32 %v6665_v54, %v7150_v40  ;;  %v7358_v7 = vmul.f32 %v6676_v34, %v6947_v47  ;;  %v7374_v47 = vrot.slane %v6755_v48, 7 }
 0x288   : > { %12004 = vst [vmem:[#allocation111_spill] sm:$0xff] %v7299_v50  ;;  %v7304_v4 = vpop.permute.xlu0 %3124  ;;  %v2304_v50 = vrot.slane %v6749_v0, 1 }
 0x289   : > { %12005 = vst [vmem:[#allocation112_spill] sm:$0xff] %v7304_v4  ;;  %3562 = vrot.lane.b32.xlu1 %v7246_v32, %s6189_s3  ;;  %v7331_v4 = vmul.f32 %v6678_v42, %v7039_v41  ;;  %v2405_v39 = vmax.f32 %v2244_v36, %v7312_v26  ;;  %v7371_v36 = vsel %vm2267_vm3, %v2299_v56, %v7325_v30  ;;  %12017 = vst [vmem:[#allocation124_spill] sm:$0xff] %v7374_v47 }
 0x28a   : > { %3352 = vrot.lane.b32.xlu0 %v7263_v60, %s6187_s29  ;;  %v7341_v60 = vmul.f32 %v6665_v54, %v7087_v15  ;;  %v7363_v54 = vrot.slane %v6739_v21, 7  ;;  %12016 = vst [vmem:[#allocation123_spill] sm:$0xff] %v7371_v36  ;;  %v7381_v26 = vmul.f32 %v6676_v34, %v6879_v11 }
 0x28b   : > { %v7333_v32 = vpop.permute.xlu1 %2173 }
 0x28c   : > { %12009 = vst [vmem:[#allocation116_spill] sm:$0xff] %v7333_v32  ;;  %12011 = vst [vmem:[#allocation118_spill] sm:$0xff] %v7341_v60  ;;  %v7347_v44 = vpop.permute.xlu0 %3552  ;;  %v7353_v32 = vrot.slane %v6749_v0, 7  ;;  %v2706_v10 = vmax.f32 %v2648_v5, %v7341_v60  ;;  %v7377_v0 = vrot.slane %v6757_v46, 7  ;;  %v7385_v5 = vmul.f32 %v6676_v34, %v6974_v3 }
 0x28d   : > { %12012 = vst [vmem:[#allocation119_spill] sm:$0xff] %v7347_v44  ;;  %3782 = vrot.lane.b32.xlu1 %v6733_v12, %s6188_s30  ;;  %12015 = vst [vmem:[#allocation122_spill] sm:$0xff] %v7363_v54  ;;  %v2303_v44 = vrot.slane %v6739_v21, 1  ;;  %v7405_v3 = vsel %vm2267_vm3, %v2304_v50, %v7350_v35 }
 0x28e   : > { %12014 = vst [vmem:[#allocation121_spill] sm:$0xff] %v7353_v32  ;;  %3784 = vrot.lane.b32.xlu0 %v6731_v49, %s6188_s30  ;;  %12018 = vst [vmem:[#allocation125_spill] sm:$0xff] %v7377_v0  ;;  %v2467_v49 = vmax.f32 %v2405_v39, %v7331_v4  ;;  %v7394_v30 = vmax.f32 %v2706_v10, %v7345_v45  ;;  %v7401_v11 = vsel %vm2018_vm2, %v7363_v54, %v7353_v32 }
 0x28f   : > { %12019 = vst [vmem:[#allocation126_spill] sm:$0xff] %v7385_v5  ;;  %v7388_v60 = vpop.permute.xlu1 %2326  ;;  %v7391_v56 = vsel %vm2267_vm3, %v2303_v44, %v2304_v50  ;;  %12023 = vst [vmem:[#allocation130_spill] sm:$0xff] %v7401_v11  ;;  %v2549_v39 = vrot.slane %v6755_v48, 1  ;;  %v2245_v44 = vmax.f32 %v7381_v26, %v7358_v7  ;;  %v7412_v10 = vmul.f32 %v6676_v34, %v7010_v24 }
 0x290   : > { %12020 = vst [vmem:[#allocation127_spill] sm:$0xff] %v7388_v60  ;;  %12021 = vst [vmem:[#allocation128_spill] sm:$0xff] %v7391_v56  ;;  %v7396_v36 = vpop.permute.xlu0 %2063  ;;  %v7416_v56 = vmul.f32 %v6678_v42, %v7012_v62  ;;  %v2548_v11 = vrot.slane %v6757_v46, 1  ;;  %v7426_v50 = vsel %vm2018_vm2, %v7377_v0, %v7374_v47  ;;  %v7429_v48 = vrot.slane %v6763_v9, 7 }
 0x291   : > { %12022 = vst [vmem:[#allocation129_spill] sm:$0xff] %v7396_v36  ;;  %12024 = vst [vmem:[#allocation131_spill] sm:$0xff] %v7405_v3  ;;  %3570 = vrot.lane.b32.xlu1 %v7290_v57, %s6189_s3  ;;  %v7432_v3 = vrot.slane %v6768_v23, 1  ;;  %v7435_v32 = vrot.slane %v6776_v61, 7  ;;  %v2406_v35 = vmax.f32 %v2245_v44, %v7385_v5  ;;  %v7441_v36 = vmul.f32 %v6678_v42, %v7050_v53 }
 0x292   : > { %2183 = vrot.lane.b32.xlu0 %v6733_v12, %s6184_s26  ;;  %12025 = vst [vmem:[#allocation132_spill] sm:$0xff] %v7426_v50  ;;  %12026 = vst [vmem:[#allocation133_spill] sm:$0xff] %v7429_v48  ;;  %v2525_v46 = vmax.f32 %v2467_v49, %v7416_v56  ;;  %v2731_v50 = vrot.slane %v6776_v61, 1  ;;  %v7447_v0 = vrot.slane %v6774_v19, 1  ;;  %v7451_v23 = vmul.f32 %v6695_v14, %v7010_v24 }
 0x293   : > { %12027 = vst [vmem:[#allocation134_spill] sm:$0xff] %v7432_v3  ;;  %12028 = vst [vmem:[#allocation135_spill] sm:$0xff] %v7435_v32  ;;  %v7443_v60 = vpop.permute.xlu1 %3130  ;;  %v2730_v44 = vrot.slane %v6763_v9, 1  ;;  %v2792_v49 = vsub.f32 %v7214_v27, %v7394_v30  ;;  %v7460_v5 = vmul.f32 %v6688_v8, %v6918_v58  ;;  %v7465_v19 = vmul.f32 %v6678_v42, %v7106_v29 }
 0x294   : > { %12029 = vst [vmem:[#allocation136_spill] sm:$0xff] %v7443_v60  ;;  %12030 = vst [vmem:[#allocation137_spill] sm:$0xff] %v7447_v0  ;;  %v7453_v47 = vpop.permute.xlu0 %2328  ;;  %v2468_v60 = vmax.f32 %v2406_v35, %v7412_v10  ;;  %v3008_v24 = vsub.f32 %v7223_v2, %v7394_v30  ;;  %v7473_v61 = vmul.f32 %v6695_v14, %v6934_v63 }
 0x295   : > { %12031 = vst [vmem:[#allocation138_spill] sm:$0xff] %v7451_v23  ;;  %3566 = vrot.lane.b32.xlu1 %v7293_v51, %s6189_s3  ;;  %v7478_v58 = vsel %vm2267_vm3, %v2548_v11, %v2549_v39  ;;  %v7482_v27 = vsel %vm2267_vm3, %v2549_v39, %v7432_v3  ;;  %v7487_v35 = vsel %vm2018_vm2, %v7429_v48, %v7435_v32  ;;  %v2816_v32 = vmul.f32 1.442695, %v2792_v49 }
 0x296   : > { %12032 = vst [vmem:[#allocation139_spill] sm:$0xff] %v7473_v61  ;;  %3140 = vrot.lane.b32.xlu0 %v6733_v12, %s6185_s27  ;;  %12033 = vst [vmem:[#allocation140_spill] sm:$0xff] %v7478_v58  ;;  %v7491_v2 = vmul.f32 %v6688_v8, %v6887_v20  ;;  %v7495_v9 = vmul.f32 %v6676_v34, %v6934_v63  ;;  %v2587_v11 = vmax.f32 %v2525_v46, %v7441_v36 }
 0x297   : > { %12034 = vst [vmem:[#allocation141_spill] sm:$0xff] %v7482_v27  ;;  %12035 = vst [vmem:[#allocation142_spill] sm:$0xff] %v7487_v35  ;;  %v7498_v58 = vpop.permute.xlu1 %3338  ;;  %v7501_v39 = vsel %vm2267_vm3, %v2730_v44, %v2731_v50  ;;  %v2248_v3 = vmax.f32 %v7451_v23, %v7473_v61  ;;  %v7507_v35 = vmul.f32 %v6688_v8, %v7034_v59  ;;  %v3032_v59 = vmul.f32 1.442695, %v3008_v24  ;;  %v12082_v23 = vld [vmem:[#allocation87_spill] sm:$0xff] }
 0x298   : > { %12036 = vst [vmem:[#allocation143_spill] sm:$0xff] %v7498_v58  ;;  %12037 = vst [vmem:[#allocation144_spill] sm:$0xff] %v7501_v39  ;;  %v7509_v20 = vpop.permute.xlu0 %2908  ;;  %v7513_v63 = vsel %vm2267_vm3, %v2731_v50, %v7447_v0  ;;  %v2246_v46 = vmax.f32 %v7460_v5, %v7491_v2  ;;  %v7518_v44 = vmax.f32 %v2468_v60, %v7495_v9  ;;  %5664 = vpow2.f32 %v2816_v32 }
 0x299   : > { %12038 = vst [vmem:[#allocation145_spill] sm:$0xff] %v7509_v20  ;;  %12039 = vst [vmem:[#allocation146_spill] sm:$0xff] %v7513_v63  ;;  %v2649_v58 = vmax.f32 %v2587_v11, %v7465_v19  ;;  %2081 = vrot.lane.b32.xlu1 %v7322_v28, %s6184_s26  ;;  %v7525_v20 = vmul.f32 %v6695_v14, %v6982_v52  ;;  %v7529_v50 = vmul.f32 %v6676_v34, %v6982_v52 }
 0x29a   : > { %v7533_v49 = vmul.f32 %v6686_v6, %v7039_v41  ;;  %v7537_v60 = vmul.f32 %v6688_v8, %v7127_v33  ;;  %2083 = vrot.lane.b32.xlu0 %v7290_v57, %s6184_s26  ;;  %v7543_v24 = vmul.f32 %v6686_v6, %v7012_v62  ;;  %v7547_v11 = vmul.f32 %v6678_v42, %v7026_v18 }
 0x29b   : > { %12040 = vst [vmem:[#allocation147_spill] sm:$0xff] %v7525_v20  ;;  %v7551_v52 = vmul.f32 %v6678_v42, %v7183_v38  ;;  %v7553_v41 = vpop.permute.xlu1 %3550  ;;  %v3224_v63 = vsub.f32 %v7227_v13, %v7394_v30  ;;  %v7558_v39 = vmax.f32 %v2248_v3, %v7525_v20  ;;  %v2407_v0 = vmax.f32 %v2246_v46, %v7507_v35 }
 0x29c   : > { %12041 = vst [vmem:[#allocation148_spill] sm:$0xff] %v7533_v49  ;;  %12042 = vst [vmem:[#allocation149_spill] sm:$0xff] %v7537_v60  ;;  %v7563_v62 = vmul.f32 %v6686_v6, %v7050_v53  ;;  %v7565_v27 = vpop.permute.xlu0 %3340  ;;  %v2588_v42 = vmax.f32 %v7518_v44, %v7529_v50  ;;  %v2707_v13 = vmax.f32 %v2649_v58, %v7547_v11  ;;  %5666 = vpow2.f32 %v3032_v59 }
 0x29d   : > { %12043 = vst [vmem:[#allocation150_spill] sm:$0xff] %v7543_v24  ;;  %12044 = vst [vmem:[#allocation151_spill] sm:$0xff] %v7553_v41  ;;  %v7571_v41 = vmul.f32 %v6693_v1, %v7127_v33  ;;  %2189 = vrot.lane.b32.xlu1 %v6739_v21, %s6184_s26  ;;  %v7578_v53 = vmul.f32 %v6701_v43, %v7026_v18  ;;  %v2247_v32 = vmax.f32 %v7533_v49, %v7543_v24  ;;  %v12064_v49 = vld [vmem:[#allocation9_spill] sm:$0xff] }
 0x29e   : > { %12045 = vst [vmem:[#allocation152_spill] sm:$0xff] %v7563_v62  ;;  %12046 = vst [vmem:[#allocation153_spill] sm:$0xff] %v7565_v27  ;;  %v7584_v3 = vmul.f32 %v6693_v1, %v7087_v15  ;;  %v2469_v33 = vmax.f32 %v2407_v0, %v7537_v60  ;;  %2928 = vrot.lane.b32.xlu0 %v7290_v57, %s6186_s28  ;;  %v7591_v58 = vmul.f32 %v6693_v1, %v7150_v40 }
 0x29f   : > { %12047 = vst [vmem:[#allocation154_spill] sm:$0xff] %v7571_v41  ;;  %12048 = vst [vmem:[#allocation155_spill] sm:$0xff] %v7578_v53  ;;  %v7594_v46 = vmax.f32 %v2707_v13, %v7551_v52  ;;  %v7596_v44 = vpop.permute.xlu1 %3770  ;;  %v3248_v59 = vmul.f32 1.442695, %v3224_v63  ;;  %v3440_v27 = vsub.f32 %v7255_v31, %v7394_v30  ;;  %v7602_v48 = vmul.f32 %v6686_v6, %v7026_v18 }
 0x2a0   : > { %12049 = vst [vmem:[#allocation156_spill] sm:$0xff] %v7584_v3  ;;  %12050 = vst [vmem:[#allocation157_spill] sm:$0xff] %v7591_v58  ;;  %v2408_v0 = vmax.f32 %v2247_v32, %v7563_v62  ;;  %v7607_v57 = vmul.f32 %v6688_v8, %v7087_v15  ;;  %v7611_v13 = vmul.f32 %v6688_v8, %v7150_v40  ;;  %v7613_v12 = vpop.permute.xlu0 %3772 }
 0x2a1   : > { %12051 = vst [vmem:[#allocation158_spill] sm:$0xff] %v7596_v44  ;;  %12052 = vst [vmem:[#allocation159_spill] sm:$0xff] %v7602_v48  ;;  %v7617_v63 = vmul.f32 %v6701_v43, %v7106_v29  ;;  %v7621_v31 = vmul.f32 %v6686_v6, %v7106_v29  ;;  %v2249_v18 = vmax.f32 %v7571_v41, %v7584_v3  ;;  %2926 = vrot.lane.b32.xlu1 %v7322_v28, %s6186_s28 }
 0x2a2   : > { %12053 = vst [vmem:[#allocation160_spill] sm:$0xff] %v7607_v57  ;;  %12054 = vst [vmem:[#allocation161_spill] sm:$0xff] %v7611_v13  ;;  %v4520_v15 = vsub.f32 %v7345_v45, %v7394_v30  ;;  %v7631_v40 = vmul.f32 %v6695_v14, %v7111_v37  ;;  %v7635_v32 = vmul.f32 %v6676_v34, %v7111_v37  ;;  %2079 = vrot.lane.b32.xlu0 %v7293_v51, %s6184_s26 }
 0x2a3   : > { %12055 = vst [vmem:[#allocation162_spill] sm:$0xff] %v7613_v12  ;;  %12056 = vst [vmem:[#allocation163_spill] sm:$0xff] %v7617_v63  ;;  %v2527_v29 = vmax.f32 %v2469_v33, %v7607_v57  ;;  %v3656_v12 = vsub.f32 %v7272_v22, %v7394_v30  ;;  %v2410_v45 = vmax.f32 %v2249_v18, %v7591_v58  ;;  %v7643_v44 = vpop.permute.xlu1 %3558  ;;  %5668 = vpow2.f32 %v3248_v59  ;;  %v12068_v58 = vld [vmem:[#allocation106_spill] sm:$0xff] }
 0x2a4   : > { %12057 = vst [vmem:[#allocation164_spill] sm:$0xff] %v7621_v31  ;;  %12058 = vst [vmem:[#allocation165_spill] sm:$0xff] %v7643_v44  ;;  %v2793_v3 = vsub.f32 %v7297_v17, %v7594_v46  ;;  %v3464_v41 = vmul.f32 1.442695, %v3440_v27  ;;  %v7650_v33 = vmul.f32 %v6693_v1, %v7156_v55  ;;  %v7654_v24 = vmul.f32 %v6688_v8, %v7156_v55  ;;  %v7656_v22 = vpop.permute.xlu0 %2171  ;;  %v7669_v44 = vpop.eup %5664 }
 0x2a5   : > { %v2589_v62 = vmax.f32 %v2527_v29, %v7611_v13  ;;  %12061 = vst [vmem:[#allocation168_spill] sm:$0xff] %v7656_v22  ;;  %v3009_v18 = vsub.f32 %v7308_v16, %v7594_v46  ;;  %v2470_v27 = vmax.f32 %v2408_v0, %v7621_v31  ;;  %v7665_v59 = vmul.f32 %v6699_v25, %v7111_v37  ;;  %v12063_v22 = vld [vmem:[#allocation76_spill] sm:$0xff] }
 0x2a6   : > { %12059 = vst [vmem:[#allocation166_spill] sm:$0xff] %v7650_v33  ;;  %12060 = vst [vmem:[#allocation167_spill] sm:$0xff] %v7654_v24  ;;  %v4544_v29 = vmul.f32 1.442695, %v4520_v15  ;;  %3146 = vrot.lane.b32.xlu1 %v6739_v21, %s6185_s27  ;;  %v2650_v16 = vmax.f32 %v2588_v42, %v7635_v32  ;;  %v7676_v17 = vmul.f32 %v12064_v49, %v12063_v22  ;;  %2924 = vrot.lane.b32.xlu0 %v7293_v51, %s6186_s28  ;;  %v5667_v0 = vpop.eup %5666 }
 0x2a7   : > { %12062 = vst [vmem:[#allocation169_spill] sm:$0xff] %v7665_v59  ;;  %v3680_v37 = vmul.f32 1.442695, %v3656_v12  ;;  %v7682_v15 = vmul.f32 %v6693_v1, %v12063_v22  ;;  %v7684_v31 = vpop.permute.xlu1 %3554  ;;  %v2818_v13 = vmul.f32 1.442695, %v2793_v3  ;;  %5670 = vpow2.f32 %v3464_v41  ;;  %v12071_v3 = vld [vmem:[#allocation17_spill] sm:$0xff] }
 0x2a8   : > { %12065 = vst [vmem:[#allocation76_spill] sm:$0xff] %v7676_v17  ;;  %12067 = vst [vmem:[#allocation171_spill] sm:$0xff] %v7684_v31  ;;  %v3872_v42 = vsub.f32 %v12068_v58, %v7394_v30  ;;  %v7690_v57 = vmul.f32 %v12064_v49, %v7156_v55  ;;  %v2472_v60 = vmax.f32 %v2410_v45, %v7650_v33  ;;  %v7696_v51 = vpop.permute.xlu0 %3128  ;;  %v3034_v1 = vmul.f32 1.442695, %v3009_v18  ;;  %v12072_v55 = vld [vmem:[#allocation108_spill] sm:$0xff]  ;;  %v12074_v45 = vld [vmem:[#allocation113_spill] sm:$0xff] }
 0x2a9   : > { %12066 = vst [vmem:[#allocation170_spill] sm:$0xff] %v7682_v15  ;;  %v7694_v12 = vmax.f32 %v2589_v62, %v7654_v24  ;;  %12070 = vst [vmem:[#allocation172_spill] sm:$0xff] %v7696_v51  ;;  %v7700_v31 = vmul.f32 %v6688_v8, %v12063_v22  ;;  %5672 = vpow2.f32 %v4544_v29  ;;  %v7703_v41 = vmax.f32 %v2470_v27, %v7602_v48  ;;  %v12073_v62 = vld [vmem:[#allocation117_spill] sm:$0xff]  ;;  %v12075_v51 = vld [vmem:[#allocation39_spill] sm:$0xff] }
 0x2aa   : > { %12069 = vst [vmem:[#allocation106_spill] sm:$0xff] %v7690_v57  ;;  %3786 = vrot.lane.b32.xlu1 %v12071_v3, %s6188_s30  ;;  %v4088_v58 = vsub.f32 %v12072_v55, %v7394_v30  ;;  %2344 = vrot.lane.b32.xlu0 %v12073_v62, %s6184_s26  ;;  %v3225_v18 = vsub.f32 %v12074_v45, %v7594_v46  ;;  %v12076_v33 = vld [vmem:[#allocation35_spill] sm:$0xff]  ;;  %5674 = vpow2.f32 %v3680_v37  ;;  %v12077_v27 = vld [vmem:[#allocation90_spill] sm:$0xff]  ;;  %v3896_v55 = vmul.f32 1.442695, %v3872_v42  ;;  %v12085_v42 = vld [vmem:[#allocation97_spill] sm:$0xff] }
 0x2ab   : > { %v2960_v22 = vmul.f32 %v7669_v44, %v12075_v51  ;;  %v3176_v29 = vmul.f32 %v5667_v0, %v12076_v33  ;;  %v7718_v24 = vmul.f32 %v6676_v34, %v12077_v27  ;;  %v7720_v48 = vpop.permute.xlu1 %2069  ;;  %5676 = vpow2.f32 %v2818_v13  ;;  %v12079_v49 = vld [vmem:[#allocation118_spill] sm:$0xff] }
 0x2ac   : > { %12078 = vst [vmem:[#allocation108_spill] sm:$0xff] %v7720_v48  ;;  %v4304_v20 = vsub.f32 %v12079_v49, %v7394_v30  ;;  %v7727_v61 = vmax.f32 %v2472_v60, %v7682_v15  ;;  %v7731_v33 = vpop.permute.xlu0 %2071  ;;  %5678 = vpow2.f32 %v3034_v1  ;;  %v12083_v48 = vld [vmem:[#allocation11_spill] sm:$0xff]  ;;  %v7739_v30 = vmul.f32 %v6676_v34, %v12085_v42 }
 0x2ad   : > { %12081 = vst [vmem:[#allocation39_spill] sm:$0xff] %v7731_v33  ;;  %v5669_v37 = vpop.eup %5668  ;;  %v7735_v13 = vmul.f32 %v12083_v48, %v12082_v23  ;;  %v3441_v49 = vsub.f32 %v7331_v4, %v7594_v46  ;;  %v4112_v60 = vmul.f32 1.442695, %v4088_v58  ;;  %v7747_v45 = vmul.f32 %v6699_v25, %v12082_v23 }
 0x2ae   : > { %12080 = vst [vmem:[#allocation113_spill] sm:$0xff] %v7727_v61  ;;  %2085 = vrot.lane.b32.xlu1 %v7363_v54, %s6184_s26  ;;  %v7751_v1 = vmul.f32 %v6695_v14, %v12082_v23  ;;  %3356 = vrot.lane.b32.xlu0 %v12073_v62, %s6187_s29  ;;  %v3250_v34 = vmul.f32 1.442695, %v3225_v18  ;;  %v3200_v51 = vadd.f32 %v3176_v29, %v2960_v22  ;;  %5680 = vpow2.f32 %v3896_v55 }
 0x2af   : > { %12084 = vst [vmem:[#allocation35_spill] sm:$0xff] %v7735_v13  ;;  %12086 = vst [vmem:[#allocation90_spill] sm:$0xff] %v7747_v45  ;;  %v4521_v15 = vsub.f32 %v7551_v52, %v7594_v46  ;;  %v2708_v33 = vmax.f32 %v2650_v16, %v7718_v24  ;;  %v7758_v4 = vpop.permute.xlu1 %2177  ;;  %v4328_v58 = vmul.f32 1.442695, %v4304_v20  ;;  %v7762_v61 = vmul.f32 %v6701_v43, %v7183_v38  ;;  %v12090_v52 = vld [vmem:[#allocation43_spill] sm:$0xff] }
 0x2b0   : > { %12087 = vst [vmem:[#allocation118_spill] sm:$0xff] %v7758_v4  ;;  %v7766_v23 = vmul.f32 %v6686_v6, %v7183_v38  ;;  %v7768_v62 = vpop.permute.xlu0 %2916  ;;  %v3657_v18 = vsub.f32 %v7416_v56, %v7594_v46  ;;  %v3392_v22 = vmul.f32 %v5669_v37, %v12090_v52  ;;  %v3466_v20 = vmul.f32 1.442695, %v3441_v49 }
 0x2b1   : > { %12088 = vst [vmem:[#allocation87_spill] sm:$0xff] %v7762_v61  ;;  %12089 = vst [vmem:[#allocation97_spill] sm:$0xff] %v7768_v62  ;;  %v5671_v16 = vpop.eup %5670  ;;  %v7774_v29 = vmax.f32 %v2708_v33, %v7739_v30  ;;  %v3873_v55 = vsub.f32 %v7441_v36, %v7594_v46  ;;  %5682 = vpow2.f32 %v4112_v60  ;;  %v7782_v38 = vmul.f32 %v6699_v25, %v12077_v27 }
 0x2b2   : > { %2930 = vrot.lane.b32.xlu1 %v7363_v54, %s6186_s28  ;;  %3568 = vrot.lane.b32.xlu0 %v7322_v28, %s6189_s3  ;;  %5684 = vpow2.f32 %v3250_v34  ;;  %v3416_v56 = vadd.f32 %v3392_v22, %v3200_v51  ;;  %v3080_v33 = vadd.f32 %v5667_v0, %v7669_v44  ;;  %v4546_v62 = vmul.f32 1.442695, %v4521_v15  ;;  %v12096_v34 = vld [vmem:[#allocation50_spill] sm:$0xff] }
 0x2b3   : > { %12091 = vst [vmem:[#allocation43_spill] sm:$0xff] %v7782_v38  ;;  %v7787_v52 = vpop.eup %5672  ;;  %v7791_v49 = vmul.f32 %v6695_v14, %v12077_v27  ;;  %v7793_v36 = vpop.permute.xlu1 %2914  ;;  %v4089_v60 = vsub.f32 %v7465_v19, %v7594_v46  ;;  %5686 = vpow2.f32 %v4328_v58  ;;  %v12094_v51 = vmax.f32 %v7617_v63, %v7578_v53  ;;  %v12097_v58 = vld [vmem:[#allocation18_spill] sm:$0xff] }
 0x2b4   : > { %12092 = vst [vmem:[#allocation173_spill] sm:$0xff] %v7787_v52  ;;  %12093 = vst [vmem:[#allocation174_spill] sm:$0xff] %v7793_v36  ;;  %v7797_v4 = vpop.eup %5674  ;;  %v7805_v0 = vpop.permute.xlu0 %2067  ;;  %v3682_v15 = vmul.f32 1.442695, %v3657_v18  ;;  %v3608_v27 = vmul.f32 %v5671_v16, %v12096_v34  ;;  %v4305_v22 = vsub.f32 %v7547_v11, %v7594_v46  ;;  %5688 = vpow2.f32 %v3466_v20 }
 0x2b5   : > { %v7803_v44 = vmax.f32 %v12094_v51, %v7762_v61  ;;  %12095 = vst [vmem:[#allocation175_spill] sm:$0xff] %v7805_v0  ;;  %v5677_v36 = vpop.eup %5676  ;;  %v3898_v28 = vmul.f32 1.442695, %v3873_v55  ;;  %v2794_v51 = vsub.f32 %v7381_v26, %v7774_v29  ;;  %v7818_v18 = vmul.f32 %v6699_v25, %v12085_v42 }
 0x2b6   : > { %2193 = vrot.lane.b32.xlu1 %v12097_v58, %s6184_s26  ;;  %v5679_v61 = vpop.eup %5678  ;;  %3788 = vrot.lane.b32.xlu0 %v6739_v21, %s6188_s30  ;;  %v3632_v11 = vadd.f32 %v3608_v27, %v3416_v56  ;;  %v3010_v46 = vsub.f32 %v7358_v7, %v7774_v29  ;;  %v3296_v34 = vadd.f32 %v5669_v37, %v3080_v33  ;;  %5690 = vpow2.f32 %v4546_v62  ;;  %v12102_v7 = vld [vmem:[#allocation45_spill] sm:$0xff] }
 0x2b7   : > { %12098 = vst [vmem:[#allocation50_spill] sm:$0xff] %v7818_v18  ;;  %v2251_v20 = vmax.f32 %v7665_v59, %v7782_v38  ;;  %v7828_v26 = vmul.f32 %v6695_v14, %v12085_v42  ;;  %v7830_v55 = vpop.permute.xlu1 %3134  ;;  %v4114_v19 = vmul.f32 1.442695, %v4089_v60  ;;  %v12100_v21 = vmax.f32 %v7558_v39, %v7631_v40  ;;  %v12104_v42 = vld [vmem:[#allocation123_spill] sm:$0xff]  ;;  %v12105_v38 = vld [vmem:[#allocation38_spill] sm:$0xff]  ;;  %v12106_v60 = vld [vmem:[#allocation33_spill] sm:$0xff] }
 0x2b8   : > { %12099 = vst [vmem:[#allocation176_spill] sm:$0xff] %v7830_v55  ;;  %v7836_v27 = vpop.permute.xlu0 %2912  ;;  %5692 = vpow2.f32 %v3682_v15  ;;  %v3824_v62 = vmul.f32 %v7797_v4, %v12102_v7  ;;  %v4330_v37 = vmul.f32 1.442695, %v4305_v22  ;;  %v7840_v33 = vpop.eup %5680  ;;  %v2961_v55 = vmul.f32 %v5677_v36, %v12105_v38 }
 0x2b9   : > { %v2529_v56 = vmax.f32 %v12100_v21, %v7791_v49  ;;  %12101 = vst [vmem:[#allocation177_spill] sm:$0xff] %v7836_v27  ;;  %12103 = vst [vmem:[#allocation45_spill] sm:$0xff] %v7840_v33  ;;  %v3177_v59 = vmul.f32 %v5679_v61, %v12106_v60  ;;  %5694 = vpow2.f32 %v3898_v28  ;;  %v2820_v53 = vmul.f32 1.442695, %v2794_v51  ;;  %v12109_v60 = vld [vmem:[#allocation105_spill] sm:$0xff] }
 0x2ba   : > { %2346 = vrot.lane.b32.xlu1 %v12104_v42, %s6184_s26  ;;  %v7847_v21 = vmax.f32 %v2251_v20, %v7818_v18  ;;  %2187 = vrot.lane.b32.xlu0 %v12071_v3, %s6184_s26  ;;  %v7851_v39 = vadd.f32 %v3824_v62, %v3632_v11  ;;  %v3036_v15 = vmul.f32 1.442695, %v3010_v46  ;;  %v3512_v22 = vadd.f32 %v5671_v16, %v3296_v34  ;;  %v12111_v18 = vld [vmem:[#allocation98_spill] sm:$0xff] }
 0x2bb   : > { %v7853_v7 = vpop.eup %5682  ;;  %v2591_v27 = vmax.f32 %v2529_v56, %v7828_v26  ;;  %v4522_v38 = vsub.f32 %v7739_v30, %v7774_v29  ;;  %v7860_v28 = vmul.f32 %v6695_v14, %v12109_v60  ;;  %v7862_v51 = vpop.permute.xlu1 %3774  ;;  %5696 = vpow2.f32 %v4114_v19  ;;  %v12115_v34 = vld [vmem:[#allocation126_spill] sm:$0xff] }
 0x2bc   : > { %12107 = vst [vmem:[#allocation38_spill] sm:$0xff] %v7851_v39  ;;  %12108 = vst [vmem:[#allocation33_spill] sm:$0xff] %v7853_v7  ;;  %v5685_v20 = vpop.eup %5684  ;;  %v7866_v11 = vmul.f32 %v12083_v48, %v12111_v18  ;;  %v7870_v16 = vmul.f32 %v6699_v25, %v12111_v18  ;;  %v7874_v46 = vmul.f32 %v6695_v14, %v12111_v18  ;;  %v7876_v30 = vpop.permute.xlu0 %2332  ;;  %5698 = vpow2.f32 %v2820_v53  ;;  %v12118_v14 = vld [vmem:[#allocation127_spill] sm:$0xff] }
 0x2bd   : > { %12110 = vst [vmem:[#allocation105_spill] sm:$0xff] %v7862_v51  ;;  %12114 = vst [vmem:[#allocation179_spill] sm:$0xff] %v7876_v30  ;;  %v3226_v56 = vsub.f32 %v12115_v34, %v7774_v29  ;;  %v7880_v62 = vpop.eup %5686  ;;  %v3201_v19 = vadd.f32 %v3177_v59, %v2961_v55  ;;  %v3442_v39 = vsub.f32 %v7412_v10, %v7774_v29  ;;  %5700 = vpow2.f32 %v3036_v15 }
 0x2be   : > { %12112 = vst [vmem:[#allocation98_spill] sm:$0xff] %v7866_v11  ;;  %12113 = vst [vmem:[#allocation178_spill] sm:$0xff] %v7870_v16  ;;  %3150 = vrot.lane.b32.xlu1 %v12097_v58, %s6185_s27  ;;  %v3658_v51 = vsub.f32 %v7495_v9, %v7774_v29  ;;  %v7890_v18 = vmul.f32 %v6699_v25, %v12109_v60  ;;  %v7894_v34 = vmul.f32 %v6688_v8, %v12118_v14  ;;  %v5689_v53 = vpop.eup %5688  ;;  %v12120_v9 = vld [vmem:[#allocation49_spill] sm:$0xff] }
 0x2bf   : > { %12116 = vst [vmem:[#allocation126_spill] sm:$0xff] %v7880_v62  ;;  %3144 = vrot.lane.b32.xlu0 %v12071_v3, %s6185_s27  ;;  %v3081_v59 = vadd.f32 %v5679_v61, %v5677_v36  ;;  %v4548_v55 = vmul.f32 1.442695, %v4522_v38  ;;  %v2653_v10 = vmax.f32 %v2591_v27, %v7860_v28  ;;  %v7899_v63 = vpop.permute.xlu1 %2073  ;;  %v3393_v30 = vmul.f32 %v5685_v20, %v12120_v9 }
 0x2c0   : > { %12117 = vst [vmem:[#allocation180_spill] sm:$0xff] %v7890_v18  ;;  %12119 = vst [vmem:[#allocation127_spill] sm:$0xff] %v7899_v63  ;;  %v3874_v25 = vsub.f32 %v7529_v50, %v7774_v29  ;;  %v7904_v52 = vpop.permute.xlu0 %3344  ;;  %v3252_v8 = vmul.f32 1.442695, %v3226_v56  ;;  %v4090_v0 = vsub.f32 %v7635_v32, %v7774_v29  ;;  %v4306_v61 = vsub.f32 %v7718_v24, %v7774_v29  ;;  %v7911_v15 = vpop.eup %5690 }
 0x2c1   : > { %12121 = vst [vmem:[#allocation49_spill] sm:$0xff] %v7904_v52  ;;  %v3728_v36 = vadd.f32 %v7797_v4, %v3512_v22  ;;  %12122 = vst [vmem:[#allocation181_spill] sm:$0xff] %v7911_v15  ;;  %v7915_v27 = vmul.f32 %v12083_v48, %v12109_v60  ;;  %v3417_v50 = vadd.f32 %v3393_v30, %v3201_v19  ;;  %v3468_v38 = vmul.f32 1.442695, %v3442_v39  ;;  %v12127_v30 = vld [vmem:[#allocation67_spill] sm:$0xff] }
 0x2c2   : > { %3358 = vrot.lane.b32.xlu1 %v12104_v42, %s6187_s29  ;;  %5702 = vpow2.f32 %v4330_v37  ;;  %v5693_v56 = vpop.eup %5692  ;;  %v2474_v32 = vmax.f32 %v7847_v21, %v7890_v18  ;;  %v12124_v24 = vmax.f32 %v7694_v12, %v7700_v31  ;;  %v3684_v29 = vmul.f32 1.442695, %v3658_v51 }
 0x2c3   : > { %12123 = vst [vmem:[#allocation182_spill] sm:$0xff] %v7915_v27  ;;  %3572 = vrot.lane.b32.xlu0 %v7363_v54, %s6189_s3  ;;  %v3297_v22 = vadd.f32 %v5685_v20, %v3081_v59  ;;  %v7929_v60 = vpop.eup %5694  ;;  %5704 = vpow2.f32 %v4548_v55  ;;  %v2711_v37 = vmax.f32 %v2653_v10, %v7751_v1  ;;  %v7932_v39 = vpop.permute.xlu1 %2918  ;;  %v3609_v21 = vmul.f32 %v5689_v53, %v12127_v30  ;;  %v12130_v20 = vld [vmem:[#allocation129_spill] sm:$0xff]  ;;  %v12131_v55 = vld [vmem:[#allocation19_spill] sm:$0xff] }
 0x2c4   : > { %v7925_v4 = vmax.f32 %v12124_v24, %v7894_v34  ;;  %12125 = vst [vmem:[#allocation183_spill] sm:$0xff] %v7929_v60  ;;  %12126 = vst [vmem:[#allocation184_spill] sm:$0xff] %v7932_v39  ;;  %v3900_v19 = vmul.f32 1.442695, %v3874_v25  ;;  %v7935_v9 = vpop.permute.xlu0 %3556  ;;  %5706 = vpow2.f32 %v3252_v8  ;;  %v4116_v12 = vmul.f32 1.442695, %v4090_v0 }
 0x2c5   : > { %12128 = vst [vmem:[#allocation67_spill] sm:$0xff] %v7935_v9  ;;  %v4332_v24 = vmul.f32 1.442695, %v4306_v61  ;;  %v3944_v52 = vadd.f32 %v7840_v33, %v3728_v36  ;;  %v7938_v54 = vpop.eup %5696  ;;  %v2254_v51 = vmax.f32 %v7915_v27, %v7735_v13  ;;  %v7944_v59 = vmul.f32 %v6686_v6, %v12130_v20  ;;  %v12132_v10 = vld [vmem:[#allocation51_spill] sm:$0xff]  ;;  %v12142_v13 = vld [vmem:[#allocation120_spill] sm:$0xff] }
 0x2c6   : > { %12129 = vst [vmem:[#allocation185_spill] sm:$0xff] %v7938_v54  ;;  %3790 = vrot.lane.b32.xlu1 %v12131_v55, %s6188_s30  ;;  %v3633_v25 = vadd.f32 %v3609_v21, %v3417_v50  ;;  %v3825_v30 = vmul.f32 %v5693_v56, %v12132_v10  ;;  %v7950_v8 = vmax.f32 %v2474_v32, %v7747_v45  ;;  %v12133_v0 = vld [vmem:[#allocation115_spill] sm:$0xff]  ;;  %5708 = vpow2.f32 %v3468_v38  ;;  %v7956_v33 = vpop.eup %5698  ;;  %v12135_v50 = vld [vmem:[#allocation8_spill] sm:$0xff] }
 0x2c7   : > { %2348 = vrot.lane.b32.xlu0 %v12133_v0, %s6184_s26  ;;  %v2795_v61 = vsub.f32 %v7460_v5, %v7925_v4  ;;  %v3513_v36 = vadd.f32 %v5689_v53, %v3297_v22  ;;  %v7959_v39 = vmax.f32 %v2711_v37, %v7874_v46  ;;  %v12134_v9 = vld [vmem:[#allocation107_spill] sm:$0xff]  ;;  %v7965_v10 = vpop.permute.xlu1 %2181  ;;  %v3011_v32 = vsub.f32 %v7491_v2, %v7925_v4  ;;  %v7969_v42 = vpop.eup %5700 }
 0x2c8   : > { %v7963_v21 = vmul.f32 %v12135_v50, %v12134_v9  ;;  %12137 = vst [vmem:[#allocation51_spill] sm:$0xff] %v7965_v10  ;;  %5710 = vpow2.f32 %v3684_v29  ;;  %v7973_v5 = vmul.f32 %v6701_v43, %v12134_v9  ;;  %v7977_v53 = vmul.f32 %v6686_v6, %v12134_v9  ;;  %v7979_v38 = vpop.permute.xlu0 %3776 }
 0x2c9   : > { %12139 = vst [vmem:[#allocation186_spill] sm:$0xff] %v7979_v38  ;;  %5712 = vpow2.f32 %v3900_v19  ;;  %v4160_v22 = vadd.f32 %v7853_v7, %v3944_v52  ;;  %v12140_v2 = vmax.f32 %v7703_v41, %v7766_v23  ;;  %v7987_v37 = vmax.f32 %v2254_v51, %v7866_v11  ;;  %v12147_v7 = vld [vmem:[#allocation48_spill] sm:$0xff]  ;;  %v12149_v38 = vld [vmem:[#allocation13_spill] sm:$0xff] }
 0x2ca   : > { %12136 = vst [vmem:[#allocation129_spill] sm:$0xff] %v7963_v21  ;;  %12138 = vst [vmem:[#allocation107_spill] sm:$0xff] %v7973_v5  ;;  %2354 = vrot.lane.b32.xlu1 %v12142_v13, %s6184_s26  ;;  %v7991_v27 = vadd.f32 %v3825_v30, %v3633_v25  ;;  %5714 = vpow2.f32 %v4116_v12  ;;  %v2822_v52 = vmul.f32 1.442695, %v2795_v61  ;;  %v7997_v19 = vadd.f32 %v5693_v56, %v3513_v36  ;;  %v12146_v30 = vld [vmem:[#allocation36_spill] sm:$0xff] }
 0x2cb   : > { %v2652_v29 = vmax.f32 %v12140_v2, %v7944_v59  ;;  %12141 = vst [vmem:[#allocation187_spill] sm:$0xff] %v7987_v37  ;;  %3360 = vrot.lane.b32.xlu0 %v12133_v0, %s6187_s29  ;;  %5716 = vpow2.f32 %v4332_v24  ;;  %v4093_v51 = vsub.f32 %v7860_v28, %v7959_v39  ;;  %v8003_v2 = vpop.permute.xlu1 %2334  ;;  %v3038_v25 = vmul.f32 1.442695, %v3011_v32 }
 0x2cc   : > { %12143 = vst [vmem:[#allocation188_spill] sm:$0xff] %v7991_v27  ;;  %v7999_v41 = vpop.eup %5702  ;;  %12145 = vst [vmem:[#allocation190_spill] sm:$0xff] %v8003_v2  ;;  %v2962_v12 = vmul.f32 %v7956_v33, %v12146_v30  ;;  %v3178_v9 = vmul.f32 %v7969_v42, %v12147_v7  ;;  %v12148_v27 = vld [vmem:[#allocation116_spill] sm:$0xff]  ;;  %v8019_v28 = vmul.f32 %v6701_v43, %v12130_v20  ;;  %v8021_v24 = vpop.permute.xlu0 %2175  ;;  %5718 = vpow2.f32 %v2822_v52 }
 0x2cd   : > { %12144 = vst [vmem:[#allocation189_spill] sm:$0xff] %v7999_v41  ;;  %v8011_v61 = vmul.f32 %v12149_v38, %v12148_v27  ;;  %v8015_v56 = vmul.f32 %v12135_v50, %v12148_v27  ;;  %12153 = vst [vmem:[#allocation191_spill] sm:$0xff] %v8021_v24  ;;  %v8024_v36 = vadd.f32 %v7880_v62, %v4160_v22  ;;  %v8026_v32 = vpop.eup %5704  ;;  %v4122_v24 = vmul.f32 1.442695, %v4093_v51 }
 0x2ce   : > { %12152 = vst [vmem:[#allocation116_spill] sm:$0xff] %v8019_v28  ;;  %12154 = vst [vmem:[#allocation192_spill] sm:$0xff] %v8026_v32  ;;  %v8030_v7 = vmul.f32 %v6701_v43, %v12148_v27  ;;  %v2710_v30 = vmax.f32 %v2652_v29, %v7977_v53  ;;  %v8035_v0 = vmul.f32 %v6686_v6, %v7453_v47  ;;  %3366 = vrot.lane.b32.xlu1 %v12142_v13, %s6187_s29  ;;  %v8041_v22 = vpop.eup %5706  ;;  %v12156_v27 = vld [vmem:[#allocation138_spill] sm:$0xff]  ;;  %v12157_v29 = vld [vmem:[#allocation139_spill] sm:$0xff] }
 0x2cf   : > { %12150 = vst [vmem:[#allocation36_spill] sm:$0xff] %v8011_v61  ;;  %12151 = vst [vmem:[#allocation48_spill] sm:$0xff] %v8015_v56  ;;  %v3227_v11 = vsub.f32 %v7507_v35, %v7925_v4  ;;  %3792 = vrot.lane.b32.xlu0 %v12097_v58, %s6188_s30  ;;  %v2797_v62 = vsub.f32 %v12156_v27, %v7959_v39  ;;  %v3013_v45 = vsub.f32 %v12157_v29, %v7959_v39  ;;  %v12158_v6 = vld [vmem:[#allocation147_spill] sm:$0xff]  ;;  %v8053_v35 = vpop.permute.xlu1 %3138  ;;  %v12161_v29 = vld [vmem:[#allocation149_spill] sm:$0xff] }
 0x2d0   : > { %12155 = vst [vmem:[#allocation193_spill] sm:$0xff] %v8030_v7  ;;  %v3229_v18 = vsub.f32 %v12158_v6, %v7959_v39  ;;  %v4523_v13 = vsub.f32 %v7894_v34, %v7925_v4  ;;  %12159 = vst [vmem:[#allocation138_spill] sm:$0xff] %v8053_v35  ;;  %5720 = vpow2.f32 %v3038_v25  ;;  %v3202_v3 = vadd.f32 %v3178_v9, %v2962_v12  ;;  %v8055_v10 = vpop.eup %5708  ;;  %v8059_v27 = vpop.permute.xlu0 %3132  ;;  %v12162_v25 = vld [vmem:[#allocation121_spill] sm:$0xff]  ;;  %v12163_v12 = vld [vmem:[#allocation160_spill] sm:$0xff] }
 0x2d1   : > { %v2473_v52 = vmax.f32 %v7803_v44, %v8019_v28  ;;  %12160 = vst [vmem:[#allocation139_spill] sm:$0xff] %v8059_v27  ;;  %v3443_v58 = vsub.f32 %v12161_v29, %v7925_v4  ;;  %v3445_v6 = vsub.f32 %v7631_v40, %v7959_v39  ;;  %v3661_v34 = vsub.f32 %v7791_v49, %v7959_v39  ;;  %v12164_v27 = vld [vmem:[#allocation52_spill] sm:$0xff] }
 0x2d2   : > { %v8067_v51 = vpop.eup %5710  ;;  %v8070_v9 = vmax.f32 %v2710_v30, %v8035_v0  ;;  %2089 = vrot.lane.b32.xlu1 %v12162_v25, %s6184_s26  ;;  %v3254_v44 = vmul.f32 1.442695, %v3227_v11  ;;  %v3659_v35 = vsub.f32 %v12163_v12, %v7925_v4  ;;  %v3394_v29 = vmul.f32 %v8041_v22, %v12164_v27  ;;  %v12168_v12 = vld [vmem:[#allocation9_spill] sm:$0xff]  ;;  %v12170_v27 = vld [vmem:[#allocation4_spill] sm:$0xff] }
 0x2d3   : > { %v8078_v28 = vpop.eup %5712  ;;  %v8082_v40 = vmul.f32 %v12135_v50, %v12130_v20  ;;  %2191 = vrot.lane.b32.xlu0 %v12131_v55, %s6184_s26  ;;  %v2826_v49 = vmul.f32 1.442695, %v2797_v62  ;;  %v3042_v30 = vmul.f32 1.442695, %v3013_v45  ;;  %v8086_v63 = vmul.f32 1.442695, %v3229_v18  ;;  %v8098_v20 = vpop.permute.xlu1 %3346 }
 0x2d4   : > { %12165 = vst [vmem:[#allocation147_spill] sm:$0xff] %v8078_v28  ;;  %v8088_v11 = vpop.eup %5714  ;;  %v8092_v32 = vmul.f32 %v12168_v12, %v12118_v14  ;;  %v8096_v2 = vmul.f32 %v12170_v27, %v12118_v14  ;;  %v4550_v7 = vmul.f32 1.442695, %v4523_v13  ;;  %12171 = vst [vmem:[#allocation194_spill] sm:$0xff] %v8098_v20  ;;  %v3418_v56 = vadd.f32 %v3394_v29, %v3202_v3 }
 0x2d5   : > { %12166 = vst [vmem:[#allocation149_spill] sm:$0xff] %v8082_v40  ;;  %12167 = vst [vmem:[#allocation160_spill] sm:$0xff] %v8088_v11  ;;  %v8100_v16 = vpop.eup %5716  ;;  %v8103_v45 = vmax.f32 %v2473_v52, %v7973_v5  ;;  %v8107_v62 = vmul.f32 %v12135_v50, %v7453_v47  ;;  %v8111_v18 = vmul.f32 %v6701_v43, %v7453_v47  ;;  %v8113_v11 = vpop.permute.xlu0 %3560  ;;  %v3470_v14 = vmul.f32 1.442695, %v3443_v58  ;;  %v12175_v52 = vld [vmem:[#allocation60_spill] sm:$0xff]  ;;  %v12176_v47 = vld [vmem:[#allocation161_spill] sm:$0xff] }
 0x2d6   : > { %12169 = vst [vmem:[#allocation52_spill] sm:$0xff] %v8092_v32  ;;  %12172 = vst [vmem:[#allocation195_spill] sm:$0xff] %v8100_v16  ;;  %v4524_v13 = vsub.f32 %v8035_v0, %v8070_v9  ;;  %2934 = vrot.lane.b32.xlu1 %v12162_v25, %s6186_s28  ;;  %5722 = vpow2.f32 %v3254_v44  ;;  %v3686_v3 = vmul.f32 1.442695, %v3659_v35  ;;  %v3610_v29 = vmul.f32 %v8055_v10, %v12175_v52  ;;  %v12190_v16 = vld [vmem:[#allocation41_spill] sm:$0xff] }
 0x2d7   : > { %12173 = vst [vmem:[#allocation196_spill] sm:$0xff] %v8107_v62  ;;  %12174 = vst [vmem:[#allocation197_spill] sm:$0xff] %v8113_v11  ;;  %5724 = vpow2.f32 %v4122_v24  ;;  %v2253_v20 = vmax.f32 %v8082_v40, %v7963_v21  ;;  %3148 = vrot.lane.b32.xlu0 %v12131_v55, %s6185_s27  ;;  %v3875_v58 = vsub.f32 %v12176_v47, %v7925_v4  ;;  %v12178_v24 = vld [vmem:[#allocation113_spill] sm:$0xff]  ;;  %v8137_v11 = vpop.permute.xlu1 %3778  ;;  %v8139_v40 = vpop.eup %5718 }
 0x2d8   : > { %v3877_v0 = vsub.f32 %v7828_v26, %v7959_v39  ;;  %v12177_v35 = vmax.f32 %v7690_v57, %v7676_v17  ;;  %5726 = vpow2.f32 %v4550_v7  ;;  %12179 = vst [vmem:[#allocation60_spill] sm:$0xff] %v8137_v11  ;;  %v3634_v21 = vadd.f32 %v3610_v29, %v3418_v56  ;;  %v12182_v7 = vld [vmem:[#allocation128_spill] sm:$0xff] }
 0x2d9   : > { %v8142_v47 = vmax.f32 %v2253_v20, %v8107_v62  ;;  %v8146_v55 = vpop.permute.xlu0 %2336  ;;  %5728 = vpow2.f32 %v3470_v14  ;;  %v4552_v52 = vmul.f32 1.442695, %v4524_v13  ;;  %v12183_v56 = vld [vmem:[#allocation56_spill] sm:$0xff]  ;;  %v12184_v20 = vld [vmem:[#allocation150_spill] sm:$0xff]  ;;  %v3902_v26 = vmul.f32 1.442695, %v3875_v58 }
 0x2da   : > { %v8133_v44 = vmax.f32 %v12177_v35, %v8092_v32  ;;  %12180 = vst [vmem:[#allocation161_spill] sm:$0xff] %v8146_v55  ;;  %v12181_v35 = vld [vmem:[#allocation148_spill] sm:$0xff]  ;;  %v5721_v17 = vpop.eup %5720  ;;  %2350 = vrot.lane.b32.xlu1 %v12182_v7, %s6184_s26  ;;  %5730 = vpow2.f32 %v3686_v3  ;;  %v3826_v29 = vmul.f32 %v8067_v51, %v12183_v56  ;;  %v3012_v11 = vsub.f32 %v12184_v20, %v8070_v9  ;;  %v12189_v55 = vld [vmem:[#allocation42_spill] sm:$0xff] }
 0x2db   : > { %v2796_v32 = vsub.f32 %v12181_v35, %v8070_v9  ;;  %3576 = vrot.lane.b32.xlu0 %v12162_v25, %s6189_s3  ;;  %5732 = vpow2.f32 %v2826_v49  ;;  %v3474_v14 = vmul.f32 1.442695, %v3445_v6  ;;  %v12185_v35 = vld [vmem:[#allocation152_spill] sm:$0xff]  ;;  %v8160_v13 = vpop.permute.xlu1 %2342  ;;  %v3690_v3 = vmul.f32 1.442695, %v3661_v34 }
 0x2dc   : > { %v3228_v62 = vsub.f32 %v12185_v35, %v8070_v9  ;;  %12186 = vst [vmem:[#allocation113_spill] sm:$0xff] %v8160_v13  ;;  %v8162_v57 = vadd.f32 %v3826_v29, %v3634_v21  ;;  %5734 = vpow2.f32 %v3042_v30  ;;  %v3906_v5 = vmul.f32 1.442695, %v3877_v0  ;;  %v12191_v6 = vld [vmem:[#allocation164_spill] sm:$0xff]  ;;  %v12192_v30 = vld [vmem:[#allocation159_spill] sm:$0xff]  ;;  %v12193_v29 = vld [vmem:[#allocation130_spill] sm:$0xff] }
 0x2dd   : > { %v8164_v56 = vpop.permute.xlu0 %3348  ;;  %v2963_v20 = vmul.f32 %v8139_v40, %v12189_v55  ;;  %v3179_v25 = vmul.f32 %v5721_v17, %v12190_v16  ;;  %v2824_v58 = vmul.f32 1.442695, %v2796_v32  ;;  %v3444_v49 = vsub.f32 %v12191_v6, %v8070_v9  ;;  %v12251_v37 = vld [vmem:[#allocation160_spill] sm:$0xff] }
 0x2de   : > { %12187 = vst [vmem:[#allocation148_spill] sm:$0xff] %v8162_v57  ;;  %12188 = vst [vmem:[#allocation56_spill] sm:$0xff] %v8164_v56  ;;  %5736 = vpow2.f32 %v4552_v52  ;;  %3362 = vrot.lane.b32.xlu1 %v12182_v7, %s6187_s29  ;;  %v3040_v21 = vmul.f32 1.442695, %v3012_v11  ;;  %v3660_v34 = vsub.f32 %v12192_v30, %v8070_v9  ;;  %v3082_v0 = vadd.f32 %v7969_v42, %v7956_v33  ;;  %v12195_v11 = vld [vmem:[#allocation167_spill] sm:$0xff] }
 0x2df   : > { %2087 = vrot.lane.b32.xlu0 %v12193_v29, %s6184_s26  ;;  %5738 = vpow2.f32 %v3902_v26  ;;  %v3256_v16 = vmul.f32 1.442695, %v3228_v62  ;;  %v3876_v55 = vsub.f32 %v7766_v23, %v8070_v9  ;;  %v3945_v32 = vadd.f32 %v7929_v60, %v7997_v19  ;;  %v8183_v35 = vpop.permute.xlu1 %3354  ;;  %v12205_v60 = vld [vmem:[#allocation10_spill] sm:$0xff] }
 0x2e0   : > { %v5723_v52 = vpop.eup %5722  ;;  %12194 = vst [vmem:[#allocation150_spill] sm:$0xff] %v8183_v35  ;;  %5740 = vpow2.f32 %v8086_v63  ;;  %v4091_v6 = vsub.f32 %v12195_v11, %v7925_v4  ;;  %v4092_v33 = vsub.f32 %v7944_v59, %v8070_v9  ;;  %v4307_v42 = vsub.f32 %v7700_v31, %v7925_v4 }
 0x2e1   : > { %v8192_v62 = vpop.eup %5724  ;;  %v8194_v23 = vpop.permute.xlu0 %3780  ;;  %v3203_v26 = vadd.f32 %v3179_v25, %v2963_v20  ;;  %5742 = vpow2.f32 %v2824_v58  ;;  %v3472_v19 = vmul.f32 1.442695, %v3444_v49  ;;  %v4309_v30 = vsub.f32 %v7751_v1, %v7959_v39  ;;  %v12199_v25 = vld [vmem:[#allocation131_spill] sm:$0xff]  ;;  %v12200_v20 = vld [vmem:[#allocation64_spill] sm:$0xff] }
 0x2e2   : > { %12196 = vst [vmem:[#allocation152_spill] sm:$0xff] %v8192_v62  ;;  %12197 = vst [vmem:[#allocation42_spill] sm:$0xff] %v8194_v23  ;;  %v8198_v63 = vpop.eup %5726  ;;  %3574 = vrot.lane.b32.xlu1 %v12193_v29, %s6189_s3  ;;  %5744 = vpow2.f32 %v3040_v21  ;;  %v3688_v59 = vmul.f32 1.442695, %v3660_v34  ;;  %v4308_v31 = vsub.f32 %v7977_v53, %v8070_v9  ;;  %v3298_v4 = vadd.f32 %v8041_v22, %v3082_v0 }
 0x2e3   : > { %12198 = vst [vmem:[#allocation41_spill] sm:$0xff] %v8198_v63  ;;  %v5729_v11 = vpop.eup %5728  ;;  %2352 = vrot.lane.b32.xlu0 %v12199_v25, %s6184_s26  ;;  %v3395_v58 = vmul.f32 %v5723_v52, %v12200_v20  ;;  %5746 = vpow2.f32 %v3474_v14  ;;  %v8208_v1 = vmul.f32 1.442695, %v3876_v55  ;;  %v4161_v49 = vadd.f32 %v7938_v54, %v3945_v32  ;;  %v8213_v21 = vpop.permute.xlu1 %2077  ;;  %v12202_v20 = vld [vmem:[#allocation175_spill] sm:$0xff] }
 0x2e4   : > { %v8211_v57 = vpop.eup %5730  ;;  %12201 = vst [vmem:[#allocation164_spill] sm:$0xff] %v8213_v21  ;;  %v8215_v34 = vmul.f32 1.442695, %v4091_v6  ;;  %v8217_v53 = vmul.f32 1.442695, %v4092_v33  ;;  %v3083_v9 = vadd.f32 %v5721_v17, %v8139_v40  ;;  %v8226_v14 = vmul.f32 %v12170_v27, %v12202_v20  ;;  %v12204_v33 = vld [vmem:[#allocation168_spill] sm:$0xff] }
 0x2e5   : > { %v8219_v22 = vmul.f32 1.442695, %v4307_v42  ;;  %v8222_v0 = vpop.eup %5732  ;;  %v8228_v55 = vpop.permute.xlu0 %2179  ;;  %v3419_v32 = vadd.f32 %v3395_v58, %v3203_v26  ;;  %5748 = vpow2.f32 %v3690_v3  ;;  %v8230_v54 = vmul.f32 1.442695, %v4309_v30  ;;  %v12207_v40 = vld [vmem:[#allocation21_spill] sm:$0xff]  ;;  %v12208_v30 = vld [vmem:[#allocation20_spill] sm:$0xff] }
 0x2e6   : > { %12203 = vst [vmem:[#allocation159_spill] sm:$0xff] %v8228_v55  ;;  %v8232_v6 = vpop.eup %5734  ;;  %v8236_v42 = vmul.f32 %v12205_v60, %v12204_v33  ;;  %v8240_v17 = vmul.f32 %v12168_v12, %v12204_v33  ;;  %2491 = vrot.lane.b32.xlu1 %v12207_v40, %s6184_s26  ;;  %v8244_v35 = vmul.f32 1.442695, %v4308_v31  ;;  %v3514_v26 = vadd.f32 %v8055_v10, %v3298_v4  ;;  %v12209_v58 = vld [vmem:[#allocation72_spill] sm:$0xff]  ;;  %v12212_v31 = vld [vmem:[#allocation69_spill] sm:$0xff] }
 0x2e7   : > { %v8249_v3 = vmul.f32 %v12170_v27, %v12204_v33  ;;  %2493 = vrot.lane.b32.xlu0 %v12208_v30, %s6184_s26  ;;  %v3611_v23 = vmul.f32 %v5729_v11, %v12209_v58  ;;  %5750 = vpow2.f32 %v3906_v5  ;;  %v4377_v56 = vadd.f32 %v7999_v41, %v4161_v49  ;;  %v8257_v55 = vpop.permute.xlu1 %2922  ;;  %v12213_v10 = vld [vmem:[#allocation173_spill] sm:$0xff] }
 0x2e8   : > { %12206 = vst [vmem:[#allocation167_spill] sm:$0xff] %v8236_v42  ;;  %v8255_v7 = vpop.eup %5736  ;;  %12211 = vst [vmem:[#allocation175_spill] sm:$0xff] %v8257_v55  ;;  %v3827_v13 = vmul.f32 %v8211_v57, %v12212_v31  ;;  %5752 = vpow2.f32 %v3256_v16  ;;  %v8263_v4 = vadd.f32 %v12213_v10, %v8024_v36  ;;  %v3299_v33 = vadd.f32 %v5723_v52, %v3083_v9  ;;  %v12217_v55 = vld [vmem:[#allocation58_spill] sm:$0xff]  ;;  %v12219_v36 = vld [vmem:[#allocation108_spill] sm:$0xff] }
 0x2e9   : > { %12210 = vst [vmem:[#allocation64_spill] sm:$0xff] %v8255_v7  ;;  %v8265_v21 = vpop.eup %5738  ;;  %v12215_v5 = vmax.f32 %v12178_v24, %v8096_v2  ;;  %v8271_v58 = vpop.permute.xlu0 %3136  ;;  %v3635_v41 = vadd.f32 %v3611_v23, %v3419_v32  ;;  %v2965_v7 = vmul.f32 %v8222_v0, %v12217_v55  ;;  %v12218_v31 = vld [vmem:[#allocation46_spill] sm:$0xff]  ;;  %v8281_v52 = vmul.f32 %v12149_v38, %v12219_v36  ;;  %v12223_v32 = vld [vmem:[#allocation179_spill] sm:$0xff] }
 0x2ea   : > { %12214 = vst [vmem:[#allocation168_spill] sm:$0xff] %v8265_v21  ;;  %12216 = vst [vmem:[#allocation72_spill] sm:$0xff] %v8271_v58  ;;  %v3181_v16 = vmul.f32 %v8232_v6, %v12218_v31  ;;  %v8277_v62 = vpop.eup %5740  ;;  %v8285_v9 = vmul.f32 %v12135_v50, %v12219_v36  ;;  %v8289_v24 = vmul.f32 %v6701_v43, %v12219_v36  ;;  %3794 = vrot.lane.b32.xlu1 %v12207_v40, %s6188_s30  ;;  %v12224_v58 = vld [vmem:[#allocation39_spill] sm:$0xff] }
 0x2eb   : > { %v2654_v49 = vmax.f32 %v12215_v5, %v8226_v14  ;;  %12220 = vst [vmem:[#allocation69_spill] sm:$0xff] %v8281_v52  ;;  %v3730_v23 = vadd.f32 %v8067_v51, %v3514_v26  ;;  %v8294_v55 = vpop.eup %5742  ;;  %v8298_v5 = vmul.f32 %v12170_v27, %v12223_v32  ;;  %2932 = vrot.lane.b32.xlu0 %v12193_v29, %s6186_s28  ;;  %5754 = vpow2.f32 %v3472_v19  ;;  %v12226_v26 = vld [vmem:[#allocation6_spill] sm:$0xff]  ;;  %v8317_v40 = vpop.permute.xlu1 %2185 }
 0x2ec   : > { %12221 = vst [vmem:[#allocation58_spill] sm:$0xff] %v8285_v9  ;;  %12222 = vst [vmem:[#allocation46_spill] sm:$0xff] %v8289_v24  ;;  %v8303_v31 = vadd.f32 %v7911_v15, %v4377_v56  ;;  %v8307_v10 = vpop.eup %5744  ;;  %v8311_v51 = vmul.f32 %v12083_v48, %v12224_v58  ;;  %v8315_v27 = vmul.f32 %v12226_v26, %v12224_v58  ;;  %5756 = vpow2.f32 %v3688_v59  ;;  %v12229_v56 = vld [vmem:[#allocation12_spill] sm:$0xff] }
 0x2ed   : > { %12228 = vst [vmem:[#allocation39_spill] sm:$0xff] %v8317_v40  ;;  %v3515_v19 = vadd.f32 %v5729_v11, %v3299_v33  ;;  %v8319_v29 = vpop.eup %5746  ;;  %v8323_v15 = vmul.f32 %v12229_v56, %v12224_v58  ;;  %v2712_v36 = vmax.f32 %v2654_v49, %v8249_v3  ;;  %v8326_v50 = vpop.permute.xlu0 %3564  ;;  %v8328_v38 = vadd.f32 %v3827_v13, %v3635_v41  ;;  %v12234_v58 = vld [vmem:[#allocation124_spill] sm:$0xff]  ;;  %v12244_v40 = vld [vmem:[#allocation71_spill] sm:$0xff] }
 0x2ee   : > { %12225 = vst [vmem:[#allocation108_spill] sm:$0xff] %v8311_v51  ;;  %12227 = vst [vmem:[#allocation179_spill] sm:$0xff] %v8315_v27  ;;  %v3205_v48 = vadd.f32 %v3181_v16, %v2965_v7  ;;  %v2476_v59 = vmax.f32 %v8142_v47, %v8285_v9  ;;  %v12233_v11 = vmax.f32 %v8103_v45, %v8111_v18  ;;  %3582 = vrot.lane.b32.xlu1 %v12234_v58, %s6189_s3  ;;  %v12235_v47 = vld [vmem:[#allocation55_spill] sm:$0xff]  ;;  %v12236_v16 = vld [vmem:[#allocation65_spill] sm:$0xff] }
 0x2ef   : > { %12230 = vst [vmem:[#allocation198_spill] sm:$0xff] %v8323_v15  ;;  %12231 = vst [vmem:[#allocation199_spill] sm:$0xff] %v8326_v50  ;;  %v3946_v49 = vadd.f32 %v8078_v28, %v3730_v23  ;;  %v8343_v41 = vpop.eup %5748  ;;  %v8346_v7 = vmax.f32 %v2712_v36, %v8298_v5  ;;  %3364 = vrot.lane.b32.xlu0 %v12199_v25, %s6187_s29  ;;  %v3397_v13 = vmul.f32 %v8277_v62, %v12235_v47  ;;  %v12240_v50 = vld [vmem:[#allocation118_spill] sm:$0xff]  ;;  %v12241_v25 = vld [vmem:[#allocation15_spill] sm:$0xff]  ;;  %v8368_v47 = vpop.permute.xlu1 %2338 }
 0x2f0   : > { %12232 = vst [vmem:[#allocation200_spill] sm:$0xff] %v8328_v38  ;;  %v8338_v33 = vmax.f32 %v12233_v11, %v8289_v24  ;;  %v2964_v45 = vmul.f32 %v8294_v55, %v12236_v16  ;;  %v12237_v11 = vld [vmem:[#allocation59_spill] sm:$0xff]  ;;  %v12238_v38 = vld [vmem:[#allocation178_spill] sm:$0xff]  ;;  %v8366_v9 = vmul.f32 %v12241_v25, %v12240_v50  ;;  %12243 = vst [vmem:[#allocation65_spill] sm:$0xff] %v8368_v47  ;;  %5758 = vpow2.f32 %v8215_v34 }
 0x2f1   : > { %v3180_v26 = vmul.f32 %v8307_v10, %v12237_v11  ;;  %v12239_v36 = vmax.f32 %v7950_v8, %v12238_v38  ;;  %v3613_v16 = vmul.f32 %v8319_v29, %v12244_v40  ;;  %v8372_v15 = vpop.eup %5750  ;;  %v8376_v11 = vmul.f32 %v12205_v60, %v12240_v50  ;;  %v12248_v47 = vld [vmem:[#allocation48_spill] sm:$0xff]  ;;  %v12250_v51 = vld [vmem:[#allocation125_spill] sm:$0xff]  ;;  %v12252_v34 = vld [vmem:[#allocation154_spill] sm:$0xff] }
 0x2f2   : > { %12242 = vst [vmem:[#allocation55_spill] sm:$0xff] %v8366_v9  ;;  %12245 = vst [vmem:[#allocation59_spill] sm:$0xff] %v8372_v15  ;;  %v8380_v8 = vmul.f32 %v12168_v12, %v12240_v50  ;;  %v3421_v23 = vadd.f32 %v3397_v13, %v3205_v48  ;;  %v8389_v40 = vmul.f32 %v12168_v12, %v12202_v20  ;;  %3578 = vrot.lane.b32.xlu1 %v12250_v51, %s6189_s3 }
 0x2f3   : > { %v8362_v28 = vmax.f32 %v12239_v36, %v8315_v27  ;;  %12246 = vst [vmem:[#allocation118_spill] sm:$0xff] %v8376_v11  ;;  %v8382_v36 = vpop.permute.xlu0 %2075  ;;  %v8385_v27 = vpop.eup %5752  ;;  %v8392_v38 = vmax.f32 %v2476_v59, %v12248_v47  ;;  %v3731_v50 = vadd.f32 %v8211_v57, %v3515_v19  ;;  %v4162_v24 = vadd.f32 %v12251_v37, %v3946_v49  ;;  %v12253_v47 = vld [vmem:[#allocation193_spill] sm:$0xff]  ;;  %v12255_v57 = vld [vmem:[#allocation83_spill] sm:$0xff]  ;;  %v12256_v49 = vld [vmem:[#allocation156_spill] sm:$0xff] }
 0x2f4   : > { %12247 = vst [vmem:[#allocation15_spill] sm:$0xff] %v8382_v36  ;;  %3796 = vrot.lane.b32.xlu0 %v12208_v30, %s6188_s30  ;;  %v3204_v48 = vadd.f32 %v3180_v26, %v2964_v45  ;;  %5760 = vpow2.f32 %v8208_v1  ;;  %v2798_v13 = vsub.f32 %v12252_v34, %v8346_v7  ;;  %v3085_v59 = vadd.f32 %v8232_v6, %v8222_v0  ;;  %v12263_v30 = vld [vmem:[#allocation86_spill] sm:$0xff] }
 0x2f5   : > { %12249 = vst [vmem:[#allocation71_spill] sm:$0xff] %v8392_v38  ;;  %v2713_v36 = vmax.f32 %v8338_v33, %v12253_v47  ;;  %v8407_v38 = vpop.permute.xlu1 %3142  ;;  %v3829_v19 = vmul.f32 %v8343_v41, %v12255_v57  ;;  %v3014_v37 = vsub.f32 %v12256_v49, %v8346_v7  ;;  %5762 = vpow2.f32 %v8217_v53  ;;  %v8414_v1 = vpop.eup %5754  ;;  %v12258_v33 = vld [vmem:[#allocation68_spill] sm:$0xff]  ;;  %v12260_v49 = vld [vmem:[#allocation195_spill] sm:$0xff] }
 0x2f6   : > { %12254 = vst [vmem:[#allocation154_spill] sm:$0xff] %v8407_v38  ;;  %v8418_v26 = vmul.f32 %v12205_v60, %v12202_v20  ;;  %v3637_v6 = vadd.f32 %v3613_v16, %v3421_v23  ;;  %v3396_v45 = vmul.f32 %v8385_v27, %v12258_v33  ;;  %5764 = vpow2.f32 %v8219_v22  ;;  %v8425_v34 = vpop.eup %5756  ;;  %v12259_v53 = vld [vmem:[#allocation132_spill] sm:$0xff] }
 0x2f7   : > { %v8420_v0 = vpop.permute.xlu0 %2340  ;;  %v2475_v57 = vmax.f32 %v8133_v44, %v8389_v40  ;;  %2435 = vrot.lane.b32.xlu1 %v12259_v53, %s6184_s26  ;;  %5766 = vrcp.f32 %v8303_v31  ;;  %v3947_v20 = vadd.f32 %v8265_v21, %v3731_v50  ;;  %v4378_v38 = vadd.f32 %v12260_v49, %v4162_v24  ;;  %v12268_v49 = vld [vmem:[#allocation157_spill] sm:$0xff] }
 0x2f8   : > { %12257 = vst [vmem:[#allocation193_spill] sm:$0xff] %v8418_v26  ;;  %2437 = vrot.lane.b32.xlu0 %v12234_v58, %s6184_s26  ;;  %v3420_v23 = vadd.f32 %v3396_v45, %v3204_v48  ;;  %v2828_v16 = vmul.f32 1.442695, %v2798_v13  ;;  %5768 = vrcp.f32 %v8263_v4  ;;  %v3301_v22 = vadd.f32 %v8277_v62, %v3085_v59  ;;  %v12265_v13 = vld [vmem:[#allocation70_spill] sm:$0xff] }
 0x2f9   : > { %v8440_v44 = vmul.f32 %v12205_v60, %v12223_v32  ;;  %v8442_v33 = vpop.permute.xlu1 %3350  ;;  %v3612_v50 = vmul.f32 %v8414_v1, %v12263_v30  ;;  %v3044_v21 = vmul.f32 1.442695, %v3014_v37  ;;  %5770 = vpow2.f32 %v8230_v54  ;;  %v12266_v30 = vld [vmem:[#allocation190_spill] sm:$0xff]  ;;  %v12267_v54 = vld [vmem:[#allocation24_spill] sm:$0xff] }
 0x2fa   : > { %12262 = vst [vmem:[#allocation156_spill] sm:$0xff] %v8442_v33  ;;  %v2255_v24 = vmax.f32 %v8418_v26, %v8236_v42  ;;  %v8451_v48 = vmul.f32 %v12168_v12, %v12223_v32  ;;  %v3828_v59 = vmul.f32 %v8425_v34, %v12265_v13  ;;  %5772 = vpow2.f32 %v8244_v35  ;;  %v12269_v33 = vld [vmem:[#allocation192_spill] sm:$0xff] }
 0x2fb   : > { %12261 = vst [vmem:[#allocation83_spill] sm:$0xff] %v8440_v44  ;;  %v8453_v62 = vpop.permute.xlu0 %2920  ;;  %v2533_v45 = vmax.f32 %v2475_v57, %v8240_v17  ;;  %v8461_v37 = vmul.f32 %v6701_v43, %v12266_v30  ;;  %2495 = vrot.lane.b32.xlu1 %v12267_v54, %s6184_s26  ;;  %v3230_v32 = vsub.f32 %v12268_v49, %v8346_v7  ;;  %5774 = vpow2.f32 %v2828_v16  ;;  %v12274_v16 = vld [vmem:[#allocation127_spill] sm:$0xff] }
 0x2fc   : > { %12264 = vst [vmem:[#allocation68_spill] sm:$0xff] %v8453_v62  ;;  %v8468_v58 = vadd.f32 %v12269_v33, %v4378_v38  ;;  %v8470_v62 = vpop.eup %5758  ;;  %2433 = vrot.lane.b32.xlu0 %v12250_v51, %s6184_s26  ;;  %v3636_v35 = vadd.f32 %v3612_v50, %v3420_v23  ;;  %v3517_v57 = vadd.f32 %v8319_v29, %v3301_v22  ;;  %5776 = vpow2.f32 %v3044_v21 }
 0x2fd   : > { %12270 = vst [vmem:[#allocation86_spill] sm:$0xff] %v8470_v62  ;;  %v12271_v13 = vsub.f32 %v7874_v46, %v7959_v39  ;;  %v2416_v42 = vmax.f32 %v2255_v24, %v8440_v44  ;;  %v8479_v26 = vpop.permute.xlu1 %3562  ;;  %v4163_v38 = vadd.f32 %v8470_v62, %v3947_v20  ;;  %v3084_v49 = vadd.f32 %v8307_v10, %v8294_v55  ;;  %v12281_v24 = vld [vmem:[#allocation140_spill] sm:$0xff]  ;;  %v12310_v44 = vld [vmem:[#allocation6_spill] sm:$0xff] }
 0x2fe   : > { %12272 = vst [vmem:[#allocation70_spill] sm:$0xff] %v8479_v26  ;;  %v8484_v33 = vpop.eup %5760  ;;  %v2595_v23 = vmax.f32 %v2533_v45, %v8451_v48  ;;  %v4526_v29 = vsub.f32 %v8298_v5, %v8346_v7  ;;  %v8491_v46 = vmul.f32 %v12205_v60, %v12274_v16  ;;  %v8495_v39 = vmul.f32 %v12168_v12, %v12274_v16  ;;  %v12279_v5 = vld [vmem:[#allocation166_spill] sm:$0xff] }
 0x2ff   : > { %v4554_v43 = vmul.f32 1.442695, %v12271_v13  ;;  %12273 = vst [vmem:[#allocation190_spill] sm:$0xff] %v8484_v33  ;;  %v8497_v21 = vpop.permute.xlu0 %3352  ;;  %v8499_v20 = vpop.eup %5762  ;;  %v8502_v10 = vmax.f32 %v2713_v36, %v8461_v37  ;;  %3798 = vrot.lane.b32.xlu1 %v12267_v54, %s6188_s30  ;;  %v3260_v55 = vmul.f32 1.442695, %v3230_v32  ;;  %v3446_v22 = vsub.f32 %v12279_v5, %v8346_v7  ;;  %v12283_v13 = vld [vmem:[#allocation170_spill] sm:$0xff] }
 0x300   : > { %12275 = vst [vmem:[#allocation157_spill] sm:$0xff] %v8491_v46  ;;  %12276 = vst [vmem:[#allocation127_spill] sm:$0xff] %v8495_v39  ;;  %5778 = vrcp.f32 %v8468_v58  ;;  %v8509_v50 = vpop.eup %5764  ;;  %2553 = vrot.lane.b32.xlu0 %v12281_v24, %s6184_s26  ;;  %v8513_v45 = vadd.f32 %v3829_v19, %v3637_v6  ;;  %v3662_v36 = vsub.f32 %v12283_v13, %v8346_v7  ;;  %v4556_v13 = vmul.f32 1.442695, %v4526_v29 }
 0x301   : > { %12277 = vst [vmem:[#allocation201_spill] sm:$0xff] %v8497_v21  ;;  %12278 = vst [vmem:[#allocation202_spill] sm:$0xff] %v8499_v20  ;;  %v3733_v62 = vadd.f32 %v8343_v41, %v3517_v57  ;;  %5780 = vpow2.f32 %v4554_v43  ;;  %v8518_v21 = vpop.eup %5766  ;;  %v8522_v32 = vmul.f32 %v12241_v25, %v12274_v16  ;;  %v8524_v5 = vpop.permute.xlu1 %3782  ;;  %v8526_v26 = vadd.f32 %v3828_v59, %v3636_v35  ;;  %v12289_v59 = vld [vmem:[#allocation133_spill] sm:$0xff] }
 0x302   : > { %12280 = vst [vmem:[#allocation166_spill] sm:$0xff] %v8509_v50  ;;  %12282 = vst [vmem:[#allocation203_spill] sm:$0xff] %v8513_v45  ;;  %v4379_v51 = vadd.f32 %v8509_v50, %v4163_v38  ;;  %v3300_v19 = vadd.f32 %v8385_v27, %v3084_v49  ;;  %v8530_v6 = vpop.eup %5768  ;;  %v2478_v41 = vmax.f32 %v2416_v42, %v8491_v46  ;;  %v12290_v27 = vld [vmem:[#allocation163_spill] sm:$0xff]  ;;  %5782 = vpow2.f32 %v3260_v55 }
 0x303   : > { %12284 = vst [vmem:[#allocation170_spill] sm:$0xff] %v8522_v32  ;;  %12285 = vst [vmem:[#allocation204_spill] sm:$0xff] %v8524_v5  ;;  %v8534_v43 = vmax.f32 %v2595_v23, %v8495_v39  ;;  %v8536_v57 = vpop.permute.xlu0 %3784  ;;  %v3878_v16 = vsub.f32 %v8096_v2, %v8346_v7  ;;  %v8540_v45 = vpop.eup %5770  ;;  %2615 = vrot.lane.b32.xlu1 %v12289_v59, %s6184_s26  ;;  %v2799_v35 = vsub.f32 %v12290_v27, %v8502_v10  ;;  %v12292_v23 = vld [vmem:[#allocation22_spill] sm:$0xff]  ;;  %v12293_v2 = vld [vmem:[#allocation155_spill] sm:$0xff] }
 0x304   : > { %12286 = vst [vmem:[#allocation205_spill] sm:$0xff] %v8526_v26  ;;  %12287 = vst [vmem:[#allocation206_spill] sm:$0xff] %v8536_v57  ;;  %v3476_v38 = vmul.f32 1.442695, %v3446_v22  ;;  %v4094_v42 = vsub.f32 %v8226_v14, %v8346_v7  ;;  %v8548_v49 = vpop.eup %5772  ;;  %2673 = vrot.lane.b32.xlu0 %v12292_v23, %s6184_s26  ;;  %v3015_v29 = vsub.f32 %v12293_v2, %v8502_v10  ;;  %v3692_v50 = vmul.f32 1.442695, %v3662_v36 }
 0x305   : > { %12288 = vst [vmem:[#allocation207_spill] sm:$0xff] %v8540_v45  ;;  %12291 = vst [vmem:[#allocation163_spill] sm:$0xff] %v8548_v49  ;;  %v4761_v26 = vmul.f32 %v8518_v21, %v8303_v31  ;;  %v3949_v57 = vadd.f32 %v8372_v15, %v3733_v62  ;;  %v8559_v22 = vpop.permute.xlu1 %3570  ;;  %v4310_v14 = vsub.f32 %v8249_v3, %v8346_v7  ;;  %v8568_v36 = vpop.eup %5774  ;;  %5784 = vpow2.f32 %v4556_v13  ;;  %v12297_v3 = vld [vmem:[#allocation141_spill] sm:$0xff] }
 0x306   : > { %12294 = vst [vmem:[#allocation155_spill] sm:$0xff] %v8559_v22  ;;  %v8565_v27 = vmul.f32 %v8530_v6, %v8263_v4  ;;  %v3516_v2 = vadd.f32 %v8414_v1, %v3300_v19  ;;  %v8571_v31 = vmax.f32 %v2478_v41, %v8376_v11  ;;  %v3908_v15 = vmul.f32 1.442695, %v3878_v16  ;;  %v8577_v23 = vpop.eup %5776  ;;  %v12298_v19 = vld [vmem:[#allocation51_spill] sm:$0xff]  ;;  %v12299_v13 = vld [vmem:[#allocation17_spill] sm:$0xff] }
 0x307   : > { %v8575_v55 = vpop.permute.xlu0 %2183  ;;  %2555 = vrot.lane.b32.xlu1 %v12297_v3, %s6184_s26  ;;  %v2830_v4 = vmul.f32 1.442695, %v2799_v35  ;;  %5786 = vpow2.f32 %v3476_v38  ;;  %v4124_v7 = vmul.f32 1.442695, %v4094_v42  ;;  %v8582_v1 = vadd.f32 %v8198_v63, %v4379_v51  ;;  %v12302_v38 = vld [vmem:[#allocation11_spill] sm:$0xff]  ;;  %v12308_v11 = vld [vmem:[#allocation73_spill] sm:$0xff] }
 0x308   : > { %12295 = vst [vmem:[#allocation208_spill] sm:$0xff] %v8571_v31  ;;  %12296 = vst [vmem:[#allocation209_spill] sm:$0xff] %v8575_v55  ;;  %v8586_v41 = vmul.f32 %v12299_v13, %v12298_v19  ;;  %3580 = vrot.lane.b32.xlu0 %v12259_v53, %s6189_s3  ;;  %v3046_v62 = vmul.f32 1.442695, %v3015_v29  ;;  %5788 = vpow2.f32 %v3692_v50  ;;  %v4785_v16 = vsub.f32 2.0, %v4761_v26  ;;  %v12306_v26 = vld [vmem:[#allocation87_spill] sm:$0xff] }
 0x309   : > { %v8594_v35 = vmul.f32 %v12229_v56, %v12298_v19  ;;  %v8598_v51 = vmul.f32 %v12302_v38, %v12298_v19  ;;  %v8600_v42 = vpop.permute.xlu1 %3566  ;;  %v4340_v63 = vmul.f32 1.442695, %v4310_v14  ;;  %v4784_v5 = vsub.f32 2.0, %v8565_v27  ;;  %v12307_v53 = vld [vmem:[#allocation81_spill] sm:$0xff]  ;;  %v12309_v19 = vld [vmem:[#allocation191_spill] sm:$0xff]  ;;  %v12311_v14 = vld [vmem:[#allocation26_spill] sm:$0xff] }
 0x30a   : > { %12300 = vst [vmem:[#allocation51_spill] sm:$0xff] %v8586_v41  ;;  %v8590_v22 = vpop.eup %5778  ;;  %12303 = vst [vmem:[#allocation211_spill] sm:$0xff] %v8600_v42  ;;  %v3231_v50 = vsub.f32 %v12306_v26, %v8502_v10  ;;  %v2966_v54 = vmul.f32 %v8568_v36, %v12307_v53  ;;  %v3182_v46 = vmul.f32 %v8577_v23, %v12308_v11  ;;  %5790 = vpow2.f32 %v3908_v15  ;;  %v12312_v27 = vld [vmem:[#allocation152_spill] sm:$0xff]  ;;  %v12313_v26 = vld [vmem:[#allocation13_spill] sm:$0xff] }
 0x30b   : > { %12301 = vst [vmem:[#allocation210_spill] sm:$0xff] %v8594_v35  ;;  %v8603_v59 = vpop.eup %5780  ;;  %v8605_v29 = vpop.permute.xlu0 %3140  ;;  %v8615_v42 = vmul.f32 %v12310_v44, %v12309_v19  ;;  %2675 = vrot.lane.b32.xlu1 %v12311_v14, %s6184_s26  ;;  %5792 = vpow2.f32 %v2830_v4  ;;  %v8621_v3 = vadd.f32 %v8425_v34, %v3516_v2  ;;  %v8625_v53 = vmul.f32 %v12313_v26, %v12266_v30  ;;  %v12315_v11 = vld [vmem:[#allocation134_spill] sm:$0xff] }
 0x30c   : > { %12304 = vst [vmem:[#allocation212_spill] sm:$0xff] %v8603_v59  ;;  %12305 = vst [vmem:[#allocation213_spill] sm:$0xff] %v8605_v29  ;;  %v4165_v29 = vadd.f32 %v12312_v27, %v3949_v57  ;;  %2557 = vrot.lane.b32.xlu0 %v12315_v11, %s6184_s26  ;;  %5794 = vpow2.f32 %v3046_v62  ;;  %v8630_v15 = vmul.f32 %v8518_v21, %v4785_v16  ;;  %v8634_v4 = vpop.eup %5782  ;;  %v12317_v57 = vld [vmem:[#allocation8_spill] sm:$0xff]  ;;  %v12318_v27 = vld [vmem:[#allocation161_spill] sm:$0xff] }
 0x30d   : > { %12314 = vst [vmem:[#allocation87_spill] sm:$0xff] %v8625_v53  ;;  %v4762_v14 = vmul.f32 %v8590_v22, %v8468_v58  ;;  %v8638_v34 = vmul.f32 %v12317_v57, %v12266_v30  ;;  %v4527_v2 = vsub.f32 %v8461_v37, %v8502_v10  ;;  %v8644_v24 = vmul.f32 %v12310_v44, %v12318_v27  ;;  %v8646_v62 = vpop.permute.xlu1 %2081  ;;  %v12321_v16 = vld [vmem:[#allocation116_spill] sm:$0xff] }
 0x30e   : > { %12316 = vst [vmem:[#allocation81_spill] sm:$0xff] %v8630_v15  ;;  %12319 = vst [vmem:[#allocation73_spill] sm:$0xff] %v8646_v62  ;;  %5796 = vrcp.f32 %v8582_v1  ;;  %v3262_v58 = vmul.f32 1.442695, %v3231_v50  ;;  %v3447_v15 = vsub.f32 %v12321_v16, %v8502_v10  ;;  %v3206_v11 = vadd.f32 %v3182_v46, %v2966_v54  ;;  %v12323_v62 = vld [vmem:[#allocation137_spill] sm:$0xff]  ;;  %v12324_v50 = vld [vmem:[#allocation107_spill] sm:$0xff] }
 0x30f   : > { %v8649_v21 = vpop.permute.xlu0 %2083  ;;  %5798 = vpow2.f32 %v4124_v7  ;;  %v8655_v30 = vmul.f32 %v12229_v56, %v12309_v19  ;;  %v8659_v37 = vmul.f32 %v12302_v38, %v12309_v19  ;;  %v2714_v44 = vmax.f32 %v8362_v28, %v8615_v42  ;;  %2739 = vrot.lane.b32.xlu1 %v12323_v62, %s6184_s26  ;;  %v8667_v16 = vpop.eup %5784  ;;  %v12326_v54 = vld [vmem:[#allocation25_spill] sm:$0xff]  ;;  %v12327_v7 = vld [vmem:[#allocation84_spill] sm:$0xff] }
 0x310   : > { %12320 = vst [vmem:[#allocation191_spill] sm:$0xff] %v8649_v21  ;;  %v3663_v21 = vsub.f32 %v12324_v50, %v8502_v10  ;;  %12325 = vst [vmem:[#allocation116_spill] sm:$0xff] %v8667_v16  ;;  %2677 = vrot.lane.b32.xlu0 %v12326_v54, %s6184_s26  ;;  %v3879_v46 = vsub.f32 %v8111_v18, %v8502_v10  ;;  %v3398_v19 = vmul.f32 %v8634_v4, %v12327_v7 }
 0x311   : > { %12322 = vst [vmem:[#allocation161_spill] sm:$0xff] %v8655_v30  ;;  %5800 = vpow2.f32 %v4340_v63  ;;  %v8676_v28 = vmul.f32 %v8530_v6, %v4784_v5  ;;  %v8678_v39 = vpop.eup %5786  ;;  %v12329_v50 = vmax.f32 %v8281_v52, %v8011_v61  ;;  %v4558_v16 = vmul.f32 1.442695, %v4527_v2  ;;  %v8689_v18 = vpop.permute.xlu1 %2189  ;;  %v12335_v2 = vld [vmem:[#allocation198_spill] sm:$0xff]  ;;  %v12336_v61 = vld [vmem:[#allocation187_spill] sm:$0xff]  ;;  %v12337_v52 = vld [vmem:[#allocation108_spill] sm:$0xff] }
 0x312   : > { %v8687_v54 = vmax.f32 %v2714_v44, %v8644_v24  ;;  %12330 = vst [vmem:[#allocation84_spill] sm:$0xff] %v8689_v18  ;;  %v4786_v55 = vsub.f32 2.0, %v4762_v14  ;;  %v8691_v7 = vpop.eup %5788  ;;  %5802 = vpow2.f32 %v3262_v58  ;;  %v3478_v5 = vmul.f32 1.442695, %v3447_v15  ;;  %v12341_v58 = vld [vmem:[#allocation142_spill] sm:$0xff] }
 0x313   : > { %12328 = vst [vmem:[#allocation107_spill] sm:$0xff] %v8676_v28  ;;  %v8684_v62 = vmax.f32 %v12329_v50, %v8625_v53  ;;  %12331 = vst [vmem:[#allocation214_spill] sm:$0xff] %v8691_v7  ;;  %v8693_v63 = vpop.permute.xlu0 %2928  ;;  %v3422_v6 = vadd.f32 %v3398_v19, %v3206_v11  ;;  %v12333_v28 = vld [vmem:[#allocation46_spill] sm:$0xff]  ;;  %v12334_v50 = vld [vmem:[#allocation71_spill] sm:$0xff]  ;;  %v2257_v44 = vmax.f32 %v12335_v2, %v8655_v30  ;;  %v3694_v15 = vmul.f32 1.442695, %v3663_v21 }
 0x314   : > { %12332 = vst [vmem:[#allocation215_spill] sm:$0xff] %v8693_v63  ;;  %v4095_v31 = vsub.f32 %v12333_v28, %v8502_v10  ;;  %v12338_v14 = vmax.f32 %v12336_v61, %v12337_v52  ;;  %v12339_v63 = vld [vmem:[#allocation135_spill] sm:$0xff]  ;;  %v8709_v11 = vpop.eup %5790  ;;  %2617 = vrot.lane.b32.xlu0 %v12341_v58, %s6184_s26  ;;  %v3910_v19 = vmul.f32 1.442695, %v3879_v46  ;;  %v4311_v30 = vsub.f32 %v12253_v47, %v8502_v10  ;;  %v12344_v21 = vld [vmem:[#allocation89_spill] sm:$0xff] }
 0x315   : > { %2619 = vrot.lane.b32.xlu1 %v12339_v63, %s6184_s26  ;;  %12340 = vst [vmem:[#allocation46_spill] sm:$0xff] %v8709_v11  ;;  %v12342_v28 = vld [vmem:[#allocation95_spill] sm:$0xff]  ;;  %v4381_v61 = vadd.f32 %v8540_v45, %v4165_v29  ;;  %5804 = vpow2.f32 %v4558_v16  ;;  %v8720_v2 = vpop.permute.xlu1 %2926  ;;  %v3830_v63 = vmul.f32 %v8691_v7, %v12344_v21  ;;  %v12345_v11 = vld [vmem:[#allocation169_spill] sm:$0xff]  ;;  %v8727_v46 = vmul.f32 %v8590_v22, %v4786_v55  ;;  %v12349_v22 = vld [vmem:[#allocation144_spill] sm:$0xff] }
 0x316   : > { %v8705_v18 = vmax.f32 %v12338_v14, %v8659_v37  ;;  %v3614_v53 = vmul.f32 %v8678_v39, %v12342_v28  ;;  %v8718_v14 = vpop.eup %5792  ;;  %12343 = vst [vmem:[#allocation71_spill] sm:$0xff] %v8720_v2  ;;  %v2800_v58 = vsub.f32 %v12345_v11, %v8687_v54  ;;  %5806 = vpow2.f32 %v3478_v5  ;;  %v12347_v10 = vld [vmem:[#allocation43_spill] sm:$0xff] }
 0x317   : > { %12346 = vst [vmem:[#allocation187_spill] sm:$0xff] %v8727_v46  ;;  %v8729_v28 = vpop.eup %5794  ;;  %v8731_v9 = vpop.permute.xlu0 %2079  ;;  %v3016_v29 = vsub.f32 %v12347_v10, %v8687_v54  ;;  %v4126_v16 = vmul.f32 1.442695, %v4095_v31  ;;  %v8739_v21 = vmul.f32 %v12229_v56, %v12318_v27  ;;  %v8743_v55 = vmul.f32 %v12302_v38, %v12318_v27  ;;  %v12351_v31 = vld [vmem:[#allocation146_spill] sm:$0xff] }
 0x318   : > { %v3638_v47 = vadd.f32 %v3614_v53, %v3422_v6  ;;  %v8735_v45 = vpop.eup %5796  ;;  %5808 = vpow2.f32 %v3694_v15  ;;  %v3948_v53 = vadd.f32 %v8484_v33, %v8621_v3  ;;  %2737 = vrot.lane.b32.xlu0 %v12351_v31, %s6184_s26  ;;  %v4342_v6 = vmul.f32 1.442695, %v4311_v30  ;;  %v12354_v3 = vld [vmem:[#allocation78_spill] sm:$0xff] }
 0x319   : > { %12348 = vst [vmem:[#allocation108_spill] sm:$0xff] %v8739_v21  ;;  %2735 = vrot.lane.b32.xlu1 %v12349_v22, %s6184_s26  ;;  %v8749_v5 = vpop.eup %5798  ;;  %5810 = vpow2.f32 %v3910_v19  ;;  %v8754_v11 = vadd.f32 %v8603_v59, %v4381_v61  ;;  %v8758_v27 = vadd.f32 %v8577_v23, %v8568_v36  ;;  %v4528_v15 = vsub.f32 %v8644_v24, %v8687_v54  ;;  %v8762_v10 = vpop.permute.xlu1 %3146  ;;  %v12355_v22 = vld [vmem:[#allocation62_spill] sm:$0xff]  ;;  %v12357_v61 = vld [vmem:[#allocation164_spill] sm:$0xff] }
 0x31a   : > { %12350 = vst [vmem:[#allocation95_spill] sm:$0xff] %v8749_v5  ;;  %12353 = vst [vmem:[#allocation169_spill] sm:$0xff] %v8762_v10  ;;  %v2967_v46 = vmul.f32 %v8718_v14, %v12354_v3  ;;  %v3183_v31 = vmul.f32 %v8729_v28, %v12355_v22  ;;  %v2832_v19 = vmul.f32 1.442695, %v2800_v58  ;;  %v8772_v59 = vmul.f32 %v12302_v38, %v12357_v61  ;;  %v12360_v22 = vld [vmem:[#allocation28_spill] sm:$0xff]  ;;  %v12368_v10 = vld [vmem:[#allocation178_spill] sm:$0xff] }
 0x31b   : > { %12352 = vst [vmem:[#allocation89_spill] sm:$0xff] %v8754_v11  ;;  %v8768_v30 = vpop.eup %5800  ;;  %v8774_v23 = vpop.permute.xlu0 %2924  ;;  %v8776_v36 = vadd.f32 %v3830_v63, %v3638_v47  ;;  %v3048_v24 = vmul.f32 1.442695, %v3016_v29  ;;  %v8780_v11 = vmul.f32 %v8735_v45, %v8582_v1  ;;  %v8783_v3 = vmax.f32 %v2257_v44, %v8739_v21  ;;  %v12361_v47 = vld [vmem:[#allocation113_spill] sm:$0xff]  ;;  %v12363_v1 = vld [vmem:[#allocation27_spill] sm:$0xff]  ;;  %v12364_v44 = vld [vmem:[#allocation50_spill] sm:$0xff] }
 0x31c   : > { %12356 = vst [vmem:[#allocation43_spill] sm:$0xff] %v8768_v30  ;;  %12358 = vst [vmem:[#allocation78_spill] sm:$0xff] %v8774_v23  ;;  %v2597_v58 = vmax.f32 %v8705_v18, %v8743_v55  ;;  %5812 = vpow2.f32 %v4126_v16  ;;  %v4164_v33 = vadd.f32 %v8499_v20, %v3948_v53  ;;  %v8790_v63 = vpop.eup %5802  ;;  %v8794_v29 = vmul.f32 %v12299_v13, %v12361_v47  ;;  %v12365_v18 = vld [vmem:[#allocation180_spill] sm:$0xff] }
 0x31d   : > { %12359 = vst [vmem:[#allocation62_spill] sm:$0xff] %v8776_v36  ;;  %3970 = vrot.lane.b32.xlu1 %v12360_v22, %s6190_s4  ;;  %3968 = vrot.lane.b32.xlu0 %v12363_v1, %s6190_s4  ;;  %v3232_v36 = vsub.f32 %v12364_v44, %v8687_v54  ;;  %v3448_v2 = vsub.f32 %v12365_v18, %v8687_v54  ;;  %v12366_v22 = vld [vmem:[#allocation90_spill] sm:$0xff]  ;;  %v4560_v23 = vmul.f32 1.442695, %v4528_v15  ;;  %v8804_v53 = vpop.permute.xlu1 %3786  ;;  %5814 = vpow2.f32 %v2832_v19  ;;  %v12371_v18 = vld [vmem:[#allocation179_spill] sm:$0xff] }
 0x31e   : > { %12362 = vst [vmem:[#allocation164_spill] sm:$0xff] %v8794_v29  ;;  %v3664_v16 = vsub.f32 %v12366_v22, %v8687_v54  ;;  %12367 = vst [vmem:[#allocation28_spill] sm:$0xff] %v8804_v53  ;;  %v3207_v20 = vadd.f32 %v3183_v31, %v2967_v46  ;;  %v3880_v21 = vsub.f32 %v12368_v10, %v8687_v54  ;;  %5816 = vpow2.f32 %v3048_v24  ;;  %v12374_v10 = vld [vmem:[#allocation65_spill] sm:$0xff]  ;;  %v12376_v24 = vld [vmem:[#allocation94_spill] sm:$0xff] }
 0x31f   : > { %v8810_v1 = vmul.f32 %v12229_v56, %v12357_v61  ;;  %v2659_v44 = vmax.f32 %v2597_v58, %v8772_v59  ;;  %v8813_v30 = vpop.permute.xlu0 %2344  ;;  %v4096_v22 = vsub.f32 %v12371_v18, %v8687_v54  ;;  %v8817_v15 = vpop.eup %5804  ;;  %v8821_v46 = vmul.f32 %v12229_v56, %v12361_v47  ;;  %v12375_v58 = vld [vmem:[#allocation32_spill] sm:$0xff] }
 0x320   : > { %12370 = vst [vmem:[#allocation27_spill] sm:$0xff] %v8813_v30  ;;  %12372 = vst [vmem:[#allocation50_spill] sm:$0xff] %v8817_v15  ;;  %v8825_v31 = vmul.f32 %v12302_v38, %v12361_v47  ;;  %v8829_v19 = vmul.f32 %v12168_v12, %v12374_v10  ;;  %v3399_v18 = vmul.f32 %v8790_v63, %v12376_v24  ;;  %v8835_v53 = vpop.eup %5806  ;;  %v12377_v15 = vld [vmem:[#allocation23_spill] sm:$0xff]  ;;  %v3264_v5 = vmul.f32 1.442695, %v3232_v36 }
 0x321   : > { %12369 = vst [vmem:[#allocation113_spill] sm:$0xff] %v8810_v1  ;;  %3974 = vrot.lane.b32.xlu1 %v12375_v58, %s6190_s4  ;;  %3972 = vrot.lane.b32.xlu0 %v12377_v15, %s6190_s4  ;;  %v3480_v56 = vmul.f32 1.442695, %v3448_v2  ;;  %5818 = vpow2.f32 %v4342_v6  ;;  %v4312_v47 = vsub.f32 %v8615_v42, %v8687_v54  ;;  %v8845_v58 = vmul.f32 %v12299_v13, %v12357_v61  ;;  %v8847_v12 = vpop.permute.xlu1 %2085  ;;  %v12383_v15 = vld [vmem:[#allocation15_spill] sm:$0xff]  ;;  %v12390_v13 = vld [vmem:[#allocation14_spill] sm:$0xff] }
 0x322   : > { %12373 = vst [vmem:[#allocation180_spill] sm:$0xff] %v8825_v31  ;;  %v8841_v38 = vpop.eup %5808  ;;  %5820 = vpow2.f32 %v4560_v23  ;;  %12379 = vst [vmem:[#allocation178_spill] sm:$0xff] %v8847_v12  ;;  %v3423_v24 = vadd.f32 %v3399_v18, %v3207_v20  ;;  %v3696_v7 = vmul.f32 1.442695, %v3664_v16  ;;  %v2480_v2 = vmax.f32 %v8783_v3, %v8810_v1  ;;  %v12384_v16 = vld [vmem:[#allocation37_spill] sm:$0xff]  ;;  %v12385_v3 = vld [vmem:[#allocation151_spill] sm:$0xff] }
 0x323   : > { %12378 = vst [vmem:[#allocation90_spill] sm:$0xff] %v8845_v58  ;;  %v8849_v30 = vpop.eup %5810  ;;  %v2717_v6 = vmax.f32 %v2659_v44, %v8598_v51  ;;  %v8854_v36 = vpop.permute.xlu0 %3356  ;;  %v3912_v42 = vmul.f32 1.442695, %v3880_v21  ;;  %v4128_v54 = vmul.f32 1.442695, %v4096_v22  ;;  %v12382_v61 = vmax.f32 %v8534_v43, %v8380_v8  ;;  %v12386_v21 = vld [vmem:[#allocation40_spill] sm:$0xff] }
 0x324   : > { %12380 = vst [vmem:[#allocation179_spill] sm:$0xff] %v8849_v30  ;;  %12381 = vst [vmem:[#allocation65_spill] sm:$0xff] %v8854_v36  ;;  %v8864_v20 = vmul.f32 %v12317_v57, %v12383_v15  ;;  %v3615_v44 = vmul.f32 %v8835_v53, %v12385_v3  ;;  %v4787_v18 = vsub.f32 2.0, %v8780_v11  ;;  %v12387_v22 = vld [vmem:[#allocation96_spill] sm:$0xff]  ;;  %5822 = vpow2.f32 %v3264_v5  ;;  %v12389_v12 = vld [vmem:[#allocation159_spill] sm:$0xff] }
 0x325   : > { %v8860_v23 = vmax.f32 %v12382_v61, %v8829_v19  ;;  %3978 = vrot.lane.b32.xlu1 %v12384_v16, %s6190_s4  ;;  %3976 = vrot.lane.b32.xlu0 %v12386_v21, %s6190_s4  ;;  %v3831_v43 = vmul.f32 %v8841_v38, %v12387_v22  ;;  %v4344_v61 = vmul.f32 1.442695, %v4312_v47  ;;  %v4380_v36 = vadd.f32 %v8548_v49, %v4164_v33  ;;  %v8888_v21 = vpop.permute.xlu1 %2930 }
 0x326   : > { %v8876_v1 = vpop.eup %5812  ;;  %v2260_v16 = vmax.f32 %v8845_v58, %v8586_v41  ;;  %v8882_v3 = vmul.f32 %v12390_v13, %v12389_v12  ;;  %v8886_v11 = vmul.f32 %v12313_v26, %v12389_v12  ;;  %12393 = vst [vmem:[#allocation151_spill] sm:$0xff] %v8888_v21  ;;  %v3639_v22 = vadd.f32 %v3615_v44, %v3423_v24 }
 0x327   : > { %12388 = vst [vmem:[#allocation94_spill] sm:$0xff] %v8876_v1  ;;  %v8891_v5 = vmax.f32 %v2480_v2, %v8594_v35  ;;  %v8894_v33 = vmax.f32 %v2717_v6, %v8825_v31  ;;  %v8898_v47 = vmul.f32 %v12317_v57, %v12389_v12  ;;  %v8900_v49 = vpop.permute.xlu0 %3568  ;;  %5824 = vpow2.f32 %v3480_v56  ;;  %v8902_v41 = vpop.eup %5814  ;;  %v12398_v2 = vld [vmem:[#allocation57_spill] sm:$0xff]  ;;  %v12399_v6 = vld [vmem:[#allocation106_spill] sm:$0xff] }
 0x328   : > { %12391 = vst [vmem:[#allocation23_spill] sm:$0xff] %v8882_v3  ;;  %12392 = vst [vmem:[#allocation15_spill] sm:$0xff] %v8886_v11  ;;  %v12397_v21 = vmax.f32 %v12334_v50, %v8638_v34  ;;  %v2801_v44 = vsub.f32 %v12399_v6, %v8860_v23  ;;  %5826 = vpow2.f32 %v3696_v7  ;;  %v8913_v12 = vmul.f32 %v8735_v45, %v4787_v18  ;;  %v8915_v31 = vpop.eup %5816  ;;  %v12402_v56 = vld [vmem:[#allocation53_spill] sm:$0xff]  ;;  %v12406_v6 = vld [vmem:[#allocation64_spill] sm:$0xff] }
 0x329   : > { %12394 = vst [vmem:[#allocation96_spill] sm:$0xff] %v8894_v33  ;;  %12395 = vst [vmem:[#allocation159_spill] sm:$0xff] %v8900_v49  ;;  %3982 = vrot.lane.b32.xlu1 %v12398_v2, %s6190_s4  ;;  %3980 = vrot.lane.b32.xlu0 %v12402_v56, %s6190_s4  ;;  %v12403_v49 = vld [vmem:[#allocation76_spill] sm:$0xff]  ;;  %5828 = vpow2.f32 %v3912_v42  ;;  %v3087_v50 = vadd.f32 %v8729_v28, %v8718_v14  ;;  %v8926_v7 = vmax.f32 %v2260_v16, %v8794_v29  ;;  %v8928_v45 = vpop.permute.xlu1 %2193  ;;  %v12410_v28 = vld [vmem:[#allocation77_spill] sm:$0xff] }
 0x32a   : > { %12396 = vst [vmem:[#allocation216_spill] sm:$0xff] %v8902_v41  ;;  %v2658_v24 = vmax.f32 %v12397_v21, %v8864_v20  ;;  %12400 = vst [vmem:[#allocation106_spill] sm:$0xff] %v8913_v12  ;;  %v3017_v58 = vsub.f32 %v12403_v49, %v8860_v23  ;;  %v3302_v21 = vadd.f32 %v8634_v4, %v8758_v27  ;;  %5830 = vpow2.f32 %v4128_v54  ;;  %v12412_v16 = vld [vmem:[#allocation74_spill] sm:$0xff]  ;;  %v12414_v14 = vld [vmem:[#allocation44_spill] sm:$0xff] }
 0x32b   : > { %12401 = vst [vmem:[#allocation217_spill] sm:$0xff] %v8915_v31  ;;  %12404 = vst [vmem:[#allocation76_spill] sm:$0xff] %v8928_v45  ;;  %v8930_v18 = vadd.f32 %v3831_v43, %v3639_v22  ;;  %v8933_v12 = vadd.f32 %v12406_v6, %v4380_v36  ;;  %v8935_v2 = vpop.eup %5818  ;;  %v4099_v49 = vsub.f32 %v8772_v59, %v8894_v33  ;;  %v8941_v4 = vpop.permute.xlu0 %3788  ;;  %5832 = vpow2.f32 %v4344_v61  ;;  %v12413_v43 = vld [vmem:[#allocation93_spill] sm:$0xff]  ;;  %v12415_v61 = vld [vmem:[#allocation182_spill] sm:$0xff] }
 0x32c   : > { %12408 = vst [vmem:[#allocation220_spill] sm:$0xff] %v8935_v2  ;;  %12409 = vst [vmem:[#allocation221_spill] sm:$0xff] %v8941_v4  ;;  %v2968_v27 = vmul.f32 %v8902_v41, %v12410_v28  ;;  %v8945_v42 = vpop.eup %5820  ;;  %v2716_v54 = vmax.f32 %v2658_v24, %v8898_v47  ;;  %v8950_v36 = vmul.f32 %v12317_v57, %v8420_v0  ;;  %v2834_v59 = vmul.f32 1.442695, %v2801_v44  ;;  %v12417_v4 = vld [vmem:[#allocation19_spill] sm:$0xff]  ;;  %v12425_v57 = vld [vmem:[#allocation98_spill] sm:$0xff] }
 0x32d   : > { %12405 = vst [vmem:[#allocation218_spill] sm:$0xff] %v8930_v18  ;;  %12407 = vst [vmem:[#allocation219_spill] sm:$0xff] %v8933_v12  ;;  %3986 = vrot.lane.b32.xlu1 %v12412_v16, %s6190_s4  ;;  %v3184_v22 = vmul.f32 %v8915_v31, %v12413_v43  ;;  %3984 = vrot.lane.b32.xlu0 %v12414_v14, %s6190_s4  ;;  %v3050_v28 = vmul.f32 1.442695, %v3017_v58  ;;  %v2803_v6 = vsub.f32 %v12415_v61, %v8894_v33  ;;  %v12416_v12 = vld [vmem:[#allocation39_spill] sm:$0xff]  ;;  %v8978_v43 = vpop.permute.xlu1 %2346  ;;  %v12424_v14 = vld [vmem:[#allocation52_spill] sm:$0xff] }
 0x32e   : > { %12411 = vst [vmem:[#allocation77_spill] sm:$0xff] %v8945_v42  ;;  %v8961_v24 = vadd.f32 %v8790_v63, %v3087_v50  ;;  %v8964_v42 = vadd.f32 %v8678_v39, %v3302_v21  ;;  %v8968_v18 = vmul.f32 %v12417_v4, %v12416_v12  ;;  %v8972_v44 = vmul.f32 %v12390_v13, %v12416_v12  ;;  %v12421_v63 = vld [vmem:[#allocation35_spill] sm:$0xff]  ;;  %v8982_v61 = vpop.eup %5822 }
 0x32f   : > { %v8976_v58 = vmul.f32 %v12313_v26, %v12383_v15  ;;  %v3019_v50 = vsub.f32 %v12421_v63, %v8894_v33  ;;  %12422 = vst [vmem:[#allocation35_spill] sm:$0xff] %v8982_v61  ;;  %v4134_v39 = vmul.f32 1.442695, %v4099_v49  ;;  %v8986_v21 = vmul.f32 %v12313_v26, %v12416_v12  ;;  %v8988_v16 = vpop.permute.xlu0 %2187  ;;  %v12426_v63 = vld [vmem:[#allocation79_spill] sm:$0xff] }
 0x330   : > { %12418 = vst [vmem:[#allocation93_spill] sm:$0xff] %v8968_v18  ;;  %12419 = vst [vmem:[#allocation182_spill] sm:$0xff] %v8972_v44  ;;  %v3233_v56 = vsub.f32 %v12424_v14, %v8860_v23  ;;  %v3235_v29 = vsub.f32 %v12425_v57, %v8894_v33  ;;  %v8995_v35 = vmax.f32 %v2716_v54, %v8950_v36  ;;  %5834 = vpow2.f32 %v2834_v59  ;;  %v12428_v14 = vld [vmem:[#allocation82_spill] sm:$0xff] }
 0x331   : > { %12420 = vst [vmem:[#allocation39_spill] sm:$0xff] %v8976_v58  ;;  %12423 = vst [vmem:[#allocation222_spill] sm:$0xff] %v8986_v21  ;;  %3990 = vrot.lane.b32.xlu1 %v12426_v63, %s6190_s4  ;;  %v3208_v49 = vadd.f32 %v3184_v22, %v2968_v27  ;;  %v3451_v12 = vsub.f32 %v12337_v52, %v8894_v33  ;;  %v9001_v45 = vpop.eup %5824  ;;  %v4529_v31 = vsub.f32 %v8829_v19, %v8860_v23  ;;  %v9015_v52 = vpop.permute.xlu1 %3150  ;;  %v12431_v19 = vld [vmem:[#allocation99_spill] sm:$0xff] }
 0x332   : > { %12427 = vst [vmem:[#allocation52_spill] sm:$0xff] %v9001_v45  ;;  %3988 = vrot.lane.b32.xlu0 %v12428_v14, %s6190_s4  ;;  %5836 = vpow2.f32 %v3050_v28  ;;  %v9007_v57 = vmul.f32 1.442695, %v2803_v6  ;;  %v3667_v54 = vsub.f32 %v8659_v37, %v8894_v33  ;;  %v9011_v63 = vpop.eup %5826  ;;  %v2479_v27 = vmax.f32 %v8684_v62, %v8976_v58  ;;  %12430 = vst [vmem:[#allocation223_spill] sm:$0xff] %v9015_v52 }
 0x333   : > { %12429 = vst [vmem:[#allocation98_spill] sm:$0xff] %v9011_v63  ;;  %v3449_v59 = vsub.f32 %v8389_v40, %v8860_v23  ;;  %v3400_v22 = vmul.f32 %v8982_v61, %v12431_v19  ;;  %v9021_v14 = vmul.f32 1.442695, %v3019_v50  ;;  %v9023_v6 = vpop.eup %5828  ;;  %v9027_v37 = vmul.f32 %v12241_v25, %v12374_v10  ;;  %v9029_v28 = vpop.permute.xlu0 %3144 }
 0x334   : > { %12432 = vst [vmem:[#allocation99_spill] sm:$0xff] %v9023_v6  ;;  %12434 = vst [vmem:[#allocation225_spill] sm:$0xff] %v9029_v28  ;;  %v3266_v41 = vmul.f32 1.442695, %v3233_v56  ;;  %v3665_v62 = vsub.f32 %v8240_v17, %v8860_v23  ;;  %v9033_v52 = vmul.f32 1.442695, %v3235_v29  ;;  %v9035_v40 = vpop.eup %5830  ;;  %v9039_v50 = vmul.f32 %v12205_v60, %v12374_v10 }
 0x335   : > { %12433 = vst [vmem:[#allocation224_spill] sm:$0xff] %v9027_v37  ;;  %12435 = vst [vmem:[#allocation226_spill] sm:$0xff] %v9035_v40  ;;  %v9043_v19 = vmul.f32 %v12390_v13, %v12383_v15  ;;  %v4530_v61 = vsub.f32 %v8950_v36, %v8995_v35  ;;  %v12437_v56 = vld [vmem:[#allocation104_spill] sm:$0xff]  ;;  %v3424_v28 = vadd.f32 %v3400_v22, %v3208_v49  ;;  %v9049_v17 = vpop.eup %5832  ;;  %5838 = vpow2.f32 %v4134_v39  ;;  %v12440_v6 = vld [vmem:[#allocation119_spill] sm:$0xff] }
 0x336   : > { %3994 = vrot.lane.b32.xlu1 %v12437_v56, %s6190_s4  ;;  %12438 = vst [vmem:[#allocation228_spill] sm:$0xff] %v9049_v17  ;;  %v4562_v29 = vmul.f32 1.442695, %v4529_v31  ;;  %v12439_v40 = vld [vmem:[#allocation100_spill] sm:$0xff]  ;;  %v3881_v10 = vsub.f32 %v8451_v48, %v8860_v23  ;;  %v3616_v15 = vmul.f32 %v9001_v45, %v12440_v6  ;;  %v9058_v58 = vmax.f32 %v2479_v27, %v8886_v11  ;;  %v9068_v31 = vpop.permute.xlu1 %3358  ;;  %v12443_v48 = vld [vmem:[#allocation55_spill] sm:$0xff] }
 0x337   : > { %12436 = vst [vmem:[#allocation227_spill] sm:$0xff] %v9043_v19  ;;  %3992 = vrot.lane.b32.xlu0 %v12439_v40, %s6190_s4  ;;  %v9062_v36 = vmul.f32 %v12390_v13, %v8420_v0  ;;  %v9066_v39 = vmul.f32 %v12313_v26, %v8420_v0  ;;  %12442 = vst [vmem:[#allocation229_spill] sm:$0xff] %v9068_v31  ;;  %v3482_v49 = vmul.f32 1.442695, %v3449_v59  ;;  %v9076_v6 = vpop.permute.xlu0 %3572  ;;  %5840 = vpow2.f32 %v3266_v41  ;;  %v12446_v56 = vld [vmem:[#allocation208_spill] sm:$0xff]  ;;  %v12447_v40 = vld [vmem:[#allocation117_spill] sm:$0xff] }
 0x338   : > { %v12444_v22 = vmax.f32 %v8522_v32, %v12443_v48  ;;  %12445 = vst [vmem:[#allocation230_spill] sm:$0xff] %v9076_v6  ;;  %v3698_v27 = vmul.f32 1.442695, %v3665_v62  ;;  %v3883_v45 = vsub.f32 %v8743_v55, %v8894_v33  ;;  %v2598_v0 = vmax.f32 %v12446_v56, %v9039_v50  ;;  %v12448_v41 = vld [vmem:[#allocation88_spill] sm:$0xff]  ;;  %v12449_v62 = vld [vmem:[#allocation149_spill] sm:$0xff] }
 0x339   : > { %12441 = vst [vmem:[#allocation119_spill] sm:$0xff] %v9062_v36  ;;  %v2259_v31 = vmax.f32 %v9043_v19, %v8882_v3  ;;  %v4564_v59 = vmul.f32 1.442695, %v4530_v61  ;;  %v3640_v48 = vadd.f32 %v3616_v15, %v3424_v28  ;;  %5842 = vpow2.f32 %v4562_v29  ;;  %v12451_v15 = vld [vmem:[#allocation103_spill] sm:$0xff]  ;;  %v12452_v19 = vld [vmem:[#allocation129_spill] sm:$0xff] }
 0x33a   : > { %v9074_v17 = vmax.f32 %v12444_v22, %v9027_v37  ;;  %3998 = vrot.lane.b32.xlu1 %v12447_v40, %s6190_s4  ;;  %v9088_v22 = vmul.f32 %v12205_v60, %v8731_v9  ;;  %v3914_v55 = vmul.f32 1.442695, %v3881_v10  ;;  %v2802_v56 = vsub.f32 %v12449_v62, %v8995_v35  ;;  %v9094_v6 = vpop.eup %5834  ;;  %v9101_v29 = vpop.permute.xlu1 %3790 }
 0x33b   : > { %3996 = vrot.lane.b32.xlu0 %v12448_v41, %s6190_s4  ;;  %v9097_v61 = vmax.f32 %v2259_v31, %v9062_v36  ;;  %12450 = vst [vmem:[#allocation208_spill] sm:$0xff] %v9101_v29  ;;  %5844 = vpow2.f32 %v3482_v49  ;;  %v3832_v40 = vmul.f32 %v9011_v63, %v12451_v15  ;;  %v9107_v10 = vpop.permute.xlu0 %2348  ;;  %v3486_v62 = vmul.f32 1.442695, %v3451_v12  ;;  %v12453_v36 = vld [vmem:[#allocation115_spill] sm:$0xff]  ;;  %v12455_v15 = vld [vmem:[#allocation196_spill] sm:$0xff] }
 0x33c   : > { %v9105_v3 = vpop.eup %5836  ;;  %5846 = vpow2.f32 %v3698_v27  ;;  %v3702_v41 = vmul.f32 1.442695, %v3667_v54  ;;  %v3018_v31 = vsub.f32 %v12452_v19, %v8995_v35  ;;  %v9115_v49 = vmul.f32 1.442695, %v3883_v45  ;;  %v12456_v27 = vld [vmem:[#allocation123_spill] sm:$0xff]  ;;  %v12457_v54 = vld [vmem:[#allocation58_spill] sm:$0xff] }
 0x33d   : > { %5848 = vpow2.f32 %v4564_v59  ;;  %v9113_v28 = vadd.f32 %v3832_v40, %v3640_v48  ;;  %v3234_v63 = vsub.f32 %v12455_v15, %v8995_v35  ;;  %v2660_v29 = vmax.f32 %v2598_v0, %v9088_v22  ;;  %v12460_v45 = vld [vmem:[#allocation80_spill] sm:$0xff] }
 0x33e   : > { %4002 = vrot.lane.b32.xlu1 %v12453_v36, %s6190_s4  ;;  %5850 = vpow2.f32 %v3914_v55  ;;  %v2836_v12 = vmul.f32 1.442695, %v2802_v56  ;;  %v3450_v19 = vsub.f32 %v12457_v54, %v8995_v35  ;;  %v9124_v59 = vpop.permute.xlu1 %2354  ;;  %v12459_v36 = vld [vmem:[#allocation85_spill] sm:$0xff]  ;;  %v3185_v48 = vmul.f32 %v9105_v3, %v12460_v45  ;;  %v12461_v0 = vld [vmem:[#allocation48_spill] sm:$0xff]  ;;  %v12465_v54 = vld [vmem:[#allocation27_spill] sm:$0xff] }
 0x33f   : > { %12454 = vst [vmem:[#allocation149_spill] sm:$0xff] %v9113_v28  ;;  %4000 = vrot.lane.b32.xlu0 %v12456_v27, %s6190_s4  ;;  %12458 = vst [vmem:[#allocation103_spill] sm:$0xff] %v9124_v59  ;;  %v2969_v40 = vmul.f32 %v9094_v6, %v12459_v36  ;;  %5852 = vpow2.f32 %v9007_v57  ;;  %v3666_v15 = vsub.f32 %v12461_v0, %v8995_v35  ;;  %v9133_v28 = vpop.eup %5838  ;;  %v12463_v55 = vld [vmem:[#allocation209_spill] sm:$0xff]  ;;  %v9143_v37 = vpop.permute.xlu0 %3360  ;;  %v3052_v36 = vmul.f32 1.442695, %v3018_v31  ;;  %v12468_v57 = vld [vmem:[#allocation131_spill] sm:$0xff] }
 0x340   : > { %12462 = vst [vmem:[#allocation129_spill] sm:$0xff] %v9133_v28  ;;  %v9137_v56 = vmul.f32 %v12205_v60, %v12463_v55  ;;  %v9141_v27 = vmul.f32 %v12205_v60, %v12465_v54  ;;  %12467 = vst [vmem:[#allocation85_spill] sm:$0xff] %v9143_v37  ;;  %5854 = vpow2.f32 %v9021_v14  ;;  %v3268_v45 = vmul.f32 1.442695, %v3234_v63  ;;  %v12469_v28 = vld [vmem:[#allocation127_spill] sm:$0xff]  ;;  %v12470_v37 = vld [vmem:[#allocation128_spill] sm:$0xff] }
 0x341   : > { %v3882_v0 = vsub.f32 %v8638_v34, %v8995_v35  ;;  %v4097_v32 = vsub.f32 %v12469_v28, %v8860_v23  ;;  %v4098_v59 = vsub.f32 %v8864_v20, %v8995_v35  ;;  %v5841_v60 = vpop.eup %5840  ;;  %5856 = vpow2.f32 %v9033_v52  ;;  %v12476_v52 = vld [vmem:[#allocation143_spill] sm:$0xff] }
 0x342   : > { %12464 = vst [vmem:[#allocation196_spill] sm:$0xff] %v9137_v56  ;;  %12466 = vst [vmem:[#allocation58_spill] sm:$0xff] %v9141_v27  ;;  %4006 = vrot.lane.b32.xlu1 %v12468_v57, %s6190_s4  ;;  %v2718_v11 = vmax.f32 %v2660_v29, %v9137_v56  ;;  %v4313_v63 = vsub.f32 %v8380_v8, %v8860_v23  ;;  %v3519_v34 = vadd.f32 %v8835_v53, %v8961_v24  ;;  %v9162_v14 = vpop.permute.xlu1 %3366  ;;  %v12475_v24 = vld [vmem:[#allocation140_spill] sm:$0xff] }
 0x343   : > { %4004 = vrot.lane.b32.xlu0 %v12470_v37, %s6190_s4  ;;  %12471 = vst [vmem:[#allocation80_spill] sm:$0xff] %v9162_v14  ;;  %v3209_v28 = vadd.f32 %v3185_v48, %v2969_v40  ;;  %5858 = vpow2.f32 %v3486_v62  ;;  %v3484_v31 = vmul.f32 1.442695, %v3450_v19  ;;  %v9164_v20 = vmul.f32 1.442695, %v3666_v15  ;;  %v9166_v57 = vpop.eup %5842  ;;  %v9171_v56 = vpop.permute.xlu0 %3792  ;;  %v12478_v48 = vld [vmem:[#allocation214_spill] sm:$0xff] }
 0x344   : > { %12472 = vst [vmem:[#allocation48_spill] sm:$0xff] %v9166_v57  ;;  %v9169_v29 = vmax.f32 %v2718_v11, %v9141_v27  ;;  %12474 = vst [vmem:[#allocation27_spill] sm:$0xff] %v9171_v56  ;;  %5860 = vpow2.f32 %v2836_v12  ;;  %v4315_v8 = vsub.f32 %v8598_v51, %v8894_v33  ;;  %v4314_v53 = vsub.f32 %v8898_v47, %v8995_v35  ;;  %v12477_v12 = vld [vmem:[#allocation120_spill] sm:$0xff] }
 0x345   : > { %v9177_v23 = vpop.eup %5844  ;;  %v3401_v62 = vmul.f32 %v5841_v60, %v12476_v52  ;;  %5862 = vpow2.f32 %v3052_v36  ;;  %v9182_v19 = vmul.f32 1.442695, %v3882_v0  ;;  %v9184_v11 = vmul.f32 1.442695, %v4097_v32  ;;  %v12480_v36 = vld [vmem:[#allocation73_spill] sm:$0xff] }
 0x346   : > { %12473 = vst [vmem:[#allocation209_spill] sm:$0xff] %v9169_v29  ;;  %4010 = vrot.lane.b32.xlu1 %v12475_v24, %s6190_s4  ;;  %v9186_v40 = vpop.eup %5846  ;;  %v9190_v51 = vmul.f32 1.442695, %v4098_v59  ;;  %v9192_v35 = vmul.f32 1.442695, %v4313_v63  ;;  %v3735_v47 = vadd.f32 %v8841_v38, %v3519_v34  ;;  %v3734_v15 = vadd.f32 %v12478_v48, %v8964_v42  ;;  %v9203_v0 = vpop.permute.xlu1 %2089  ;;  %v12483_v38 = vld [vmem:[#allocation16_spill] sm:$0xff] }
 0x347   : > { %4008 = vrot.lane.b32.xlu0 %v12477_v12, %s6190_s4  ;;  %v9197_v52 = vpop.eup %5848  ;;  %v9201_v32 = vmul.f32 %v12313_v26, %v12480_v36  ;;  %12481 = vst [vmem:[#allocation143_spill] sm:$0xff] %v9203_v0  ;;  %v3425_v57 = vadd.f32 %v3401_v62, %v3209_v28  ;;  %5864 = vpow2.f32 %v3702_v41  ;;  %v3089_v59 = vadd.f32 %v9105_v3, %v9094_v6  ;;  %v9213_v42 = vpop.permute.xlu0 %2191  ;;  %v12486_v48 = vld [vmem:[#allocation193_spill] sm:$0xff]  ;;  %v12489_v6 = vld [vmem:[#allocation134_spill] sm:$0xff]  ;;  %v12490_v41 = vld [vmem:[#allocation171_spill] sm:$0xff] }
 0x348   : > { %12479 = vst [vmem:[#allocation127_spill] sm:$0xff] %v9197_v52  ;;  %v9207_v63 = vpop.eup %5850  ;;  %v9211_v34 = vmul.f32 %v12483_v38, %v12463_v55  ;;  %12485 = vst [vmem:[#allocation16_spill] sm:$0xff] %v9213_v42  ;;  %v2804_v52 = vsub.f32 %v12486_v48, %v9169_v29  ;;  %v9217_v33 = vmul.f32 1.442695, %v4315_v8  ;;  %v9219_v27 = vmul.f32 1.442695, %v4314_v53 }
 0x349   : > { %12482 = vst [vmem:[#allocation214_spill] sm:$0xff] %v9207_v63  ;;  %v9221_v28 = vpop.eup %5852  ;;  %v9225_v3 = vmul.f32 %v12241_v25, %v12463_v55  ;;  %v3617_v62 = vmul.f32 %v9177_v23, %v12490_v41  ;;  %5866 = vpow2.f32 %v9115_v49  ;;  %v12491_v48 = vld [vmem:[#allocation167_spill] sm:$0xff]  ;;  %v12493_v53 = vld [vmem:[#allocation141_spill] sm:$0xff]  ;;  %v3951_v14 = vadd.f32 %v8849_v30, %v3735_v47  ;;  %v12512_v30 = vld [vmem:[#allocation30_spill] sm:$0xff] }
 0x34a   : > { %12484 = vst [vmem:[#allocation73_spill] sm:$0xff] %v9211_v34  ;;  %12487 = vst [vmem:[#allocation193_spill] sm:$0xff] %v9219_v27  ;;  %4014 = vrot.lane.b32.xlu1 %v12489_v6, %s6190_s4  ;;  %v3020_v8 = vsub.f32 %v12491_v48, %v9169_v29  ;;  %v9234_v56 = vpop.eup %5854  ;;  %v12494_v27 = vld [vmem:[#allocation158_spill] sm:$0xff]  ;;  %5868 = vpow2.f32 %v3268_v45  ;;  %v12496_v49 = vmax.f32 %v9058_v58, %v9066_v39  ;;  %v9246_v12 = vpop.permute.xlu1 %2934 }
 0x34b   : > { %12488 = vst [vmem:[#allocation231_spill] sm:$0xff] %v9221_v28  ;;  %12492 = vst [vmem:[#allocation171_spill] sm:$0xff] %v9234_v56  ;;  %4012 = vrot.lane.b32.xlu0 %v12493_v53, %s6190_s4  ;;  %v3833_v55 = vmul.f32 %v9186_v40, %v12494_v27  ;;  %v12495_v6 = vld [vmem:[#allocation46_spill] sm:$0xff]  ;;  %v3641_v48 = vadd.f32 %v3617_v62, %v3425_v57  ;;  %5870 = vpow2.f32 %v3484_v31  ;;  %v9248_v37 = vpop.eup %5856  ;;  %v9258_v47 = vpop.permute.xlu0 %3148  ;;  %v12504_v57 = vld [vmem:[#allocation191_spill] sm:$0xff] }
 0x34c   : > { %v3950_v24 = vadd.f32 %v12495_v6, %v3734_v15  ;;  %v2661_v41 = vmax.f32 %v12496_v49, %v9201_v32  ;;  %12497 = vst [vmem:[#allocation167_spill] sm:$0xff] %v9246_v12  ;;  %v3305_v63 = vadd.f32 %v5841_v60, %v3089_v59  ;;  %12498 = vst [vmem:[#allocation158_spill] sm:$0xff] %v9248_v37  ;;  %v12502_v15 = vld [vmem:[#allocation111_spill] sm:$0xff]  ;;  %v2840_v49 = vmul.f32 1.442695, %v2804_v52  ;;  %v12505_v60 = vld [vmem:[#allocation17_spill] sm:$0xff] }
 0x34d   : > { %v9252_v27 = vmul.f32 %v12417_v4, %v12480_v36  ;;  %v9256_v45 = vmul.f32 %v12390_v13, %v12480_v36  ;;  %12501 = vst [vmem:[#allocation234_spill] sm:$0xff] %v9258_v47  ;;  %v2971_v58 = vmul.f32 %v9221_v28, %v12502_v15  ;;  %v9262_v12 = vpop.eup %5858  ;;  %v9266_v31 = vmul.f32 %v12505_v60, %v12504_v57  ;;  %v12507_v36 = vld [vmem:[#allocation31_spill] sm:$0xff]  ;;  %v12510_v52 = vld [vmem:[#allocation12_spill] sm:$0xff] }
 0x34e   : > { %12503 = vst [vmem:[#allocation111_spill] sm:$0xff] %v9262_v12  ;;  %v9270_v59 = vmul.f32 %v12313_v26, %v8978_v43  ;;  %4186 = vrot.lane.b32.xlu1 %v12507_v36, %s6191_s5  ;;  %v12508_v62 = vld [vmem:[#allocation91_spill] sm:$0xff]  ;;  %v3056_v6 = vmul.f32 1.442695, %v3020_v8  ;;  %v9276_v15 = vpop.eup %5860  ;;  %v9280_v28 = vmul.f32 %v12510_v52, %v12504_v57  ;;  %5872 = vpow2.f32 %v9164_v20  ;;  %v9294_v0 = vpop.permute.xlu1 %2350 }
 0x34f   : > { %12499 = vst [vmem:[#allocation232_spill] sm:$0xff] %v9252_v27  ;;  %12500 = vst [vmem:[#allocation233_spill] sm:$0xff] %v9256_v45  ;;  %v3187_v53 = vmul.f32 %v9234_v56, %v12508_v62  ;;  %4184 = vrot.lane.b32.xlu0 %v12512_v30, %s6191_s5  ;;  %v4167_v47 = vadd.f32 %v8876_v1, %v3951_v14  ;;  %v12513_v26 = vld [vmem:[#allocation95_spill] sm:$0xff]  ;;  %v9287_v36 = vpop.eup %5862  ;;  %v12515_v62 = vld [vmem:[#allocation18_spill] sm:$0xff]  ;;  %v2719_v56 = vmax.f32 %v2661_v41, %v8986_v21 }
 0x350   : > { %12506 = vst [vmem:[#allocation191_spill] sm:$0xff] %v9270_v59  ;;  %12509 = vst [vmem:[#allocation17_spill] sm:$0xff] %v9276_v15  ;;  %v4166_v42 = vadd.f32 %v12513_v26, %v3950_v24  ;;  %v9291_v8 = vmul.f32 %v12515_v62, %v12504_v57  ;;  %v12517_v13 = vld [vmem:[#allocation83_spill] sm:$0xff]  ;;  %v9299_v30 = vadd.f32 %v9177_v23, %v3305_v63  ;;  %v9305_v24 = vpop.permute.xlu0 %3576  ;;  %5874 = vpow2.f32 %v2840_v49  ;;  %v12522_v23 = vld [vmem:[#allocation34_spill] sm:$0xff] }
 0x351   : > { %12511 = vst [vmem:[#allocation31_spill] sm:$0xff] %v9280_v28  ;;  %12514 = vst [vmem:[#allocation91_spill] sm:$0xff] %v9287_v36  ;;  %v3236_v4 = vsub.f32 %v12517_v13, %v9169_v29  ;;  %v2482_v20 = vmax.f32 %v9097_v61, %v9256_v45  ;;  %v9307_v57 = vadd.f32 %v3833_v55, %v3641_v48  ;;  %v9309_v41 = vpop.eup %5864  ;;  %5876 = vpow2.f32 %v3056_v6  ;;  %v12524_v48 = vld [vmem:[#allocation29_spill] sm:$0xff]  ;;  %v12525_v49 = vld [vmem:[#allocation102_spill] sm:$0xff] }
 0x352   : > { %12516 = vst [vmem:[#allocation12_spill] sm:$0xff] %v9291_v8  ;;  %12518 = vst [vmem:[#allocation30_spill] sm:$0xff] %v9305_v24  ;;  %v9314_v13 = vmax.f32 %v2719_v56, %v9270_v59  ;;  %4190 = vrot.lane.b32.xlu1 %v12522_v23, %s6191_s5  ;;  %v3211_v63 = vadd.f32 %v3187_v53, %v2971_v58  ;;  %v12523_v61 = vmax.f32 %v8891_v5, %v8821_v46  ;;  %v12526_v21 = vld [vmem:[#allocation145_spill] sm:$0xff]  ;;  %v12527_v59 = vld [vmem:[#allocation112_spill] sm:$0xff]  ;;  %v9338_v5 = vpop.permute.xlu1 %3362 }
 0x353   : > { %12519 = vst [vmem:[#allocation83_spill] sm:$0xff] %v9307_v57  ;;  %12520 = vst [vmem:[#allocation235_spill] sm:$0xff] %v9309_v41  ;;  %4188 = vrot.lane.b32.xlu0 %v12524_v48, %s6191_s5  ;;  %v3403_v14 = vmul.f32 %v9248_v37, %v12525_v49  ;;  %v2970_v56 = vmul.f32 %v9276_v15, %v12526_v21  ;;  %v3186_v23 = vmul.f32 %v9287_v36, %v12527_v59  ;;  %v9332_v53 = vpop.eup %5866  ;;  %v12531_v58 = vld [vmem:[#allocation165_spill] sm:$0xff]  ;;  %v12534_v21 = vld [vmem:[#allocation84_spill] sm:$0xff] }
 0x354   : > { %12521 = vst [vmem:[#allocation236_spill] sm:$0xff] %v9314_v13  ;;  %v9322_v55 = vmax.f32 %v12523_v61, %v9280_v28  ;;  %12528 = vst [vmem:[#allocation34_spill] sm:$0xff] %v9332_v53  ;;  %v9336_v6 = vmul.f32 %v12241_v25, %v8731_v9  ;;  %v3619_v61 = vmul.f32 %v9262_v12, %v12531_v58  ;;  %v3272_v48 = vmul.f32 1.442695, %v3236_v4  ;;  %v12532_v49 = vld [vmem:[#allocation157_spill] sm:$0xff]  ;;  %v9344_v24 = vpop.eup %5868  ;;  %v9361_v4 = vpop.permute.xlu0 %2087  ;;  %v12539_v12 = vld [vmem:[#allocation47_spill] sm:$0xff] }
 0x355   : > { %12530 = vst [vmem:[#allocation102_spill] sm:$0xff] %v9338_v5  ;;  %v3452_v37 = vsub.f32 %v12532_v49, %v9169_v29  ;;  %12533 = vst [vmem:[#allocation145_spill] sm:$0xff] %v9344_v24  ;;  %v12535_v15 = vld [vmem:[#allocation21_spill] sm:$0xff]  ;;  %v9352_v36 = vmul.f32 %v12483_v38, %v12534_v21  ;;  %v9356_v53 = vmul.f32 %v12241_v25, %v12534_v21  ;;  %v9363_v49 = vpop.eup %5870  ;;  %5878 = vpow2.f32 %v9182_v19 }
 0x356   : > { %12529 = vst [vmem:[#allocation29_spill] sm:$0xff] %v9336_v6  ;;  %v9348_v59 = vmul.f32 %v12535_v15, %v12534_v21  ;;  %v9359_v58 = vmax.f32 %v2482_v20, %v8972_v44  ;;  %12538 = vst [vmem:[#allocation157_spill] sm:$0xff] %v9363_v49  ;;  %4194 = vrot.lane.b32.xlu1 %v12539_v12, %s6191_s5  ;;  %v3427_v57 = vadd.f32 %v3403_v14, %v3211_v63  ;;  %v12540_v26 = vld [vmem:[#allocation105_spill] sm:$0xff]  ;;  %v12543_v44 = vld [vmem:[#allocation54_spill] sm:$0xff]  ;;  %v9385_v19 = vpop.permute.xlu1 %3574 }
 0x357   : > { %12536 = vst [vmem:[#allocation112_spill] sm:$0xff] %v9352_v36  ;;  %12537 = vst [vmem:[#allocation165_spill] sm:$0xff] %v9356_v53  ;;  %v9369_v1 = vmul.f32 %v9309_v41, %v12540_v26  ;;  %v12541_v21 = vld [vmem:[#allocation69_spill] sm:$0xff]  ;;  %v9376_v20 = vmul.f32 %v12483_v38, %v8731_v9  ;;  %4192 = vrot.lane.b32.xlu0 %v12543_v44, %s6191_s5  ;;  %v3210_v45 = vadd.f32 %v3186_v23, %v2970_v56  ;;  %v12544_v12 = vld [vmem:[#allocation36_spill] sm:$0xff] }
 0x358   : > { %v2805_v5 = vsub.f32 %v12541_v21, %v9314_v13  ;;  %v3021_v14 = vsub.f32 %v12544_v12, %v9314_v13  ;;  %5880 = vpow2.f32 %v9184_v11  ;;  %v2481_v26 = vmax.f32 %v9074_v17, %v9336_v6  ;;  %12545 = vst [vmem:[#allocation21_spill] sm:$0xff] %v9385_v19  ;;  %v12546_v21 = vld [vmem:[#allocation118_spill] sm:$0xff]  ;;  %v9389_v41 = vpop.eup %5872  ;;  %v9395_v56 = vpop.permute.xlu0 %2352  ;;  %v12549_v23 = vld [vmem:[#allocation153_spill] sm:$0xff]  ;;  %v12550_v12 = vld [vmem:[#allocation43_spill] sm:$0xff] }
 0x359   : > { %12542 = vst [vmem:[#allocation84_spill] sm:$0xff] %v9376_v20  ;;  %5882 = vpow2.f32 %v3272_v48  ;;  %v3488_v63 = vmul.f32 1.442695, %v3452_v37  ;;  %v3668_v9 = vsub.f32 %v12546_v21, %v9169_v29  ;;  %12547 = vst [vmem:[#allocation47_spill] sm:$0xff] %v9389_v41  ;;  %v9393_v44 = vmul.f32 %v12483_v38, %v12465_v54  ;;  %v12551_v48 = vld [vmem:[#allocation66_spill] sm:$0xff] }
 0x35a   : > { %v3402_v11 = vmul.f32 %v9344_v24, %v12549_v23  ;;  %v4383_v17 = vadd.f32 %v8935_v2, %v4167_v47  ;;  %v4382_v19 = vadd.f32 %v12550_v12, %v4166_v42  ;;  %v9403_v37 = vmul.f32 %v12241_v25, %v12465_v54  ;;  %4198 = vrot.lane.b32.xlu1 %v12551_v48, %s6191_s5  ;;  %v9408_v28 = vpop.eup %5874  ;;  %v12553_v47 = vld [vmem:[#allocation63_spill] sm:$0xff] }
 0x35b   : > { %12548 = vst [vmem:[#allocation105_spill] sm:$0xff] %v9393_v44  ;;  %v3643_v21 = vadd.f32 %v3619_v61, %v3427_v57  ;;  %v2842_v6 = vmul.f32 1.442695, %v2805_v5  ;;  %5884 = vpow2.f32 %v9190_v51  ;;  %12552 = vst [vmem:[#allocation69_spill] sm:$0xff] %v9408_v28  ;;  %v2261_v23 = vmax.f32 %v9376_v20, %v9211_v34  ;;  %4196 = vrot.lane.b32.xlu0 %v12553_v47, %s6191_s5  ;;  %v9415_v54 = vpop.eup %5876  ;;  %v9418_v57 = vpop.permute.xlu1 %2491  ;;  %v12558_v47 = vld [vmem:[#allocation50_spill] sm:$0xff] }
 0x35c   : > { %v3426_v42 = vadd.f32 %v3402_v11, %v3210_v45  ;;  %v3058_v12 = vmul.f32 1.442695, %v3021_v14  ;;  %5886 = vpow2.f32 %v9192_v35  ;;  %12554 = vst [vmem:[#allocation54_spill] sm:$0xff] %v9415_v54  ;;  %v2539_v48 = vmax.f32 %v2481_v26, %v9225_v3  ;;  %v9425_v2 = vpop.permute.xlu0 %2493  ;;  %v12556_v45 = vld [vmem:[#allocation67_spill] sm:$0xff] }
 0x35d   : > { %5888 = vpow2.f32 %v3488_v63  ;;  %v3704_v51 = vmul.f32 1.442695, %v3668_v9  ;;  %v9422_v5 = vadd.f32 %v9186_v40, %v9299_v30  ;;  %v2422_v61 = vmax.f32 %v2261_v23, %v9393_v44  ;;  %v12557_v35 = vld [vmem:[#allocation87_spill] sm:$0xff]  ;;  %v12560_v9 = vld [vmem:[#allocation178_spill] sm:$0xff]  ;;  %v12563_v23 = vld [vmem:[#allocation61_spill] sm:$0xff] }
 0x35e   : > { %v3618_v14 = vmul.f32 %v9363_v49, %v12556_v45  ;;  %v3237_v11 = vsub.f32 %v12557_v35, %v9314_v13  ;;  %v9432_v26 = vadd.f32 %v12558_v47, %v4383_v17  ;;  %v2601_v63 = vmax.f32 %v2539_v48, %v9403_v37  ;;  %v12562_v30 = vld [vmem:[#allocation75_spill] sm:$0xff]  ;;  %v12564_v17 = vld [vmem:[#allocation177_spill] sm:$0xff]  ;;  %v12565_v35 = vld [vmem:[#allocation172_spill] sm:$0xff] }
 0x35f   : > { %12555 = vst [vmem:[#allocation36_spill] sm:$0xff] %v9422_v5  ;;  %v9437_v24 = vmul.f32 %v12483_v38, %v12560_v9  ;;  %v9441_v40 = vmul.f32 %v12241_v25, %v12560_v9  ;;  %4202 = vrot.lane.b32.xlu1 %v12562_v30, %s6191_s5  ;;  %5890 = vpow2.f32 %v2842_v6  ;;  %4200 = vrot.lane.b32.xlu0 %v12563_v23, %s6191_s5  ;;  %v9451_v49 = vpop.eup %5878  ;;  %v9461_v30 = vpop.permute.xlu1 %3794  ;;  %v12571_v23 = vld [vmem:[#allocation162_spill] sm:$0xff] }
 0x360   : > { %12559 = vst [vmem:[#allocation118_spill] sm:$0xff] %v9432_v26  ;;  %v3642_v45 = vadd.f32 %v3618_v14, %v3426_v42  ;;  %5892 = vpow2.f32 %v3058_v12  ;;  %v2972_v48 = vmul.f32 %v9408_v28, %v12564_v17  ;;  %v3188_v47 = vmul.f32 %v9415_v54, %v12565_v35  ;;  %12566 = vst [vmem:[#allocation66_spill] sm:$0xff] %v9451_v49  ;;  %v9467_v14 = vpop.permute.xlu0 %2932  ;;  %v12573_v28 = vld [vmem:[#allocation116_spill] sm:$0xff] }
 0x361   : > { %12561 = vst [vmem:[#allocation153_spill] sm:$0xff] %v9437_v24  ;;  %v9455_v26 = vmul.f32 %v12535_v15, %v12560_v9  ;;  %v9459_v6 = vmul.f32 %v12510_v52, %v8988_v16  ;;  %12568 = vst [vmem:[#allocation67_spill] sm:$0xff] %v9461_v30  ;;  %5894 = vpow2.f32 %v3704_v51  ;;  %v3884_v12 = vsub.f32 %v9039_v50, %v9169_v29  ;;  %v12572_v9 = vld [vmem:[#allocation39_spill] sm:$0xff] }
 0x362   : > { %v9465_v42 = vpop.eup %5880  ;;  %12570 = vst [vmem:[#allocation178_spill] sm:$0xff] %v9467_v14  ;;  %v3834_v17 = vmul.f32 %v9389_v41, %v12571_v23  ;;  %v3274_v35 = vmul.f32 1.442695, %v3237_v11  ;;  %v3453_v54 = vsub.f32 %v12572_v9, %v9314_v13  ;;  %v9474_v5 = vadd.f32 %v12573_v28, %v4382_v19  ;;  %v12577_v23 = vld [vmem:[#allocation92_spill] sm:$0xff]  ;;  %v12578_v19 = vld [vmem:[#allocation101_spill] sm:$0xff] }
 0x363   : > { %12567 = vst [vmem:[#allocation63_spill] sm:$0xff] %v9459_v6  ;;  %12569 = vst [vmem:[#allocation87_spill] sm:$0xff] %v9465_v42  ;;  %v9476_v49 = vpop.eup %5882  ;;  %v2484_v51 = vmax.f32 %v2422_v61, %v9437_v24  ;;  %v9480_v50 = vmax.f32 %v2601_v63, %v9441_v40  ;;  %v9484_v42 = vmul.f32 %v12510_v52, %v9107_v10  ;;  %4206 = vrot.lane.b32.xlu1 %v12577_v23, %s6191_s5  ;;  %v12580_v63 = vld [vmem:[#allocation216_spill] sm:$0xff]  ;;  %v12581_v28 = vld [vmem:[#allocation217_spill] sm:$0xff] }
 0x364   : > { %12574 = vst [vmem:[#allocation75_spill] sm:$0xff] %v9474_v5  ;;  %12575 = vst [vmem:[#allocation61_spill] sm:$0xff] %v9476_v49  ;;  %v4100_v11 = vsub.f32 %v9088_v22, %v9169_v29  ;;  %4204 = vrot.lane.b32.xlu0 %v12578_v19, %s6191_s5  ;;  %v9493_v9 = vadd.f32 %v9369_v1, %v3643_v21  ;;  %v3212_v61 = vadd.f32 %v3188_v47, %v2972_v48  ;;  %v9506_v29 = vpop.permute.xlu1 %3582  ;;  %v12588_v47 = vld [vmem:[#allocation15_spill] sm:$0xff]  ;;  %v12614_v14 = vld [vmem:[#allocation136_spill] sm:$0xff] }
 0x365   : > { %12576 = vst [vmem:[#allocation177_spill] sm:$0xff] %v9484_v42  ;;  %5896 = vpow2.f32 %v9217_v33  ;;  %v9498_v41 = vadd.f32 %v12581_v28, %v12580_v63  ;;  %v9500_v5 = vpop.eup %5884  ;;  %v2720_v22 = vmax.f32 %v9322_v55, %v9459_v6  ;;  %12584 = vst [vmem:[#allocation92_spill] sm:$0xff] %v9506_v29  ;;  %v9508_v19 = vadd.f32 %v3834_v17, %v3642_v45  ;;  %v9512_v33 = vpop.permute.xlu0 %3364  ;;  %v12589_v63 = vld [vmem:[#allocation49_spill] sm:$0xff] }
 0x366   : > { %12579 = vst [vmem:[#allocation172_spill] sm:$0xff] %v9493_v9  ;;  %12583 = vst [vmem:[#allocation39_spill] sm:$0xff] %v9500_v5  ;;  %v3920_v1 = vmul.f32 1.442695, %v3884_v12  ;;  %v9510_v21 = vpop.eup %5886  ;;  %5898 = vpow2.f32 %v3274_v35  ;;  %v3490_v28 = vmul.f32 1.442695, %v3453_v54  ;;  %v3669_v48 = vsub.f32 %v12588_v47, %v9314_v13 }
 0x367   : > { %12582 = vst [vmem:[#allocation162_spill] sm:$0xff] %v9498_v41  ;;  %12585 = vst [vmem:[#allocation101_spill] sm:$0xff] %v9508_v19  ;;  %v3404_v23 = vmul.f32 %v9476_v49, %v12589_v63  ;;  %v9518_v41 = vpop.eup %5888  ;;  %v9521_v55 = vmax.f32 %v2720_v22, %v9484_v42  ;;  %v12592_v12 = vld [vmem:[#allocation114_spill] sm:$0xff]  ;;  %v9528_v17 = vmax.f32 %v2484_v51, %v9352_v36  ;;  %v4136_v54 = vmul.f32 1.442695, %v4100_v11  ;;  %v12593_v35 = vld [vmem:[#allocation76_spill] sm:$0xff] }
 0x368   : > { %12586 = vst [vmem:[#allocation216_spill] sm:$0xff] %v9510_v21  ;;  %12587 = vst [vmem:[#allocation217_spill] sm:$0xff] %v9512_v33  ;;  %4210 = vrot.lane.b32.xlu1 %v12592_v12, %s6191_s5  ;;  %v12594_v47 = vld [vmem:[#allocation24_spill] sm:$0xff]  ;;  %v9536_v63 = vmul.f32 %v12515_v62, %v12593_v35  ;;  %v12597_v22 = vld [vmem:[#allocation110_spill] sm:$0xff]  ;;  %v3885_v45 = vsub.f32 %v9066_v39, %v9314_v13  ;;  %v9546_v51 = vmul.f32 %v12505_v60, %v12593_v35  ;;  %v9552_v6 = vpop.permute.xlu1 %3578 }
 0x369   : > { %12590 = vst [vmem:[#allocation15_spill] sm:$0xff] %v9518_v41  ;;  %12591 = vst [vmem:[#allocation49_spill] sm:$0xff] %v9521_v55  ;;  %v9532_v21 = vmul.f32 %v12594_v47, %v12593_v35  ;;  %4208 = vrot.lane.b32.xlu0 %v12597_v22, %s6191_s5  ;;  %v3428_v49 = vadd.f32 %v3404_v23, %v3212_v61  ;;  %v9542_v12 = vpop.eup %5890  ;;  %v9550_v11 = vmul.f32 %v12515_v62, %v8988_v16  ;;  %v9562_v61 = vpop.permute.xlu0 %3796  ;;  %v12604_v35 = vld [vmem:[#allocation197_spill] sm:$0xff]  ;;  %v12610_v9 = vld [vmem:[#allocation198_spill] sm:$0xff] }
 0x36a   : > { %12596 = vst [vmem:[#allocation76_spill] sm:$0xff] %v9536_v63  ;;  %12598 = vst [vmem:[#allocation24_spill] sm:$0xff] %v9542_v12  ;;  %5900 = vpow2.f32 %v3920_v1  ;;  %v4101_v22 = vsub.f32 %v9201_v32, %v9314_v13  ;;  %v9556_v42 = vpop.eup %5892  ;;  %v9560_v39 = vmul.f32 %v12505_v60, %v8988_v16  ;;  %v3706_v23 = vmul.f32 1.442695, %v3669_v48  ;;  %v12606_v1 = vld [vmem:[#allocation19_spill] sm:$0xff]  ;;  %v12608_v32 = vld [vmem:[#allocation14_spill] sm:$0xff] }
 0x36b   : > { %12595 = vst [vmem:[#allocation114_spill] sm:$0xff] %v9532_v21  ;;  %12599 = vst [vmem:[#allocation110_spill] sm:$0xff] %v9546_v51  ;;  %5902 = vpow2.f32 %v3490_v28  ;;  %v3620_v29 = vmul.f32 %v9518_v41, %v12604_v35  ;;  %v9566_v5 = vpop.eup %5894  ;;  %v9570_v19 = vmul.f32 %v12606_v1, %v8978_v43  ;;  %v9574_v13 = vmul.f32 %v12608_v32, %v8978_v43  ;;  %v12609_v16 = vld [vmem:[#allocation122_spill] sm:$0xff]  ;;  %v12612_v41 = vld [vmem:[#allocation109_spill] sm:$0xff] }
 0x36c   : > { %12600 = vst [vmem:[#allocation237_spill] sm:$0xff] %v9550_v11  ;;  %12601 = vst [vmem:[#allocation238_spill] sm:$0xff] %v9552_v6  ;;  %4214 = vrot.lane.b32.xlu1 %v12609_v16, %s6191_s5  ;;  %v2806_v28 = vsub.f32 %v12610_v9, %v9521_v55  ;;  %5904 = vpow2.f32 %v4136_v54  ;;  %v9582_v48 = vmul.f32 %v12515_v62, %v9107_v10  ;;  %v3922_v43 = vmul.f32 1.442695, %v3885_v45  ;;  %v9592_v33 = vpop.permute.xlu1 %2435  ;;  %v12613_v9 = vld [vmem:[#allocation174_spill] sm:$0xff] }
 0x36d   : > { %12602 = vst [vmem:[#allocation239_spill] sm:$0xff] %v9556_v42  ;;  %12603 = vst [vmem:[#allocation240_spill] sm:$0xff] %v9562_v61  ;;  %v9586_v35 = vmul.f32 %v12505_v60, %v9107_v10  ;;  %4212 = vrot.lane.b32.xlu0 %v12612_v41, %s6191_s5  ;;  %v3644_v61 = vadd.f32 %v3620_v29, %v3428_v49  ;;  %v2263_v16 = vmax.f32 %v9291_v8, %v9550_v11  ;;  %v12617_v29 = vld [vmem:[#allocation143_spill] sm:$0xff]  ;;  %v9608_v45 = vpop.permute.xlu0 %2437  ;;  %v12618_v11 = vld [vmem:[#allocation186_spill] sm:$0xff] }
 0x36e   : > { %12605 = vst [vmem:[#allocation197_spill] sm:$0xff] %v9566_v5  ;;  %12607 = vst [vmem:[#allocation19_spill] sm:$0xff] %v9570_v19  ;;  %v2973_v54 = vmul.f32 %v9542_v12, %v12613_v9  ;;  %v3189_v30 = vmul.f32 %v9556_v42, %v12614_v14  ;;  %v4138_v6 = vmul.f32 1.442695, %v4101_v22  ;;  %v12616_v10 = vmax.f32 %v8926_v7, %v9266_v31  ;;  %v12621_v42 = vld [vmem:[#allocation161_spill] sm:$0xff]  ;;  %v12623_v8 = vld [vmem:[#allocation130_spill] sm:$0xff] }
 0x36f   : > { %12611 = vst [vmem:[#allocation14_spill] sm:$0xff] %v9582_v48  ;;  %v9598_v36 = vpop.eup %5896  ;;  %v9606_v49 = vmul.f32 %v12505_v60, %v12617_v29  ;;  %5906 = vpow2.f32 %v3706_v23  ;;  %v3836_v9 = vmul.f32 %v9566_v5, %v12618_v11  ;;  %v12619_v14 = vmax.f32 %v9252_v27, %v8968_v18 }
 0x370   : > { %12615 = vst [vmem:[#allocation122_spill] sm:$0xff] %v9598_v36  ;;  %v2541_v41 = vmax.f32 %v12616_v10, %v9560_v39  ;;  %v2602_v7 = vmax.f32 %v9359_v58, %v9574_v13  ;;  %v12620_v10 = vld [vmem:[#allocation121_spill] sm:$0xff]  ;;  %v2844_v36 = vmul.f32 1.442695, %v2806_v28  ;;  %v3022_v12 = vsub.f32 %v12621_v42, %v9521_v55  ;;  %v9624_v23 = vpop.eup %5898  ;;  %v9636_v28 = vpop.permute.xlu1 %2495  ;;  %v12627_v42 = vld [vmem:[#allocation108_spill] sm:$0xff] }
 0x371   : > { %v9616_v22 = vmax.f32 %v12619_v14, %v9570_v19  ;;  %4218 = vrot.lane.b32.xlu1 %v12620_v10, %s6191_s5  ;;  %12622 = vst [vmem:[#allocation198_spill] sm:$0xff] %v9624_v23  ;;  %v2424_v11 = vmax.f32 %v2263_v16, %v9582_v48  ;;  %4216 = vrot.lane.b32.xlu0 %v12623_v8, %s6191_s5  ;;  %5908 = vpow2.f32 %v3922_v43  ;;  %12626 = vst [vmem:[#allocation136_spill] sm:$0xff] %v9636_v28  ;;  %v9645_v43 = vpop.permute.xlu0 %2433 }
 0x372   : > { %v2603_v5 = vmax.f32 %v2541_v41, %v9586_v35  ;;  %v9630_v14 = vadd.f32 %v3836_v9, %v3644_v61  ;;  %v9634_v58 = vmul.f32 %v12241_v25, %v9294_v0  ;;  %v3213_v10 = vadd.f32 %v3189_v30, %v2973_v54  ;;  %v12629_v61 = vld [vmem:[#allocation113_spill] sm:$0xff]  ;;  %v12630_v9 = vld [vmem:[#allocation210_spill] sm:$0xff] }
 0x373   : > { %v3238_v19 = vsub.f32 %v12627_v42, %v9521_v55  ;;  %5910 = vpow2.f32 %v4138_v6  ;;  %v9642_v16 = vmul.f32 %v12515_v62, %v12617_v29  ;;  %v3454_v41 = vsub.f32 %v12629_v61, %v9521_v55  ;;  %v12632_v6 = vld [vmem:[#allocation132_spill] sm:$0xff]  ;;  %v12633_v54 = vld [vmem:[#allocation194_spill] sm:$0xff]  ;;  %v12635_v61 = vld [vmem:[#allocation103_spill] sm:$0xff] }
 0x374   : > { %12624 = vst [vmem:[#allocation109_spill] sm:$0xff] %v9630_v14  ;;  %12625 = vst [vmem:[#allocation174_spill] sm:$0xff] %v9634_v58  ;;  %v2665_v8 = vmax.f32 %v2603_v5, %v9606_v49  ;;  %v3670_v14 = vsub.f32 %v12630_v9, %v9521_v55  ;;  %v9651_v48 = vpop.eup %5900  ;;  %v9655_v30 = vmul.f32 %v12608_v32, %v9361_v4  ;;  %5912 = vpow2.f32 %v2844_v36  ;;  %v9689_v34 = vpop.permute.xlu1 %3798 }
 0x375   : > { %12628 = vst [vmem:[#allocation143_spill] sm:$0xff] %v9642_v16  ;;  %12631 = vst [vmem:[#allocation186_spill] sm:$0xff] %v9651_v48  ;;  %4222 = vrot.lane.b32.xlu1 %v12632_v6, %s6191_s5  ;;  %v3405_v5 = vmul.f32 %v9624_v23, %v12633_v54  ;;  %v3060_v42 = vmul.f32 1.442695, %v3022_v12  ;;  %v9661_v18 = vpop.eup %5902  ;;  %v9665_v27 = vmul.f32 %v12594_v47, %v12635_v61  ;;  %v12638_v48 = vld [vmem:[#allocation125_spill] sm:$0xff]  ;;  %v12639_v54 = vld [vmem:[#allocation31_spill] sm:$0xff] }
 0x376   : > { %12634 = vst [vmem:[#allocation121_spill] sm:$0xff] %v9661_v18  ;;  %v9669_v9 = vmul.f32 %v12515_v62, %v12635_v61  ;;  %4220 = vrot.lane.b32.xlu0 %v12638_v48, %s6191_s5  ;;  %v3886_v6 = vsub.f32 %v8821_v46, %v9521_v55  ;;  %v4102_v36 = vsub.f32 %v12639_v54, %v9521_v55  ;;  %v9677_v12 = vpop.eup %5904  ;;  %12644 = vst [vmem:[#allocation132_spill] sm:$0xff] %v9689_v34 }
 0x377   : > { %12636 = vst [vmem:[#allocation161_spill] sm:$0xff] %v9665_v27  ;;  %12640 = vst [vmem:[#allocation108_spill] sm:$0xff] %v9677_v12  ;;  %v9681_v23 = vmul.f32 %v12594_v47, %v12617_v29  ;;  %v12642_v24 = vmax.f32 %v9480_v50, %v9356_v53  ;;  %v3429_v48 = vadd.f32 %v3405_v5, %v3213_v10  ;;  %v3276_v28 = vmul.f32 1.442695, %v3238_v19  ;;  %v9697_v29 = vpop.permute.xlu0 %2553  ;;  %v12647_v50 = vld [vmem:[#allocation70_spill] sm:$0xff] }
 0x378   : > { %12637 = vst [vmem:[#allocation130_spill] sm:$0xff] %v9669_v9  ;;  %v9693_v46 = vmul.f32 %v12505_v60, %v12635_v61  ;;  %v2486_v54 = vmax.f32 %v2424_v11, %v9642_v16  ;;  %v2723_v55 = vmax.f32 %v2665_v8, %v9546_v51  ;;  %v3492_v12 = vmul.f32 1.442695, %v3454_v41  ;;  %v12649_v61 = vld [vmem:[#allocation16_spill] sm:$0xff]  ;;  %v12652_v51 = vld [vmem:[#allocation170_spill] sm:$0xff] }
 0x379   : > { %12641 = vst [vmem:[#allocation113_spill] sm:$0xff] %v9681_v23  ;;  %v9687_v44 = vmax.f32 %v12642_v24, %v9634_v58  ;;  %v2664_v20 = vmax.f32 %v2602_v7, %v9655_v30  ;;  %v12646_v24 = vld [vmem:[#allocation133_spill] sm:$0xff]  ;;  %v3621_v10 = vmul.f32 %v9661_v18, %v12647_v50  ;;  %5914 = vpow2.f32 %v3060_v42  ;;  %v9704_v5 = vpop.eup %5906  ;;  %v12651_v7 = vld [vmem:[#allocation124_spill] sm:$0xff]  ;;  %v9718_v42 = vpop.permute.xlu1 %2615 }
 0x37a   : > { %12645 = vst [vmem:[#allocation194_spill] sm:$0xff] %v9693_v46  ;;  %4226 = vrot.lane.b32.xlu1 %v12646_v24, %s6191_s5  ;;  %v3708_v19 = vmul.f32 1.442695, %v3670_v14  ;;  %12648 = vst [vmem:[#allocation103_spill] sm:$0xff] %v9704_v5  ;;  %v9708_v11 = vmul.f32 %v12608_v32, %v12649_v61  ;;  %v9712_v8 = vmul.f32 %v12535_v15, %v9294_v0  ;;  %4224 = vrot.lane.b32.xlu0 %v12651_v7, %s6191_s5  ;;  %v12681_v16 = vld [vmem:[#allocation164_spill] sm:$0xff] }
 0x37b   : > { %12643 = vst [vmem:[#allocation210_spill] sm:$0xff] %v9687_v44  ;;  %v3924_v41 = vmul.f32 1.442695, %v3886_v6  ;;  %v4140_v24 = vmul.f32 1.442695, %v4102_v36  ;;  %v2266_v50 = vmax.f32 %v9681_v23, %v9532_v21  ;;  %v3645_v14 = vadd.f32 %v3621_v10, %v3429_v48  ;;  %v9722_v18 = vpop.eup %5908  ;;  %v9734_v36 = vpop.permute.xlu0 %2673  ;;  %v12657_v48 = vld [vmem:[#allocation55_spill] sm:$0xff] }
 0x37c   : > { %12650 = vst [vmem:[#allocation125_spill] sm:$0xff] %v9708_v11  ;;  %v2807_v53 = vsub.f32 %v12652_v51, %v9687_v44  ;;  %5916 = vpow2.f32 %v3276_v28  ;;  %12653 = vst [vmem:[#allocation31_spill] sm:$0xff] %v9722_v18  ;;  %v9725_v58 = vmax.f32 %v2723_v55, %v9693_v46  ;;  %v9728_v34 = vmax.f32 %v2486_v54, %v9536_v63  ;;  %v12660_v28 = vld [vmem:[#allocation135_spill] sm:$0xff]  ;;  %v12661_v54 = vld [vmem:[#allocation60_spill] sm:$0xff] }
 0x37d   : > { %v9732_v6 = vmul.f32 %v12535_v15, %v9645_v43  ;;  %v3023_v10 = vsub.f32 %v12657_v48, %v9687_v44  ;;  %v9738_v7 = vpop.eup %5910  ;;  %v2722_v51 = vmax.f32 %v2664_v20, %v9708_v11  ;;  %v9743_v55 = vmul.f32 %v12608_v32, %v9395_v56  ;;  %v12662_v18 = vld [vmem:[#allocation20_spill] sm:$0xff] }
 0x37e   : > { %12654 = vst [vmem:[#allocation133_spill] sm:$0xff] %v9725_v58  ;;  %12655 = vst [vmem:[#allocation70_spill] sm:$0xff] %v9728_v34  ;;  %4230 = vrot.lane.b32.xlu1 %v12660_v28, %s6191_s5  ;;  %v3837_v46 = vmul.f32 %v9704_v5, %v12661_v54  ;;  %5918 = vpow2.f32 %v3492_v12  ;;  %v9751_v21 = vmul.f32 %v12662_v18, %v12649_v61  ;;  %v9763_v28 = vpop.eup %5912  ;;  %v9768_v54 = vpop.permute.xlu1 %2555 }
 0x37f   : > { %12656 = vst [vmem:[#allocation16_spill] sm:$0xff] %v9732_v6  ;;  %12658 = vst [vmem:[#allocation124_spill] sm:$0xff] %v9738_v7  ;;  %v9755_v48 = vmul.f32 %v12606_v1, %v12649_v61  ;;  %v12664_v20 = vmax.f32 %v9455_v26, %v9348_v59  ;;  %v12665_v7 = vld [vmem:[#allocation142_spill] sm:$0xff]  ;;  %5920 = vpow2.f32 %v3708_v19  ;;  %v9766_v12 = vmax.f32 %v2266_v50, %v9665_v27  ;;  %v9777_v19 = vpop.permute.xlu0 %3580  ;;  %v12680_v27 = vld [vmem:[#allocation51_spill] sm:$0xff] }
 0x380   : > { %12659 = vst [vmem:[#allocation170_spill] sm:$0xff] %v9743_v55  ;;  %12663 = vst [vmem:[#allocation55_spill] sm:$0xff] %v9751_v21  ;;  %4228 = vrot.lane.b32.xlu0 %v12665_v7, %s6191_s5  ;;  %v9770_v5 = vadd.f32 %v3837_v46, %v3645_v14  ;;  %v2846_v61 = vmul.f32 1.442695, %v2807_v53  ;;  %5922 = vpow2.f32 %v3924_v41  ;;  %v4105_v23 = vsub.f32 %v9606_v49, %v9725_v58  ;;  %v12671_v53 = vld [vmem:[#allocation2_spill] sm:$0xff]  ;;  %v12672_v49 = vld [vmem:[#allocation224_spill] sm:$0xff] }
 0x381   : > { %v2425_v11 = vmax.f32 %v12664_v20, %v9712_v8  ;;  %12666 = vst [vmem:[#allocation135_spill] sm:$0xff] %v9763_v28  ;;  %12667 = vst [vmem:[#allocation60_spill] sm:$0xff] %v9766_v12  ;;  %v3062_v63 = vmul.f32 1.442695, %v3023_v10  ;;  %v9781_v50 = vmul.f32 %v12483_v38, %v9294_v0  ;;  %v9784_v46 = vmax.f32 %v2722_v51, %v9743_v55  ;;  %v12675_v0 = vld [vmem:[#allocation3_spill] sm:$0xff]  ;;  %v12676_v10 = vld [vmem:[#allocation29_spill] sm:$0xff] }
 0x382   : > { %12668 = vst [vmem:[#allocation20_spill] sm:$0xff] %v9770_v5  ;;  %12669 = vst [vmem:[#allocation142_spill] sm:$0xff] %v9777_v19  ;;  %4402 = vrot.lane.b32.xlu1 %v12671_v53, %s6192_s6  ;;  %v3239_v41 = vsub.f32 %v12672_v49, %v9687_v44  ;;  %5924 = vpow2.f32 %v4140_v24  ;;  %v9796_v14 = vmul.f32 %v12535_v15, %v9418_v57  ;;  %v12677_v20 = vld [vmem:[#allocation97_spill] sm:$0xff]  ;;  %v9806_v24 = vpop.permute.xlu1 %2675  ;;  %v12679_v49 = vld [vmem:[#allocation90_spill] sm:$0xff]  ;;  %v4146_v9 = vmul.f32 1.442695, %v4105_v23 }
 0x383   : > { %v2487_v7 = vmax.f32 %v2425_v11, %v9732_v6  ;;  %12670 = vst [vmem:[#allocation241_spill] sm:$0xff] %v9784_v46  ;;  %v9792_v11 = vmul.f32 %v12606_v1, %v9361_v4  ;;  %v3455_v51 = vsub.f32 %v12676_v10, %v9687_v44  ;;  %v2974_v53 = vmul.f32 %v9763_v28, %v12677_v20  ;;  %v9804_v55 = vpop.eup %5914  ;;  %v9819_v28 = vpop.permute.xlu0 %2557  ;;  %v12684_v23 = vld [vmem:[#allocation4_spill] sm:$0xff]  ;;  %v12687_v12 = vld [vmem:[#allocation139_spill] sm:$0xff] }
 0x384   : > { %12674 = vst [vmem:[#allocation224_spill] sm:$0xff] %v9796_v14  ;;  %4400 = vrot.lane.b32.xlu0 %v12675_v0, %s6192_s6  ;;  %12678 = vst [vmem:[#allocation3_spill] sm:$0xff] %v9804_v55  ;;  %5926 = vpow2.f32 %v2846_v61  ;;  %v2809_v5 = vsub.f32 %v12679_v49, %v9725_v58  ;;  %v3025_v19 = vsub.f32 %v12680_v27, %v9725_v58  ;;  %v12688_v6 = vld [vmem:[#allocation23_spill] sm:$0xff] }
 0x385   : > { %12673 = vst [vmem:[#allocation2_spill] sm:$0xff] %v9792_v11  ;;  %v3241_v0 = vsub.f32 %v12681_v16, %v9725_v58  ;;  %v2545_v10 = vmax.f32 %v2487_v7, %v9796_v14  ;;  %v9817_v20 = vmul.f32 %v12535_v15, %v9697_v29  ;;  %12682 = vst [vmem:[#allocation29_spill] sm:$0xff] %v9819_v28  ;;  %5928 = vpow2.f32 %v3062_v63  ;;  %v12685_v7 = vld [vmem:[#allocation227_spill] sm:$0xff]  ;;  %v12686_v63 = vld [vmem:[#allocation5_spill] sm:$0xff] }
 0x386   : > { %v9821_v61 = vpop.eup %5916  ;;  %v9825_v49 = vmul.f32 %v12662_v18, %v9361_v4  ;;  %4406 = vrot.lane.b32.xlu1 %v12684_v23, %s6192_s6  ;;  %v3278_v16 = vmul.f32 1.442695, %v3239_v41  ;;  %v2808_v34 = vsub.f32 %v12685_v7, %v9784_v46  ;;  %v2485_v28 = vmax.f32 %v9616_v22, %v9792_v11  ;;  %v9843_v23 = vpop.permute.xlu1 %2739 }
 0x387   : > { %12683 = vst [vmem:[#allocation97_spill] sm:$0xff] %v9821_v61  ;;  %v3494_v14 = vmul.f32 1.442695, %v3455_v51  ;;  %v3190_v4 = vmul.f32 %v9804_v55, %v12687_v12  ;;  %v3024_v27 = vsub.f32 %v12688_v6, %v9784_v46  ;;  %12690 = vst [vmem:[#allocation51_spill] sm:$0xff] %v9843_v23  ;;  %v3671_v41 = vsub.f32 %v9225_v3, %v9687_v44  ;;  %v9856_v51 = vpop.permute.xlu0 %2677 }
 0x388   : > { %4404 = vrot.lane.b32.xlu0 %v12686_v63, %s6192_s6  ;;  %v9841_v62 = vpop.eup %5918  ;;  %v3887_v22 = vsub.f32 %v9403_v37, %v9687_v44  ;;  %v2850_v7 = vmul.f32 1.442695, %v2809_v5  ;;  %v3066_v11 = vmul.f32 1.442695, %v3025_v19  ;;  %5930 = vpow2.f32 %v4146_v9  ;;  %12693 = vst [vmem:[#allocation227_spill] sm:$0xff] %v9856_v51  ;;  %v12695_v9 = vld [vmem:[#allocation6_spill] sm:$0xff] }
 0x389   : > { %12689 = vst [vmem:[#allocation90_spill] sm:$0xff] %v9841_v62  ;;  %v9849_v63 = vpop.eup %5920  ;;  %v2607_v12 = vmax.f32 %v2545_v10, %v9817_v20  ;;  %v9854_v6 = vmul.f32 %v12535_v15, %v9718_v42  ;;  %v3282_v55 = vmul.f32 1.442695, %v3241_v0  ;;  %v2265_v3 = vmax.f32 %v9825_v49, %v9751_v21  ;;  %v12696_v0 = vld [vmem:[#allocation7_spill] sm:$0xff] }
 0x38a   : > { %12691 = vst [vmem:[#allocation164_spill] sm:$0xff] %v9849_v63  ;;  %v9858_v23 = vpop.eup %5922  ;;  %v9864_v37 = vmul.f32 %v12662_v18, %v9395_v56  ;;  %4410 = vrot.lane.b32.xlu1 %v12695_v9, %s6192_s6  ;;  %5932 = vpow2.f32 %v3278_v16  ;;  %v2848_v5 = vmul.f32 1.442695, %v2808_v34  ;;  %v9870_v42 = vmul.f32 %v12606_v1, %v9395_v56  ;;  %v9879_v51 = vpop.permute.xlu1 %2619 }
 0x38b   : > { %12692 = vst [vmem:[#allocation4_spill] sm:$0xff] %v9854_v6  ;;  %12694 = vst [vmem:[#allocation5_spill] sm:$0xff] %v9858_v23  ;;  %v9873_v19 = vmax.f32 %v2485_v28, %v9755_v48  ;;  %5934 = vpow2.f32 %v3494_v14  ;;  %v3064_v10 = vmul.f32 1.442695, %v3024_v27  ;;  %v3710_v21 = vmul.f32 1.442695, %v3671_v41  ;;  %v9886_v28 = vpop.permute.xlu0 %2617 }
 0x38c   : > { %4408 = vrot.lane.b32.xlu0 %v12696_v0, %s6192_s6  ;;  %v9877_v23 = vpop.eup %5924  ;;  %v3926_v9 = vmul.f32 1.442695, %v3887_v22  ;;  %v3214_v16 = vadd.f32 %v3190_v4, %v2974_v53  ;;  %5936 = vpow2.f32 %v2850_v7  ;;  %v2669_v34 = vmax.f32 %v2607_v12, %v9854_v6  ;;  %v12699_v14 = vld [vmem:[#allocation119_spill] sm:$0xff]  ;;  %v12701_v53 = vld [vmem:[#allocation8_spill] sm:$0xff]  ;;  %v12705_v12 = vld [vmem:[#allocation9_spill] sm:$0xff] }
 0x38d   : > { %12697 = vst [vmem:[#allocation139_spill] sm:$0xff] %v9877_v23  ;;  %v9884_v56 = vmul.f32 %v12535_v15, %v9734_v36  ;;  %5938 = vpow2.f32 %v3066_v11  ;;  %v3240_v27 = vsub.f32 %v12699_v14, %v9784_v46  ;;  %v9893_v23 = vmax.f32 %v2265_v3, %v9864_v37  ;;  %v12702_v4 = vld [vmem:[#allocation56_spill] sm:$0xff] }
 0x38e   : > { %v9890_v0 = vpop.eup %5926  ;;  %4414 = vrot.lane.b32.xlu1 %v12701_v53, %s6192_s6  ;;  %v3406_v41 = vmul.f32 %v9821_v61, %v12702_v4  ;;  %v3457_v36 = vsub.f32 %v9266_v31, %v9725_v58  ;;  %5940 = vpow2.f32 %v2848_v5  ;;  %v9905_v11 = vmul.f32 %v12483_v38, %v9418_v57  ;;  %v2736_v14 = vpop.permute.xlu1 %2735  ;;  %v12706_v5 = vld [vmem:[#allocation199_spill] sm:$0xff]  ;;  %v12707_v4 = vld [vmem:[#allocation233_spill] sm:$0xff] }
 0x38f   : > { %12698 = vst [vmem:[#allocation23_spill] sm:$0xff] %v9884_v56  ;;  %12700 = vst [vmem:[#allocation6_spill] sm:$0xff] %v9890_v0  ;;  %v9901_v22 = vpop.eup %5928  ;;  %v3673_v3 = vsub.f32 %v9560_v39, %v9725_v58  ;;  %5942 = vpow2.f32 %v3064_v10  ;;  %v3622_v53 = vmul.f32 %v9841_v62, %v12706_v5  ;;  %v3456_v57 = vsub.f32 %v12707_v4, %v9784_v46  ;;  %v9925_v39 = vpop.permute.xlu0 %2737  ;;  %v12711_v5 = vld [vmem:[#allocation176_spill] sm:$0xff] }
 0x390   : > { %12703 = vst [vmem:[#allocation7_spill] sm:$0xff] %v9901_v22  ;;  %12704 = vst [vmem:[#allocation119_spill] sm:$0xff] %v9905_v11  ;;  %4412 = vrot.lane.b32.xlu0 %v12705_v12, %s6192_s6  ;;  %5944 = vpow2.f32 %v3710_v21  ;;  %v3430_v31 = vadd.f32 %v3406_v41, %v3214_v16  ;;  %v9919_v61 = vmul.f32 %v12662_v18, %v9592_v33  ;;  %v3280_v10 = vmul.f32 1.442695, %v3240_v27  ;;  %v12709_v21 = vld [vmem:[#allocation10_spill] sm:$0xff]  ;;  %v12710_v16 = vld [vmem:[#allocation184_spill] sm:$0xff] }
 0x391   : > { %v2727_v7 = vmax.f32 %v2669_v34, %v9884_v56  ;;  %v9923_v12 = vmul.f32 %v12535_v15, %v2736_v14  ;;  %v2975_v41 = vmul.f32 %v9890_v0, %v12710_v16  ;;  %v3191_v4 = vmul.f32 %v9901_v22, %v12711_v5  ;;  %v12713_v27 = vld [vmem:[#allocation11_spill] sm:$0xff]  ;;  %v12714_v56 = vld [vmem:[#allocation182_spill] sm:$0xff] }
 0x392   : > { %4418 = vrot.lane.b32.xlu1 %v12709_v21, %s6192_s6  ;;  %v3498_v62 = vmul.f32 1.442695, %v3457_v36  ;;  %v3889_v6 = vsub.f32 %v9586_v35, %v9725_v58  ;;  %v9935_v34 = vpop.eup %5930  ;;  %5946 = vpow2.f32 %v3926_v9  ;;  %v3714_v21 = vmul.f32 1.442695, %v3673_v3  ;;  %v9950_v35 = vpop.permute.xlu1 %3970 }
 0x393   : > { %12708 = vst [vmem:[#allocation8_spill] sm:$0xff] %v9923_v12  ;;  %12712 = vst [vmem:[#allocation56_spill] sm:$0xff] %v9935_v34  ;;  %v9938_v14 = vmax.f32 %v2727_v7, %v9923_v12  ;;  %v3672_v16 = vsub.f32 %v12714_v56, %v9784_v46  ;;  %v9948_v36 = vmul.f32 %v12662_v18, %v9425_v2  ;;  %5948 = vpow2.f32 %v3282_v55  ;;  %v9960_v56 = vpop.permute.xlu0 %3968  ;;  %v12729_v34 = vld [vmem:[#allocation138_spill] sm:$0xff] }
 0x394   : > { %4416 = vrot.lane.b32.xlu0 %v12713_v27, %s6192_s6  ;;  %v9944_v0 = vpop.eup %5932  ;;  %v3646_v5 = vadd.f32 %v3622_v53, %v3430_v31  ;;  %v3496_v7 = vmul.f32 1.442695, %v3456_v57  ;;  %v2488_v9 = vmax.f32 %v9893_v23, %v9919_v61  ;;  %v9958_v3 = vmul.f32 %v12483_v38, %v9645_v43  ;;  %v12717_v27 = vld [vmem:[#allocation42_spill] sm:$0xff]  ;;  %v12720_v57 = vld [vmem:[#allocation13_spill] sm:$0xff] }
 0x395   : > { %12715 = vst [vmem:[#allocation9_spill] sm:$0xff] %v9944_v0  ;;  %v9952_v12 = vpop.eup %5934  ;;  %v3838_v58 = vmul.f32 %v9849_v63, %v12717_v27  ;;  %5950 = vpow2.f32 %v3280_v10  ;;  %v3215_v55 = vadd.f32 %v3191_v4, %v2975_v41  ;;  %v3930_v31 = vmul.f32 1.442695, %v3889_v6  ;;  %v12723_v6 = vld [vmem:[#allocation156_spill] sm:$0xff] }
 0x396   : > { %12716 = vst [vmem:[#allocation199_spill] sm:$0xff] %v9952_v12  ;;  %v9964_v22 = vpop.eup %5936  ;;  %4422 = vrot.lane.b32.xlu1 %v12510_v52, %s6192_s6  ;;  %5952 = vpow2.f32 %v3498_v62  ;;  %v3888_v23 = vsub.f32 %v9574_v13, %v9784_v46  ;;  %v9974_v43 = vmul.f32 %v12662_v18, %v9768_v54  ;;  %v3712_v10 = vmul.f32 1.442695, %v3672_v16  ;;  %v9986_v13 = vpop.permute.xlu1 %3974 }
 0x397   : > { %12718 = vst [vmem:[#allocation233_spill] sm:$0xff] %v9964_v22  ;;  %v9970_v53 = vpop.eup %5938  ;;  %5954 = vpow2.f32 %v3714_v21  ;;  %v2813_v52 = vsub.f32 %v9455_v26, %v9938_v14  ;;  %v9984_v62 = vmul.f32 %v12606_v1, %v9425_v2  ;;  %v3407_v4 = vmul.f32 %v9944_v0, %v12723_v6  ;;  %v10003_v63 = vpop.permute.xlu0 %3972 }
 0x398   : > { %12719 = vst [vmem:[#allocation10_spill] sm:$0xff] %v9970_v53  ;;  %4420 = vrot.lane.b32.xlu0 %v12720_v57, %s6192_s6  ;;  %v9980_v41 = vpop.eup %5940  ;;  %v9990_v27 = vadd.f32 %v3838_v58, %v3646_v5  ;;  %5956 = vpow2.f32 %v3496_v7  ;;  %v12726_v26 = vmax.f32 %v9528_v17, %v9781_v50  ;;  %v2546_v16 = vmax.f32 %v2488_v9, %v9948_v36 }
 0x399   : > { %12721 = vst [vmem:[#allocation184_spill] sm:$0xff] %v9980_v41  ;;  %12722 = vst [vmem:[#allocation176_spill] sm:$0xff] %v9984_v62  ;;  %v9992_v57 = vpop.eup %5942  ;;  %v10001_v2 = vmul.f32 %v12662_v18, %v9886_v28  ;;  %v3029_v58 = vsub.f32 %v9348_v59, %v9938_v14  ;;  %v3431_v7 = vadd.f32 %v3407_v4, %v3215_v55  ;;  %5958 = vpow2.f32 %v3930_v31  ;;  %v12728_v28 = vld [vmem:[#allocation175_spill] sm:$0xff]  ;;  %v12730_v55 = vld [vmem:[#allocation68_spill] sm:$0xff] }
 0x39a   : > { %12724 = vst [vmem:[#allocation11_spill] sm:$0xff] %v9990_v27  ;;  %12725 = vst [vmem:[#allocation182_spill] sm:$0xff] %v9992_v57  ;;  %v2666_v21 = vmax.f32 %v12726_v26, %v9958_v3  ;;  %v10007_v5 = vpop.eup %5944  ;;  %4426 = vrot.lane.b32.xlu1 %v12608_v32, %s6192_s6  ;;  %v3928_v17 = vmul.f32 1.442695, %v3888_v23  ;;  %v4103_v9 = vsub.f32 %v9441_v40, %v9687_v44  ;;  %5960 = vpow2.f32 %v3712_v10  ;;  %v10018_v0 = vpop.permute.xlu1 %3978  ;;  %v12731_v23 = vld [vmem:[#allocation72_spill] sm:$0xff] }
 0x39b   : > { %12727 = vst [vmem:[#allocation42_spill] sm:$0xff] %v10007_v5  ;;  %v2608_v6 = vmax.f32 %v2546_v16, %v9974_v43  ;;  %v2977_v26 = vmul.f32 %v9964_v22, %v12728_v28  ;;  %v2858_v59 = vmul.f32 1.442695, %v2813_v52  ;;  %v3193_v32 = vmul.f32 %v9970_v53, %v12729_v34  ;;  %v10034_v28 = vpop.permute.xlu0 %3976  ;;  %v12733_v34 = vld [vmem:[#allocation211_spill] sm:$0xff] }
 0x39c   : > { %4424 = vrot.lane.b32.xlu0 %v12241_v25, %s6192_s6  ;;  %v2976_v31 = vmul.f32 %v9980_v41, %v12730_v55  ;;  %v3192_v40 = vmul.f32 %v9992_v57, %v12731_v23  ;;  %v3074_v4 = vmul.f32 1.442695, %v3029_v58  ;;  %v10026_v16 = vpop.eup %5946  ;;  %v2724_v25 = vmax.f32 %v2666_v21, %v9905_v11  ;;  %v12735_v58 = vld [vmem:[#allocation204_spill] sm:$0xff] }
 0x39d   : > { %v10031_v10 = vmul.f32 %v12483_v38, %v9697_v29  ;;  %v2670_v52 = vmax.f32 %v2608_v6, %v10001_v2  ;;  %v3623_v53 = vmul.f32 %v9952_v12, %v12733_v34  ;;  %v10038_v55 = vpop.eup %5948  ;;  %v3839_v23 = vmul.f32 %v10007_v5, %v12735_v58 }
 0x39e   : > { %12734 = vst [vmem:[#allocation156_spill] sm:$0xff] %v10038_v55  ;;  %4430 = vrot.lane.b32.xlu1 %v12483_v38, %s6192_s6  ;;  %v3245_v21 = vsub.f32 %v9712_v8, %v9938_v14  ;;  %v4142_v29 = vmul.f32 1.442695, %v4103_v9  ;;  %v4104_v6 = vsub.f32 %v9655_v30, %v9784_v46  ;;  %v10052_v34 = vmul.f32 %v12606_v1, %v9592_v33  ;;  %v10066_v9 = vpop.permute.xlu1 %3982 }
 0x39f   : > { %12732 = vst [vmem:[#allocation13_spill] sm:$0xff] %v10031_v10  ;;  %v10048_v57 = vpop.eup %5950  ;;  %v10056_v41 = vmul.f32 %v12662_v18, %v9806_v24  ;;  %v3647_v38 = vadd.f32 %v3623_v53, %v3431_v7  ;;  %5962 = vpow2.f32 %v2858_v59  ;;  %v10064_v30 = vmul.f32 %v12594_v47, %v9608_v45  ;;  %v10078_v7 = vpop.permute.xlu0 %3980 }
 0x3a0   : > { %12736 = vst [vmem:[#allocation175_spill] sm:$0xff] %v10048_v57  ;;  %4428 = vrot.lane.b32.xlu0 %v12505_v60, %s6192_s6  ;;  %v10060_v8 = vpop.eup %5952  ;;  %v3217_v58 = vadd.f32 %v3193_v32, %v2977_v26  ;;  %v3216_v33 = vadd.f32 %v3192_v40, %v2976_v31  ;;  %5964 = vpow2.f32 %v3074_v4  ;;  %v10071_v24 = vmax.f32 %v2724_v25, %v10031_v10  ;;  %v12742_v26 = vld [vmem:[#allocation18_spill] sm:$0xff]  ;;  %v12744_v40 = vld [vmem:[#allocation201_spill] sm:$0xff]  ;;  %v12751_v10 = vld [vmem:[#allocation159_spill] sm:$0xff] }
 0x3a1   : > { %12737 = vst [vmem:[#allocation138_spill] sm:$0xff] %v10056_v41  ;;  %12738 = vst [vmem:[#allocation68_spill] sm:$0xff] %v10060_v8  ;;  %v10068_v11 = vpop.eup %5954  ;;  %v2728_v60 = vmax.f32 %v2670_v52, %v10056_v41  ;;  %v10076_v53 = vmul.f32 %v12662_v18, %v9925_v39  ;;  %5966 = vpow2.f32 %v3928_v17  ;;  %v12743_v32 = vld [vmem:[#allocation150_spill] sm:$0xff]  ;;  %v3408_v4 = vmul.f32 %v10048_v57, %v12744_v40  ;;  %v12745_v52 = vld [vmem:[#allocation16_spill] sm:$0xff] }
 0x3a2   : > { %12739 = vst [vmem:[#allocation72_spill] sm:$0xff] %v10068_v11  ;;  %v10080_v59 = vpop.eup %5956  ;;  %4434 = vrot.lane.b32.xlu1 %v12742_v26, %s6192_s6  ;;  %v3409_v31 = vmul.f32 %v10038_v55, %v12743_v32  ;;  %v3290_v25 = vmul.f32 1.442695, %v3245_v21  ;;  %v3461_v41 = vsub.f32 %v12745_v52, %v9938_v14  ;;  %v12746_v39 = vmax.f32 %v9873_v19, %v9870_v42  ;;  %v12748_v21 = vld [vmem:[#allocation60_spill] sm:$0xff]  ;;  %v10104_v52 = vpop.permute.xlu1 %3986 }
 0x3a3   : > { %12740 = vst [vmem:[#allocation211_spill] sm:$0xff] %v10076_v53  ;;  %12741 = vst [vmem:[#allocation204_spill] sm:$0xff] %v10080_v59  ;;  %v10096_v22 = vmul.f32 %v12742_v26, %v9608_v45  ;;  %5968 = vpow2.f32 %v4142_v29  ;;  %v4144_v32 = vmul.f32 1.442695, %v4104_v6  ;;  %v10100_v55 = vpop.eup %5958  ;;  %v2489_v40 = vmax.f32 %v12748_v21, %v10064_v30  ;;  %v10113_v12 = vpop.permute.xlu0 %3984  ;;  %v12750_v29 = vld [vmem:[#allocation155_spill] sm:$0xff]  ;;  %v12752_v21 = vld [vmem:[#allocation84_spill] sm:$0xff] }
 0x3a4   : > { %v2667_v17 = vmax.f32 %v12746_v39, %v10052_v34  ;;  %4432 = vrot.lane.b32.xlu0 %v12606_v1, %s6192_s6  ;;  %12747 = vst [vmem:[#allocation18_spill] sm:$0xff] %v10100_v55  ;;  %v10106_v57 = vadd.f32 %v3839_v23, %v3647_v38  ;;  %v3433_v19 = vadd.f32 %v3409_v31, %v3217_v58  ;;  %v10108_v5 = vpop.eup %5960  ;;  %5970 = vpow2.f32 %v3290_v25  ;;  %v12754_v58 = vld [vmem:[#allocation224_spill] sm:$0xff]  ;;  %v12756_v31 = vld [vmem:[#allocation130_spill] sm:$0xff] }
 0x3a5   : > { %v3432_v39 = vadd.f32 %v3408_v4, %v3216_v33  ;;  %12749 = vst [vmem:[#allocation150_spill] sm:$0xff] %v10108_v5  ;;  %v10111_v45 = vmax.f32 %v2728_v60, %v10076_v53  ;;  %v3625_v6 = vmul.f32 %v10060_v8, %v12750_v29  ;;  %v3624_v46 = vmul.f32 %v10080_v59, %v12751_v10  ;;  %v12755_v60 = vld [vmem:[#allocation70_spill] sm:$0xff]  ;;  %v12758_v29 = vld [vmem:[#allocation136_spill] sm:$0xff] }
 0x3a6   : > { %v2810_v44 = vsub.f32 %v12752_v21, %v10071_v24  ;;  %v10123_v23 = vmul.f32 %v12606_v1, %v9768_v54  ;;  %4438 = vrot.lane.b32.xlu1 %v12662_v18, %s6192_s6  ;;  %v3506_v38 = vmul.f32 1.442695, %v3461_v41  ;;  %v3677_v33 = vsub.f32 %v12754_v58, %v9938_v14  ;;  %v10146_v54 = vpop.permute.xlu1 %3990  ;;  %v12760_v25 = vld [vmem:[#allocation28_spill] sm:$0xff] }
 0x3a7   : > { %v12757_v4 = vmax.f32 %v12755_v60, %v12756_v31  ;;  %v10137_v21 = vmul.f32 %v12594_v47, %v12758_v29  ;;  %v10141_v1 = vmul.f32 %v12742_v26, %v12758_v29  ;;  %v2725_v18 = vmax.f32 %v2667_v17, %v9984_v62  ;;  %v10154_v53 = vpop.permute.xlu0 %3988  ;;  %v12763_v29 = vld [vmem:[#allocation206_spill] sm:$0xff] }
 0x3a8   : > { %12753 = vst [vmem:[#allocation201_spill] sm:$0xff] %v10123_v23  ;;  %4436 = vrot.lane.b32.xlu0 %v12535_v15, %s6192_s6  ;;  %v3649_v41 = vadd.f32 %v3625_v6, %v3433_v19  ;;  %v3841_v58 = vmul.f32 %v10068_v11, %v12760_v25  ;;  %v3648_v60 = vadd.f32 %v3624_v46, %v3432_v39  ;;  %v2852_v62 = vmul.f32 1.442695, %v2810_v44  ;;  %v12764_v15 = vld [vmem:[#allocation105_spill] sm:$0xff]  ;;  %v12766_v39 = vld [vmem:[#allocation22_spill] sm:$0xff] }
 0x3a9   : > { %v10133_v10 = vmax.f32 %v12757_v4, %v10096_v22  ;;  %12759 = vst [vmem:[#allocation16_spill] sm:$0xff] %v10141_v1  ;;  %v12761_v4 = vld [vmem:[#allocation73_spill] sm:$0xff]  ;;  %v10152_v8 = vpop.eup %5962  ;;  %v3840_v17 = vmul.f32 %v10108_v5, %v12763_v29  ;;  %v3242_v27 = vsub.f32 %v12764_v15, %v10071_v24  ;;  %v2814_v19 = vsub.f32 %v9825_v49, %v10111_v45 }
 0x3aa   : > { %v3026_v59 = vsub.f32 %v12761_v4, %v10071_v24  ;;  %12762 = vst [vmem:[#allocation60_spill] sm:$0xff] %v10152_v8  ;;  %v10162_v6 = vpop.eup %5964  ;;  %v10165_v46 = vmax.f32 %v2725_v18, %v10123_v23  ;;  %4442 = vrot.lane.b32.xlu1 %v12766_v39, %s6192_s6  ;;  %5972 = vpow2.f32 %v3506_v38  ;;  %v3722_v25 = vmul.f32 1.442695, %v3677_v33  ;;  %v12768_v18 = vld [vmem:[#allocation153_spill] sm:$0xff]  ;;  %v10182_v38 = vpop.permute.xlu1 %3994 }
 0x3ab   : > { %12765 = vst [vmem:[#allocation155_spill] sm:$0xff] %v10162_v6  ;;  %v3893_v4 = vsub.f32 %v9817_v20, %v9938_v14  ;;  %v10171_v44 = vpop.eup %5966  ;;  %v10174_v29 = vmax.f32 %v2489_v40, %v10137_v21  ;;  %v2726_v49 = vmax.f32 %v10133_v10, %v10141_v1  ;;  %v3458_v15 = vsub.f32 %v12768_v18, %v10071_v24  ;;  %v12771_v40 = vld [vmem:[#allocation112_spill] sm:$0xff]  ;;  %v10192_v10 = vpop.permute.xlu0 %3992  ;;  %v12773_v1 = vld [vmem:[#allocation151_spill] sm:$0xff]  ;;  %v12774_v18 = vld [vmem:[#allocation169_spill] sm:$0xff] }
 0x3ac   : > { %12767 = vst [vmem:[#allocation159_spill] sm:$0xff] %v10171_v44  ;;  %4440 = vrot.lane.b32.xlu0 %v12594_v47, %s6192_s6  ;;  %5974 = vpow2.f32 %v4144_v32  ;;  %v10184_v33 = vadd.f32 %v3841_v58, %v3649_v41  ;;  %v10186_v20 = vadd.f32 %v3840_v17, %v3648_v60  ;;  %v3068_v39 = vmul.f32 1.442695, %v3026_v59  ;;  %v12775_v41 = vld [vmem:[#allocation25_spill] sm:$0xff]  ;;  %v12776_v59 = vld [vmem:[#allocation232_spill] sm:$0xff] }
 0x3ad   : > { %v3674_v5 = vsub.f32 %v12771_v40, %v10071_v24  ;;  %v10190_v11 = vpop.eup %5968  ;;  %5976 = vpow2.f32 %v2852_v62  ;;  %v2981_v23 = vmul.f32 %v10152_v8, %v12773_v1  ;;  %v3197_v32 = vmul.f32 %v10162_v6, %v12774_v18  ;;  %v12777_v40 = vld [vmem:[#allocation26_spill] sm:$0xff]  ;;  %v12778_v62 = vld [vmem:[#allocation93_spill] sm:$0xff] }
 0x3ae   : > { %12769 = vst [vmem:[#allocation84_spill] sm:$0xff] %v10184_v33  ;;  %12770 = vst [vmem:[#allocation224_spill] sm:$0xff] %v10186_v20  ;;  %v2860_v44 = vmul.f32 1.442695, %v2814_v19  ;;  %4446 = vrot.lane.b32.xlu1 %v12775_v41, %s6192_s6  ;;  %v2811_v58 = vsub.f32 %v12776_v59, %v10165_v46  ;;  %v10202_v60 = vmul.f32 1.442695, %v3242_v27  ;;  %5978 = vpow2.f32 %v3722_v25  ;;  %v10212_v41 = vpop.eup %5970  ;;  %v10214_v6 = vpop.permute.xlu1 %3998 }
 0x3af   : > { %12772 = vst [vmem:[#allocation70_spill] sm:$0xff] %v10190_v11  ;;  %v3938_v17 = vmul.f32 1.442695, %v3893_v4  ;;  %v3027_v1 = vsub.f32 %v12778_v62, %v10165_v46  ;;  %v10208_v8 = vmul.f32 1.442695, %v3458_v15  ;;  %v12779_v19 = vld [vmem:[#allocation55_spill] sm:$0xff]  ;;  %v3890_v25 = vsub.f32 %v9781_v50, %v10071_v24 }
 0x3b0   : > { %4444 = vrot.lane.b32.xlu0 %v12777_v40, %s6192_s6  ;;  %5980 = vpow2.f32 %v2860_v44  ;;  %v3030_v18 = vsub.f32 %v12779_v19, %v10111_v45  ;;  %12780 = vst [vmem:[#allocation130_spill] sm:$0xff] %v10212_v41  ;;  %v10216_v27 = vmul.f32 1.442695, %v3674_v5  ;;  %v3246_v4 = vsub.f32 %v9864_v37, %v10111_v45  ;;  %v12781_v59 = vld [vmem:[#allocation29_spill] sm:$0xff]  ;;  %v10226_v44 = vpop.permute.xlu0 %3996  ;;  %v12783_v5 = vld [vmem:[#allocation40_spill] sm:$0xff]  ;;  %v12785_v33 = vld [vmem:[#allocation102_spill] sm:$0xff] }
 0x3b1   : > { %5982 = vpow2.f32 %v3068_v39  ;;  %v10224_v15 = vmul.f32 %v12742_v26, %v12781_v59  ;;  %v3221_v40 = vadd.f32 %v3197_v32, %v2981_v23  ;;  %v3462_v19 = vsub.f32 %v9919_v61, %v10111_v45  ;;  %v12784_v26 = vld [vmem:[#allocation32_spill] sm:$0xff]  ;;  %v12792_v37 = vld [vmem:[#allocation53_spill] sm:$0xff] }
 0x3b2   : > { %v3076_v62 = vmul.f32 1.442695, %v3030_v18  ;;  %4618 = vrot.lane.b32.xlu1 %v12783_v5, %s6193_s7  ;;  %v2854_v39 = vmul.f32 1.442695, %v2811_v58  ;;  %5984 = vpow2.f32 %v3938_v17  ;;  %v3292_v50 = vmul.f32 1.442695, %v3246_v4  ;;  %v10244_v58 = vpop.permute.xlu1 %4002 }
 0x3b3   : > { %12782 = vst [vmem:[#allocation136_spill] sm:$0xff] %v10224_v15  ;;  %v3070_v20 = vmul.f32 1.442695, %v3027_v1  ;;  %v3413_v23 = vmul.f32 %v10212_v41, %v12785_v33  ;;  %v3508_v32 = vmul.f32 1.442695, %v3462_v19  ;;  %v10242_v18 = vmul.f32 %v12594_v47, %v12781_v59  ;;  %12787 = vst [vmem:[#allocation73_spill] sm:$0xff] %v10244_v58 }
 0x3b4   : > { %4616 = vrot.lane.b32.xlu0 %v12784_v26, %s6193_s7  ;;  %5986 = vpow2.f32 %v3076_v62  ;;  %v10238_v61 = vpop.eup %5972  ;;  %v12788_v17 = vld [vmem:[#allocation19_spill] sm:$0xff]  ;;  %v3678_v1 = vsub.f32 %v9948_v36, %v10111_v45  ;;  %v10253_v33 = vmax.f32 %v2726_v49, %v10224_v15  ;;  %v10255_v62 = vpop.permute.xlu0 %4000  ;;  %v12791_v19 = vld [vmem:[#allocation2_spill] sm:$0xff]  ;;  %v10269_v41 = vmul.f32 %v12594_v47, %v9879_v51 }
 0x3b5   : > { %12786 = vst [vmem:[#allocation28_spill] sm:$0xff] %v10238_v61  ;;  %v3243_v4 = vsub.f32 %v12788_v17, %v10165_v46  ;;  %5988 = vpow2.f32 %v3292_v50  ;;  %12790 = vst [vmem:[#allocation105_spill] sm:$0xff] %v10255_v62  ;;  %v3459_v59 = vsub.f32 %v12791_v19, %v10165_v46  ;;  %v3437_v26 = vadd.f32 %v3413_v23, %v3221_v40  ;;  %v12794_v40 = vld [vmem:[#allocation37_spill] sm:$0xff] }
 0x3b6   : > { %v10250_v5 = vpop.eup %5974  ;;  %5990 = vpow2.f32 %v3508_v32  ;;  %4622 = vrot.lane.b32.xlu1 %v12792_v37, %s6193_s7  ;;  %v3675_v50 = vsub.f32 %v9755_v48, %v10165_v46  ;;  %v3724_v36 = vmul.f32 1.442695, %v3678_v1  ;;  %v3894_v17 = vsub.f32 %v9974_v43, %v10111_v45  ;;  %v12795_v37 = vld [vmem:[#allocation238_spill] sm:$0xff]  ;;  %v10281_v1 = vpop.permute.xlu1 %4006 }
 0x3b7   : > { %12789 = vst [vmem:[#allocation206_spill] sm:$0xff] %v10250_v5  ;;  %5992 = vpow2.f32 %v2854_v39  ;;  %v10265_v49 = vpop.eup %5976  ;;  %v3891_v39 = vsub.f32 %v9870_v42, %v10165_v46  ;;  %v3629_v48 = vmul.f32 %v10238_v61, %v12795_v37  ;;  %v2609_v43 = vmax.f32 %v10174_v29, %v10242_v18  ;;  %12797 = vst [vmem:[#allocation112_spill] sm:$0xff] %v10281_v1  ;;  %v12802_v61 = vld [vmem:[#allocation12_spill] sm:$0xff]  ;;  %v12804_v29 = vld [vmem:[#allocation227_spill] sm:$0xff] }
 0x3b8   : > { %12793 = vst [vmem:[#allocation22_spill] sm:$0xff] %v10265_v49  ;;  %4620 = vrot.lane.b32.xlu0 %v12794_v40, %s6193_s7  ;;  %5994 = vpow2.f32 %v3070_v20  ;;  %v10277_v23 = vpop.eup %5978  ;;  %v3286_v32 = vmul.f32 1.442695, %v3243_v4  ;;  %v3940_v51 = vmul.f32 1.442695, %v3894_v17  ;;  %v12799_v40 = vld [vmem:[#allocation51_spill] sm:$0xff]  ;;  %v10289_v15 = vpop.permute.xlu0 %4004  ;;  %v2812_v5 = vsub.f32 %v12802_v61, %v10253_v33 }
 0x3b9   : > { %12796 = vst [vmem:[#allocation153_spill] sm:$0xff] %v10277_v23  ;;  %5996 = vpow2.f32 %v3724_v36  ;;  %v10287_v20 = vmul.f32 %v12594_v47, %v12799_v40  ;;  %v3502_v42 = vmul.f32 1.442695, %v3459_v59  ;;  %12801 = vst [vmem:[#allocation25_spill] sm:$0xff] %v10289_v15  ;;  %v3653_v37 = vadd.f32 %v3629_v48, %v3437_v26  ;;  %v12806_v17 = vld [vmem:[#allocation44_spill] sm:$0xff]  ;;  %v12807_v40 = vld [vmem:[#allocation237_spill] sm:$0xff] }
 0x3ba   : > { %v10283_v19 = vpop.eup %5980  ;;  %v10297_v4 = vmul.f32 %v12594_v47, %v12804_v29  ;;  %v3718_v36 = vmul.f32 1.442695, %v3675_v50  ;;  %4626 = vrot.lane.b32.xlu1 %v12806_v17, %s6193_s7  ;;  %v3028_v1 = vsub.f32 %v12807_v40, %v10253_v33  ;;  %5998 = vpow2.f32 %v3940_v51  ;;  %v12808_v61 = vld [vmem:[#allocation57_spill] sm:$0xff]  ;;  %v12809_v15 = vld [vmem:[#allocation67_spill] sm:$0xff]  ;;  %v4011_v50 = vpop.permute.xlu1 %4010  ;;  %v12811_v17 = vld [vmem:[#allocation14_spill] sm:$0xff] }
 0x3bb   : > { %12798 = vst [vmem:[#allocation151_spill] sm:$0xff] %v10283_v19  ;;  %12800 = vst [vmem:[#allocation169_spill] sm:$0xff] %v10287_v20  ;;  %v10293_v62 = vpop.eup %5982  ;;  %v2671_v59 = vmax.f32 %v2609_v43, %v10269_v41  ;;  %v3934_v26 = vmul.f32 1.442695, %v3891_v39  ;;  %v10304_v48 = vmul.f32 1.442695, %v3890_v25  ;;  %v3845_v47 = vmul.f32 %v10277_v23, %v12809_v15 }
 0x3bc   : > { %12803 = vst [vmem:[#allocation232_spill] sm:$0xff] %v10293_v62  ;;  %12805 = vst [vmem:[#allocation26_spill] sm:$0xff] %v10297_v4  ;;  %4624 = vrot.lane.b32.xlu0 %v12808_v61, %s6193_s7  ;;  %v10310_v29 = vpop.eup %5984  ;;  %6000 = vpow2.f32 %v3286_v32  ;;  %v3244_v11 = vsub.f32 %v12811_v17, %v10253_v33  ;;  %v12812_v51 = vld [vmem:[#allocation143_spill] sm:$0xff]  ;;  %v12813_v43 = vld [vmem:[#allocation178_spill] sm:$0xff]  ;;  %v10321_v15 = vmul.f32 1.442695, %v2812_v5  ;;  %v10323_v23 = vpop.permute.xlu0 %4008 }
 0x3bd   : > { %12810 = vst [vmem:[#allocation93_spill] sm:$0xff] %v10310_v29  ;;  %v3460_v40 = vsub.f32 %v12812_v51, %v10253_v33  ;;  %v2982_v25 = vmul.f32 %v10283_v19, %v12813_v43  ;;  %6002 = vpow2.f32 %v3502_v42  ;;  %v3869_v61 = vadd.f32 %v3845_v47, %v3653_v37  ;;  %12815 = vst [vmem:[#allocation29_spill] sm:$0xff] %v10323_v23  ;;  %v12817_v17 = vld [vmem:[#allocation78_spill] sm:$0xff]  ;;  %v12821_v47 = vld [vmem:[#allocation213_spill] sm:$0xff] }
 0x3be   : > { %v10318_v39 = vpop.eup %5986  ;;  %v4061_v55 = vmul.f32 %v10310_v29, %v4011_v50  ;;  %6004 = vpow2.f32 %v3718_v36  ;;  %v2978_v58 = vmul.f32 %v10265_v49, %v12817_v17  ;;  %v10329_v51 = vmul.f32 1.442695, %v3028_v1  ;;  %v12818_v43 = vld [vmem:[#allocation82_spill] sm:$0xff]  ;;  %v12823_v36 = vld [vmem:[#allocation76_spill] sm:$0xff] }
 0x3bf   : > { %12814 = vst [vmem:[#allocation55_spill] sm:$0xff] %v10318_v39  ;;  %v10325_v32 = vpop.eup %5988  ;;  %4630 = vrot.lane.b32.xlu1 %v12818_v43, %s6193_s7  ;;  %v12819_v19 = vld [vmem:[#allocation234_spill] sm:$0xff]  ;;  %v2729_v5 = vmax.f32 %v2671_v59, %v10297_v4  ;;  %v3194_v50 = vmul.f32 %v10293_v62, %v12821_v47  ;;  %v3676_v17 = vsub.f32 %v12823_v36, %v10253_v33  ;;  %6006 = vpow2.f32 %v3934_v26  ;;  %v12827_v59 = vld [vmem:[#allocation217_spill] sm:$0xff] }
 0x3c0   : > { %12816 = vst [vmem:[#allocation40_spill] sm:$0xff] %v10325_v32  ;;  %v3198_v42 = vmul.f32 %v10318_v39, %v12819_v19  ;;  %v10335_v37 = vpop.eup %5990  ;;  %v10340_v29 = vadd.f32 %v4061_v55, %v3869_v61  ;;  %v12824_v1 = vld [vmem:[#allocation74_spill] sm:$0xff]  ;;  %v10348_v43 = vmul.f32 1.442695, %v3244_v11  ;;  %v10350_v19 = vpop.permute.xlu1 %4014  ;;  %v3414_v4 = vmul.f32 %v10325_v32, %v12827_v59  ;;  %v12828_v55 = vld [vmem:[#allocation183_spill] sm:$0xff] }
 0x3c1   : > { %12820 = vst [vmem:[#allocation32_spill] sm:$0xff] %v10335_v37  ;;  %4628 = vrot.lane.b32.xlu0 %v12824_v1, %s6193_s7  ;;  %v10346_v49 = vpop.eup %5992  ;;  %12826 = vst [vmem:[#allocation2_spill] sm:$0xff] %v10350_v19  ;;  %v4041_v61 = vmul.f32 %v12828_v55, %v9950_v35  ;;  %6008 = vpow2.f32 %v10202_v60  ;;  %v10359_v36 = vmul.f32 1.442695, %v3460_v40  ;;  %v3892_v26 = vsub.f32 %v12756_v31, %v10253_v33  ;;  %v4013_v11 = vpop.permute.xlu0 %4012  ;;  %v12831_v32 = vld [vmem:[#allocation142_spill] sm:$0xff]  ;;  %v12832_v35 = vld [vmem:[#allocation100_spill] sm:$0xff] }
 0x3c2   : > { %12822 = vst [vmem:[#allocation102_spill] sm:$0xff] %v10340_v29  ;;  %12825 = vst [vmem:[#allocation19_spill] sm:$0xff] %v10346_v49  ;;  %v3222_v39 = vadd.f32 %v3198_v42, %v2982_v25  ;;  %v10354_v47 = vpop.eup %5994  ;;  %v12830_v25 = vld [vmem:[#allocation45_spill] sm:$0xff]  ;;  %6010 = vpow2.f32 %v10208_v8  ;;  %v3630_v62 = vmul.f32 %v10335_v37, %v12831_v32  ;;  %v10373_v60 = vmax.f32 %v2729_v5, %v10287_v20  ;;  %v12836_v32 = vld [vmem:[#allocation154_spill] sm:$0xff] }
 0x3c3   : > { %v10363_v1 = vpop.eup %5996  ;;  %v4040_v42 = vmul.f32 %v12830_v25, %v9960_v56  ;;  %4634 = vrot.lane.b32.xlu1 %v12832_v35, %s6193_s7  ;;  %v10375_v40 = vadd.f32 %v3194_v50, %v2978_v58  ;;  %6012 = vpow2.f32 %v10216_v27  ;;  %v10378_v31 = vmul.f32 1.442695, %v3676_v17  ;;  %v12833_v56 = vld [vmem:[#allocation79_spill] sm:$0xff]  ;;  %v12837_v5 = vld [vmem:[#allocation240_spill] sm:$0xff]  ;;  %v12840_v20 = vld [vmem:[#allocation185_spill] sm:$0xff] }
 0x3c4   : > { %12829 = vst [vmem:[#allocation53_spill] sm:$0xff] %v10363_v1  ;;  %v3438_v59 = vadd.f32 %v3414_v4, %v3222_v39  ;;  %v10382_v8 = vpop.eup %5998  ;;  %v12835_v4 = vld [vmem:[#allocation71_spill] sm:$0xff]  ;;  %v3195_v55 = vmul.f32 %v10354_v47, %v12836_v32  ;;  %v3846_v58 = vmul.f32 %v10363_v1, %v12837_v5  ;;  %v4187_v50 = vpop.permute.xlu1 %4186  ;;  %v12838_v35 = vld [vmem:[#allocation188_spill] sm:$0xff]  ;;  %v12843_v5 = vld [vmem:[#allocation33_spill] sm:$0xff]  ;;  %6014 = vpow2.f32 %v10304_v48 }
 0x3c5   : > { %4632 = vrot.lane.b32.xlu0 %v12833_v56, %s6193_s7  ;;  %12834 = vst [vmem:[#allocation37_spill] sm:$0xff] %v10382_v8  ;;  %v2979_v39 = vmul.f32 %v10346_v49, %v12835_v4  ;;  %v4065_v27 = vadd.f32 %v4041_v61, %v12838_v35  ;;  %v12839_v17 = vld [vmem:[#allocation168_spill] sm:$0xff]  ;;  %v4062_v56 = vmul.f32 %v10382_v8, %v4013_v11  ;;  %v4185_v19 = vpop.permute.xlu0 %4184  ;;  %v12841_v4 = vld [vmem:[#allocation38_spill] sm:$0xff]  ;;  %6016 = vpow2.f32 %v10321_v15 }
 0x3c6   : > { %v3654_v25 = vadd.f32 %v3630_v62, %v3438_v59  ;;  %v4043_v37 = vmul.f32 %v12839_v17, %v9986_v13  ;;  %v4257_v29 = vmul.f32 %v12840_v20, %v4187_v50  ;;  %v10395_v23 = vpop.eup %6000  ;;  %v4064_v49 = vadd.f32 %v4040_v42, %v12841_v4  ;;  %v12842_v62 = vld [vmem:[#allocation147_spill] sm:$0xff]  ;;  %v12844_v61 = vld [vmem:[#allocation88_spill] sm:$0xff] }
 0x3c7   : > { %v4042_v59 = vmul.f32 %v12842_v62, %v10003_v63  ;;  %v4256_v1 = vmul.f32 %v12843_v5, %v4185_v19  ;;  %4638 = vrot.lane.b32.xlu1 %v12844_v61, %s6193_s7  ;;  %v10403_v35 = vpop.eup %6002  ;;  %v4111_v13 = vsub.f32 %v10269_v41, %v10373_v60  ;;  %v10408_v20 = vmul.f32 1.442695, %v3892_v26  ;;  %v12847_v42 = vld [vmem:[#allocation104_spill] sm:$0xff]  ;;  %v12852_v26 = vld [vmem:[#allocation59_spill] sm:$0xff]  ;;  %v12854_v5 = vld [vmem:[#allocation86_spill] sm:$0xff] }
 0x3c8   : > { %v3870_v32 = vadd.f32 %v3846_v58, %v3654_v25  ;;  %12845 = vst [vmem:[#allocation238_spill] sm:$0xff] %v10403_v35  ;;  %v10410_v11 = vadd.f32 %v4257_v29, %v4065_v27  ;;  %v10414_v63 = vpop.eup %6004  ;;  %v3219_v19 = vadd.f32 %v3195_v55, %v2979_v39  ;;  %v12849_v25 = vld [vmem:[#allocation113_spill] sm:$0xff]  ;;  %v4191_v41 = vpop.permute.xlu1 %4190  ;;  %v12851_v4 = vld [vmem:[#allocation200_spill] sm:$0xff]  ;;  %v4045_v29 = vmul.f32 %v12852_v26, %v10018_v0  ;;  %v12853_v27 = vld [vmem:[#allocation114_spill] sm:$0xff] }
 0x3c9   : > { %4636 = vrot.lane.b32.xlu0 %v12847_v42, %s6193_s7  ;;  %12848 = vst [vmem:[#allocation12_spill] sm:$0xff] %v10414_v63  ;;  %v2815_v58 = vsub.f32 %v12849_v25, %v10373_v60  ;;  %v10420_v17 = vadd.f32 %v4256_v1, %v4064_v49  ;;  %v4067_v48 = vadd.f32 %v4043_v37, %v12851_v4  ;;  %v4189_v42 = vpop.permute.xlu0 %4188  ;;  %v10428_v39 = vpop.eup %6006  ;;  %v12855_v55 = vld [vmem:[#allocation148_spill] sm:$0xff]  ;;  %v12857_v1 = vld [vmem:[#allocation229_spill] sm:$0xff]  ;;  %v12859_v0 = vld [vmem:[#allocation123_spill] sm:$0xff]  ;;  %6018 = vpow2.f32 %v10329_v51 }
 0x3ca   : > { %12846 = vst [vmem:[#allocation51_spill] sm:$0xff] %v10410_v11  ;;  %v10418_v50 = vadd.f32 %v4062_v56, %v3870_v32  ;;  %v3031_v62 = vsub.f32 %v12853_v27, %v10373_v60  ;;  %v4259_v61 = vmul.f32 %v12854_v5, %v4191_v41  ;;  %v4066_v25 = vadd.f32 %v4042_v59, %v12855_v55  ;;  %v12856_v56 = vld [vmem:[#allocation190_spill] sm:$0xff]  ;;  %v12858_v37 = vld [vmem:[#allocation160_spill] sm:$0xff]  ;;  %v12861_v41 = vld [vmem:[#allocation21_spill] sm:$0xff] }
 0x3cb   : > { %12850 = vst [vmem:[#allocation227_spill] sm:$0xff] %v10420_v17  ;;  %v4044_v49 = vmul.f32 %v12856_v56, %v10034_v28  ;;  %v3411_v32 = vmul.f32 %v10395_v23, %v12857_v1  ;;  %v4258_v4 = vmul.f32 %v12858_v37, %v4189_v42  ;;  %4642 = vrot.lane.b32.xlu1 %v12859_v0, %s6193_s7  ;;  %v10438_v26 = vpop.eup %6008  ;;  %v4158_v27 = vmul.f32 1.442695, %v4111_v13  ;;  %v12863_v59 = vld [vmem:[#allocation117_spill] sm:$0xff]  ;;  %v12867_v0 = vld [vmem:[#allocation203_spill] sm:$0xff] }
 0x3cc   : > { %12860 = vst [vmem:[#allocation44_spill] sm:$0xff] %v10438_v26  ;;  %v3627_v5 = vmul.f32 %v10403_v35, %v12861_v41  ;;  %v10442_v8 = vadd.f32 %v4259_v61, %v4067_v48  ;;  %v10448_v55 = vpop.eup %6010  ;;  %v2862_v56 = vmul.f32 1.442695, %v2815_v58  ;;  %v4195_v13 = vpop.permute.xlu1 %4194  ;;  %v4069_v48 = vadd.f32 %v4045_v29, %v12867_v0  ;;  %v12868_v61 = vld [vmem:[#allocation179_spill] sm:$0xff]  ;;  %v12870_v11 = vld [vmem:[#allocation205_spill] sm:$0xff]  ;;  %v12872_v58 = vld [vmem:[#allocation202_spill] sm:$0xff] }
 0x3cd   : > { %4640 = vrot.lane.b32.xlu0 %v12863_v59, %s6193_s7  ;;  %12864 = vst [vmem:[#allocation57_spill] sm:$0xff] %v10448_v55  ;;  %v3435_v42 = vadd.f32 %v3411_v32, %v3219_v19  ;;  %v10451_v1 = vadd.f32 %v4258_v4, %v4066_v25  ;;  %v10453_v37 = vpop.eup %6012  ;;  %v4047_v41 = vmul.f32 %v12868_v61, %v10066_v9  ;;  %v3078_v59 = vmul.f32 1.442695, %v3031_v62  ;;  %v4193_v28 = vpop.permute.xlu0 %4192  ;;  %v12871_v19 = vld [vmem:[#allocation46_spill] sm:$0xff]  ;;  %v12873_v32 = vld [vmem:[#allocation128_spill] sm:$0xff] }
 0x3ce   : > { %12862 = vst [vmem:[#allocation237_spill] sm:$0xff] %v10442_v8  ;;  %12866 = vst [vmem:[#allocation14_spill] sm:$0xff] %v10453_v37  ;;  %v12869_v8 = vld [vmem:[#allocation152_spill] sm:$0xff]  ;;  %v4068_v35 = vadd.f32 %v4044_v49, %v12870_v11  ;;  %v4046_v15 = vmul.f32 %v12871_v19, %v10078_v7  ;;  %v4260_v25 = vmul.f32 %v12872_v58, %v4193_v28  ;;  %6020 = vpow2.f32 %v4158_v27  ;;  %v12878_v49 = vld [vmem:[#allocation161_spill] sm:$0xff] }
 0x3cf   : > { %12865 = vst [vmem:[#allocation67_spill] sm:$0xff] %v10451_v1  ;;  %v4261_v17 = vmul.f32 %v12869_v8, %v4195_v13  ;;  %4646 = vrot.lane.b32.xlu1 %v12873_v32, %s6193_s7  ;;  %v12874_v29 = vld [vmem:[#allocation208_spill] sm:$0xff]  ;;  %v12876_v8 = vld [vmem:[#allocation115_spill] sm:$0xff]  ;;  %v12877_v7 = vsub.f32 %v9958_v3, %v10071_v24  ;;  %v10479_v51 = vadd.f32 %v3627_v5, %v3435_v42  ;;  %6022 = vpow2.f32 %v2862_v56  ;;  %v10485_v13 = vpop.eup %6014  ;;  %v12883_v3 = vld [vmem:[#allocation94_spill] sm:$0xff] }
 0x3d0   : > { %v10468_v9 = vmul.f32 %v10414_v63, %v12874_v29  ;;  %v3247_v4 = vsub.f32 %v12878_v49, %v10373_v60  ;;  %v10483_v27 = vadd.f32 %v4260_v25, %v4068_v35  ;;  %v4199_v28 = vpop.permute.xlu1 %4198  ;;  %12880 = vst [vmem:[#allocation78_spill] sm:$0xff] %v10485_v13  ;;  %6024 = vpow2.f32 %v3078_v59  ;;  %v12884_v5 = vld [vmem:[#allocation62_spill] sm:$0xff]  ;;  %v12885_v56 = vld [vmem:[#allocation99_spill] sm:$0xff]  ;;  %v12886_v29 = vld [vmem:[#allocation65_spill] sm:$0xff] }
 0x3d1   : > { %v10470_v62 = vadd.f32 %v4261_v17, %v4069_v48  ;;  %4644 = vrot.lane.b32.xlu0 %v12876_v8, %s6193_s7  ;;  %v10477_v11 = vmul.f32 1.442695, %v12877_v7  ;;  %v12881_v17 = vld [vmem:[#allocation218_spill] sm:$0xff]  ;;  %v4263_v19 = vmul.f32 %v12883_v3, %v4199_v28  ;;  %v4197_v58 = vpop.permute.xlu0 %4196  ;;  %v4070_v42 = vadd.f32 %v4046_v15, %v12884_v5  ;;  %v12887_v25 = vld [vmem:[#allocation95_spill] sm:$0xff]  ;;  %v12888_v7 = vld [vmem:[#allocation120_spill] sm:$0xff] }
 0x3d2   : > { %12879 = vst [vmem:[#allocation178_spill] sm:$0xff] %v10483_v27  ;;  %v4071_v0 = vadd.f32 %v4047_v41, %v12881_v17  ;;  %v12882_v48 = vld [vmem:[#allocation214_spill] sm:$0xff]  ;;  %v4048_v32 = vmul.f32 %v12885_v56, %v10113_v12  ;;  %v3410_v35 = vmul.f32 %v10438_v26, %v12886_v29  ;;  %v4262_v8 = vmul.f32 %v12887_v25, %v4197_v58  ;;  %v12891_v12 = vld [vmem:[#allocation131_spill] sm:$0xff] }
 0x3d3   : > { %12875 = vst [vmem:[#allocation143_spill] sm:$0xff] %v10470_v62  ;;  %v4049_v61 = vmul.f32 %v12882_v48, %v10104_v52  ;;  %4650 = vrot.lane.b32.xlu1 %v12888_v7, %s6193_s7  ;;  %v12889_v41 = vld [vmem:[#allocation230_spill] sm:$0xff]  ;;  %6026 = vpow2.f32 %v10348_v43  ;;  %v3463_v59 = vsub.f32 %v10064_v30, %v10373_v60  ;;  %v3294_v28 = vmul.f32 1.442695, %v3247_v4  ;;  %v12893_v58 = vld [vmem:[#allocation83_spill] sm:$0xff]  ;;  %v10522_v7 = vpop.eup %6016 }
 0x3d4   : > { %v10501_v52 = vmul.f32 %v10448_v55, %v12889_v41  ;;  %v10506_v15 = vadd.f32 %v4263_v19, %v4071_v0  ;;  %v10511_v49 = vadd.f32 %v3410_v35, %v10375_v40  ;;  %6028 = vpow2.f32 %v10359_v36  ;;  %v4203_v3 = vpop.permute.xlu1 %4202  ;;  %v12894_v43 = vld [vmem:[#allocation34_spill] sm:$0xff]  ;;  %v12895_v0 = vld [vmem:[#allocation87_spill] sm:$0xff]  ;;  %12896 = vst [vmem:[#allocation213_spill] sm:$0xff] %v10522_v7  ;;  %v12897_v40 = vld [vmem:[#allocation149_spill] sm:$0xff] }
 0x3d5   : > { %4648 = vrot.lane.b32.xlu0 %v12891_v12, %s6193_s7  ;;  %v10514_v17 = vadd.f32 %v4262_v8, %v4070_v42  ;;  %v4073_v5 = vadd.f32 %v4049_v61, %v12893_v58  ;;  %v4051_v29 = vmul.f32 %v12894_v43, %v10146_v54  ;;  %v3679_v30 = vsub.f32 %v10137_v21, %v10373_v60  ;;  %v4201_v25 = vpop.permute.xlu0 %4200  ;;  %v12898_v36 = vld [vmem:[#allocation66_spill] sm:$0xff]  ;;  %v12900_v8 = vld [vmem:[#allocation141_spill] sm:$0xff]  ;;  %v10538_v12 = vpop.eup %6018 }
 0x3d6   : > { %12890 = vst [vmem:[#allocation82_spill] sm:$0xff] %v10506_v15  ;;  %v4265_v19 = vmul.f32 %v12895_v0, %v4203_v3  ;;  %v4072_v35 = vadd.f32 %v4048_v32, %v12897_v40  ;;  %v4050_v4 = vmul.f32 %v12898_v36, %v10154_v53  ;;  %6030 = vpow2.f32 %v10378_v31  ;;  %v12899_v42 = vld [vmem:[#allocation226_spill] sm:$0xff]  ;;  %v12902_v32 = vld [vmem:[#allocation140_spill] sm:$0xff]  ;;  %12903 = vst [vmem:[#allocation74_spill] sm:$0xff] %v10538_v12 }
 0x3d7   : > { %12892 = vst [vmem:[#allocation234_spill] sm:$0xff] %v10514_v17  ;;  %v4264_v61 = vmul.f32 %v12899_v42, %v4201_v25  ;;  %4654 = vrot.lane.b32.xlu1 %v12900_v8, %s6193_s7  ;;  %6032 = vpow2.f32 %v10408_v20  ;;  %v3510_v21 = vmul.f32 1.442695, %v3463_v59  ;;  %v3895_v54 = vsub.f32 %v10242_v18, %v10373_v60  ;;  %v12904_v53 = vld [vmem:[#allocation31_spill] sm:$0xff]  ;;  %v12905_v3 = vld [vmem:[#allocation186_spill] sm:$0xff]  ;;  %v12908_v18 = vld [vmem:[#allocation172_spill] sm:$0xff] }
 0x3d8   : > { %v10534_v41 = vadd.f32 %v4265_v19, %v4073_v5  ;;  %v4053_v31 = vmul.f32 %v12904_v53, %v10182_v38  ;;  %v4052_v58 = vmul.f32 %v12905_v3, %v10192_v10  ;;  %6034 = vpow2.f32 %v3294_v28  ;;  %v4207_v20 = vpop.permute.xlu1 %4206  ;;  %v10546_v59 = vpop.eup %6020  ;;  %v12909_v19 = vld [vmem:[#allocation215_spill] sm:$0xff]  ;;  %v12912_v38 = vld [vmem:[#allocation101_spill] sm:$0xff] }
 0x3d9   : > { %4652 = vrot.lane.b32.xlu0 %v12902_v32, %s6193_s7  ;;  %v10544_v25 = vadd.f32 %v4264_v61, %v4072_v35  ;;  %12907 = vst [vmem:[#allocation183_spill] sm:$0xff] %v10546_v59  ;;  %v4075_v5 = vadd.f32 %v4051_v29, %v12908_v18  ;;  %v2980_v40 = vmul.f32 %v10522_v7, %v12909_v19  ;;  %v3726_v8 = vmul.f32 1.442695, %v3679_v30  ;;  %v12910_v32 = vld [vmem:[#allocation129_spill] sm:$0xff]  ;;  %v4205_v17 = vpop.permute.xlu0 %4204  ;;  %v10552_v15 = vpop.eup %6022  ;;  %v12913_v10 = vld [vmem:[#allocation39_spill] sm:$0xff]  ;;  %v12914_v35 = vld [vmem:[#allocation144_spill] sm:$0xff] }
 0x3da   : > { %12901 = vst [vmem:[#allocation76_spill] sm:$0xff] %v10534_v41  ;;  %v4267_v41 = vmul.f32 %v12910_v32, %v4207_v20  ;;  %12911 = vst [vmem:[#allocation45_spill] sm:$0xff] %v10552_v15  ;;  %v4074_v27 = vadd.f32 %v4050_v4, %v12912_v38  ;;  %v4266_v28 = vmul.f32 %v12913_v10, %v4205_v17  ;;  %v12916_v18 = vld [vmem:[#allocation4_spill] sm:$0xff]  ;;  %v10563_v30 = vpop.eup %6024  ;;  %v12918_v20 = vld [vmem:[#allocation225_spill] sm:$0xff]  ;;  %v3942_v62 = vmul.f32 1.442695, %v3895_v54 }
 0x3db   : > { %12906 = vst [vmem:[#allocation217_spill] sm:$0xff] %v10544_v25  ;;  %4658 = vrot.lane.b32.xlu1 %v12914_v35, %s6193_s7  ;;  %v12915_v61 = vsub.f32 %v10052_v34, %v10165_v46  ;;  %v4109_v19 = vsub.f32 %v12916_v18, %v9938_v14  ;;  %12917 = vst [vmem:[#allocation142_spill] sm:$0xff] %v10563_v30  ;;  %v3196_v25 = vmul.f32 %v10538_v12, %v12918_v20  ;;  %v12920_v17 = vld [vmem:[#allocation134_spill] sm:$0xff]  ;;  %v12921_v38 = vld [vmem:[#allocation20_spill] sm:$0xff] }
 0x3dc   : > { %v10567_v1 = vadd.f32 %v4267_v41, %v4075_v5  ;;  %v4108_v4 = vsub.f32 %v10096_v22, %v10253_v33  ;;  %v4077_v34 = vadd.f32 %v4053_v31, %v12921_v38  ;;  %v12922_v35 = vld [vmem:[#allocation109_spill] sm:$0xff]  ;;  %6036 = vpow2.f32 %v3510_v21  ;;  %v4211_v7 = vpop.permute.xlu1 %4210  ;;  %v12926_v20 = vld [vmem:[#allocation167_spill] sm:$0xff]  ;;  %v12927_v22 = vld [vmem:[#allocation124_spill] sm:$0xff] }
 0x3dd   : > { %v4150_v29 = vmul.f32 1.442695, %v12915_v61  ;;  %4656 = vrot.lane.b32.xlu0 %v12920_v17, %s6193_s7  ;;  %v4076_v61 = vadd.f32 %v4052_v58, %v12922_v35  ;;  %v10575_v18 = vadd.f32 %v4266_v28, %v4074_v27  ;;  %v10577_v55 = vpop.eup %6026  ;;  %v4055_v54 = vmul.f32 %v10026_v16, %v10214_v6  ;;  %v12925_v41 = vld [vmem:[#allocation5_spill] sm:$0xff]  ;;  %v4209_v31 = vpop.permute.xlu0 %4208  ;;  %v12929_v21 = vld [vmem:[#allocation223_spill] sm:$0xff]  ;;  %v12930_v58 = vld [vmem:[#allocation108_spill] sm:$0xff] }
 0x3de   : > { %12919 = vst [vmem:[#allocation100_spill] sm:$0xff] %v10567_v1  ;;  %12924 = vst [vmem:[#allocation71_spill] sm:$0xff] %v10577_v55  ;;  %v4054_v5 = vmul.f32 %v12925_v41, %v10226_v44  ;;  %v2983_v17 = vmul.f32 %v10552_v15, %v12926_v20  ;;  %v4269_v1 = vmul.f32 %v12927_v22, %v4211_v7  ;;  %v10586_v38 = vpop.eup %6028  ;;  %v12931_v35 = vld [vmem:[#allocation137_spill] sm:$0xff]  ;;  %v4154_v6 = vmul.f32 1.442695, %v4109_v19  ;;  %v12933_v44 = vld [vmem:[#allocation146_spill] sm:$0xff] }
 0x3df   : > { %12923 = vst [vmem:[#allocation79_spill] sm:$0xff] %v10575_v18  ;;  %12928 = vst [vmem:[#allocation154_spill] sm:$0xff] %v10586_v38  ;;  %v3199_v27 = vmul.f32 %v10563_v30, %v12929_v21  ;;  %v4268_v28 = vmul.f32 %v12930_v58, %v4209_v31  ;;  %4662 = vrot.lane.b32.xlu1 %v12931_v35, %s6193_s7  ;;  %6038 = vpow2.f32 %v4150_v29  ;;  %v4152_v7 = vmul.f32 1.442695, %v4108_v4  ;;  %v12935_v31 = vld [vmem:[#allocation85_spill] sm:$0xff] }
 0x3e0   : > { %v10593_v18 = vadd.f32 %v4269_v1, %v4077_v34  ;;  %6040 = vpow2.f32 %v10477_v11  ;;  %v4110_v20 = vsub.f32 %v10001_v2, %v10111_v45  ;;  %v10600_v15 = vpop.eup %6030  ;;  %v3220_v21 = vadd.f32 %v3196_v25, %v2980_v40  ;;  %v4215_v1 = vpop.permute.xlu1 %4214  ;;  %v12938_v35 = vld [vmem:[#allocation73_spill] sm:$0xff]  ;;  %v12939_v11 = vld [vmem:[#allocation18_spill] sm:$0xff]  ;;  %v12942_v25 = vld [vmem:[#allocation11_spill] sm:$0xff] }
 0x3e1   : > { %4660 = vrot.lane.b32.xlu0 %v12933_v44, %s6193_s7  ;;  %12934 = vst [vmem:[#allocation188_spill] sm:$0xff] %v10600_v15  ;;  %v3412_v30 = vmul.f32 %v10577_v55, %v12935_v31  ;;  %6042 = vpow2.f32 %v3726_v8  ;;  %v10604_v29 = vadd.f32 %v4268_v28, %v4076_v61  ;;  %v10606_v19 = vpop.eup %6032  ;;  %v4079_v34 = vadd.f32 %v4055_v54, %v10106_v57  ;;  %v12940_v44 = vld [vmem:[#allocation70_spill] sm:$0xff]  ;;  %v12943_v31 = vld [vmem:[#allocation105_spill] sm:$0xff]  ;;  %v12944_v8 = vld [vmem:[#allocation159_spill] sm:$0xff] }
 0x3e2   : > { %12932 = vst [vmem:[#allocation240_spill] sm:$0xff] %v10593_v18  ;;  %12937 = vst [vmem:[#allocation185_spill] sm:$0xff] %v10606_v19  ;;  %v4057_v4 = vmul.f32 %v12939_v11, %v12938_v35  ;;  %6044 = vpow2.f32 %v3942_v62  ;;  %v4271_v2 = vmul.f32 %v12940_v44, %v4215_v1  ;;  %v4213_v18 = vpop.permute.xlu0 %4212  ;;  %v10612_v12 = vpop.eup %6034  ;;  %v4078_v40 = vadd.f32 %v4054_v5, %v12942_v25  ;;  %v12945_v28 = vld [vmem:[#allocation139_spill] sm:$0xff]  ;;  %v12947_v54 = vld [vmem:[#allocation221_spill] sm:$0xff] }
 0x3e3   : > { %12936 = vst [vmem:[#allocation168_spill] sm:$0xff] %v10604_v29  ;;  %12941 = vst [vmem:[#allocation38_spill] sm:$0xff] %v10612_v12  ;;  %v4056_v61 = vmul.f32 %v12944_v8, %v12943_v31  ;;  %v4270_v29 = vmul.f32 %v12945_v28, %v4213_v18  ;;  %6046 = vpow2.f32 %v4154_v6  ;;  %v3223_v55 = vadd.f32 %v3199_v27, %v2983_v17  ;;  %v12949_v25 = vld [vmem:[#allocation84_spill] sm:$0xff] }
 0x3e4   : > { %v10618_v26 = vadd.f32 %v4271_v2, %v4079_v34  ;;  %6048 = vpow2.f32 %v4152_v7  ;;  %v4156_v57 = vmul.f32 1.442695, %v4110_v20  ;;  %v3650_v62 = vadd.f32 %v10501_v52, %v10511_v49  ;;  %v4219_v5 = vpop.permute.xlu1 %4218  ;;  %v12950_v8 = vld [vmem:[#allocation112_spill] sm:$0xff]  ;;  %v12955_v2 = vld [vmem:[#allocation25_spill] sm:$0xff] }
 0x3e5   : > { %v3842_v1 = vmul.f32 %v10453_v37, %v12947_v54  ;;  %v3436_v35 = vadd.f32 %v3412_v30, %v3220_v21  ;;  %v10624_v63 = vadd.f32 %v4270_v29, %v4078_v40  ;;  %v4081_v31 = vadd.f32 %v4057_v4, %v12949_v25  ;;  %v12951_v17 = vld [vmem:[#allocation80_spill] sm:$0xff]  ;;  %v12956_v21 = vld [vmem:[#allocation30_spill] sm:$0xff] }
 0x3e6   : > { %12946 = vst [vmem:[#allocation147_spill] sm:$0xff] %v10618_v26  ;;  %v4059_v18 = vmul.f32 %v10428_v39, %v12950_v8  ;;  %v3415_v27 = vmul.f32 %v10612_v12, %v12951_v17  ;;  %v12952_v6 = vld [vmem:[#allocation56_spill] sm:$0xff]  ;;  %v4217_v20 = vpop.permute.xlu0 %4216  ;;  %v10632_v34 = vpop.eup %6036  ;;  %v4058_v30 = vmul.f32 %v10485_v13, %v12955_v2  ;;  %v3628_v29 = vmul.f32 %v10586_v38, %v12956_v21  ;;  %v12957_v4 = vld [vmem:[#allocation206_spill] sm:$0xff]  ;;  %v12961_v2 = vld [vmem:[#allocation89_spill] sm:$0xff] }
 0x3e7   : > { %12948 = vst [vmem:[#allocation33_spill] sm:$0xff] %v10624_v63  ;;  %v4273_v7 = vmul.f32 %v12952_v6, %v4219_v5  ;;  %12953 = vst [vmem:[#allocation88_spill] sm:$0xff] %v10632_v34  ;;  %v12954_v52 = vld [vmem:[#allocation224_spill] sm:$0xff]  ;;  %v4272_v40 = vmul.f32 %v12957_v4, %v4217_v20  ;;  %v3867_v8 = vadd.f32 %v10468_v9, %v10479_v51  ;;  %6050 = vpow2.f32 %v4156_v57  ;;  %v12964_v51 = vld [vmem:[#allocation162_spill] sm:$0xff] }
 0x3e8   : > { %v4080_v49 = vadd.f32 %v4056_v61, %v12954_v52  ;;  %v3439_v54 = vadd.f32 %v3415_v27, %v3223_v55  ;;  %v3866_v17 = vadd.f32 %v3842_v1, %v3650_v62  ;;  %v3652_v63 = vadd.f32 %v3628_v29, %v3436_v35  ;;  %v4223_v52 = vpop.permute.xlu1 %4222  ;;  %v12963_v20 = vld [vmem:[#allocation92_spill] sm:$0xff]  ;;  %v12965_v57 = vld [vmem:[#allocation35_spill] sm:$0xff] }
 0x3e9   : > { %v10642_v25 = vadd.f32 %v4273_v7, %v4081_v31  ;;  %v10644_v5 = vpop.eup %6038  ;;  %6052 = vrcp.f32 %v12961_v2  ;;  %v4083_v21 = vadd.f32 %v4059_v18, %v3867_v8  ;;  %v3631_v38 = vmul.f32 %v10632_v34, %v12963_v20  ;;  %v12967_v1 = vld [vmem:[#allocation27_spill] sm:$0xff]  ;;  %v12968_v7 = vld [vmem:[#allocation29_spill] sm:$0xff]  ;;  %v12991_v13 = vld [vmem:[#allocation196_spill] sm:$0xff] }
 0x3ea   : > { %12959 = vst [vmem:[#allocation113_spill] sm:$0xff] %v10644_v5  ;;  %v10646_v61 = vadd.f32 %v4272_v40, %v4080_v49  ;;  %v10649_v26 = vpop.eup %6040  ;;  %v4275_v55 = vmul.f32 %v10644_v5, %v4223_v52  ;;  %v4221_v9 = vpop.permute.xlu0 %4220  ;;  %v3304_v31 = vadd.f32 %v12965_v57, %v12964_v51  ;;  %v4082_v62 = vadd.f32 %v4058_v30, %v3866_v17  ;;  %v12971_v52 = vld [vmem:[#allocation193_spill] sm:$0xff]  ;;  %v12973_v51 = vld [vmem:[#allocation91_spill] sm:$0xff] }
 0x3eb   : > { %12958 = vst [vmem:[#allocation104_spill] sm:$0xff] %v10642_v25  ;;  %12962 = vst [vmem:[#allocation59_spill] sm:$0xff] %v10649_v26  ;;  %v10656_v27 = vpop.eup %6042  ;;  %v3844_v35 = vmul.f32 %v10600_v15, %v12967_v1  ;;  %v4060_v49 = vmul.f32 %v10606_v19, %v12968_v7  ;;  %v4274_v18 = vmul.f32 %v10649_v26, %v4221_v9  ;;  %6054 = vpow2.f32 %v12971_v52  ;;  %v12972_v20 = vld [vmem:[#allocation17_spill] sm:$0xff]  ;;  %v12976_v25 = vld [vmem:[#allocation219_spill] sm:$0xff] }
 0x3ec   : > { %12960 = vst [vmem:[#allocation200_spill] sm:$0xff] %v10646_v61  ;;  %12966 = vst [vmem:[#allocation114_spill] sm:$0xff] %v10656_v27  ;;  %v10663_v29 = vpop.eup %6044  ;;  %v3655_v40 = vadd.f32 %v3631_v38, %v3439_v54  ;;  %v10665_v8 = vadd.f32 %v4275_v55, %v4083_v21  ;;  %v3090_v57 = vadd.f32 %v12973_v51, %v12972_v20  ;;  %v4227_v1 = vpop.permute.xlu1 %4226  ;;  %6056 = vrcp.f32 %v12976_v25  ;;  %v12977_v7 = vld [vmem:[#allocation36_spill] sm:$0xff]  ;;  %v12980_v21 = vld [vmem:[#allocation2_spill] sm:$0xff] }
 0x3ed   : > { %12969 = vst [vmem:[#allocation86_spill] sm:$0xff] %v10663_v29  ;;  %v10670_v61 = vpop.eup %6046  ;;  %v3868_v30 = vadd.f32 %v3844_v35, %v3652_v63  ;;  %v10672_v17 = vadd.f32 %v4274_v18, %v4082_v62  ;;  %v3953_v9 = vadd.f32 %v12882_v48, %v12977_v7  ;;  %v12979_v38 = vld [vmem:[#allocation132_spill] sm:$0xff]  ;;  %v4063_v55 = vmul.f32 %v10663_v29, %v12980_v21  ;;  %v12981_v63 = vld [vmem:[#allocation118_spill] sm:$0xff]  ;;  %v12982_v62 = vld [vmem:[#allocation209_spill] sm:$0xff] }
 0x3ee   : > { %12970 = vst [vmem:[#allocation148_spill] sm:$0xff] %v10665_v8  ;;  %12974 = vst [vmem:[#allocation190_spill] sm:$0xff] %v10670_v61  ;;  %v10677_v19 = vpop.eup %6048  ;;  %v3847_v54 = vmul.f32 %v10656_v27, %v12979_v38  ;;  %v4277_v52 = vmul.f32 %v10670_v61, %v4227_v1  ;;  %v4225_v20 = vpop.permute.xlu0 %4224  ;;  %6058 = vrcp.f32 %v12981_v63  ;;  %v12983_v35 = vld [vmem:[#allocation58_spill] sm:$0xff]  ;;  %v12984_v48 = vld [vmem:[#allocation52_spill] sm:$0xff] }
 0x3ef   : > { %12975 = vst [vmem:[#allocation229_spill] sm:$0xff] %v10672_v17  ;;  %12978 = vst [vmem:[#allocation160_spill] sm:$0xff] %v10677_v19  ;;  %v4532_v18 = vsub.f32 %v12983_v35, %v12982_v62  ;;  %v4084_v51 = vadd.f32 %v4060_v49, %v3868_v30  ;;  %v4276_v17 = vmul.f32 %v10677_v19, %v4225_v20  ;;  %v12985_v15 = vld [vmem:[#allocation102_spill] sm:$0xff]  ;;  %v12987_v38 = vld [vmem:[#allocation145_spill] sm:$0xff] }
 0x3f0   : > { %v3520_v7 = vadd.f32 %v12984_v48, %v3304_v31  ;;  %v3871_v8 = vadd.f32 %v3847_v54, %v3655_v40  ;;  %v10690_v26 = vadd.f32 %v4277_v52, %v12985_v15  ;;  %v3306_v27 = vadd.f32 %v12987_v38, %v3090_v57  ;;  %v12988_v21 = vld [vmem:[#allocation24_spill] sm:$0xff]  ;;  %v12989_v29 = vld [vmem:[#allocation239_spill] sm:$0xff]  ;;  %v4231_v34 = vpop.permute.xlu1 %4230  ;;  %v13001_v19 = vld [vmem:[#allocation177_spill] sm:$0xff] }
 0x3f1   : > { %v3093_v1 = vadd.f32 %v12989_v29, %v12988_v21  ;;  %v10695_v61 = vadd.f32 %v4276_v17, %v4084_v51  ;;  %v4316_v35 = vsub.f32 %v12991_v13, %v12982_v62  ;;  %v12992_v49 = vld [vmem:[#allocation75_spill] sm:$0xff]  ;;  %v10702_v40 = vpop.eup %6050  ;;  %v12996_v15 = vld [vmem:[#allocation236_spill] sm:$0xff]  ;;  %v4279_v48 = vmul.f32 %v10546_v59, %v4231_v34  ;;  %v12998_v62 = vld [vmem:[#allocation222_spill] sm:$0xff] }
 0x3f2   : > { %12986 = vst [vmem:[#allocation123_spill] sm:$0xff] %v10690_v26  ;;  %6060 = vrcp.f32 %v12992_v49  ;;  %v12993_v30 = vld [vmem:[#allocation231_spill] sm:$0xff]  ;;  %12995 = vst [vmem:[#allocation117_spill] sm:$0xff] %v10702_v40  ;;  %v4087_v57 = vadd.f32 %v4063_v55, %v3871_v8  ;;  %v4229_v29 = vpop.permute.xlu0 %4228  ;;  %v4169_v17 = vadd.f32 %v12895_v0, %v3953_v9  ;;  %v4568_v38 = vmul.f32 1.442695, %v4532_v18  ;;  %v13003_v8 = vld [vmem:[#allocation157_spill] sm:$0xff] }
 0x3f3   : > { %12990 = vst [vmem:[#allocation21_spill] sm:$0xff] %v10695_v61  ;;  %v12994_v20 = vld [vmem:[#allocation171_spill] sm:$0xff]  ;;  %v10708_v51 = vpop.eup %6052  ;;  %v4278_v13 = vmul.f32 %v10702_v40, %v4229_v29  ;;  %v4317_v21 = vsub.f32 %v12998_v62, %v12996_v15  ;;  %v13000_v61 = vld [vmem:[#allocation49_spill] sm:$0xff]  ;;  %v3522_v34 = vadd.f32 %v13003_v8, %v3306_v27  ;;  %v13004_v55 = vld [vmem:[#allocation198_spill] sm:$0xff]  ;;  %v4352_v18 = vmul.f32 1.442695, %v4316_v35 }
 0x3f4   : > { %v3091_v31 = vadd.f32 %v12994_v20, %v12993_v30  ;;  %v12997_v54 = vld [vmem:[#allocation191_spill] sm:$0xff]  ;;  %v12999_v30 = vld [vmem:[#allocation98_spill] sm:$0xff]  ;;  %v4534_v12 = vsub.f32 %v13001_v19, %v13000_v61  ;;  %v3309_v59 = vadd.f32 %v13004_v55, %v3093_v1  ;;  %v10723_v9 = vpop.permute.xlu1 %4402  ;;  %v13013_v1 = vld [vmem:[#allocation216_spill] sm:$0xff]  ;;  %6062 = vpow2.f32 %v4568_v38 }
 0x3f5   : > { %v4533_v52 = vsub.f32 %v12997_v54, %v12996_v15  ;;  %v3736_v20 = vadd.f32 %v12999_v30, %v3520_v7  ;;  %v10716_v54 = vadd.f32 %v4279_v48, %v4087_v57  ;;  %v10721_v0 = vadd.f32 %v4278_v13, %v10418_v50  ;;  %13006 = vst [vmem:[#allocation152_spill] sm:$0xff] %v10723_v9  ;;  %v13007_v29 = vld [vmem:[#allocation158_spill] sm:$0xff]  ;;  %v13008_v15 = vld [vmem:[#allocation69_spill] sm:$0xff]  ;;  %v10728_v30 = vpop.eup %6054  ;;  %v13012_v27 = vld [vmem:[#allocation63_spill] sm:$0xff] }
 0x3f6   : > { %v3307_v40 = vadd.f32 %v13007_v29, %v3091_v31  ;;  %v13009_v62 = vld [vmem:[#allocation54_spill] sm:$0xff]  ;;  %13010 = vst [vmem:[#allocation205_spill] sm:$0xff] %v10728_v30  ;;  %v10730_v57 = vpop.permute.xlu0 %4400  ;;  %v4318_v48 = vsub.f32 %v13012_v27, %v13000_v61  ;;  %v10735_v8 = vadd.f32 %v13013_v1, %v4169_v17  ;;  %v13015_v13 = vld [vmem:[#allocation7_spill] sm:$0xff]  ;;  %v10739_v35 = vpop.eup %6056  ;;  %v10748_v61 = vmul.f32 %v10708_v51, %v12961_v2  ;;  %v13019_v1 = vld [vmem:[#allocation121_spill] sm:$0xff] }
 0x3f7   : > { %13002 = vst [vmem:[#allocation203_spill] sm:$0xff] %v10716_v54  ;;  %13005 = vst [vmem:[#allocation179_spill] sm:$0xff] %v10721_v0  ;;  %v3092_v7 = vadd.f32 %v13009_v62, %v13008_v15  ;;  %v4570_v19 = vmul.f32 1.442695, %v4533_v52  ;;  %v13014_v50 = vld [vmem:[#allocation6_spill] sm:$0xff]  ;;  %v3952_v52 = vadd.f32 %v12885_v56, %v3736_v20  ;;  %v13018_v17 = vld [vmem:[#allocation47_spill] sm:$0xff]  ;;  %6064 = vpow2.f32 %v4352_v18 }
 0x3f8   : > { %13011 = vst [vmem:[#allocation46_spill] sm:$0xff] %v10730_v57  ;;  %v3095_v55 = vadd.f32 %v13015_v13, %v13014_v50  ;;  %v13016_v31 = vld [vmem:[#allocation210_spill] sm:$0xff]  ;;  %v4354_v62 = vmul.f32 1.442695, %v4317_v21  ;;  %v10744_v54 = vpop.eup %6058  ;;  %v4572_v0 = vmul.f32 1.442695, %v4534_v12  ;;  %v3738_v27 = vadd.f32 %v13018_v17, %v3522_v34  ;;  %v10754_v9 = vpop.permute.xlu1 %4406 }
 0x3f9   : > { %v13017_v29 = vld [vmem:[#allocation174_spill] sm:$0xff]  ;;  %v3525_v50 = vadd.f32 %v13019_v1, %v3309_v59  ;;  %v13020_v13 = vld [vmem:[#allocation241_spill] sm:$0xff]  ;;  %13022 = vst [vmem:[#allocation202_spill] sm:$0xff] %v10754_v9  ;;  %v13023_v21 = vld [vmem:[#allocation111_spill] sm:$0xff]  ;;  %6066 = vpow2.f32 %v4570_v19  ;;  %v4356_v37 = vmul.f32 1.442695, %v4318_v48 }
 0x3fa   : > { %v4535_v15 = vsub.f32 %v13017_v29, %v13016_v31  ;;  %v13021_v57 = vld [vmem:[#allocation170_spill] sm:$0xff]  ;;  %v3523_v29 = vadd.f32 %v13023_v21, %v3307_v40  ;;  %v13024_v56 = vld [vmem:[#allocation61_spill] sm:$0xff]  ;;  %v10758_v12 = vpop.permute.xlu0 %4404  ;;  %v13026_v2 = vld [vmem:[#allocation96_spill] sm:$0xff]  ;;  %6068 = vpow2.f32 %v4354_v62  ;;  %v4168_v40 = vadd.f32 %v12899_v42, %v3952_v52 }
 0x3fb   : > { %v4536_v38 = vsub.f32 %v13021_v57, %v13020_v13  ;;  %v3308_v20 = vadd.f32 %v13024_v56, %v3092_v7  ;;  %13025 = vst [vmem:[#allocation128_spill] sm:$0xff] %v10758_v12  ;;  %v13027_v26 = vld [vmem:[#allocation180_spill] sm:$0xff]  ;;  %v13028_v34 = vld [vmem:[#allocation9_spill] sm:$0xff]  ;;  %6070 = vpow2.f32 %v4572_v0  ;;  %v13031_v19 = vld [vmem:[#allocation110_spill] sm:$0xff]  ;;  %v3954_v48 = vadd.f32 %v12898_v36, %v3738_v27 }
 0x3fc   : > { %v4531_v5 = vsub.f32 %v13027_v26, %v13026_v2  ;;  %v3311_v17 = vadd.f32 %v13028_v34, %v3095_v55  ;;  %v10763_v59 = vpop.eup %6060  ;;  %v4574_v1 = vmul.f32 1.442695, %v4535_v15  ;;  %v13029_v57 = vld [vmem:[#allocation165_spill] sm:$0xff]  ;;  %v13032_v56 = vld [vmem:[#allocation103_spill] sm:$0xff]  ;;  %v10772_v2 = vpop.permute.xlu1 %4410  ;;  %6072 = vpow2.f32 %v4356_v37 }
 0x3fd   : > { %v4319_v18 = vsub.f32 %v13029_v57, %v13016_v31  ;;  %v13030_v7 = vld [vmem:[#allocation133_spill] sm:$0xff]  ;;  %v3741_v12 = vadd.f32 %v13032_v56, %v3525_v50  ;;  %v4576_v26 = vmul.f32 1.442695, %v4536_v38  ;;  %v13034_v62 = vld [vmem:[#allocation235_spill] sm:$0xff] }
 0x3fe   : > { %v4321_v21 = vsub.f32 %v13031_v19, %v13030_v7  ;;  %v13033_v55 = vld [vmem:[#allocation125_spill] sm:$0xff]  ;;  %v3739_v34 = vadd.f32 %v13034_v62, %v3523_v29  ;;  %v13035_v9 = vld [vmem:[#allocation15_spill] sm:$0xff]  ;;  %v10780_v52 = vpop.permute.xlu0 %4408  ;;  %v4566_v57 = vmul.f32 1.442695, %v4531_v5  ;;  %6074 = vpow2.f32 %v4574_v1  ;;  %v13041_v29 = vld [vmem:[#allocation136_spill] sm:$0xff]  ;;  %v10791_v37 = vpop.eup %6062 }
 0x3ff   : > { %v4320_v15 = vsub.f32 %v13033_v55, %v13020_v13  ;;  %v3524_v31 = vadd.f32 %v13035_v9, %v3308_v20  ;;  %v13036_v42 = vld [vmem:[#allocation13_spill] sm:$0xff]  ;;  %v13037_v36 = vld [vmem:[#allocation199_spill] sm:$0xff]  ;;  %v4358_v19 = vmul.f32 1.442695, %v4319_v18  ;;  %v4540_v9 = vsub.f32 %v13041_v29, %v10253_v33  ;;  %13042 = vst [vmem:[#allocation208_spill] sm:$0xff] %v10791_v37 }
 0x400   : > { %v4538_v0 = vsub.f32 %v13036_v42, %v10071_v24  ;;  %v3527_v27 = vadd.f32 %v13037_v36, %v3311_v17  ;;  %v13038_v50 = vld [vmem:[#allocation201_spill] sm:$0xff]  ;;  %v13039_v56 = vld [vmem:[#allocation135_spill] sm:$0xff]  ;;  %v4362_v20 = vmul.f32 1.442695, %v4321_v21  ;;  %v4170_v62 = vadd.f32 %v12913_v10, %v3954_v48  ;;  %v10793_v5 = vpop.permute.xlu1 %4414  ;;  %v13045_v21 = vld [vmem:[#allocation42_spill] sm:$0xff] }
 0x401   : > { %v4539_v38 = vsub.f32 %v13038_v50, %v10165_v46  ;;  %v13040_v13 = vld [vmem:[#allocation3_spill] sm:$0xff]  ;;  %v3957_v42 = vadd.f32 %v12904_v53, %v3741_v12  ;;  %6076 = vpow2.f32 %v4576_v26  ;;  %v4360_v17 = vmul.f32 1.442695, %v4320_v15  ;;  %v13043_v18 = vld [vmem:[#allocation197_spill] sm:$0xff]  ;;  %v10801_v48 = vpop.eup %6064  ;;  %v13047_v12 = vld [vmem:[#allocation48_spill] sm:$0xff] }
 0x402   : > { %v3094_v55 = vadd.f32 %v13040_v13, %v13039_v56  ;;  %v3955_v1 = vadd.f32 %v12894_v43, %v3739_v34  ;;  %v3740_v36 = vadd.f32 %v13043_v18, %v3524_v31  ;;  %v4580_v50 = vmul.f32 1.442695, %v4538_v0  ;;  %v10797_v56 = vpop.permute.xlu0 %4412  ;;  %v13044_v13 = vld [vmem:[#allocation228_spill] sm:$0xff]  ;;  %13046 = vst [vmem:[#allocation115_spill] sm:$0xff] %v10801_v48  ;;  %v13048_v15 = vld [vmem:[#allocation97_spill] sm:$0xff] }
 0x403   : > { %v4384_v29 = vadd.f32 %v13044_v13, %v4168_v40  ;;  %6078 = vpow2.f32 %v4566_v57  ;;  %v3743_v10 = vadd.f32 %v13045_v21, %v3527_v27  ;;  %v4582_v53 = vmul.f32 1.442695, %v4539_v38  ;;  %v10808_v34 = vpop.eup %6066  ;;  %v13051_v27 = vld [vmem:[#allocation8_spill] sm:$0xff] }
 0x404   : > { %6080 = vpow2.f32 %v4358_v19  ;;  %v10805_v26 = vadd.f32 %v13047_v12, %v10735_v8  ;;  %v3310_v43 = vadd.f32 %v13048_v15, %v3094_v55  ;;  %13049 = vst [vmem:[#allocation161_spill] sm:$0xff] %v10808_v34  ;;  %v4584_v31 = vmul.f32 1.442695, %v4540_v9  ;;  %v10812_v57 = vpop.eup %6068  ;;  %v10816_v19 = vpop.permute.xlu1 %4418  ;;  %v13053_v9 = vld [vmem:[#allocation211_spill] sm:$0xff] }
 0x405   : > { %6082 = vpow2.f32 %v4362_v20  ;;  %v4386_v0 = vadd.f32 %v10728_v30, %v4170_v62  ;;  %v4173_v40 = vadd.f32 %v12927_v22, %v3957_v42  ;;  %13050 = vst [vmem:[#allocation218_spill] sm:$0xff] %v10812_v57  ;;  %v4541_v38 = vsub.f32 %v13051_v27, %v9938_v14  ;;  %v10820_v18 = vpop.eup %6070  ;;  %v13054_v22 = vld [vmem:[#allocation77_spill] sm:$0xff]  ;;  %v13059_v27 = vld [vmem:[#allocation119_spill] sm:$0xff]  ;;  %v13068_v30 = vld [vmem:[#allocation164_spill] sm:$0xff] }
 0x406   : > { %6084 = vpow2.f32 %v4360_v17  ;;  %v4171_v8 = vadd.f32 %v12910_v32, %v3955_v1  ;;  %v3956_v55 = vadd.f32 %v12905_v3, %v3740_v36  ;;  %13052 = vst [vmem:[#allocation214_spill] sm:$0xff] %v10820_v18  ;;  %v4542_v20 = vsub.f32 %v13053_v9, %v10111_v45  ;;  %v10824_v62 = vpop.permute.xlu0 %4416  ;;  %v13055_v32 = vld [vmem:[#allocation90_spill] sm:$0xff]  ;;  %v13056_v1 = vld [vmem:[#allocation233_spill] sm:$0xff]  ;;  %v10837_v15 = vpop.eup %6072 }
 0x407   : > { %6086 = vpow2.f32 %v4580_v50  ;;  %v10827_v42 = vadd.f32 %v13054_v22, %v4384_v29  ;;  %v3959_v21 = vadd.f32 %v10026_v16, %v3743_v10  ;;  %v10832_v17 = vmul.f32 %v10739_v35, %v12976_v25  ;;  %v13057_v36 = vld [vmem:[#allocation10_spill] sm:$0xff]  ;;  %13058 = vst [vmem:[#allocation94_spill] sm:$0xff] %v10837_v15  ;;  %v13060_v29 = vld [vmem:[#allocation127_spill] sm:$0xff] }
 0x408   : > { %6088 = vpow2.f32 %v4582_v53  ;;  %v3526_v3 = vadd.f32 %v13055_v32, %v3310_v43  ;;  %v3097_v50 = vadd.f32 %v13057_v36, %v13056_v1  ;;  %v4322_v9 = vsub.f32 %v13059_v27, %v10071_v24  ;;  %v10845_v10 = vpop.eup %6074  ;;  %v10847_v53 = vpop.permute.xlu1 %4422  ;;  %v13062_v43 = vld [vmem:[#allocation122_spill] sm:$0xff] }
 0x409   : > { %6090 = vpow2.f32 %v4584_v31  ;;  %v10842_v22 = vadd.f32 %v13060_v29, %v4386_v0  ;;  %v4389_v16 = vadd.f32 %v10812_v57, %v4173_v40  ;;  %13061 = vst [vmem:[#allocation62_spill] sm:$0xff] %v10845_v10  ;;  %v4586_v25 = vmul.f32 1.442695, %v4541_v38  ;;  %v13064_v0 = vld [vmem:[#allocation184_spill] sm:$0xff]  ;;  %v13065_v40 = vld [vmem:[#allocation182_spill] sm:$0xff]  ;;  %v13067_v38 = vld [vmem:[#allocation23_spill] sm:$0xff] }
 0x40a   : > { %6092 = vrcp.f32 %v10805_v26  ;;  %v4387_v32 = vadd.f32 %v13062_v43, %v4171_v8  ;;  %v4172_v1 = vadd.f32 %v12930_v58, %v3956_v55  ;;  %v4588_v31 = vmul.f32 1.442695, %v4542_v20  ;;  %v10852_v36 = vpop.permute.xlu0 %4420  ;;  %v13069_v8 = vld [vmem:[#allocation156_spill] sm:$0xff]  ;;  %v13070_v58 = vld [vmem:[#allocation19_spill] sm:$0xff] }
 0x40b   : > { %13063 = vst [vmem:[#allocation99_spill] sm:$0xff] %v10852_v36  ;;  %6094 = vrcp.f32 %v10827_v42  ;;  %v4175_v24 = vadd.f32 %v12940_v44, %v3959_v21  ;;  %v3096_v27 = vadd.f32 %v13065_v40, %v13064_v0  ;;  %v10858_v29 = vpop.eup %6076  ;;  %v4325_v57 = vsub.f32 %v13067_v38, %v9938_v14  ;;  %v13071_v36 = vld [vmem:[#allocation176_spill] sm:$0xff]  ;;  %v13075_v40 = vld [vmem:[#allocation175_spill] sm:$0xff] }
 0x40c   : > { %13066 = vst [vmem:[#allocation65_spill] sm:$0xff] %v10858_v29  ;;  %v3742_v12 = vadd.f32 %v13068_v30, %v3526_v3  ;;  %v3313_v43 = vadd.f32 %v13069_v8, %v3097_v50  ;;  %v3099_v55 = vadd.f32 %v10354_v47, %v13070_v58  ;;  %v4323_v44 = vsub.f32 %v13071_v36, %v10165_v46  ;;  %v10880_v3 = vpop.permute.xlu1 %4426  ;;  %v13077_v58 = vld [vmem:[#allocation68_spill] sm:$0xff] }
 0x40d   : > { %v10866_v20 = vpop.eup %6078  ;;  %v10872_v21 = vmul.f32 %v10744_v54, %v12981_v63  ;;  %6096 = vrcp.f32 %v10842_v22  ;;  %v10876_v14 = vadd.f32 %v10808_v34, %v4389_v16  ;;  %v4789_v47 = vsub.f32 2.0, %v10748_v61 }
 0x40e   : > { %v10878_v30 = vpop.eup %6080  ;;  %6098 = vpow2.f32 %v4586_v25  ;;  %v10884_v50 = vadd.f32 %v10866_v20, %v4387_v32  ;;  %v4388_v46 = vadd.f32 %v10801_v48, %v4172_v1  ;;  %v10889_v63 = vpop.permute.xlu0 %4424  ;;  %v4364_v0 = vmul.f32 1.442695, %v4322_v9 }
 0x40f   : > { %13072 = vst [vmem:[#allocation95_spill] sm:$0xff] %v10878_v30  ;;  %v10887_v36 = vpop.eup %6082  ;;  %6100 = vpow2.f32 %v4588_v31  ;;  %13074 = vst [vmem:[#allocation230_spill] sm:$0xff] %v10889_v63  ;;  %v4391_v16 = vadd.f32 %v10878_v30, %v4175_v24  ;;  %v3312_v38 = vadd.f32 %v13075_v40, %v3096_v27  ;;  %v4370_v8 = vmul.f32 1.442695, %v4325_v57  ;;  %v13078_v31 = vld [vmem:[#allocation138_spill] sm:$0xff] }
 0x410   : > { %13073 = vst [vmem:[#allocation120_spill] sm:$0xff] %v10887_v36  ;;  %v10893_v25 = vpop.eup %6084  ;;  %v3958_v61 = vadd.f32 %v12925_v41, %v3742_v12  ;;  %v3529_v32 = vadd.f32 %v13077_v58, %v3313_v43  ;;  %v3315_v34 = vadd.f32 %v10395_v23, %v3099_v55  ;;  %v4366_v48 = vmul.f32 1.442695, %v4323_v44  ;;  %v10906_v27 = vpop.permute.xlu1 %4430  ;;  %v13081_v12 = vld [vmem:[#allocation194_spill] sm:$0xff]  ;;  %v13083_v43 = vld [vmem:[#allocation16_spill] sm:$0xff] }
 0x411   : > { %13076 = vst [vmem:[#allocation131_spill] sm:$0xff] %v10893_v25  ;;  %v10898_v1 = vpop.eup %6086  ;;  %v4326_v63 = vsub.f32 %v13078_v31, %v10111_v45  ;;  %v4788_v9 = vsub.f32 2.0, %v10832_v17  ;;  %6102 = vrcp.f32 %v10876_v14  ;;  %13080 = vst [vmem:[#allocation34_spill] sm:$0xff] %v10906_v27  ;;  %v10910_v41 = vmul.f32 %v10763_v59, %v12992_v49  ;;  %v13084_v44 = vld [vmem:[#allocation204_spill] sm:$0xff] }
 0x412   : > { %v10904_v24 = vpop.eup %6088  ;;  %6104 = vrcp.f32 %v10884_v50  ;;  %v10914_v23 = vadd.f32 %v10791_v37, %v4388_v46  ;;  %v4537_v45 = vsub.f32 %v13081_v12, %v13030_v7  ;;  %v10920_v17 = vpop.permute.xlu0 %4428  ;;  %v4324_v55 = vsub.f32 %v13083_v43, %v10253_v33  ;;  %v13085_v7 = vld [vmem:[#allocation72_spill] sm:$0xff]  ;;  %v13086_v12 = vld [vmem:[#allocation238_spill] sm:$0xff] }
 0x413   : > { %13079 = vst [vmem:[#allocation83_spill] sm:$0xff] %v10904_v24  ;;  %v10918_v57 = vpop.eup %6090  ;;  %13082 = vst [vmem:[#allocation87_spill] sm:$0xff] %v10920_v17  ;;  %6106 = vpow2.f32 %v4364_v0  ;;  %v10925_v49 = vadd.f32 %v10845_v10, %v4391_v16  ;;  %v3528_v40 = vadd.f32 %v13084_v44, %v3312_v38  ;;  %v4174_v46 = vadd.f32 %v12945_v28, %v3958_v61  ;;  %v13087_v0 = vld [vmem:[#allocation26_spill] sm:$0xff]  ;;  %v13089_v10 = vld [vmem:[#allocation232_spill] sm:$0xff] }
 0x414   : > { %v10928_v58 = vpop.eup %6092  ;;  %6108 = vpow2.f32 %v4370_v8  ;;  %v3745_v31 = vadd.f32 %v13085_v7, %v3529_v32  ;;  %v3531_v37 = vadd.f32 %v13086_v12, %v3315_v34  ;;  %v4327_v33 = vsub.f32 %v13087_v0, %v10373_v60  ;;  %v13088_v16 = vld [vmem:[#allocation22_spill] sm:$0xff]  ;;  %v10939_v38 = vpop.permute.xlu1 %4434  ;;  %v13093_v7 = vld [vmem:[#allocation12_spill] sm:$0xff] }
 0x415   : > { %v10933_v17 = vpop.eup %6094  ;;  %6110 = vpow2.f32 %v4366_v48  ;;  %v4372_v43 = vmul.f32 1.442695, %v4326_v63  ;;  %v3098_v30 = vadd.f32 %v13089_v10, %v13088_v16  ;;  %13090 = vst [vmem:[#allocation149_spill] sm:$0xff] %v10939_v38  ;;  %v10943_v8 = vmul.f32 %v10708_v51, %v4789_v47  ;;  %v13092_v32 = vld [vmem:[#allocation150_spill] sm:$0xff] }
 0x416   : > { %v4791_v28 = vsub.f32 2.0, %v10872_v21  ;;  %6112 = vrcp.f32 %v10914_v23  ;;  %v4578_v34 = vmul.f32 1.442695, %v4537_v45  ;;  %v10949_v61 = vpop.permute.xlu0 %4432  ;;  %v4368_v63 = vmul.f32 1.442695, %v4324_v55 }
 0x417   : > { %v10947_v48 = vpop.eup %6096  ;;  %13091 = vst [vmem:[#allocation66_spill] sm:$0xff] %v10949_v61  ;;  %v4769_v10 = vmul.f32 %v10928_v58, %v10805_v26  ;;  %6114 = vrcp.f32 %v10925_v49  ;;  %v3744_v44 = vadd.f32 %v13092_v32, %v3528_v40  ;;  %v4768_v21 = vmul.f32 %v10933_v17, %v10827_v42  ;;  %v13095_v40 = vld [vmem:[#allocation44_spill] sm:$0xff] }
 0x418   : > { %v10955_v51 = vpop.eup %6098  ;;  %v4390_v47 = vadd.f32 %v10837_v15, %v4174_v46  ;;  %v3961_v45 = vadd.f32 %v12939_v11, %v3745_v31  ;;  %v3747_v12 = vadd.f32 %v13093_v7, %v3531_v37  ;;  %v4374_v55 = vmul.f32 1.442695, %v4327_v33  ;;  %v10972_v42 = vpop.permute.xlu1 %4438  ;;  %v13097_v37 = vld [vmem:[#allocation60_spill] sm:$0xff]  ;;  %v13098_v31 = vld [vmem:[#allocation155_spill] sm:$0xff] }
 0x419   : > { %v10962_v0 = vpop.eup %6100  ;;  %6116 = vpow2.f32 %v4372_v43  ;;  %v4790_v26 = vsub.f32 2.0, %v10910_v41  ;;  %v3314_v16 = vadd.f32 %v13095_v40, %v3098_v30  ;;  %13096 = vst [vmem:[#allocation226_spill] sm:$0xff] %v10972_v42  ;;  %v10975_v46 = vmul.f32 %v10739_v35, %v4788_v9  ;;  %v13100_v35 = vld [vmem:[#allocation159_spill] sm:$0xff] }
 0x41a   : > { %v4770_v11 = vmul.f32 %v10947_v48, %v10842_v22  ;;  %6118 = vpow2.f32 %v4578_v34  ;;  %v3101_v33 = vadd.f32 %v13098_v31, %v13097_v37  ;;  %v10983_v32 = vpop.permute.xlu0 %4436  ;;  %v10986_v30 = vmul.f32 %v10744_v54, %v4791_v28  ;;  %v13101_v28 = vld [vmem:[#allocation57_spill] sm:$0xff]  ;;  %v13116_v42 = vld [vmem:[#allocation151_spill] sm:$0xff] }
 0x41b   : > { %v10981_v43 = vpop.eup %6102  ;;  %13099 = vst [vmem:[#allocation141_spill] sm:$0xff] %v10983_v32  ;;  %6120 = vpow2.f32 %v4368_v63  ;;  %v4793_v41 = vsub.f32 2.0, %v4769_v10  ;;  %v3960_v9 = vadd.f32 %v13100_v35, %v3744_v44  ;;  %v4792_v22 = vsub.f32 2.0, %v4768_v21  ;;  %v13102_v10 = vld [vmem:[#allocation213_spill] sm:$0xff]  ;;  %v13103_v44 = vld [vmem:[#allocation74_spill] sm:$0xff] }
 0x41c   : > { %v10989_v7 = vpop.eup %6104  ;;  %v10992_v40 = vadd.f32 %v10820_v18, %v4390_v47  ;;  %v4177_v34 = vadd.f32 %v12952_v6, %v3961_v45  ;;  %v3963_v37 = vadd.f32 %v10428_v39, %v3747_v12  ;;  %6122 = vpow2.f32 %v4374_v55  ;;  %v4443_v6 = vpop.permute.xlu1 %4442  ;;  %v13104_v12 = vld [vmem:[#allocation130_spill] sm:$0xff]  ;;  %v13105_v35 = vld [vmem:[#allocation45_spill] sm:$0xff] }
 0x41d   : > { %v10996_v31 = vpop.eup %6106  ;;  %v11005_v54 = vmul.f32 %v10763_v59, %v4790_v26  ;;  %v3530_v63 = vadd.f32 %v13101_v28, %v3314_v16  ;;  %v3100_v21 = vadd.f32 %v13103_v44, %v13102_v10  ;;  %v4794_v45 = vsub.f32 2.0, %v4770_v11  ;;  %v13106_v32 = vld [vmem:[#allocation142_spill] sm:$0xff] }
 0x41e   : > { %v11010_v47 = vpop.eup %6108  ;;  %v11014_v39 = vmul.f32 %v10981_v43, %v10876_v14  ;;  %v3317_v55 = vadd.f32 %v13104_v12, %v3101_v33  ;;  %v3103_v59 = vadd.f32 %v13106_v32, %v13105_v35  ;;  %v11022_v28 = vpop.permute.xlu0 %4440  ;;  %v11025_v10 = vmul.f32 %v10928_v58, %v4793_v41  ;;  %v13112_v58 = vld [vmem:[#allocation123_spill] sm:$0xff] }
 0x41f   : > { %v11019_v26 = vpop.eup %6110  ;;  %v4493_v16 = vmul.f32 %v11010_v47, %v4443_v6  ;;  %13108 = vst [vmem:[#allocation31_spill] sm:$0xff] %v11022_v28  ;;  %v11029_v14 = vmul.f32 %v10989_v7, %v10884_v50  ;;  %v4176_v11 = vadd.f32 %v12957_v4, %v3960_v9  ;;  %v11035_v44 = vmul.f32 %v10933_v17, %v4792_v22  ;;  %v13110_v6 = vld [vmem:[#allocation113_spill] sm:$0xff]  ;;  %v13114_v50 = vld [vmem:[#allocation14_spill] sm:$0xff]  ;;  %v13115_v9 = vld [vmem:[#allocation71_spill] sm:$0xff] }
 0x420   : > { %13107 = vst [vmem:[#allocation140_spill] sm:$0xff] %v11019_v26  ;;  %v11032_v33 = vpop.eup %6112  ;;  %6124 = vrcp.f32 %v10992_v40  ;;  %v4393_v32 = vadd.f32 %v10887_v36, %v4177_v34  ;;  %v4179_v12 = vadd.f32 %v13110_v6, %v3963_v37  ;;  %v3746_v4 = vadd.f32 %v13114_v50, %v3530_v63  ;;  %v13117_v17 = vld [vmem:[#allocation55_spill] sm:$0xff]  ;;  %v11051_v18 = vpop.permute.xlu1 %4446  ;;  %v13120_v6 = vld [vmem:[#allocation28_spill] sm:$0xff]  ;;  %v13123_v50 = vld [vmem:[#allocation189_spill] sm:$0xff] }
 0x421   : > { %13109 = vst [vmem:[#allocation186_spill] sm:$0xff] %v11032_v33  ;;  %v11040_v35 = vpop.eup %6114  ;;  %v11043_v41 = vadd.f32 %v4493_v16, %v13112_v58  ;;  %v3316_v28 = vadd.f32 %v13115_v9, %v3100_v21  ;;  %v3102_v22 = vadd.f32 %v13117_v17, %v13116_v42  ;;  %13118 = vst [vmem:[#allocation129_spill] sm:$0xff] %v11051_v18  ;;  %v13121_v58 = vld [vmem:[#allocation38_spill] sm:$0xff]  ;;  %v13122_v63 = vld [vmem:[#allocation152_spill] sm:$0xff] }
 0x422   : > { %13111 = vst [vmem:[#allocation172_spill] sm:$0xff] %v11040_v35  ;;  %v11054_v34 = vmul.f32 %v10947_v48, %v4794_v45  ;;  %v3533_v16 = vadd.f32 %v13120_v6, %v3317_v55  ;;  %v4473_v21 = vmul.f32 %v13123_v50, %v13122_v63  ;;  %v4445_v9 = vpop.permute.xlu0 %4444  ;;  %v11066_v17 = vmul.f32 %v11032_v33, %v10914_v23  ;;  %v13125_v55 = vld [vmem:[#allocation46_spill] sm:$0xff]  ;;  %v13133_v33 = vld [vmem:[#allocation153_spill] sm:$0xff] }
 0x423   : > { %13113 = vst [vmem:[#allocation215_spill] sm:$0xff] %v11043_v41  ;;  %v3319_v41 = vadd.f32 %v13121_v58, %v3103_v59  ;;  %v11059_v61 = vpop.eup %6116  ;;  %v4392_v48 = vadd.f32 %v10893_v25, %v4176_v11  ;;  %v13126_v6 = vld [vmem:[#allocation126_spill] sm:$0xff]  ;;  %v11078_v63 = vmul.f32 %v11040_v35, %v10925_v49  ;;  %v4395_v50 = vadd.f32 %v11019_v26, %v4179_v12  ;;  %v13131_v25 = vld [vmem:[#allocation179_spill] sm:$0xff]  ;;  %v13134_v35 = vld [vmem:[#allocation88_spill] sm:$0xff] }
 0x424   : > { %13119 = vst [vmem:[#allocation101_spill] sm:$0xff] %v11054_v34  ;;  %v11069_v45 = vpop.eup %6118  ;;  %v4472_v59 = vmul.f32 %v13126_v6, %v13125_v55  ;;  %v4494_v58 = vmul.f32 %v11059_v61, %v4445_v9  ;;  %v13128_v42 = vld [vmem:[#allocation78_spill] sm:$0xff]  ;;  %v13130_v6 = vld [vmem:[#allocation40_spill] sm:$0xff]  ;;  %v4619_v38 = vpop.permute.xlu1 %4618  ;;  %v3749_v49 = vadd.f32 %v13133_v33, %v3533_v16  ;;  %v13135_v12 = vld [vmem:[#allocation169_spill] sm:$0xff] }
 0x425   : > { %13124 = vst [vmem:[#allocation39_spill] sm:$0xff] %v11069_v45  ;;  %13127 = vst [vmem:[#allocation144_spill] sm:$0xff] %v11078_v63  ;;  %v11081_v23 = vpop.eup %6120  ;;  %v11084_v11 = vadd.f32 %v11069_v45, %v4393_v32  ;;  %v3962_v37 = vadd.f32 %v13128_v42, %v3746_v4  ;;  %v13129_v18 = vld [vmem:[#allocation154_spill] sm:$0xff]  ;;  %v3318_v9 = vadd.f32 %v13130_v6, %v3102_v22  ;;  %v13136_v32 = vld [vmem:[#allocation51_spill] sm:$0xff] }
 0x426   : > { %v3532_v55 = vadd.f32 %v13129_v18, %v3316_v28  ;;  %v11090_v36 = vadd.f32 %v4494_v58, %v13131_v25  ;;  %v3535_v63 = vadd.f32 %v13134_v35, %v3319_v41  ;;  %v4543_v26 = vsub.f32 %v13135_v12, %v10373_v60  ;;  %v11096_v34 = vpop.eup %6122  ;;  %v13137_v4 = vld [vmem:[#allocation202_spill] sm:$0xff]  ;;  %v13139_v28 = vld [vmem:[#allocation181_spill] sm:$0xff]  ;;  %v4617_v25 = vpop.permute.xlu0 %4616  ;;  %v13140_v33 = vld [vmem:[#allocation227_spill] sm:$0xff] }
 0x427   : > { %v4497_v45 = vadd.f32 %v4473_v21, %v13136_v32  ;;  %v13138_v42 = vld [vmem:[#allocation166_spill] sm:$0xff]  ;;  %v4689_v22 = vmul.f32 %v13139_v28, %v4619_v38  ;;  %v11104_v58 = vadd.f32 %v10858_v29, %v4392_v48  ;;  %v4496_v35 = vadd.f32 %v4472_v59, %v13140_v33  ;;  %v13141_v41 = vld [vmem:[#allocation128_spill] sm:$0xff]  ;;  %v13142_v16 = vld [vmem:[#allocation195_spill] sm:$0xff] }
 0x428   : > { %13132 = vst [vmem:[#allocation4_spill] sm:$0xff] %v11090_v36  ;;  %v4475_v18 = vmul.f32 %v13138_v42, %v13137_v4  ;;  %v4474_v60 = vmul.f32 %v13142_v16, %v13141_v41  ;;  %v13143_v6 = vld [vmem:[#allocation173_spill] sm:$0xff]  ;;  %v11111_v21 = vadd.f32 %v10904_v24, %v4395_v50  ;;  %v13144_v4 = vld [vmem:[#allocation59_spill] sm:$0xff]  ;;  %v13145_v36 = vld [vmem:[#allocation188_spill] sm:$0xff]  ;;  %v4623_v59 = vpop.permute.xlu1 %4622  ;;  %6126 = vrcp.f32 %v11084_v11 }
 0x429   : > { %v4688_v12 = vmul.f32 %v13143_v6, %v4617_v25  ;;  %v4713_v32 = vadd.f32 %v4689_v22, %v4497_v45  ;;  %v4178_v42 = vadd.f32 %v13144_v4, %v3962_v37  ;;  %v3748_v38 = vadd.f32 %v13145_v36, %v3532_v55  ;;  %v13146_v28 = vld [vmem:[#allocation32_spill] sm:$0xff]  ;;  %v13147_v25 = vld [vmem:[#allocation93_spill] sm:$0xff]  ;;  %v13148_v33 = vld [vmem:[#allocation114_spill] sm:$0xff] }
 0x42a   : > { %v3534_v15 = vadd.f32 %v13146_v28, %v3318_v9  ;;  %v11116_v27 = vpop.eup %6124  ;;  %v3965_v50 = vadd.f32 %v13147_v25, %v3749_v49  ;;  %v3751_v45 = vadd.f32 %v13148_v33, %v3535_v63  ;;  %v4590_v37 = vmul.f32 1.442695, %v4543_v26  ;;  %v13149_v22 = vld [vmem:[#allocation237_spill] sm:$0xff]  ;;  %v13150_v55 = vld [vmem:[#allocation207_spill] sm:$0xff]  ;;  %v4621_v28 = vpop.permute.xlu0 %4620  ;;  %v13156_v63 = vld [vmem:[#allocation192_spill] sm:$0xff] }
 0x42b   : > { %v4712_v48 = vadd.f32 %v4688_v12, %v4496_v35  ;;  %v4499_v36 = vadd.f32 %v4475_v18, %v13149_v22  ;;  %v4477_v9 = vmul.f32 %v13150_v55, %v10772_v2  ;;  %v13151_v41 = vld [vmem:[#allocation81_spill] sm:$0xff]  ;;  %v13153_v24 = vld [vmem:[#allocation67_spill] sm:$0xff]  ;;  %v4690_v33 = vmul.f32 %v13156_v63, %v4621_v28  ;;  %v13160_v55 = vld [vmem:[#allocation86_spill] sm:$0xff] }
 0x42c   : > { %v4833_v16 = vmul.f32 %v13151_v41, %v4713_v32  ;;  %v13152_v6 = vld [vmem:[#allocation41_spill] sm:$0xff]  ;;  %v4498_v29 = vadd.f32 %v4474_v60, %v13153_v24  ;;  %v13154_v35 = vld [vmem:[#allocation163_spill] sm:$0xff]  ;;  %v4627_v60 = vpop.permute.xlu1 %4626  ;;  %6128 = vpow2.f32 %v4590_v37  ;;  %v13164_v28 = vld [vmem:[#allocation212_spill] sm:$0xff] }
 0x42d   : > { %v4691_v4 = vmul.f32 %v13152_v6, %v4623_v59  ;;  %v4476_v12 = vmul.f32 %v13154_v35, %v10780_v52  ;;  %v13155_v49 = vld [vmem:[#allocation107_spill] sm:$0xff]  ;;  %v13157_v2 = vld [vmem:[#allocation185_spill] sm:$0xff]  ;;  %v13159_v59 = vld [vmem:[#allocation190_spill] sm:$0xff]  ;;  %6130 = vrcp.f32 %v11104_v58 }
 0x42e   : > { %v4832_v25 = vmul.f32 %v13155_v49, %v4712_v48  ;;  %4859 = vst.msk [vmem:[%s11121_s21 + $0x7] sm:$0xff] %vm4858_vm4, %v4833_v16  ;;  %v3964_v18 = vadd.f32 %v13157_v2, %v3748_v38  ;;  %v13158_v32 = vld [vmem:[#allocation53_spill] sm:$0xff]  ;;  %v4714_v24 = vadd.f32 %v4690_v33, %v4498_v29  ;;  %v4181_v52 = vadd.f32 %v13159_v59, %v3965_v50  ;;  %v13161_v41 = vld [vmem:[#allocation143_spill] sm:$0xff]  ;;  %v4625_v35 = vpop.permute.xlu0 %4624  ;;  %v13165_v49 = vld [vmem:[#allocation178_spill] sm:$0xff] }
 0x42f   : > { %v4715_v26 = vadd.f32 %v4691_v4, %v4499_v36  ;;  %v3750_v22 = vadd.f32 %v13158_v32, %v3534_v15  ;;  %v3967_v48 = vadd.f32 %v13160_v55, %v3751_v45  ;;  %v4501_v16 = vadd.f32 %v4477_v9, %v13161_v41  ;;  %v13162_v36 = vld [vmem:[#allocation220_spill] sm:$0xff]  ;;  %v13163_v4 = vld [vmem:[#allocation106_spill] sm:$0xff]  ;;  %v13166_v29 = vld [vmem:[#allocation43_spill] sm:$0xff] }
 0x430   : > { %4857 = vst.msk [vmem:[%s11121_s21 - $0x1] sm:$0xfe] %vm4856_vm5, %v4832_v25  ;;  %v4479_v6 = vmul.f32 %v13162_v36, %v10793_v5  ;;  %v4693_v15 = vmul.f32 %v13164_v28, %v4627_v60  ;;  %v4500_v25 = vadd.f32 %v4476_v12, %v13165_v49  ;;  %v4478_v63 = vmul.f32 %v13166_v29, %v10797_v56  ;;  %v13167_v50 = vld [vmem:[#allocation187_spill] sm:$0xff]  ;;  %v13168_v45 = vld [vmem:[#allocation64_spill] sm:$0xff]  ;;  %v13172_v41 = vld [vmem:[#allocation82_spill] sm:$0xff] }
 0x431   : > { %v4835_v38 = vmul.f32 %v13163_v4, %v4715_v26  ;;  %v4834_v33 = vmul.f32 %v13167_v50, %v4714_v24  ;;  %v4692_v2 = vmul.f32 %v13168_v45, %v4625_v35  ;;  %v4394_v9 = vadd.f32 %v10996_v31, %v4178_v42  ;;  %v13169_v5 = vld [vmem:[#allocation160_spill] sm:$0xff]  ;;  %v13170_v26 = vld [vmem:[#allocation37_spill] sm:$0xff]  ;;  %v4631_v60 = vpop.permute.xlu1 %4630  ;;  %v13171_v24 = vld [vmem:[#allocation183_spill] sm:$0xff] }
 0x432   : > { %v4717_v37 = vadd.f32 %v4693_v15, %v4501_v16  ;;  %v4180_v32 = vadd.f32 %v13169_v5, %v3964_v18  ;;  %v3966_v59 = vadd.f32 %v13170_v26, %v3750_v22  ;;  %v4397_v56 = vadd.f32 %v11010_v47, %v4181_v52  ;;  %v13173_v42 = vld [vmem:[#allocation216_spill] sm:$0xff]  ;;  %v13174_v22 = vld [vmem:[#allocation50_spill] sm:$0xff] }
 0x433   : > { %4862 = vst.msk [vmem:[%s11121_s21 + $0xf] sm:$0xfe] %vm4856_vm5, %v4835_v38  ;;  %v4716_v12 = vadd.f32 %v4692_v2, %v4500_v25  ;;  %v4183_v55 = vadd.f32 %v13171_v24, %v3967_v48  ;;  %v4503_v16 = vadd.f32 %v4479_v6, %v13172_v41  ;;  %v4481_v36 = vmul.f32 %v13173_v42, %v10816_v19  ;;  %v4629_v38 = vpop.permute.xlu0 %4628  ;;  %v13175_v28 = vld [vmem:[#allocation234_spill] sm:$0xff]  ;;  %v13176_v52 = vld [vmem:[#allocation116_spill] sm:$0xff]  ;;  %v13184_v41 = vld [vmem:[#allocation77_spill] sm:$0xff] }
 0x434   : > { %4861 = vst.msk [vmem:[%s11121_s21 + $0xf] sm:$0x1] %vm4860_vm6, %v4834_v33  ;;  %v4837_v18 = vmul.f32 %v10943_v8, %v4717_v37  ;;  %v4695_v4 = vmul.f32 %v13174_v22, %v4631_v60  ;;  %v4502_v15 = vadd.f32 %v4478_v63, %v13175_v28  ;;  %v4480_v35 = vmul.f32 %v13044_v13, %v10824_v62  ;;  %v13177_v8 = vld [vmem:[#allocation117_spill] sm:$0xff]  ;;  %v13178_v50 = vld [vmem:[#allocation76_spill] sm:$0xff]  ;;  %v13179_v45 = vld [vmem:[#allocation122_spill] sm:$0xff] }
 0x435   : > { %v4836_v47 = vmul.f32 %v10975_v46, %v4716_v12  ;;  %v4694_v49 = vmul.f32 %v13176_v52, %v4629_v38  ;;  %v11177_v6 = vadd.f32 %v10898_v1, %v4394_v9  ;;  %v4396_v19 = vadd.f32 %v11081_v23, %v4180_v32  ;;  %v4635_v63 = vpop.permute.xlu1 %4634  ;;  %v11188_v46 = vpop.eup %6126  ;;  %v13180_v9 = vld [vmem:[#allocation48_spill] sm:$0xff]  ;;  %v13182_v60 = vld [vmem:[#allocation99_spill] sm:$0xff] }
 0x436   : > { %4864 = vst.msk [vmem:[%s11121_s21 + $0x1f] sm:$0x1] %vm4860_vm6, %v4837_v18  ;;  %v4719_v48 = vadd.f32 %v4695_v4, %v4503_v16  ;;  %v4182_v25 = vadd.f32 %v13177_v8, %v3966_v59  ;;  %6132 = vrcp.f32 %v11111_v21  ;;  %v11185_v13 = vadd.f32 %v10955_v51, %v4397_v56  ;;  %v11195_v26 = vpop.eup %6128  ;;  %v13181_v59 = vld [vmem:[#allocation217_spill] sm:$0xff]  ;;  %v13186_v38 = vld [vmem:[#allocation100_spill] sm:$0xff] }
 0x437   : > { %4863 = vst.msk [vmem:[%s11121_s21 + $0x17] sm:$0xff] %vm4858_vm4, %v4836_v47  ;;  %v4718_v29 = vadd.f32 %v4694_v49, %v4502_v15  ;;  %v4399_v62 = vadd.f32 %v11096_v34, %v4183_v55  ;;  %v4505_v33 = vadd.f32 %v4481_v36, %v13178_v50  ;;  %v4483_v2 = vmul.f32 %v13179_v45, %v10847_v53  ;;  %v4633_v32 = vpop.permute.xlu0 %4632  ;;  %v13183_v56 = vld [vmem:[#allocation205_spill] sm:$0xff]  ;;  %v13187_v15 = vld [vmem:[#allocation218_spill] sm:$0xff]  ;;  %v11223_v49 = vpop.eup %6130 }
 0x438   : > { %v4839_v37 = vmul.f32 %v10986_v30, %v4719_v48  ;;  %v4697_v5 = vmul.f32 %v13180_v9, %v4635_v63  ;;  %v4504_v12 = vadd.f32 %v4480_v35, %v13181_v59  ;;  %v4482_v24 = vmul.f32 %v13183_v56, %v13182_v60  ;;  %v13189_v48 = vld [vmem:[#allocation230_spill] sm:$0xff]  ;;  %v13197_v56 = vld [vmem:[#allocation168_spill] sm:$0xff] }
 0x439   : > { %v4838_v55 = vmul.f32 %v11005_v54, %v4718_v29  ;;  %v4696_v16 = vmul.f32 %v13184_v41, %v4633_v32  ;;  %6134 = vrcp.f32 %v11177_v6  ;;  %v11206_v53 = vadd.f32 %v10918_v57, %v4396_v19  ;;  %v4639_v18 = vpop.permute.xlu1 %4638  ;;  %v13190_v19 = vld [vmem:[#allocation115_spill] sm:$0xff]  ;;  %v13196_v32 = vld [vmem:[#allocation161_spill] sm:$0xff] }
 0x43a   : > { %4866 = vst.msk [vmem:[%s11121_s21 + $0x27] sm:$0xff] %vm4858_vm4, %v4839_v37  ;;  %v4721_v42 = vadd.f32 %v4697_v5, %v4505_v33  ;;  %v4398_v30 = vadd.f32 %v11059_v61, %v4182_v25  ;;  %v13185_v22 = vsub.f32 2.0, %v11014_v39  ;;  %6136 = vrcp.f32 %v11185_v13  ;;  %v13188_v39 = vld [vmem:[#allocation79_spill] sm:$0xff] }
 0x43b   : > { %4865 = vst.msk [vmem:[%s11121_s21 + $0x1f] sm:$0xfe] %vm4856_vm5, %v4838_v55  ;;  %v4720_v36 = vadd.f32 %v4696_v16, %v4504_v12  ;;  %v11216_v4 = vadd.f32 %v11195_v26, %v4399_v62  ;;  %v4507_v28 = vadd.f32 %v4483_v2, %v13186_v38  ;;  %v4485_v61 = vmul.f32 %v13187_v15, %v10880_v3  ;;  %v4637_v52 = vpop.permute.xlu0 %4636  ;;  %v13191_v29 = vld [vmem:[#allocation127_spill] sm:$0xff]  ;;  %v13194_v2 = vld [vmem:[#allocation34_spill] sm:$0xff] }
 0x43c   : > { %v4821_v54 = vmul.f32 %v10981_v43, %v13185_v22  ;;  %v4841_v35 = vmul.f32 %v11025_v10, %v4721_v42  ;;  %v4699_v47 = vmul.f32 %v10866_v20, %v4639_v18  ;;  %v4506_v43 = vadd.f32 %v4482_v24, %v13188_v39  ;;  %v13195_v37 = vld [vmem:[#allocation95_spill] sm:$0xff]  ;;  %v13199_v55 = vld [vmem:[#allocation94_spill] sm:$0xff]  ;;  %v13201_v42 = vld [vmem:[#allocation208_spill] sm:$0xff] }
 0x43d   : > { %v4484_v8 = vmul.f32 %v13190_v19, %v13189_v48  ;;  %v4840_v25 = vmul.f32 %v11035_v44, %v4720_v36  ;;  %v4698_v63 = vmul.f32 %v13191_v29, %v4637_v52  ;;  %v13192_v3 = vsub.f32 2.0, %v11029_v14  ;;  %v4643_v33 = vpop.permute.xlu1 %4642  ;;  %v13193_v14 = vld [vmem:[#allocation240_spill] sm:$0xff]  ;;  %v13205_v19 = vld [vmem:[#allocation149_spill] sm:$0xff]  ;;  %v13207_v29 = vld [vmem:[#allocation62_spill] sm:$0xff] }
 0x43e   : > { %4868 = vst.msk [vmem:[%s11121_s21 + $0x2f] sm:$0xfe] %vm4856_vm5, %v4841_v35  ;;  %v4723_v62 = vadd.f32 %v4699_v47, %v4507_v28  ;;  %6138 = vrcp.f32 %v11206_v53  ;;  %v11237_v20 = vadd.f32 %v10962_v0, %v4398_v30  ;;  %v4796_v44 = vsub.f32 2.0, %v11066_v17  ;;  %v13198_v17 = vld [vmem:[#allocation87_spill] sm:$0xff]  ;;  %v13202_v18 = vld [vmem:[#allocation144_spill] sm:$0xff]  ;;  %v13203_v28 = vld [vmem:[#allocation186_spill] sm:$0xff] }
 0x43f   : > { %v4819_v10 = vmul.f32 %v10989_v7, %v13192_v3  ;;  %4867 = vst.msk [vmem:[%s11121_s21 + $0x2f] sm:$0x1] %vm4860_vm6, %v4840_v25  ;;  %v4722_v50 = vadd.f32 %v4698_v63, %v4506_v43  ;;  %v4774_v45 = vmul.f32 %v11116_v27, %v10992_v40  ;;  %6140 = vrcp.f32 %v11216_v4  ;;  %v4641_v12 = vpop.permute.xlu0 %4640  ;;  %v13200_v40 = vld [vmem:[#allocation101_spill] sm:$0xff]  ;;  %v13204_v43 = vld [vmem:[#allocation147_spill] sm:$0xff] }
 0x440   : > { %v4509_v7 = vadd.f32 %v4485_v61, %v13193_v14  ;;  %v4487_v9 = vmul.f32 %v13195_v37, %v13194_v2  ;;  %v4701_v59 = vmul.f32 %v13196_v32, %v4643_v33  ;;  %v11249_v60 = vpop.eup %6132  ;;  %v4508_v24 = vadd.f32 %v4484_v8, %v13197_v56  ;;  %v13206_v8 = vld [vmem:[#allocation120_spill] sm:$0xff]  ;;  %v13209_v33 = vld [vmem:[#allocation66_spill] sm:$0xff] }
 0x441   : > { %v4843_v5 = vmul.f32 %v4819_v10, %v4723_v62  ;;  %v4486_v41 = vmul.f32 %v13199_v55, %v13198_v17  ;;  %v4842_v16 = vmul.f32 %v13200_v40, %v4722_v50  ;;  %v4700_v30 = vmul.f32 %v13201_v42, %v4641_v12  ;;  %v4647_v35 = vpop.permute.xlu1 %4646  ;;  %v13208_v62 = vld [vmem:[#allocation33_spill] sm:$0xff]  ;;  %v13212_v2 = vld [vmem:[#allocation172_spill] sm:$0xff]  ;;  %v13214_v40 = vld [vmem:[#allocation226_spill] sm:$0xff] }
 0x442   : > { %v4725_v36 = vadd.f32 %v4701_v59, %v4509_v7  ;;  %v4799_v22 = vsub.f32 2.0, %v13202_v18  ;;  %v4777_v38 = vmul.f32 %v11188_v46, %v11084_v11  ;;  %6142 = vrcp.f32 %v11237_v20  ;;  %v13213_v55 = vld [vmem:[#allocation104_spill] sm:$0xff] }
 0x443   : > { %4870 = vst.msk [vmem:[%s11121_s21 + $0x3f] sm:$0x1] %vm4860_vm6, %v4843_v5  ;;  %v4820_v15 = vmul.f32 %v13203_v28, %v4796_v44  ;;  %v4724_v61 = vadd.f32 %v4700_v30, %v4508_v24  ;;  %v4798_v47 = vsub.f32 2.0, %v4774_v45  ;;  %v4776_v52 = vmul.f32 %v11223_v49, %v11104_v58  ;;  %v6135_v39 = vpop.eup %6134  ;;  %v4645_v3 = vpop.permute.xlu0 %4644  ;;  %v13210_v44 = vld [vmem:[#allocation131_spill] sm:$0xff]  ;;  %v13211_v58 = vld [vmem:[#allocation214_spill] sm:$0xff]  ;;  %v13218_v28 = vld [vmem:[#allocation141_spill] sm:$0xff] }
 0x444   : > { %4869 = vst.msk [vmem:[%s11121_s21 + $0x37] sm:$0xff] %vm4858_vm4, %v4842_v16  ;;  %v4511_v48 = vadd.f32 %v4487_v9, %v13204_v43  ;;  %v4489_v11 = vmul.f32 %v13206_v8, %v13205_v19  ;;  %v4845_v25 = vmul.f32 %v4821_v54, %v4725_v36  ;;  %v4703_v63 = vmul.f32 %v13207_v29, %v4647_v35  ;;  %v11271_v10 = vpop.eup %6136  ;;  %v13215_v16 = vld [vmem:[#allocation140_spill] sm:$0xff]  ;;  %v13216_v36 = vld [vmem:[#allocation39_spill] sm:$0xff]  ;;  %v13219_v35 = vld [vmem:[#allocation65_spill] sm:$0xff] }
 0x445   : > { %v4510_v50 = vadd.f32 %v4486_v41, %v13208_v62  ;;  %v4488_v45 = vmul.f32 %v13210_v44, %v13209_v33  ;;  %v4844_v14 = vmul.f32 %v4820_v15, %v4724_v61  ;;  %v4702_v7 = vmul.f32 %v13211_v58, %v4645_v3  ;;  %v4651_v12 = vpop.permute.xlu1 %4650  ;;  %v13221_v62 = vld [vmem:[#allocation83_spill] sm:$0xff]  ;;  %v13222_v44 = vld [vmem:[#allocation229_spill] sm:$0xff] }
 0x446   : > { %4872 = vst.msk [vmem:[%s11121_s21 + $0x47] sm:$0xff] %vm4858_vm4, %v4845_v25  ;;  %v4823_v37 = vmul.f32 %v13212_v2, %v4799_v22  ;;  %v4727_v9 = vadd.f32 %v4703_v63, %v4511_v48  ;;  %v4801_v5 = vsub.f32 2.0, %v4777_v38  ;;  %v4779_v54 = vmul.f32 %v11249_v60, %v11111_v21  ;;  %v13217_v38 = vld [vmem:[#allocation200_spill] sm:$0xff] }
 0x447   : > { %4871 = vst.msk [vmem:[%s11121_s21 + $0x3f] sm:$0xfe] %vm4856_vm5, %v4844_v14  ;;  %v4822_v32 = vmul.f32 %v11116_v27, %v4798_v47  ;;  %v4726_v59 = vadd.f32 %v4702_v7, %v4510_v50  ;;  %v4800_v56 = vsub.f32 2.0, %v4776_v52  ;;  %v4778_v24 = vmul.f32 %v6135_v39, %v11177_v6  ;;  %v4649_v18 = vpop.permute.xlu0 %4648  ;;  %v13220_v63 = vld [vmem:[#allocation148_spill] sm:$0xff] }
 0x448   : > { %v6139_v17 = vpop.eup %6138  ;;  %v4513_v41 = vadd.f32 %v4489_v11, %v13213_v55  ;;  %v4491_v42 = vmul.f32 %v13215_v16, %v13214_v40  ;;  %v4847_v30 = vmul.f32 %v4823_v37, %v4727_v9  ;;  %v4705_v21 = vmul.f32 %v13216_v36, %v4651_v12  ;;  %v13226_v40 = vld [vmem:[#allocation215_spill] sm:$0xff] }
 0x449   : > { %v6141_v22 = vpop.eup %6140  ;;  %v4512_v27 = vadd.f32 %v4488_v45, %v13217_v38  ;;  %v4490_v15 = vmul.f32 %v10996_v31, %v13218_v28  ;;  %v4846_v61 = vmul.f32 %v4822_v32, %v4726_v59  ;;  %v4704_v6 = vmul.f32 %v13219_v35, %v4649_v18  ;;  %v4655_v11 = vpop.permute.xlu1 %4654  ;;  %v13223_v45 = vld [vmem:[#allocation31_spill] sm:$0xff]  ;;  %v13224_v59 = vld [vmem:[#allocation129_spill] sm:$0xff] }
 0x44a   : > { %4874 = vst.msk [vmem:[%s11121_s21 + $0x4f] sm:$0xfe] %vm4856_vm5, %v4847_v30  ;;  %v4825_v47 = vmul.f32 %v11188_v46, %v4801_v5  ;;  %v4729_v52 = vadd.f32 %v4705_v21, %v4513_v41  ;;  %v4803_v43 = vsub.f32 2.0, %v4779_v54  ;;  %v4781_v48 = vmul.f32 %v11271_v10, %v11185_v13  ;;  %v13227_v36 = vld [vmem:[#allocation203_spill] sm:$0xff] }
 0x44b   : > { %4873 = vst.msk [vmem:[%s11121_s21 + $0x4f] sm:$0x1] %vm4860_vm6, %v4846_v61  ;;  %v4824_v19 = vmul.f32 %v11223_v49, %v4800_v56  ;;  %v4728_v8 = vadd.f32 %v4704_v6, %v4512_v27  ;;  %v4802_v31 = vsub.f32 2.0, %v4778_v24  ;;  %v4780_v25 = vmul.f32 %v6139_v17, %v11206_v53  ;;  %v4653_v33 = vpop.permute.xlu0 %4652  ;;  %v13225_v24 = vld [vmem:[#allocation21_spill] sm:$0xff]  ;;  %v13228_v61 = vld [vmem:[#allocation4_spill] sm:$0xff] }
 0x44c   : > { %v6143_v29 = vpop.eup %6142  ;;  %v4515_v3 = vadd.f32 %v4491_v42, %v13220_v63  ;;  %v4849_v46 = vmul.f32 %v4825_v47, %v4729_v52  ;;  %v4707_v50 = vmul.f32 %v13221_v62, %v4655_v11  ;;  %v4514_v13 = vadd.f32 %v4490_v15, %v13222_v44 }
 0x44d   : > { %v4492_v14 = vmul.f32 %v11081_v23, %v13223_v45  ;;  %v4848_v58 = vmul.f32 %v4824_v19, %v4728_v8  ;;  %v4706_v49 = vmul.f32 %v10898_v1, %v4653_v33  ;;  %v4827_v7 = vmul.f32 %v11249_v60, %v4803_v43  ;;  %v4659_v54 = vpop.permute.xlu1 %4658 }
 0x44e   : > { %4876 = vst.msk [vmem:[%s11121_s21 + $0x5f] sm:$0x1] %vm4860_vm6, %v4849_v46  ;;  %v4731_v53 = vadd.f32 %v4707_v50, %v4515_v3  ;;  %v4805_v2 = vsub.f32 2.0, %v4781_v48  ;;  %v4783_v37 = vmul.f32 %v6141_v22, %v11216_v4  ;;  %v4826_v9 = vmul.f32 %v6135_v39, %v4802_v31 }
 0x44f   : > { %4875 = vst.msk [vmem:[%s11121_s21 + $0x57] sm:$0xff] %vm4858_vm4, %v4848_v58  ;;  %v4730_v5 = vadd.f32 %v4706_v49, %v4514_v13  ;;  %v4804_v32 = vsub.f32 2.0, %v4780_v25  ;;  %v4782_v23 = vmul.f32 %v6143_v29, %v11237_v20  ;;  %v4495_v1 = vmul.f32 %v11096_v34, %v13224_v59  ;;  %v4657_v56 = vpop.permute.xlu0 %4656 }
 0x450   : > { %v4851_v12 = vmul.f32 %v4827_v7, %v4731_v53  ;;  %v4709_v60 = vmul.f32 %v10955_v51, %v4659_v54  ;;  %v4516_v55 = vadd.f32 %v4492_v14, %v13225_v24  ;;  %v4708_v4 = vmul.f32 %v10918_v57, %v4657_v56 }
 0x451   : > { %v4850_v41 = vmul.f32 %v4826_v9, %v4730_v5  ;;  %v4829_v39 = vmul.f32 %v11271_v10, %v4805_v2  ;;  %v4807_v20 = vsub.f32 2.0, %v4783_v37  ;;  %v4828_v34 = vmul.f32 %v6139_v17, %v4804_v32  ;;  %v4663_v51 = vpop.permute.xlu1 %4662 }
 0x452   : > { %4878 = vst.msk [vmem:[%s11121_s21 + $0x67] sm:$0xff] %vm4858_vm4, %v4851_v12  ;;  %v4733_v16 = vadd.f32 %v4709_v60, %v13226_v40  ;;  %v4732_v42 = vadd.f32 %v4708_v4, %v4516_v55  ;;  %v4806_v30 = vsub.f32 2.0, %v4782_v23  ;;  %v4519_v21 = vadd.f32 %v4495_v1, %v13227_v36 }
 0x453   : > { %4877 = vst.msk [vmem:[%s11121_s21 + $0x5f] sm:$0xfe] %vm4856_vm5, %v4850_v41  ;;  %v4711_v18 = vmul.f32 %v11195_v26, %v4663_v51  ;;  %v4661_v38 = vpop.permute.xlu0 %4660  ;;  %v4831_v28 = vmul.f32 %v6141_v22, %v4807_v20 }
 0x454   : > { %v4853_v57 = vmul.f32 %v4829_v39, %v4733_v16  ;;  %v4852_v27 = vmul.f32 %v4828_v34, %v4732_v42  ;;  %v4710_v10 = vmul.f32 %v10962_v0, %v4661_v38  ;;  %v4830_v17 = vmul.f32 %v6143_v29, %v4806_v30 }
 0x455   : > { %v4735_v15 = vadd.f32 %v4711_v18, %v4519_v21 }
 0x456   : > { %4880 = vst.msk [vmem:[%s11121_s21 + $0x6f] sm:$0xfe] %vm4856_vm5, %v4853_v57  ;;  %v4734_v35 = vadd.f32 %v4710_v10, %v13228_v61 }
 0x457   : > { %4879 = vst.msk [vmem:[%s11121_s21 + $0x6f] sm:$0x1] %vm4860_vm6, %v4852_v27  ;;  %v4855_v6 = vmul.f32 %v4831_v28, %v4735_v15 }
 0x458   : > { %v4854_v47 = vmul.f32 %v4830_v17, %v4734_v35 }
 0x459   : > { %4882 = vst.msk [vmem:[%s11121_s21 + $0x7f] sm:$0x1] %vm4860_vm6, %v4855_v6 }
 0x45a   : > { %4881 = vst.msk [vmem:[%s11121_s21 + $0x77] sm:$0xff] %vm4858_vm4, %v4854_v47 }
 0x45b PF: > { %s12_s13 = sadd.s32 1, %s6182_s13   ;;  %s13229_s9 = smov %s6174_s11 }
 0x45c   : > { %p9_p8 = scmp.ge.s32.totalorder %s12_s13, 6   ;;  %s13230_s10 = smov %s6178_s12 }
 0x45d   : > { %s13231_s11 = smov %s13234_s14  ;;  %s13232_s12 = smov %s13238_s15 }
 0x45e   :  { %11 = sbr.rel (!%p9_p8) target bundleno = 3 (0x3), region = 58 }

</bundles_post_ra>
